<compile_context>
chip_gen: v7x
topology: tpu7x:2x2x1
jax: 0.10.0
libtpu: 0.0.40
codegen_flags: <defaults>
</compile_context>

<pallas_src>
import jax
import jax.numpy as jnp
from jax.experimental import pallas as pl
from jax.experimental.pallas import tpu as pltpu

_LANE = 128
_ROW_PAD = 512     # node-dim padding granularity (keeps row tiles large)
_TM_CAP = 512      # output-row tile cap
_TK_CAP = 2048     # contraction tile cap over A's columns (nodes)
_TKF_CAP = 512     # contraction tile cap over features (pass 1)


def _round_up(x, m):
    return ((x + m - 1) // m) * m


def _pick_tile(total, cap):
    # largest power-of-two tile <= cap that divides `total` (total is a
    # multiple of 128, cap is a power of two >= 128, so this terminates).
    t = cap
    while total % t != 0:
        t //= 2
    return t


def _pad_to(a, shape):
    pads = [(0, s - d) for d, s in zip(a.shape, shape)]
    return jnp.pad(a, pads)


def _vmem_limit_bytes():
    # Generation-aware VMEM budget: v5e/v6e have 128 MiB physical VMEM,
    # v7x only 64 MiB. Leave ~25% headroom for Mosaic's own scratch.
    cap = None
    try:
        cap = getattr(pltpu.get_tpu_info(), "vmem_capacity_bytes", None)
    except Exception:
        cap = None
    if not cap:
        return 48 * 1024 * 1024
    return int(min(cap * 3 // 4, 96 * 1024 * 1024))


# ---------------------------------------------------------------------------
# Kernels
# ---------------------------------------------------------------------------

def _proj_kernel(x_ref, w_ref, t_ref, acc_ref):
    # T_all = x @ [Wl | W1 | W2]; feature contraction tiled on grid axis 1.
    k = pl.program_id(1)

    @pl.when(k == 0)
    def _():
        acc_ref[...] = jnp.zeros_like(acc_ref)

    acc_ref[...] += jnp.dot(x_ref[...], w_ref[...],
                            preferred_element_type=jnp.float32)

    @pl.when(k == pl.num_programs(1) - 1)
    def _():
        t_ref[...] = acc_ref[...].astype(t_ref.dtype)


def _prop_proj_kernel(a1_ref, a2_ref, t1_ref, t2_ref, x0_ref, bsum_ref,
                      wnext_ref, t_out_ref, acc_ref):
    # h = A1 @ T1 + A2 @ T2 + x0 + (bl + b1 + b2); then project for next block.
    # All matmul operands already bf16 in HBM/VMEM; accumulation in f32.
    k = pl.program_id(1)

    @pl.when(k == 0)
    def _():
        acc_ref[...] = jnp.zeros_like(acc_ref)

    acc_ref[...] += (
        jnp.dot(a1_ref[...], t1_ref[...], preferred_element_type=jnp.float32)
        + jnp.dot(a2_ref[...], t2_ref[...], preferred_element_type=jnp.float32)
    )

    @pl.when(k == pl.num_programs(1) - 1)
    def _():
        h = acc_ref[...] + x0_ref[...].astype(jnp.float32) + bsum_ref[...]
        t_out_ref[...] = jnp.dot(
            h.astype(jnp.bfloat16), wnext_ref[...],
            preferred_element_type=jnp.float32).astype(t_out_ref.dtype)


def _prop_head_kernel(a1_ref, a2_ref, t1_ref, t2_ref, x0_ref, bsum_ref,
                      wconv_ref, bconv_ref, logp_ref, p_ref, acc_ref):
    # Second block propagation + Conv1d(k=1)-as-linear head + softmax.
    k = pl.program_id(1)

    @pl.when(k == 0)
    def _():
        acc_ref[...] = jnp.zeros_like(acc_ref)

    acc_ref[...] += (
        jnp.dot(a1_ref[...], t1_ref[...], preferred_element_type=jnp.float32)
        + jnp.dot(a2_ref[...], t2_ref[...], preferred_element_type=jnp.float32)
    )

    @pl.when(k == pl.num_programs(1) - 1)
    def _():
        h = acc_ref[...] + x0_ref[...].astype(jnp.float32) + bsum_ref[...]
        # dropout (eval mode) -> identity.
        # bconv_ref holds -1e30 in padded class lanes so softmax ignores them.
        logits = jnp.dot(h.astype(jnp.bfloat16), wconv_ref[...],
                         preferred_element_type=jnp.float32) + bconv_ref[...]
        m = jnp.max(logits, axis=1, keepdims=True)
        z = logits - m
        ez = jnp.exp(z)
        s = jnp.sum(ez, axis=1, keepdims=True)
        logp_ref[...] = z - jnp.log(s)
        p_ref[...] = ez * pl.reciprocal(s, approx=False)


# ---------------------------------------------------------------------------
# Wrapper
# ---------------------------------------------------------------------------

def digcn_ib_forward(x, a1, a2, params):
    N, F = x.shape
    H = params["wl1"].shape[1]
    C = params["wconv"].shape[1]

    Fp = _round_up(F, _LANE)
    Hp = _round_up(H, _LANE)
    Cp = _round_up(C, _LANE)
    Np = _round_up(N, _ROW_PAD)

    TM = _pick_tile(Np, _TM_CAP)    # output-row tile
    TK = _pick_tile(Np, _TK_CAP)    # contraction tile over A's columns
    TKF = _pick_tile(Fp, _TKF_CAP)  # contraction tile over features (pass 1)
    vmem_limit = _vmem_limit_bytes()

    # --- padded / fused bf16 operands (glue) ---
    x_p = _pad_to(x, (Np, Fp)).astype(jnp.bfloat16)
    a1_p = _pad_to(a1, (Np, Np)).astype(jnp.bfloat16)
    a2_p = _pad_to(a2, (Np, Np)).astype(jnp.bfloat16)

    wcat1 = jnp.concatenate([_pad_to(params["wl1"], (Fp, Hp)),
                             _pad_to(params["wc11"], (Fp, Hp)),
                             _pad_to(params["wc12"], (Fp, Hp))],
                            axis=1).astype(jnp.bfloat16)
    bsum1 = _pad_to(params["bl1"] + params["bc11"] + params["bc12"], (1, Hp))

    wcat2 = jnp.concatenate([_pad_to(params["wl2"], (Hp, Hp)),
                             _pad_to(params["wc21"], (Hp, Hp)),
                             _pad_to(params["wc22"], (Hp, Hp))],
                            axis=1).astype(jnp.bfloat16)
    bsum2 = _pad_to(params["bl2"] + params["bc21"] + params["bc22"], (1, Hp))

    wconv = _pad_to(params["wconv"], (Hp, Cp)).astype(jnp.bfloat16)
    bconv = jnp.full((1, Cp), -1e30, jnp.float32).at[:, :C].set(params["bconv"])

    # --- pass 1: projection T1_all = x @ Wcat1 (feature axis tiled) ---
    t_all1 = pl.pallas_call(
        _proj_kernel,
        out_shape=jax.ShapeDtypeStruct((Np, 3 * Hp), jnp.bfloat16),
        grid_spec=pltpu.PrefetchScalarGridSpec(
            num_scalar_prefetch=0,
            grid=(Np // TM, Fp // TKF),
            in_specs=[pl.BlockSpec((TM, TKF), lambda i, k: (i, k)),
                      pl.BlockSpec((TKF, 3 * Hp), lambda i, k: (k, 0))],
            out_specs=pl.BlockSpec((TM, 3 * Hp), lambda i, k: (i, 0)),
            scratch_shapes=[pltpu.VMEM((TM, 3 * Hp), jnp.float32)],
        ),
        compiler_params=pltpu.CompilerParams(
            dimension_semantics=("parallel", "arbitrary"),
            vmem_limit_bytes=vmem_limit),
        cost_estimate=pl.CostEstimate(
            flops=2 * Np * Fp * 3 * Hp,
            transcendentals=0,
            bytes_accessed=2 * (Np * Fp + (Np // TM) * Fp * 3 * Hp
                                + Np * 3 * Hp)),
    )(x_p, wcat1)

    # common specs for the tiled A-propagation passes (i: output rows, k: contraction)
    prop_in_specs = [
        pl.BlockSpec((TM, TK), lambda i, k: (i, k)),   # A1 tile (bf16)
        pl.BlockSpec((TM, TK), lambda i, k: (i, k)),   # A2 tile (bf16)
        pl.BlockSpec((TK, Hp), lambda i, k: (k, 1)),   # T1 rows (col block 1 of T_all)
        pl.BlockSpec((TK, Hp), lambda i, k: (k, 2)),   # T2 rows (col block 2 of T_all)
        pl.BlockSpec((TM, Hp), lambda i, k: (i, 0)),   # x0 rows (col block 0 of T_all)
        pl.BlockSpec((1, Hp), lambda i, k: (0, 0)),    # summed bias (f32)
    ]
    prop_flops = 2 * 2 * Np * Np * Hp
    # bf16 A read once per pass + (Np//TM)-fold re-streaming of bf16 T1/T2 + x0
    prop_bytes = (2 * (2 * Np * Np)
                  + 2 * ((Np // TM) * 2 * Np * Hp + Np * Hp))

    # --- pass 2: block-1 propagation fused with block-2 projection ---
    t_all2 = pl.pallas_call(
        _prop_proj_kernel,
        out_shape=jax.ShapeDtypeStruct((Np, 3 * Hp), jnp.bfloat16),
        grid_spec=pltpu.PrefetchScalarGridSpec(
            num_scalar_prefetch=0,
            grid=(Np // TM, Np // TK),
            in_specs=prop_in_specs + [
                pl.BlockSpec((Hp, 3 * Hp), lambda i, k: (0, 0)),   # Wcat2 (bf16)
            ],
            out_specs=pl.BlockSpec((TM, 3 * Hp), lambda i, k: (i, 0)),
            scratch_shapes=[pltpu.VMEM((TM, Hp), jnp.float32)],
        ),
        compiler_params=pltpu.CompilerParams(
            dimension_semantics=("parallel", "arbitrary"),
            vmem_limit_bytes=vmem_limit),
        cost_estimate=pl.CostEstimate(
            flops=prop_flops + 2 * Np * Hp * 3 * Hp,
            transcendentals=0,
            bytes_accessed=prop_bytes + 2 * Np * 3 * Hp),
    )(a1_p, a2_p, t_all1, t_all1, t_all1, bsum1, wcat2)

    # --- pass 3: block-2 propagation fused with Conv1d head + softmax ---
    logp_pad, p_pad = pl.pallas_call(
        _prop_head_kernel,
        out_shape=(jax.ShapeDtypeStruct((Np, Cp), jnp.float32),
                   jax.ShapeDtypeStruct((Np, Cp), jnp.float32)),
        grid_spec=pltpu.PrefetchScalarGridSpec(
            num_scalar_prefetch=0,
            grid=(Np // TM, Np // TK),
            in_specs=prop_in_specs + [
                pl.BlockSpec((Hp, Cp), lambda i, k: (0, 0)),   # Wconv (bf16)
                pl.BlockSpec((1, Cp), lambda i, k: (0, 0)),    # padded Conv bias
            ],
            out_specs=(pl.BlockSpec((TM, Cp), lambda i, k: (i, 0)),
                       pl.BlockSpec((TM, Cp), lambda i, k: (i, 0))),
            scratch_shapes=[pltpu.VMEM((TM, Hp), jnp.float32)],
        ),
        compiler_params=pltpu.CompilerParams(
            dimension_semantics=("parallel", "arbitrary"),
            vmem_limit_bytes=vmem_limit),
        cost_estimate=pl.CostEstimate(
            flops=prop_flops + 2 * Np * Hp * Cp,
            transcendentals=Np * Cp,
            bytes_accessed=prop_bytes + 2 * 4 * Np * Cp),
    )(a1_p, a2_p, t_all2, t_all2, t_all2, bsum2, wconv, bconv)

    return logp_pad[:N, :C], p_pad[:N, :C]


# ---------------------------------------------------------------------------
# Params / adjacency glue (matches the PyTorch module's parameterization)
# ---------------------------------------------------------------------------

def _glorot(key, shape):
    fan_in, fan_out = shape[0], shape[1]
    limit = (6.0 / (fan_in + fan_out)) ** 0.5
    return jax.random.uniform(key, shape, jnp.float32, -limit, limit)


def make_params(key, num_features, hidden, num_classes):
    ks = jax.random.split(key, 16)
    return {
        # InceptionBlock 1 (num_features -> hidden)
        "wl1": _glorot(ks[0], (num_features, hidden)),
        "bl1": jnp.zeros((1, hidden), jnp.float32),
        "wc11": _glorot(ks[1], (num_features, hidden)),
        "bc11": jnp.zeros((1, hidden), jnp.float32),
        "wc12": _glorot(ks[2], (num_features, hidden)),
        "bc12": jnp.zeros((1, hidden), jnp.float32),
        # InceptionBlock 2 (hidden -> hidden)
        "wl2": _glorot(ks[3], (hidden, hidden)),
        "bl2": jnp.zeros((1, hidden), jnp.float32),
        "wc21": _glorot(ks[4], (hidden, hidden)),
        "bc21": jnp.zeros((1, hidden), jnp.float32),
        "wc22": _glorot(ks[5], (hidden, hidden)),
        "bc22": jnp.zeros((1, hidden), jnp.float32),
        # Conv1d(hidden, C, kernel_size=1): weight [C, H, 1] used as [H, C]
        "wconv": _glorot(ks[6], (hidden, num_classes)),
        "bconv": jax.random.uniform(ks[7], (1, num_classes), jnp.float32, -0.1, 0.1),
    }


def dense_adjacency(edge_index, edge_weight, num_nodes):
    # PyG MessagePassing(aggr='add', flow='source_to_target'):
    # row 0 = source j, row 1 = target i; messages aggregated at target.
    a = jnp.zeros((num_nodes, num_nodes), jnp.float32)
    src, dst = edge_index[0], edge_index[1]
    return a.at[dst, src].add(edge_weight)


def reference_forward(x, a1, a2, p):
    # pure-JAX f32 reference of the PyTorch forward (eval mode).
    def block(h, wl, bl, w1, b1, w2, b2):
        return (h @ wl + bl) + (a1 @ (h @ w1) + b1) + (a2 @ (h @ w2) + b2)
    h = block(x, p["wl1"], p["bl1"], p["wc11"], p["bc11"], p["wc12"], p["bc12"])
    h = block(h, p["wl2"], p["bl2"], p["wc21"], p["bc21"], p["wc22"], p["bc22"])
    logits = h @ p["wconv"] + p["bconv"]
    return jax.nn.log_softmax(logits, axis=1), jax.nn.softmax(logits, axis=1)


if __name__ == "__main__":
    N = 16           # nodes
    num_features = 8
    hidden = 32
    num_classes = 4
    E = 24           # edges per graph

    key = jax.random.PRNGKey(0)
    k_feat, k_e1, k_w1, k_e2, k_w2, k_params = jax.random.split(key, 6)

    features = jax.random.normal(k_feat, (N, num_features), jnp.float32)

    edge_index = jax.random.randint(k_e1, (2, E), 0, N)
    edge_weight = jax.random.uniform(k_w1, (E,), jnp.float32, 0.1, 1.0)
    edge_index2 = jax.random.randint(k_e2, (2, E), 0, N)
    edge_weight2 = jax.random.uniform(k_w2, (E,), jnp.float32, 0.1, 1.0)

    a1 = dense_adjacency(edge_index, edge_weight, N)
    a2 = dense_adjacency(edge_index2, edge_weight2, N)

    params = make_params(k_params, num_features, hidden, num_classes)

    log_probs, probs = jax.block_until_ready(
        jax.jit(digcn_ib_forward)(features, a1, a2, params)
    )

    assert log_probs.shape == (N, num_classes)
    assert probs.shape == (N, num_classes)
    assert bool(jnp.all(jnp.isfinite(log_probs)))
    assert bool(jnp.allclose(jnp.sum(probs, axis=1), 1.0, atol=1e-5))

    # loose tolerance vs f32 reference (bf16 MXU operands / bf16 activations)
    ref_logp, ref_p = reference_forward(features, a1, a2, params)
    assert bool(jnp.allclose(probs, ref_p, atol=5e-2))
    assert bool(jnp.allclose(log_probs, ref_logp, atol=1.5e-1))

    print("KERNEL_OK")
</pallas_src>

<mosaic_0001>
module attributes {stable_mosaic.version = 11 : i64} {
  func.func @_proj_kernel(%arg0: i32, %arg1: i32, %arg2: memref<512x128xbf16, #tpu.memory_space<vmem>>, %arg3: memref<128x384xbf16, #tpu.memory_space<vmem>>, %arg4: memref<512x384xbf16, #tpu.memory_space<vmem>>, %arg5: memref<512x384xf32, #tpu.memory_space<vmem>>) attributes {dimension_semantics = [#tpu.dimension_semantics<parallel>, #tpu.dimension_semantics<arbitrary>], iteration_bounds = array<i64: 1, 1>, scalar_prefetch = 0 : i64, scratch_operands = 1 : i64, tpu.core_type = #tpu.core_type<tc>, window_params = [{transform_indices = @transform_0, window_bounds = array<i64: 512, 128>}, {transform_indices = @transform_1, window_bounds = array<i64: 128, 384>}, {transform_indices = @transform_2, window_bounds = array<i64: 512, 384>}]} {
    %c0_i32 = arith.constant 0 : i32
    %0 = arith.cmpi eq, %arg1, %c0_i32 : i32
    %1 = arith.extui %0 : i1 to i32
    %c0_i32_0 = arith.constant 0 : i32
    %2 = arith.cmpi ne, %1, %c0_i32_0 : i32
    scf.if %2 {
      %cst_10 = arith.constant 0.000000e+00 : f32
      %12 = vector.broadcast %cst_10 : f32 to vector<512x384xf32>
      %c0_11 = arith.constant 0 : index
      %c0_12 = arith.constant 0 : index
      %13 = vector.load %arg5[%c0_11, %c0_12] : memref<512x384xf32, #tpu.memory_space<vmem>>, vector<512x384xf32>
      tpu.vector_store %arg5[%c0_11, %c0_12], %12 {strides = array<i32>} : memref<512x384xf32, #tpu.memory_space<vmem>>, vector<512x384xf32>,
    } else {
    }
    %c0 = arith.constant 0 : index
    %c0_1 = arith.constant 0 : index
    %3 = vector.load %arg5[%c0, %c0_1] : memref<512x384xf32, #tpu.memory_space<vmem>>, vector<512x384xf32>
    %c0_2 = arith.constant 0 : index
    %c0_3 = arith.constant 0 : index
    %4 = vector.load %arg2[%c0_2, %c0_3] : memref<512x128xbf16, #tpu.memory_space<vmem>>, vector<512x128xbf16>
    %c0_4 = arith.constant 0 : index
    %c0_5 = arith.constant 0 : index
    %5 = vector.load %arg3[%c0_4, %c0_5] : memref<128x384xbf16, #tpu.memory_space<vmem>>, vector<128x384xbf16>
    %cst = arith.constant dense<0.000000e+00> : vector<512x384xf32>
    %6 = tpu.matmul %4, %5, %cst {dimension_numbers = #tpu.dot_dimension_numbers<[1], [0], [0], [1], [0, 0, 1, 1], [], []>} : vector<512x128xbf16>, vector<128x384xbf16>, vector<512x384xf32> -> vector<512x384xf32>
    %7 = arith.addf %3, %6 : vector<512x384xf32>
    %c0_6 = arith.constant 0 : index
    %c0_7 = arith.constant 0 : index
    %8 = vector.load %arg5[%c0_6, %c0_7] : memref<512x384xf32, #tpu.memory_space<vmem>>, vector<512x384xf32>
    tpu.vector_store %arg5[%c0_6, %c0_7], %7 {strides = array<i32>} : memref<512x384xf32, #tpu.memory_space<vmem>>, vector<512x384xf32>,
    %c0_i32_8 = arith.constant 0 : i32
    %9 = arith.cmpi eq, %arg1, %c0_i32_8 : i32
    %10 = arith.extui %9 : i1 to i32
    %c0_i32_9 = arith.constant 0 : i32
    %11 = arith.cmpi ne, %10, %c0_i32_9 : i32
    scf.if %11 {
      %c0_10 = arith.constant 0 : index
      %c0_11 = arith.constant 0 : index
      %12 = vector.load %arg5[%c0_10, %c0_11] : memref<512x384xf32, #tpu.memory_space<vmem>>, vector<512x384xf32>
      %13 = arith.truncf %12 : vector<512x384xf32> to vector<512x384xbf16>
      %c0_12 = arith.constant 0 : index
      %c0_13 = arith.constant 0 : index
      %14 = vector.load %arg4[%c0_12, %c0_13] : memref<512x384xbf16, #tpu.memory_space<vmem>>, vector<512x384xbf16>
      tpu.vector_store %arg4[%c0_12, %c0_13], %13 {strides = array<i32>} : memref<512x384xbf16, #tpu.memory_space<vmem>>, vector<512x384xbf16>,
    } else {
    }
    return
  }
  func.func @transform_0(%arg0: i32, %arg1: i32) -> (i32, i32) {
    %c0_i32 = arith.constant 0 : i32
    return %arg0, %arg1 : i32, i32
  }
  func.func @transform_1(%arg0: i32, %arg1: i32) -> (i32, i32) {
    %c0_i32 = arith.constant 0 : i32
    %c0_i32_0 = arith.constant 0 : i32
    return %arg1, %c0_i32 : i32, i32
  }
  func.func @transform_2(%arg0: i32, %arg1: i32) -> (i32, i32) {
    %c0_i32 = arith.constant 0 : i32
    %c0_i32_0 = arith.constant 0 : i32
    return %arg0, %c0_i32 : i32, i32
  }
}

module attributes {stable_mosaic.version = 11 : i64} {
  func.func @_prop_head_kernel(%arg0: i32, %arg1: i32, %arg2: memref<512x512xbf16, #tpu.memory_space<vmem>>, %arg3: memref<512x512xbf16, #tpu.memory_space<vmem>>, %arg4: memref<512x128xbf16, #tpu.memory_space<vmem>>, %arg5: memref<512x128xbf16, #tpu.memory_space<vmem>>, %arg6: memref<512x128xbf16, #tpu.memory_space<vmem>>, %arg7: memref<1x128xf32, #tpu.memory_space<vmem>>, %arg8: memref<128x128xbf16, #tpu.memory_space<vmem>>, %arg9: memref<1x128xf32, #tpu.memory_space<vmem>>, %arg10: memref<512x128xf32, #tpu.memory_space<vmem>>, %arg11: memref<512x128xf32, #tpu.memory_space<vmem>>, %arg12: memref<512x128xf32, #tpu.memory_space<vmem>>) attributes {dimension_semantics = [#tpu.dimension_semantics<parallel>, #tpu.dimension_semantics<arbitrary>], iteration_bounds = array<i64: 1, 1>, scalar_prefetch = 0 : i64, scratch_operands = 1 : i64, tpu.core_type = #tpu.core_type<tc>, window_params = [{transform_indices = @transform_0, window_bounds = array<i64: 512, 512>}, {transform_indices = @transform_1, window_bounds = array<i64: 512, 512>}, {transform_indices = @transform_2, window_bounds = array<i64: 512, 128>}, {transform_indices = @transform_3, window_bounds = array<i64: 512, 128>}, {transform_indices = @transform_4, window_bounds = array<i64: 512, 128>}, {pipeline_mode = #tpu.pipeline_mode<synchronous>, transform_indices = @transform_5, window_bounds = array<i64: 1, 128>}, {pipeline_mode = #tpu.pipeline_mode<synchronous>, transform_indices = @transform_6, window_bounds = array<i64: 128, 128>}, {pipeline_mode = #tpu.pipeline_mode<synchronous>, transform_indices = @transform_7, window_bounds = array<i64: 1, 128>}, {transform_indices = @transform_8, window_bounds = array<i64: 512, 128>}, {transform_indices = @transform_9, window_bounds = array<i64: 512, 128>}]} {
    %c0_i32 = arith.constant 0 : i32
    %0 = arith.cmpi eq, %arg1, %c0_i32 : i32
    %1 = arith.extui %0 : i1 to i32
    %c0_i32_0 = arith.constant 0 : i32
    %2 = arith.cmpi ne, %1, %c0_i32_0 : i32
    scf.if %2 {
      %cst_15 = arith.constant 0.000000e+00 : f32
      %16 = vector.broadcast %cst_15 : f32 to vector<512x128xf32>
      %c0_16 = arith.constant 0 : index
      %c0_17 = arith.constant 0 : index
      %17 = vector.load %arg12[%c0_16, %c0_17] : memref<512x128xf32, #tpu.memory_space<vmem>>, vector<512x128xf32>
      tpu.vector_store %arg12[%c0_16, %c0_17], %16 {strides = array<i32>} : memref<512x128xf32, #tpu.memory_space<vmem>>, vector<512x128xf32>,
    } else {
    }
    %c0 = arith.constant 0 : index
    %c0_1 = arith.constant 0 : index
    %3 = vector.load %arg12[%c0, %c0_1] : memref<512x128xf32, #tpu.memory_space<vmem>>, vector<512x128xf32>
    %c0_2 = arith.constant 0 : index
    %c0_3 = arith.constant 0 : index
    %4 = vector.load %arg2[%c0_2, %c0_3] : memref<512x512xbf16, #tpu.memory_space<vmem>>, vector<512x512xbf16>
    %c0_4 = arith.constant 0 : index
    %c0_5 = arith.constant 0 : index
    %5 = vector.load %arg4[%c0_4, %c0_5] : memref<512x128xbf16, #tpu.memory_space<vmem>>, vector<512x128xbf16>
    %cst = arith.constant dense<0.000000e+00> : vector<512x128xf32>
    %6 = tpu.matmul %4, %5, %cst {dimension_numbers = #tpu.dot_dimension_numbers<[1], [0], [0], [1], [0, 0, 1, 1], [], []>} : vector<512x512xbf16>, vector<512x128xbf16>, vector<512x128xf32> -> vector<512x128xf32>
    %c0_6 = arith.constant 0 : index
    %c0_7 = arith.constant 0 : index
    %7 = vector.load %arg3[%c0_6, %c0_7] : memref<512x512xbf16, #tpu.memory_space<vmem>>, vector<512x512xbf16>
    %c0_8 = arith.constant 0 : index
    %c0_9 = arith.constant 0 : index
    %8 = vector.load %arg5[%c0_8, %c0_9] : memref<512x128xbf16, #tpu.memory_space<vmem>>, vector<512x128xbf16>
    %cst_10 = arith.constant dense<0.000000e+00> : vector<512x128xf32>
    %9 = tpu.matmul %7, %8, %cst_10 {dimension_numbers = #tpu.dot_dimension_numbers<[1], [0], [0], [1], [0, 0, 1, 1], [], []>} : vector<512x512xbf16>, vector<512x128xbf16>, vector<512x128xf32> -> vector<512x128xf32>
    %10 = arith.addf %6, %9 : vector<512x128xf32>
    %11 = arith.addf %3, %10 : vector<512x128xf32>
    %c0_11 = arith.constant 0 : index
    %c0_12 = arith.constant 0 : index
    %12 = vector.load %arg12[%c0_11, %c0_12] : memref<512x128xf32, #tpu.memory_space<vmem>>, vector<512x128xf32>
    tpu.vector_store %arg12[%c0_11, %c0_12], %11 {strides = array<i32>} : memref<512x128xf32, #tpu.memory_space<vmem>>, vector<512x128xf32>,
    %c0_i32_13 = arith.constant 0 : i32
    %13 = arith.cmpi eq, %arg1, %c0_i32_13 : i32
    %14 = arith.extui %13 : i1 to i32
    %c0_i32_14 = arith.constant 0 : i32
    %15 = arith.cmpi ne, %14, %c0_i32_14 : i32
    scf.if %15 {
      %c0_15 = arith.constant 0 : index
      %c0_16 = arith.constant 0 : index
      %16 = vector.load %arg12[%c0_15, %c0_16] : memref<512x128xf32, #tpu.memory_space<vmem>>, vector<512x128xf32>
      %c0_17 = arith.constant 0 : index
      %c0_18 = arith.constant 0 : index
      %17 = vector.load %arg6[%c0_17, %c0_18] : memref<512x128xbf16, #tpu.memory_space<vmem>>, vector<512x128xbf16>
      %18 = arith.extf %17 : vector<512x128xbf16> to vector<512x128xf32>
      %19 = arith.addf %16, %18 : vector<512x128xf32>
      %c0_19 = arith.constant 0 : index
      %c0_20 = arith.constant 0 : index
      %20 = vector.load %arg7[%c0_19, %c0_20] : memref<1x128xf32, #tpu.memory_space<vmem>>, vector<1x128xf32>
      %21 = vector.broadcast %20 : vector<1x128xf32> to vector<512x128xf32>
      %22 = arith.addf %19, %21 : vector<512x128xf32>
      %23 = arith.truncf %22 : vector<512x128xf32> to vector<512x128xbf16>
      %c0_21 = arith.constant 0 : index
      %c0_22 = arith.constant 0 : index
      %24 = vector.load %arg8[%c0_21, %c0_22] : memref<128x128xbf16, #tpu.memory_space<vmem>>, vector<128x128xbf16>
      %cst_23 = arith.constant dense<0.000000e+00> : vector<512x128xf32>
      %25 = tpu.matmul %23, %24, %cst_23 {dimension_numbers = #tpu.dot_dimension_numbers<[1], [0], [0], [1], [0, 0, 1, 1], [], []>} : vector<512x128xbf16>, vector<128x128xbf16>, vector<512x128xf32> -> vector<512x128xf32>
      %c0_24 = arith.constant 0 : index
      %c0_25 = arith.constant 0 : index
      %26 = vector.load %arg9[%c0_24, %c0_25] : memref<1x128xf32, #tpu.memory_space<vmem>>, vector<1x128xf32>
      %27 = vector.broadcast %26 : vector<1x128xf32> to vector<512x128xf32>
      %28 = arith.addf %25, %27 : vector<512x128xf32>
      %cst_26 = arith.constant dense<0xFF800000> : vector<512xf32>
      %29 = vector.multi_reduction <maximumf>, %28, %cst_26 [1] : vector<512x128xf32> to vector<512xf32>
      %30 = vector.shape_cast %29 : vector<512xf32> to vector<512x1xf32>
      %31 = vector.broadcast %30 : vector<512x1xf32> to vector<512x128xf32>
      %32 = arith.subf %28, %31 : vector<512x128xf32>
      %33 = math.exp %32 : vector<512x128xf32>
      %cst_27 = arith.constant dense<0.000000e+00> : vector<512xf32>
      %34 = vector.multi_reduction <add>, %33, %cst_27 [1] : vector<512x128xf32> to vector<512xf32>
      %35 = vector.shape_cast %34 : vector<512xf32> to vector<512x1xf32>
      %36 = math.log %35 : vector<512x1xf32>
      %37 = vector.broadcast %36 : vector<512x1xf32> to vector<512x128xf32>
      %38 = arith.subf %32, %37 : vector<512x128xf32>
      %c0_28 = arith.constant 0 : index
      %c0_29 = arith.constant 0 : index
      %39 = vector.load %arg10[%c0_28, %c0_29] : memref<512x128xf32, #tpu.memory_space<vmem>>, vector<512x128xf32>
      tpu.vector_store %arg10[%c0_28, %c0_29], %38 {strides = array<i32>} : memref<512x128xf32, #tpu.memory_space<vmem>>, vector<512x128xf32>,
      %40 = tpu.reciprocal %35 : vector<512x1xf32> -> vector<512x1xf32>
      %41 = vector.broadcast %40 : vector<512x1xf32> to vector<512x128xf32>
      %42 = arith.mulf %33, %41 : vector<512x128xf32>
      %c0_30 = arith.constant 0 : index
      %c0_31 = arith.constant 0 : index
      %43 = vector.load %arg11[%c0_30, %c0_31] : memref<512x128xf32, #tpu.memory_space<vmem>>, vector<512x128xf32>
      tpu.vector_store %arg11[%c0_30, %c0_31], %42 {strides = array<i32>} : memref<512x128xf32, #tpu.memory_space<vmem>>, vector<512x128xf32>,
    } else {
    }
    return
  }
  func.func @transform_0(%arg0: i32, %arg1: i32) -> (i32, i32) {
    %c0_i32 = arith.constant 0 : i32
    return %arg0, %arg1 : i32, i32
  }
  func.func @transform_1(%arg0: i32, %arg1: i32) -> (i32, i32) {
    %c0_i32 = arith.constant 0 : i32
    return %arg0, %arg1 : i32, i32
  }
  func.func @transform_2(%arg0: i32, %arg1: i32) -> (i32, i32) {
    %c1_i32 = arith.constant 1 : i32
    %c0_i32 = arith.constant 0 : i32
    return %arg1, %c1_i32 : i32, i32
  }
  func.func @transform_3(%arg0: i32, %arg1: i32) -> (i32, i32) {
    %c2_i32 = arith.constant 2 : i32
    %c0_i32 = arith.constant 0 : i32
    return %arg1, %c2_i32 : i32, i32
  }
  func.func @transform_4(%arg0: i32, %arg1: i32) -> (i32, i32) {
    %c0_i32 = arith.constant 0 : i32
    %c0_i32_0 = arith.constant 0 : i32
    return %arg0, %c0_i32 : i32, i32
  }
  func.func @transform_5(%arg0: i32, %arg1: i32) -> (i32, i32) {
    %c0_i32 = arith.constant 0 : i32
    %c0_i32_0 = arith.constant 0 : i32
    %c0_i32_1 = arith.constant 0 : i32
    return %c0_i32, %c0_i32_0 : i32, i32
  }
  func.func @transform_6(%arg0: i32, %arg1: i32) -> (i32, i32) {
    %c0_i32 = arith.constant 0 : i32
    %c0_i32_0 = arith.constant 0 : i32
    %c0_i32_1 = arith.constant 0 : i32
    return %c0_i32, %c0_i32_0 : i32, i32
  }
  func.func @transform_7(%arg0: i32, %arg1: i32) -> (i32, i32) {
    %c0_i32 = arith.constant 0 : i32
    %c0_i32_0 = arith.constant 0 : i32
    %c0_i32_1 = arith.constant 0 : i32
    return %c0_i32, %c0_i32_0 : i32, i32
  }
  func.func @transform_8(%arg0: i32, %arg1: i32) -> (i32, i32) {
    %c0_i32 = arith.constant 0 : i32
    %c0_i32_0 = arith.constant 0 : i32
    return %arg0, %c0_i32 : i32, i32
  }
  func.func @transform_9(%arg0: i32, %arg1: i32) -> (i32, i32) {
    %c0_i32 = arith.constant 0 : i32
    %c0_i32_0 = arith.constant 0 : i32
    return %arg0, %c0_i32 : i32, i32
  }
}

module attributes {stable_mosaic.version = 11 : i64} {
  func.func @_prop_proj_kernel(%arg0: i32, %arg1: i32, %arg2: memref<512x512xbf16, #tpu.memory_space<vmem>>, %arg3: memref<512x512xbf16, #tpu.memory_space<vmem>>, %arg4: memref<512x128xbf16, #tpu.memory_space<vmem>>, %arg5: memref<512x128xbf16, #tpu.memory_space<vmem>>, %arg6: memref<512x128xbf16, #tpu.memory_space<vmem>>, %arg7: memref<1x128xf32, #tpu.memory_space<vmem>>, %arg8: memref<128x384xbf16, #tpu.memory_space<vmem>>, %arg9: memref<512x384xbf16, #tpu.memory_space<vmem>>, %arg10: memref<512x128xf32, #tpu.memory_space<vmem>>) attributes {dimension_semantics = [#tpu.dimension_semantics<parallel>, #tpu.dimension_semantics<arbitrary>], iteration_bounds = array<i64: 1, 1>, scalar_prefetch = 0 : i64, scratch_operands = 1 : i64, tpu.core_type = #tpu.core_type<tc>, window_params = [{transform_indices = @transform_0, window_bounds = array<i64: 512, 512>}, {transform_indices = @transform_1, window_bounds = array<i64: 512, 512>}, {transform_indices = @transform_2, window_bounds = array<i64: 512, 128>}, {transform_indices = @transform_3, window_bounds = array<i64: 512, 128>}, {transform_indices = @transform_4, window_bounds = array<i64: 512, 128>}, {pipeline_mode = #tpu.pipeline_mode<synchronous>, transform_indices = @transform_5, window_bounds = array<i64: 1, 128>}, {pipeline_mode = #tpu.pipeline_mode<synchronous>, transform_indices = @transform_6, window_bounds = array<i64: 128, 384>}, {transform_indices = @transform_7, window_bounds = array<i64: 512, 384>}]} {
    %c0_i32 = arith.constant 0 : i32
    %0 = arith.cmpi eq, %arg1, %c0_i32 : i32
    %1 = arith.extui %0 : i1 to i32
    %c0_i32_0 = arith.constant 0 : i32
    %2 = arith.cmpi ne, %1, %c0_i32_0 : i32
    scf.if %2 {
      %cst_15 = arith.constant 0.000000e+00 : f32
      %16 = vector.broadcast %cst_15 : f32 to vector<512x128xf32>
      %c0_16 = arith.constant 0 : index
      %c0_17 = arith.constant 0 : index
      %17 = vector.load %arg10[%c0_16, %c0_17] : memref<512x128xf32, #tpu.memory_space<vmem>>, vector<512x128xf32>
      tpu.vector_store %arg10[%c0_16, %c0_17], %16 {strides = array<i32>} : memref<512x128xf32, #tpu.memory_space<vmem>>, vector<512x128xf32>,
    } else {
    }
    %c0 = arith.constant 0 : index
    %c0_1 = arith.constant 0 : index
    %3 = vector.load %arg10[%c0, %c0_1] : memref<512x128xf32, #tpu.memory_space<vmem>>, vector<512x128xf32>
    %c0_2 = arith.constant 0 : index
    %c0_3 = arith.constant 0 : index
    %4 = vector.load %arg2[%c0_2, %c0_3] : memref<512x512xbf16, #tpu.memory_space<vmem>>, vector<512x512xbf16>
    %c0_4 = arith.constant 0 : index
    %c0_5 = arith.constant 0 : index
    %5 = vector.load %arg4[%c0_4, %c0_5] : memref<512x128xbf16, #tpu.memory_space<vmem>>, vector<512x128xbf16>
    %cst = arith.constant dense<0.000000e+00> : vector<512x128xf32>
    %6 = tpu.matmul %4, %5, %cst {dimension_numbers = #tpu.dot_dimension_numbers<[1], [0], [0], [1], [0, 0, 1, 1], [], []>} : vector<512x512xbf16>, vector<512x128xbf16>, vector<512x128xf32> -> vector<512x128xf32>
    %c0_6 = arith.constant 0 : index
    %c0_7 = arith.constant 0 : index
    %7 = vector.load %arg3[%c0_6, %c0_7] : memref<512x512xbf16, #tpu.memory_space<vmem>>, vector<512x512xbf16>
    %c0_8 = arith.constant 0 : index
    %c0_9 = arith.constant 0 : index
    %8 = vector.load %arg5[%c0_8, %c0_9] : memref<512x128xbf16, #tpu.memory_space<vmem>>, vector<512x128xbf16>
    %cst_10 = arith.constant dense<0.000000e+00> : vector<512x128xf32>
    %9 = tpu.matmul %7, %8, %cst_10 {dimension_numbers = #tpu.dot_dimension_numbers<[1], [0], [0], [1], [0, 0, 1, 1], [], []>} : vector<512x512xbf16>, vector<512x128xbf16>, vector<512x128xf32> -> vector<512x128xf32>
    %10 = arith.addf %6, %9 : vector<512x128xf32>
    %11 = arith.addf %3, %10 : vector<512x128xf32>
    %c0_11 = arith.constant 0 : index
    %c0_12 = arith.constant 0 : index
    %12 = vector.load %arg10[%c0_11, %c0_12] : memref<512x128xf32, #tpu.memory_space<vmem>>, vector<512x128xf32>
    tpu.vector_store %arg10[%c0_11, %c0_12], %11 {strides = array<i32>} : memref<512x128xf32, #tpu.memory_space<vmem>>, vector<512x128xf32>,
    %c0_i32_13 = arith.constant 0 : i32
    %13 = arith.cmpi eq, %arg1, %c0_i32_13 : i32
    %14 = arith.extui %13 : i1 to i32
    %c0_i32_14 = arith.constant 0 : i32
    %15 = arith.cmpi ne, %14, %c0_i32_14 : i32
    scf.if %15 {
      %c0_15 = arith.constant 0 : index
      %c0_16 = arith.constant 0 : index
      %16 = vector.load %arg10[%c0_15, %c0_16] : memref<512x128xf32, #tpu.memory_space<vmem>>, vector<512x128xf32>
      %c0_17 = arith.constant 0 : index
      %c0_18 = arith.constant 0 : index
      %17 = vector.load %arg6[%c0_17, %c0_18] : memref<512x128xbf16, #tpu.memory_space<vmem>>, vector<512x128xbf16>
      %18 = arith.extf %17 : vector<512x128xbf16> to vector<512x128xf32>
      %19 = arith.addf %16, %18 : vector<512x128xf32>
      %c0_19 = arith.constant 0 : index
      %c0_20 = arith.constant 0 : index
      %20 = vector.load %arg7[%c0_19, %c0_20] : memref<1x128xf32, #tpu.memory_space<vmem>>, vector<1x128xf32>
      %21 = vector.broadcast %20 : vector<1x128xf32> to vector<512x128xf32>
      %22 = arith.addf %19, %21 : vector<512x128xf32>
      %23 = arith.truncf %22 : vector<512x128xf32> to vector<512x128xbf16>
      %c0_21 = arith.constant 0 : index
      %c0_22 = arith.constant 0 : index
      %24 = vector.load %arg8[%c0_21, %c0_22] : memref<128x384xbf16, #tpu.memory_space<vmem>>, vector<128x384xbf16>
      %cst_23 = arith.constant dense<0.000000e+00> : vector<512x384xf32>
      %25 = tpu.matmul %23, %24, %cst_23 {dimension_numbers = #tpu.dot_dimension_numbers<[1], [0], [0], [1], [0, 0, 1, 1], [], []>} : vector<512x128xbf16>, vector<128x384xbf16>, vector<512x384xf32> -> vector<512x384xf32>
      %26 = arith.truncf %25 : vector<512x384xf32> to vector<512x384xbf16>
      %c0_24 = arith.constant 0 : index
      %c0_25 = arith.constant 0 : index
      %27 = vector.load %arg9[%c0_24, %c0_25] : memref<512x384xbf16, #tpu.memory_space<vmem>>, vector<512x384xbf16>
      tpu.vector_store %arg9[%c0_24, %c0_25], %26 {strides = array<i32>} : memref<512x384xbf16, #tpu.memory_space<vmem>>, vector<512x384xbf16>,
    } else {
    }
    return
  }
  func.func @transform_0(%arg0: i32, %arg1: i32) -> (i32, i32) {
    %c0_i32 = arith.constant 0 : i32
    return %arg0, %arg1 : i32, i32
  }
  func.func @transform_1(%arg0: i32, %arg1: i32) -> (i32, i32) {
    %c0_i32 = arith.constant 0 : i32
    return %arg0, %arg1 : i32, i32
  }
  func.func @transform_2(%arg0: i32, %arg1: i32) -> (i32, i32) {
    %c1_i32 = arith.constant 1 : i32
    %c0_i32 = arith.constant 0 : i32
    return %arg1, %c1_i32 : i32, i32
  }
  func.func @transform_3(%arg0: i32, %arg1: i32) -> (i32, i32) {
    %c2_i32 = arith.constant 2 : i32
    %c0_i32 = arith.constant 0 : i32
    return %arg1, %c2_i32 : i32, i32
  }
  func.func @transform_4(%arg0: i32, %arg1: i32) -> (i32, i32) {
    %c0_i32 = arith.constant 0 : i32
    %c0_i32_0 = arith.constant 0 : i32
    return %arg0, %c0_i32 : i32, i32
  }
  func.func @transform_5(%arg0: i32, %arg1: i32) -> (i32, i32) {
    %c0_i32 = arith.constant 0 : i32
    %c0_i32_0 = arith.constant 0 : i32
    %c0_i32_1 = arith.constant 0 : i32
    return %c0_i32, %c0_i32_0 : i32, i32
  }
  func.func @transform_6(%arg0: i32, %arg1: i32) -> (i32, i32) {
    %c0_i32 = arith.constant 0 : i32
    %c0_i32_0 = arith.constant 0 : i32
    %c0_i32_1 = arith.constant 0 : i32
    return %c0_i32, %c0_i32_0 : i32, i32
  }
  func.func @transform_7(%arg0: i32, %arg1: i32) -> (i32, i32) {
    %c0_i32 = arith.constant 0 : i32
    %c0_i32_0 = arith.constant 0 : i32
    return %arg0, %c0_i32 : i32, i32
  }
}

</mosaic_0001>

<bundles_post_ra>
// kernel: digcn_ib_forward.5
= control target key start
LH: loop header
LB: loop body
LE: loop exit
PB: predicated region body
PF: predicated region fallthrough
CT: control target
= control target key end

     0   :  { %v7626_v2 = vmov 0   ;;  %s10996_s0 = inlined_call_operand.vmem [shape: bf16[512,512], index: 0, kind: input, shape index: {}]   ;;  %s10997_s1 = inlined_call_operand.vmem [shape: bf16[512,512], index: 1, kind: input, shape index: {}]   ;;  %s10998_s2 = inlined_call_operand.vmem [shape: bf16[512,384], index: 2, kind: input, shape index: {}, may-alias: {2,3,4}]   ;;  %s10999_s3 = inlined_call_operand.vmem [shape: bf16[512,384], index: 3, kind: input, shape index: {}, may-alias: {2,3,4}]   ;;  %s11000_s4 = inlined_call_operand.vmem [shape: bf16[512,384], index: 4, kind: input, shape index: {}, may-alias: {2,3,4}]   ;;  %s11001_s5 = inlined_call_operand.vmem [shape: f32[1,128], index: 5, kind: input, shape index: {}]   ;;  %s11002_s6 = inlined_call_operand.vmem [shape: bf16[128,128], index: 6, kind: input, shape index: {}]   ;;  %s11003_s7 = inlined_call_operand.vmem [shape: f32[1,128], index: 7, kind: input, shape index: {}]   ;;  %s11004_s8 = inlined_call_operand.vmem [shape: f32[512,128], index: 8, kind: output, shape index: {0}]   ;;  %s11005_s9 = inlined_call_operand.vmem [shape: f32[512,128], index: 9, kind: output, shape index: {1}]  }
   0x1   :  { %v6079_v0 = vld [vmem:[%s10999_s3 + $0x8] sm:$0xf]  ;;  %v6080_v1 = vld [vmem:[%s10999_s3 + $0x14] sm:$0xf]  ;;  %2261 = vmatprep.subr.bf16.mxu0 %v7626_v2  ;;  %6752 = vmatprep.subr.bf16.mxu1 %v7626_v2  ;;  %v6081_v3 = vld [vmem:[%s10999_s3 + $0x20] sm:$0xf] }
   0x2   :  { %332 = vst [vmem:[#allocation4] sm:$0xf] %v6079_v0  ;;  %334 = vst [vmem:[#allocation4 + $0x4] sm:$0xf] %v6080_v1  ;;  %v6082_v4 = vld [vmem:[%s10999_s3 + $0x2c] sm:$0xf] }
   0x3   :  { %v6083_v5 = vld [vmem:[%s10999_s3 + $0x38] sm:$0xf]  ;;  %336 = vst [vmem:[#allocation4 + $0x8] sm:$0xf] %v6081_v3  ;;  %338 = vst [vmem:[#allocation4 + $0xc] sm:$0xf] %v6082_v4 }
   0x4   :  { %340 = vst [vmem:[#allocation4 + $0x10] sm:$0xf] %v6083_v5  ;;  %v6084_v6 = vld [vmem:[%s10999_s3 + $0x44] sm:$0xf]  ;;  %v6085_v7 = vld [vmem:[%s10999_s3 + $0x50] sm:$0xf] }
   0x5   :  { %v6086_v8 = vld [vmem:[%s10999_s3 + $0x5c] sm:$0xf]  ;;  %342 = vst [vmem:[#allocation4 + $0x14] sm:$0xf] %v6084_v6  ;;  %344 = vst [vmem:[#allocation4 + $0x18] sm:$0xf] %v6085_v7 }
   0x6   :  { %346 = vst [vmem:[#allocation4 + $0x1c] sm:$0xf] %v6086_v8  ;;  %v6087_v9 = vld [vmem:[%s10999_s3 + $0x68] sm:$0xf]  ;;  %v6088_v10 = vld [vmem:[%s10999_s3 + $0x74] sm:$0xf] }
   0x7   :  { %v6089_v11 = vld [vmem:[%s10999_s3 + $0x80] sm:$0xf]  ;;  %348 = vst [vmem:[#allocation4 + $0x20] sm:$0xf] %v6087_v9  ;;  %350 = vst [vmem:[#allocation4 + $0x24] sm:$0xf] %v6088_v10 }
   0x8   :  { %352 = vst [vmem:[#allocation4 + $0x28] sm:$0xf] %v6089_v11  ;;  %v6090_v12 = vld [vmem:[%s10999_s3 + $0x8c] sm:$0xf]  ;;  %v6091_v13 = vld [vmem:[%s10999_s3 + $0x98] sm:$0xf] }
   0x9   :  { %v6092_v14 = vld [vmem:[%s10999_s3 + $0xa4] sm:$0xf]  ;;  %354 = vst [vmem:[#allocation4 + $0x2c] sm:$0xf] %v6090_v12  ;;  %356 = vst [vmem:[#allocation4 + $0x30] sm:$0xf] %v6091_v13 }
   0xa   :  { %358 = vst [vmem:[#allocation4 + $0x34] sm:$0xf] %v6092_v14  ;;  %v6093_v15 = vld [vmem:[%s10999_s3 + $0xb0] sm:$0xf]  ;;  %v6094_v16 = vld [vmem:[%s10999_s3 + $0xbc] sm:$0xf] }
   0xb   :  { %v6095_v17 = vld [vmem:[%s10999_s3 + $0xc8] sm:$0xf]  ;;  %360 = vst [vmem:[#allocation4 + $0x38] sm:$0xf] %v6093_v15  ;;  %362 = vst [vmem:[#allocation4 + $0x3c] sm:$0xf] %v6094_v16 }
   0xc   :  { %364 = vst [vmem:[#allocation4 + $0x40] sm:$0xf] %v6095_v17  ;;  %v6096_v18 = vld [vmem:[%s10999_s3 + $0xd4] sm:$0xf]  ;;  %v6097_v19 = vld [vmem:[%s10999_s3 + $0xe0] sm:$0xf] }
   0xd   :  { %v6098_v20 = vld [vmem:[%s10999_s3 + $0xec] sm:$0xf]  ;;  %366 = vst [vmem:[#allocation4 + $0x44] sm:$0xf] %v6096_v18  ;;  %368 = vst [vmem:[#allocation4 + $0x48] sm:$0xf] %v6097_v19 }
   0xe   :  { %370 = vst [vmem:[#allocation4 + $0x4c] sm:$0xf] %v6098_v20  ;;  %v6099_v21 = vld [vmem:[%s10999_s3 + $0xf8] sm:$0xf]  ;;  %v6100_v22 = vld [vmem:[%s10999_s3 + $0x104] sm:$0xf] }
   0xf   :  { %v6101_v23 = vld [vmem:[%s10999_s3 + $0x110] sm:$0xf]  ;;  %v6785_v24 = vld [vmem:[#allocation4] sm:$0xff]   ;;  %372 = vst [vmem:[#allocation4 + $0x50] sm:$0xf] %v6099_v21  ;;  %v6786_v25 = vld [vmem:[#allocation4 + $0x8] sm:$0xff]  }
  0x10   :  { %374 = vst [vmem:[#allocation4 + $0x54] sm:$0xf] %v6100_v22  ;;  %376 = vst [vmem:[#allocation4 + $0x58] sm:$0xf] %v6101_v23  ;;  %2262 = vmatpush1.bf16.msra.mxu0 %v6785_v24  ;;  %6768 = vmatpush1.bf16.msra.mxu1 %v6785_v24  ;;  %v6787_v26 = vld [vmem:[#allocation4 + $0x10] sm:$0xff]   ;;  %v6788_v27 = vld [vmem:[#allocation4 + $0x18] sm:$0xff]  }
  0x11   :  { %2263 = vmatprep.subr.bf16.mxu0 %v7626_v2  ;;  %6753 = vmatprep.subr.bf16.mxu1 %v7626_v2  ;;  %v6102_v28 = vld [vmem:[%s10999_s3 + $0x11c] sm:$0xf]  ;;  %v6103_v29 = vld [vmem:[%s10999_s3 + $0x128] sm:$0xf]  ;;  %v6104_v30 = vld [vmem:[%s10999_s3 + $0x134] sm:$0xf] }
  0x12   :  { %378 = vst [vmem:[#allocation4 + $0x5c] sm:$0xf] %v6102_v28  ;;  %380 = vst [vmem:[#allocation4 + $0x60] sm:$0xf] %v6103_v29  ;;  %v6105_v31 = vld [vmem:[%s10999_s3 + $0x140] sm:$0xf] }
  0x13   :  { %v6106_v32 = vld [vmem:[%s10999_s3 + $0x14c] sm:$0xf]  ;;  %382 = vst [vmem:[#allocation4 + $0x64] sm:$0xf] %v6104_v30  ;;  %384 = vst [vmem:[#allocation4 + $0x68] sm:$0xf] %v6105_v31 }
  0x14   :  { %2264 = vmatpush1.bf16.msra.mxu0 %v6786_v25  ;;  %6769 = vmatpush1.bf16.msra.mxu1 %v6786_v25  ;;  %386 = vst [vmem:[#allocation4 + $0x6c] sm:$0xf] %v6106_v32  ;;  %v6107_v33 = vld [vmem:[%s10999_s3 + $0x158] sm:$0xf]  ;;  %v6108_v34 = vld [vmem:[%s10999_s3 + $0x164] sm:$0xf] }
  0x15   :  { %2265 = vmatprep.subr.bf16.mxu0 %v7626_v2  ;;  %6754 = vmatprep.subr.bf16.mxu1 %v7626_v2  ;;  %v6109_v35 = vld [vmem:[%s10999_s3 + $0x170] sm:$0xf]  ;;  %v6789_v36 = vld [vmem:[#allocation4 + $0x20] sm:$0xff]   ;;  %388 = vst [vmem:[#allocation4 + $0x70] sm:$0xf] %v6107_v33  ;;  %v6790_v44 = vld [vmem:[#allocation4 + $0x28] sm:$0xff]  }
  0x16   :  { %390 = vst [vmem:[#allocation4 + $0x74] sm:$0xf] %v6108_v34  ;;  %392 = vst [vmem:[#allocation4 + $0x78] sm:$0xf] %v6109_v35  ;;  %v6110_v37 = vld [vmem:[%s10999_s3 + $0x17c] sm:$0xf] }
  0x17   :  { %394 = vst [vmem:[#allocation4 + $0x7c] sm:$0xf] %v6110_v37  ;;  %v6803_v38 = vld [vmem:[%s10997_s1 + $0x4] ss:$16 sps:$4 sm:$0xff]   ;;  %v6111_v40 = vld [vmem:[%s10999_s3 + $0x188] sm:$0xf] }
  0x18   :  { %2266 = vmatpush1.bf16.msra.mxu0 %v6787_v26  ;;  %6770 = vmatpush1.bf16.msra.mxu1 %v6787_v26  ;;  %v6806_v39 = vld [vmem:[%s10997_s1 + $0x304] ss:$16 sps:$4 sm:$0xff]   ;;  %396 = vst [vmem:[#allocation4 + $0x80] sm:$0xf] %v6111_v40  ;;  %v6113_v42 = vld [vmem:[%s10999_s3 + $0x1a0] sm:$0xf] }
  0x19   :  { %2267 = vmatprep.subr.bf16.mxu0 %v7626_v2  ;;  %6755 = vmatprep.subr.bf16.mxu1 %v7626_v2  ;;  %v6112_v41 = vld [vmem:[%s10999_s3 + $0x194] sm:$0xf]  ;;  %v6114_v43 = vld [vmem:[%s10999_s3 + $0x1ac] sm:$0xf]  ;;  %400 = vst [vmem:[#allocation4 + $0x88] sm:$0xf] %v6113_v42 }
  0x1a   :  { %2293 = vmatprep.mubr.bf16.mxu0 %v6803_v38  ;;  %398 = vst [vmem:[#allocation4 + $0x84] sm:$0xf] %v6112_v41  ;;  %402 = vst [vmem:[#allocation4 + $0x8c] sm:$0xf] %v6114_v43  ;;  %2485 = vmatprep.mubr.bf16.mxu1 %v6806_v39  ;;  %v6791_v45 = vld [vmem:[#allocation4 + $0x30] sm:$0xff]   ;;  %v6792_v46 = vld [vmem:[#allocation4 + $0x38] sm:$0xff]  }
  0x1b   :  { %v6115_v47 = vld [vmem:[%s10999_s3 + $0x1b8] sm:$0xf]  ;;  %v6116_v48 = vld [vmem:[%s10999_s3 + $0x1c4] sm:$0xf]  ;;  %v6117_v49 = vld [vmem:[%s10999_s3 + $0x1d0] sm:$0xf] }
  0x1c   :  { %2268 = vmatpush1.bf16.msra.mxu0 %v6788_v27  ;;  %6771 = vmatpush1.bf16.msra.mxu1 %v6788_v27  ;;  %404 = vst [vmem:[#allocation4 + $0x90] sm:$0xf] %v6115_v47  ;;  %406 = vst [vmem:[#allocation4 + $0x94] sm:$0xf] %v6116_v48  ;;  %v6118_v50 = vld [vmem:[%s10999_s3 + $0x1dc] sm:$0xf] }
  0x1d   :  { %2269 = vmatprep.subr.bf16.mxu0 %v7626_v2  ;;  %6756 = vmatprep.subr.bf16.mxu1 %v7626_v2  ;;  %408 = vst [vmem:[#allocation4 + $0x98] sm:$0xf] %v6117_v49  ;;  %410 = vst [vmem:[#allocation4 + $0x9c] sm:$0xf] %v6118_v50  ;;  %v6793_v51 = vld [vmem:[#allocation4 + $0x40] sm:$0xff]   ;;  %v6794_v56 = vld [vmem:[#allocation4 + $0x48] sm:$0xff]  }
  0x1e   :  { %v6119_v52 = vld [vmem:[%s10999_s3 + $0x1e8] sm:$0xf]  ;;  %v6120_v53 = vld [vmem:[%s10999_s3 + $0x1f4] sm:$0xf]  ;;  %v6121_v54 = vld [vmem:[%s10999_s3 + $0x200] sm:$0xf] }
  0x1f   :  { %412 = vst [vmem:[#allocation4 + $0xa0] sm:$0xf] %v6119_v52  ;;  %414 = vst [vmem:[#allocation4 + $0xa4] sm:$0xf] %v6120_v53  ;;  %v6122_v55 = vld [vmem:[%s10999_s3 + $0x20c] sm:$0xf] }
  0x20   :  { %2270 = vmatpush1.bf16.msra.mxu0 %v6789_v36  ;;  %6772 = vmatpush1.bf16.msra.mxu1 %v6789_v36  ;;  %416 = vst [vmem:[#allocation4 + $0xa8] sm:$0xf] %v6121_v54  ;;  %418 = vst [vmem:[#allocation4 + $0xac] sm:$0xf] %v6122_v55  ;;  %v6795_v57 = vld [vmem:[#allocation4 + $0x50] sm:$0xff]   ;;  %v6796_v62 = vld [vmem:[#allocation4 + $0x58] sm:$0xff]  }
  0x21   :  { %2271 = vmatprep.subr.bf16.mxu0 %v7626_v2  ;;  %6757 = vmatprep.subr.bf16.mxu1 %v7626_v2  ;;  %v6123_v58 = vld [vmem:[%s10999_s3 + $0x218] sm:$0xf]  ;;  %v6124_v59 = vld [vmem:[%s10999_s3 + $0x224] sm:$0xf]  ;;  %v6125_v60 = vld [vmem:[%s10999_s3 + $0x230] sm:$0xf] }
  0x22   :  { %420 = vst [vmem:[#allocation4 + $0xb0] sm:$0xf] %v6123_v58  ;;  %422 = vst [vmem:[#allocation4 + $0xb4] sm:$0xf] %v6124_v59  ;;  %v6126_v61 = vld [vmem:[%s10999_s3 + $0x23c] sm:$0xf] }
  0x23   :  { %424 = vst [vmem:[#allocation4 + $0xb8] sm:$0xf] %v6125_v60  ;;  %426 = vst [vmem:[#allocation4 + $0xbc] sm:$0xf] %v6126_v61  ;;  %v6127_v63 = vld [vmem:[%s10999_s3 + $0x248] sm:$0xf] }
  0x24   :  { %2272 = vmatpush1.bf16.msra.mxu0 %v6790_v44  ;;  %6773 = vmatpush1.bf16.msra.mxu1 %v6790_v44  ;;  %v6128_v0 = vld [vmem:[%s10999_s3 + $0x254] sm:$0xf]  ;;  %428 = vst [vmem:[#allocation4 + $0xc0] sm:$0xf] %v6127_v63  ;;  %v6129_v1 = vld [vmem:[%s10999_s3 + $0x260] sm:$0xf] }
  0x25   :  { %2273 = vmatprep.subr.bf16.mxu0 %v7626_v2  ;;  %6758 = vmatprep.subr.bf16.mxu1 %v7626_v2  ;;  %430 = vst [vmem:[#allocation4 + $0xc4] sm:$0xf] %v6128_v0  ;;  %v6130_v3 = vld [vmem:[%s10999_s3 + $0x26c] sm:$0xf]  ;;  %432 = vst [vmem:[#allocation4 + $0xc8] sm:$0xf] %v6129_v1 }
  0x26   :  { %434 = vst [vmem:[#allocation4 + $0xcc] sm:$0xf] %v6130_v3  ;;  %v6797_v4 = vld [vmem:[#allocation4 + $0x60] sm:$0xff]   ;;  %v6798_v5 = vld [vmem:[#allocation4 + $0x68] sm:$0xff]   ;;  %v6131_v6 = vld [vmem:[%s10999_s3 + $0x278] sm:$0xf] }
  0x27   :  { %v6132_v7 = vld [vmem:[%s10999_s3 + $0x284] sm:$0xf]  ;;  %436 = vst [vmem:[#allocation4 + $0xd0] sm:$0xf] %v6131_v6  ;;  %v6133_v8 = vld [vmem:[%s10999_s3 + $0x290] sm:$0xf] }
  0x28   :  { %2274 = vmatpush1.bf16.msra.mxu0 %v6791_v45  ;;  %6774 = vmatpush1.bf16.msra.mxu1 %v6791_v45  ;;  %438 = vst [vmem:[#allocation4 + $0xd4] sm:$0xf] %v6132_v7  ;;  %v6134_v9 = vld [vmem:[%s10999_s3 + $0x29c] sm:$0xf]  ;;  %440 = vst [vmem:[#allocation4 + $0xd8] sm:$0xf] %v6133_v8 }
  0x29   :  { %2275 = vmatprep.subr.bf16.mxu0 %v7626_v2  ;;  %6759 = vmatprep.subr.bf16.mxu1 %v7626_v2  ;;  %442 = vst [vmem:[#allocation4 + $0xdc] sm:$0xf] %v6134_v9  ;;  %v6799_v10 = vld [vmem:[#allocation4 + $0x70] sm:$0xff]   ;;  %v6135_v11 = vld [vmem:[%s10999_s3 + $0x2a8] sm:$0xf]  ;;  %v6800_v15 = vld [vmem:[#allocation4 + $0x78] sm:$0xff]  }
  0x2a   :  { %v6136_v12 = vld [vmem:[%s10999_s3 + $0x2b4] sm:$0xf]  ;;  %444 = vst [vmem:[#allocation4 + $0xe0] sm:$0xf] %v6135_v11  ;;  %v6137_v13 = vld [vmem:[%s10999_s3 + $0x2c0] sm:$0xf] }
  0x2b   :  { %446 = vst [vmem:[#allocation4 + $0xe4] sm:$0xf] %v6136_v12  ;;  %v6138_v14 = vld [vmem:[%s10999_s3 + $0x2cc] sm:$0xf]  ;;  %448 = vst [vmem:[#allocation4 + $0xe8] sm:$0xf] %v6137_v13 }
  0x2c   :  { %2276 = vmatpush1.bf16.msra.mxu0 %v6792_v46  ;;  %6775 = vmatpush1.bf16.msra.mxu1 %v6792_v46  ;;  %450 = vst [vmem:[#allocation4 + $0xec] sm:$0xf] %v6138_v14  ;;  %v6801_v16 = vld [vmem:[%s10997_s1] ss:$16 sps:$4 sm:$0xff]   ;;  %v6809_v18 = vld [vmem:[%s10997_s1 + $0x24] ss:$16 sps:$4 sm:$0xff]  }
  0x2d   :  { %2277 = vmatprep.subr.bf16.mxu0 %v7626_v2  ;;  %6760 = vmatprep.subr.bf16.mxu1 %v7626_v2  ;;  %v6804_v17 = vld [vmem:[%s10997_s1 + $0x300] ss:$16 sps:$4 sm:$0xff]   ;;  %v6139_v20 = vld [vmem:[%s10999_s3 + $0x2d8] sm:$0xf]  ;;  %v6140_v21 = vld [vmem:[%s10999_s3 + $0x2e4] sm:$0xf] }
  0x2e   :  { %v6807_v19 = vld [vmem:[#allocation4 + $0x80] sm:$0xff]   ;;  %452 = vst [vmem:[#allocation4 + $0xf0] sm:$0xf] %v6139_v20  ;;  %454 = vst [vmem:[#allocation4 + $0xf4] sm:$0xf] %v6140_v21  ;;  %v6808_v25 = vld [vmem:[#allocation4 + $0x88] sm:$0xff]  }
  0x2f   :  { %v6141_v22 = vld [vmem:[%s10999_s3 + $0x2f0] sm:$0xf]  ;;  %v6142_v23 = vld [vmem:[%s10999_s3 + $0x2fc] sm:$0xf]  ;;  %v6811_v24 = vld [vmem:[%s10997_s1 + $0x324] ss:$16 sps:$4 sm:$0xff]  }
  0x30   :  { %2278 = vmatpush1.bf16.msra.mxu0 %v6793_v51  ;;  %6776 = vmatpush1.bf16.msra.mxu1 %v6793_v51  ;;  %456 = vst [vmem:[#allocation4 + $0xf8] sm:$0xf] %v6141_v22  ;;  %458 = vst [vmem:[#allocation4 + $0xfc] sm:$0xf] %v6142_v23  ;;  %v6813_v26 = vld [vmem:[%s10997_s1 + $0x20] ss:$16 sps:$4 sm:$0xff]  }
  0x31   :  { %2279 = vmatprep.subr.bf16.mxu0 %v7626_v2  ;;  %6761 = vmatprep.subr.bf16.mxu1 %v7626_v2  ;;  %v6047_v27 = vld [vmem:[%s10998_s2 + $0x184] sm:$0xf]  ;;  %v6048_v28 = vld [vmem:[%s10998_s2 + $0x190] sm:$0xf]  ;;  %v6816_v33 = vld [vmem:[#allocation4 + $0x98] sm:$0xff]  }
  0x32   :  { %v6814_v29 = vld [vmem:[%s10997_s1 + $0x320] ss:$16 sps:$4 sm:$0xff]   ;;  %102 = vst [vmem:[#allocation3 + $0x80] sm:$0xf] %v6047_v27  ;;  %104 = vst [vmem:[#allocation3 + $0x84] sm:$0xf] %v6048_v28 }
  0x33   :  { %v6817_v30 = vld [vmem:[%s10997_s1 + $0x44] ss:$16 sps:$4 sm:$0xff]   ;;  %v6821_v34 = vld [vmem:[%s10997_s1 + $0x40] ss:$16 sps:$4 sm:$0xff]   ;;  %v6049_v36 = vld [vmem:[%s10998_s2 + $0x19c] sm:$0xf] }
  0x34   :  { %2280 = vmatpush1.bf16.msra.mxu0 %v6794_v56  ;;  %6777 = vmatpush1.bf16.msra.mxu1 %v6794_v56  ;;  %v6815_v31 = vld [vmem:[#allocation4 + $0x90] sm:$0xff]   ;;  %v6050_v37 = vld [vmem:[%s10998_s2 + $0x1a8] sm:$0xf]  ;;  %106 = vst [vmem:[#allocation3 + $0x88] sm:$0xf] %v6049_v36  ;;  %v6823_v39 = vld [vmem:[#allocation4 + $0xa0] sm:$0xff]  }
  0x35   :  { %2281 = vmatprep.subr.bf16.mxu0 %v7626_v2  ;;  %6762 = vmatprep.subr.bf16.mxu1 %v7626_v2  ;;  %v6819_v32 = vld [vmem:[%s10997_s1 + $0x344] ss:$16 sps:$4 sm:$0xff]   ;;  %v6822_v35 = vld [vmem:[%s10997_s1 + $0x340] ss:$16 sps:$4 sm:$0xff]   ;;  %108 = vst [vmem:[#allocation3 + $0x8c] sm:$0xf] %v6050_v37 }
  0x36   :  { %v6825_v38 = vld [vmem:[%s10997_s1 + $0x64] ss:$16 sps:$4 sm:$0xff]   ;;  %v6824_v41 = vld [vmem:[#allocation4 + $0xa8] sm:$0xff]   ;;  %v6052_v43 = vld [vmem:[%s10998_s2 + $0x1c0] sm:$0xf] }
  0x37   :  { %v6827_v40 = vld [vmem:[%s10997_s1 + $0x364] ss:$16 sps:$4 sm:$0xff]   ;;  %v6829_v44 = vld [vmem:[%s10997_s1 + $0x60] ss:$16 sps:$4 sm:$0xff]   ;;  %112 = vst [vmem:[#allocation3 + $0x94] sm:$0xf] %v6052_v43 }
  0x38   :  { %2282 = vmatpush1.bf16.msra.mxu0 %v6795_v57  ;;  %6778 = vmatpush1.bf16.msra.mxu1 %v6795_v57  ;;  %v6051_v42 = vld [vmem:[%s10998_s2 + $0x1b4] sm:$0xf]  ;;  %v6830_v45 = vld [vmem:[%s10997_s1 + $0x360] ss:$16 sps:$4 sm:$0xff]   ;;  %v6015_v49 = vld [vmem:[%s10998_s2 + $0x4] sm:$0xf] }
  0x39   :  { %2283 = vmatprep.subr.bf16.mxu0 %v7626_v2  ;;  %6763 = vmatprep.subr.bf16.mxu1 %v7626_v2  ;;  %110 = vst [vmem:[#allocation3 + $0x90] sm:$0xf] %v6051_v42  ;;  %v6833_v46 = vld [vmem:[%s10997_s1 + $0x84] ss:$16 sps:$4 sm:$0xff]   ;;  %38 = vst [vmem:[#allocation3] sm:$0xf] %v6015_v49 }
  0x3a   :  { %v6831_v47 = vld [vmem:[#allocation4 + $0xb0] sm:$0xff]   ;;  %v6832_v51 = vld [vmem:[#allocation4 + $0xb8] sm:$0xff]   ;;  %v6053_v53 = vld [vmem:[%s10998_s2 + $0x1cc] sm:$0xf] }
  0x3b   :  { %v6835_v48 = vld [vmem:[%s10997_s1 + $0x384] ss:$16 sps:$4 sm:$0xff]   ;;  %v6016_v50 = vld [vmem:[%s10998_s2 + $0x10] sm:$0xf]  ;;  %v6054_v54 = vld [vmem:[%s10998_s2 + $0x1d8] sm:$0xf] }
  0x3c   :  { %2284 = vmatpush1.bf16.msra.mxu0 %v6796_v62  ;;  %6779 = vmatpush1.bf16.msra.mxu1 %v6796_v62  ;;  %40 = vst [vmem:[#allocation3 + $0x4] sm:$0xf] %v6016_v50  ;;  %v6837_v52 = vld [vmem:[%s10997_s1 + $0x80] ss:$16 sps:$4 sm:$0xff]   ;;  %v6017_v55 = vld [vmem:[%s10998_s2 + $0x1c] sm:$0xf] }
  0x3d   :  { %2285 = vmatprep.subr.bf16.mxu0 %v7626_v2  ;;  %6764 = vmatprep.subr.bf16.mxu1 %v7626_v2  ;;  %114 = vst [vmem:[#allocation3 + $0x98] sm:$0xf] %v6053_v53  ;;  %116 = vst [vmem:[#allocation3 + $0x9c] sm:$0xf] %v6054_v54  ;;  %v6018_v56 = vld [vmem:[%s10998_s2 + $0x28] sm:$0xf] }
  0x3e   :  { %42 = vst [vmem:[#allocation3 + $0x8] sm:$0xf] %v6017_v55  ;;  %v6838_v57 = vld [vmem:[%s10997_s1 + $0x380] ss:$16 sps:$4 sm:$0xff]   ;;  %44 = vst [vmem:[#allocation3 + $0xc] sm:$0xf] %v6018_v56 }
  0x3f   :  { %v6839_v58 = vld [vmem:[#allocation4 + $0xc0] sm:$0xff]   ;;  %v6840_v62 = vld [vmem:[#allocation4 + $0xc8] sm:$0xff]   ;;  %v6019_v63 = vld [vmem:[%s10998_s2 + $0x34] sm:$0xf] }
  0x40   :  { %2286 = vmatpush1.bf16.msra.mxu0 %v6797_v4  ;;  %6780 = vmatpush1.bf16.msra.mxu1 %v6797_v4  ;;  %v6841_v59 = vld [vmem:[%s10997_s1 + $0xa4] ss:$16 sps:$4 sm:$0xff]   ;;  %v6845_v0 = vld [vmem:[%s10997_s1 + $0xa0] ss:$16 sps:$4 sm:$0xff]   ;;  %46 = vst [vmem:[#allocation3 + $0x10] sm:$0xf] %v6019_v63 }
  0x41   :  { %2287 = vmatprep.subr.bf16.mxu0 %v7626_v2  ;;  %6765 = vmatprep.subr.bf16.mxu1 %v7626_v2  ;;  %v6843_v60 = vld [vmem:[%s10997_s1 + $0x3a4] ss:$16 sps:$4 sm:$0xff]   ;;  %v6846_v1 = vld [vmem:[%s10997_s1 + $0x3a0] ss:$16 sps:$4 sm:$0xff]   ;;  %v6022_v11 = vld [vmem:[%s10998_s2 + $0x58] sm:$0xf] }
  0x42   :  { %v6849_v3 = vld [vmem:[%s10997_s1 + $0xc4] ss:$16 sps:$4 sm:$0xff]   ;;  %v6056_v7 = vld [vmem:[%s10998_s2 + $0x1f0] sm:$0xf]  ;;  %v6848_v12 = vld [vmem:[#allocation4 + $0xd8] sm:$0xff]  }
  0x43   :  { %v6904_v61 = vld [vmem:[#allocation3] sm:$0xff]   ;;  %v6847_v8 = vld [vmem:[#allocation4 + $0xd0] sm:$0xff]   ;;  %120 = vst [vmem:[#allocation3 + $0xa4] sm:$0xf] %v6056_v7  ;;  %52 = vst [vmem:[#allocation3 + $0x1c] sm:$0xf] %v6022_v11 }
  0x44   :  { %2288 = vmatpush1.bf16.msra.mxu0 %v6798_v5  ;;  %6781 = vmatpush1.bf16.msra.mxu1 %v6798_v5  ;;  %v6020_v5 = vld [vmem:[%s10998_s2 + $0x40] sm:$0xf]  ;;  %v6055_v6 = vld [vmem:[%s10998_s2 + $0x1e4] sm:$0xf]  ;;  %v6057_v21 = vld [vmem:[%s10998_s2 + $0x1fc] sm:$0xf] }
  0x45   :  { %2289 = vmatprep.subr.bf16.mxu0 %v7626_v2  ;;  %6766 = vmatprep.subr.bf16.mxu1 %v7626_v2  ;;  %v6912_v4 = vld [vmem:[#allocation3 + $0x8] sm:$0xff]   ;;  %48 = vst [vmem:[#allocation3 + $0x14] sm:$0xf] %v6020_v5  ;;  %118 = vst [vmem:[#allocation3 + $0xa0] sm:$0xf] %v6055_v6  ;;  %v6855_v20 = vld [vmem:[#allocation4 + $0xe0] sm:$0xff]  }
  0x46   :  { %v6851_v9 = vld [vmem:[%s10997_s1 + $0x3c4] ss:$16 sps:$4 sm:$0xff]   ;;  %v6853_v13 = vld [vmem:[%s10997_s1 + $0xc0] ss:$16 sps:$4 sm:$0xff]   ;;  %122 = vst [vmem:[#allocation3 + $0xa8] sm:$0xf] %v6057_v21 }
  0x47   :  { %v6854_v14 = vld [vmem:[%s10997_s1 + $0x3c0] ss:$16 sps:$4 sm:$0xff]   ;;  %v6058_v22 = vld [vmem:[%s10998_s2 + $0x208] sm:$0xf]  ;;  %v6025_v23 = vld [vmem:[%s10998_s2 + $0x7c] sm:$0xf] }
  0x48   :  { %2290 = vmatpush1.bf16.msra.mxu0 %v6799_v10  ;;  %6782 = vmatpush1.bf16.msra.mxu1 %v6799_v10  ;;  %v6021_v10 = vld [vmem:[%s10998_s2 + $0x4c] sm:$0xf]  ;;  %124 = vst [vmem:[#allocation3 + $0xac] sm:$0xf] %v6058_v22  ;;  %58 = vst [vmem:[#allocation3 + $0x28] sm:$0xf] %v6025_v23 }
  0x49   :  { %2291 = vmatprep.subr.bf16.mxu0 %v7626_v2  ;;  %6767 = vmatprep.subr.bf16.mxu1 %v7626_v2  ;;  %50 = vst [vmem:[#allocation3 + $0x18] sm:$0xf] %v6021_v10  ;;  %v6861_v27 = vld [vmem:[%s10997_s1 + $0xe0] ss:$16 sps:$4 sm:$0xff]   ;;  %v6869_v36 = vld [vmem:[%s10997_s1 + $0xc] ss:$16 sps:$4 sm:$0xff]  }
  0x4a   :  { %v6862_v28 = vld [vmem:[%s10997_s1 + $0x3e0] ss:$16 sps:$4 sm:$0xff]   ;;  %v6059_v43 = vld [vmem:[%s10998_s2 + $0x214] sm:$0xf]  ;;  %v6874_v49 = vld [vmem:[%s10997_s1 + $0x2c] ss:$16 sps:$4 sm:$0xff]  }
  0x4b   :  { %v6032_v42 = vld [vmem:[%s10998_s2 + $0xd0] sm:$0xf]  ;;  %126 = vst [vmem:[#allocation3 + $0xb0] sm:$0xf] %v6059_v43  ;;  %v6036_v53 = vld [vmem:[%s10998_s2 + $0x100] sm:$0xf] }
  0x4c   :  { %2292 = vmatpush1.bf16.msra.mxu0 %v6800_v15  ;;  %6783 = vmatpush1.bf16.msra.mxu1 %v6800_v15  ;;  %v6857_v15 = vld [vmem:[%s10997_s1 + $0xe4] ss:$16 sps:$4 sm:$0xff]   ;;  %72 = vst [vmem:[#allocation3 + $0x44] sm:$0xf] %v6032_v42  ;;  %80 = vst [vmem:[#allocation3 + $0x54] sm:$0xf] %v6036_v53 }
  0x4d   :  { %2550 = vmatprep.subr.bf16.mxu1 %v7626_v2  ;;  %3671 = vmatprep.subr.bf16.mxu0 %v7626_v2  ;;  %v6037_v54 = vld [vmem:[%s10998_s2 + $0x10c] sm:$0xf]  ;;  %v6038_v55 = vld [vmem:[%s10998_s2 + $0x118] sm:$0xf]  ;;  %v6876_v56 = vld [vmem:[%s10997_s1 + $0x120] ss:$16 sps:$4 sm:$0xff]  }
  0x4e   :  { %82 = vst [vmem:[#allocation3 + $0x58] sm:$0xf] %v6037_v54  ;;  %84 = vst [vmem:[#allocation3 + $0x5c] sm:$0xf] %v6038_v55  ;;  %v6039_v63 = vld [vmem:[%s10998_s2 + $0x124] sm:$0xf] }
  0x4f   :  { %2294 = vmatmul.mubr.bf16.vlgmr.msra.gmra.mrb[0].mxu0 %v6801_v16  ;;  %2486 = vmatmul.mubr.bf16.vlgmr.msra.gmra.mrb[0].mxu1 %v6804_v17  ;;  %v6023_v16 = vld [vmem:[%s10998_s2 + $0x64] sm:$0xf]  ;;  %v6024_v17 = vld [vmem:[%s10998_s2 + $0x70] sm:$0xf]  ;;  %86 = vst [vmem:[#allocation3 + $0x60] sm:$0xf] %v6039_v63 }
  0x50   :  { %2551 = vmatpush1.bf16.msra.mxu1 %v6807_v19  ;;  %2301 = vmatprep.mubr.bf16.mxu0 %v6809_v18  ;;  %v6859_v18 = vld [vmem:[%s10997_s1 + $0x3e4] ss:$16 sps:$4 sm:$0xff]   ;;  %54 = vst [vmem:[#allocation3 + $0x20] sm:$0xf] %v6023_v16  ;;  %56 = vst [vmem:[#allocation3 + $0x24] sm:$0xf] %v6024_v17 }
  0x51   :  { %2552 = vmatprep.subr.bf16.mxu1 %v7626_v2  ;;  %2493 = vmatprep.mubr.bf16.mxu1 %v6811_v24  ;;  %v6925_v19 = vld [vmem:[#allocation3 + $0x10] sm:$0xff]   ;;  %v6026_v24 = vld [vmem:[%s10998_s2 + $0x88] sm:$0xf]  ;;  %v6061_v5 = vld [vmem:[%s10998_s2 + $0x22c] sm:$0xf] }
  0x52   :  { %3672 = vmatpush1.bf16.msra.mxu0 %v6904_v61  ;;  %60 = vst [vmem:[#allocation3 + $0x2c] sm:$0xf] %v6026_v24  ;;  %v6897_v61 = vld [vmem:[#allocation3 + $0x90] sm:$0xff]   ;;  %v6062_v6 = vld [vmem:[%s10998_s2 + $0x238] sm:$0xf] }
  0x53   :  { %3673 = vmatprep.subr.bf16.mxu0 %v7626_v2  ;;  %v6041_v7 = vld [vmem:[%s10998_s2 + $0x13c] sm:$0xf]  ;;  %130 = vst [vmem:[#allocation3 + $0xb8] sm:$0xf] %v6061_v5  ;;  %132 = vst [vmem:[#allocation3 + $0xbc] sm:$0xf] %v6062_v6 }
  0x54   :  { %2553 = vmatpush1.bf16.msra.mxu1 %v6808_v25  ;;  %v6933_v25 = vld [vmem:[#allocation3 + $0x18] sm:$0xff]   ;;  %90 = vst [vmem:[#allocation3 + $0x68] sm:$0xf] %v6041_v7  ;;  %v6885_v10 = vld [vmem:[%s10997_s1 + $0x164] ss:$16 sps:$4 sm:$0xff]  }
  0x55   :  { %2554 = vmatprep.subr.bf16.mxu1 %v7626_v2  ;;  %v6887_v11 = vld [vmem:[%s10997_s1 + $0x6c] ss:$16 sps:$4 sm:$0xff]   ;;  %v6046_v17 = vld [vmem:[%s10998_s2 + $0x178] sm:$0xf]  ;;  %v6891_v22 = vld [vmem:[%s10997_s1 + $0x184] ss:$16 sps:$4 sm:$0xff]  }
  0x56   :  { %3674 = vmatpush1.bf16.msra.mxu0 %v6912_v4  ;;  %v6882_v4 = vld [vmem:[%s10997_s1 + $0x140] ss:$16 sps:$4 sm:$0xff]   ;;  %100 = vst [vmem:[#allocation3 + $0x7c] sm:$0xf] %v6046_v17  ;;  %v6890_v21 = vld [vmem:[%s10997_s1 + $0x68] ss:$16 sps:$4 sm:$0xff]  }
  0x57   :  { %2302 = vmatmul.mubr.bf16.gmra.mrb[4].mxu0 %v6813_v26  ;;  %2494 = vmatmul.mubr.bf16.gmra.mrb[4].mxu1 %v6814_v29  ;;  %v6856_v26 = vld [vmem:[#allocation4 + $0xe8] sm:$0xff]   ;;  %v6027_v29 = vld [vmem:[%s10998_s2 + $0x94] sm:$0xf]  ;;  %v6063_v24 = vld [vmem:[%s10998_s2 + $0x244] sm:$0xf] }
  0x58   :  { %2555 = vmatpush1.bf16.msra.mxu1 %v6815_v31  ;;  %2309 = vmatprep.mubr.bf16.mxu0 %v6817_v30  ;;  %v6863_v30 = vld [vmem:[#allocation4 + $0xf0] sm:$0xff]   ;;  %62 = vst [vmem:[#allocation3 + $0x30] sm:$0xf] %v6027_v29  ;;  %v6893_v23 = vld [vmem:[%s10997_s1 + $0x8c] ss:$16 sps:$4 sm:$0xff]  }
  0x59   :  { %2556 = vmatprep.subr.bf16.mxu1 %v7626_v2  ;;  %2501 = vmatprep.mubr.bf16.mxu1 %v6819_v32  ;;  %v6865_v31 = vld [vmem:[%s10997_s1 + $0x104] ss:$16 sps:$4 sm:$0xff]   ;;  %v6942_v37 = vld [vmem:[#allocation3 + $0x28] sm:$0xff]   ;;  %134 = vst [vmem:[#allocation3 + $0xc0] sm:$0xf] %v6063_v24 }
  0x5a   :  { %3675 = vmatprep.subr.bf16.mxu0 %v7626_v2  ;;  %v6940_v32 = vld [vmem:[#allocation3 + $0x20] sm:$0xff]   ;;  %v6975_v29 = vld [vmem:[#allocation3 + $0xb8] sm:$0xff]   ;;  %v6067_v42 = vld [vmem:[%s10998_s2 + $0x274] sm:$0xf] }
  0x5b   :  { %3676 = vmatpush1.bf16.msra.mxu0 %v6925_v19  ;;  %v6941_v19 = vld [vmem:[#allocation3 + $0xa8] sm:$0xff]   ;;  %v6068_v43 = vld [vmem:[%s10998_s2 + $0x280] sm:$0xf]  ;;  %142 = vst [vmem:[#allocation3 + $0xd0] sm:$0xf] %v6067_v42 }
  0x5c   :  { %2557 = vmatpush1.bf16.msra.mxu1 %v6816_v33  ;;  %3677 = vmatprep.subr.bf16.mxu0 %v7626_v2  ;;  %v6028_v33 = vld [vmem:[%s10998_s2 + $0xa0] sm:$0xf]  ;;  %144 = vst [vmem:[#allocation3 + $0xd4] sm:$0xf] %v6068_v43  ;;  %v6918_v54 = vld [vmem:[%s10997_s1 + $0xe8] ss:$16 sps:$4 sm:$0xff]  }
  0x5d   :  { %2558 = vmatprep.subr.bf16.mxu1 %v7626_v2  ;;  %64 = vst [vmem:[#allocation3 + $0x34] sm:$0xf] %v6028_v33  ;;  %v6900_v33 = vld [vmem:[%s10997_s1 + $0xac] ss:$16 sps:$4 sm:$0xff]   ;;  %v6917_v53 = vld [vmem:[%s10997_s1 + $0x1e0] ss:$16 sps:$4 sm:$0xff]  }
  0x5e   :  { %v6919_v55 = vld [vmem:[%s10997_s1 + $0x204] ss:$16 sps:$4 sm:$0xff]   ;;  %v6072_v63 = vld [vmem:[%s10998_s2 + $0x2b0] sm:$0xf]  ;;  %v6939_v7 = vld [vmem:[%s10997_s1 + $0x148] ss:$16 sps:$4 sm:$0xff]  }
  0x5f   :  { %2310 = vmatmul.mubr.bf16.gmra.mrb[8].mxu0 %v6821_v34  ;;  %2502 = vmatmul.mubr.bf16.gmra.mrb[8].mxu1 %v6822_v35  ;;  %v6029_v34 = vld [vmem:[%s10998_s2 + $0xac] sm:$0xf]  ;;  %v6030_v35 = vld [vmem:[%s10998_s2 + $0xb8] sm:$0xf]  ;;  %152 = vst [vmem:[#allocation3 + $0xe4] sm:$0xf] %v6072_v63 }
  0x60   :  { %2559 = vmatpush1.bf16.msra.mxu1 %v6823_v39  ;;  %2317 = vmatprep.mubr.bf16.mxu0 %v6825_v38  ;;  %66 = vst [vmem:[#allocation3 + $0x38] sm:$0xf] %v6029_v34  ;;  %68 = vst [vmem:[#allocation3 + $0x3c] sm:$0xf] %v6030_v35  ;;  %v6864_v38 = vld [vmem:[#allocation4 + $0xf8] sm:$0xff]  }
  0x61   :  { %2560 = vmatprep.subr.bf16.mxu1 %v7626_v2  ;;  %2509 = vmatprep.mubr.bf16.mxu1 %v6827_v40  ;;  %v6031_v39 = vld [vmem:[%s10998_s2 + $0xc4] sm:$0xf]  ;;  %v6867_v40 = vld [vmem:[%s10997_s1 + $0x8] ss:$16 sps:$4 sm:$0xff]   ;;  %v6065_v35 = vld [vmem:[%s10998_s2 + $0x25c] sm:$0xf] }
  0x62   :  { %3678 = vmatpush1.bf16.msra.mxu0 %v6933_v25  ;;  %70 = vst [vmem:[#allocation3 + $0x40] sm:$0xf] %v6031_v39  ;;  %v6064_v25 = vld [vmem:[%s10998_s2 + $0x250] sm:$0xf]  ;;  %138 = vst [vmem:[#allocation3 + $0xc8] sm:$0xf] %v6065_v35 }
  0x63   :  { %3679 = vmatprep.subr.bf16.mxu0 %v7626_v2  ;;  %136 = vst [vmem:[#allocation3 + $0xc4] sm:$0xf] %v6064_v25  ;;  %v6903_v39 = vld [vmem:[%s10997_s1 + $0xa8] ss:$16 sps:$4 sm:$0xff]   ;;  %v6938_v6 = vld [vmem:[%s10997_s1 + $0x240] ss:$16 sps:$4 sm:$0xff]  }
  0x64   :  { %2561 = vmatpush1.bf16.msra.mxu1 %v6824_v41  ;;  %v6870_v41 = vld [vmem:[%s10997_s1 + $0x100] ss:$16 sps:$4 sm:$0xff]   ;;  %v6965_v24 = vld [vmem:[%s10997_s1 + $0x1a8] ss:$16 sps:$4 sm:$0xff]   ;;  %v6968_v25 = vld [vmem:[%s10997_s1 + $0x2c4] ss:$16 sps:$4 sm:$0xff]  }
  0x65   :  { %2562 = vmatprep.subr.bf16.mxu1 %v7626_v2  ;;  %v6949_v50 = vld [vmem:[#allocation3 + $0x30] sm:$0xff]   ;;  %v6982_v35 = vld [vmem:[%s10997_s1 + $0x1e8] ss:$16 sps:$4 sm:$0xff]  }
  0x66   :  { %3680 = vmatpush1.bf16.msra.mxu0 %v6940_v32  ;;  %v6898_v32 = vld [vmem:[%s10997_s1 + $0x1a4] ss:$16 sps:$4 sm:$0xff]   ;;  %v6955_v17 = vld [vmem:[%s10997_s1 + $0x280] ss:$16 sps:$4 sm:$0xff]   ;;  %v6996_v43 = vld [vmem:[%s10997_s1 + $0x228] ss:$16 sps:$4 sm:$0xff]  }
  0x67   :  { %2318 = vmatmul.mubr.bf16.gmra.mrb[12].mxu0 %v6829_v44  ;;  %2510 = vmatmul.mubr.bf16.gmra.mrb[12].mxu1 %v6830_v45  ;;  %v6060_v44 = vld [vmem:[%s10998_s2 + $0x220] sm:$0xf]  ;;  %v6033_v45 = vld [vmem:[%s10998_s2 + $0xdc] sm:$0xf]  ;;  %v6994_v42 = vld [vmem:[%s10996_s0 + $0x24] ss:$16 sps:$4 sm:$0xff]  }
  0x68   :  { %2563 = vmatpush1.bf16.msra.mxu1 %v6831_v47  ;;  %2325 = vmatprep.mubr.bf16.mxu0 %v6833_v46  ;;  %v6034_v46 = vld [vmem:[%s10998_s2 + $0xe8] sm:$0xf]  ;;  %v6872_v47 = vld [vmem:[%s10997_s1 + $0x124] ss:$16 sps:$4 sm:$0xff]   ;;  %128 = vst [vmem:[#allocation3 + $0xb4] sm:$0xf] %v6060_v44 }
  0x69   :  { %2564 = vmatprep.subr.bf16.mxu1 %v7626_v2  ;;  %2517 = vmatprep.mubr.bf16.mxu1 %v6835_v48  ;;  %74 = vst [vmem:[#allocation3 + $0x48] sm:$0xf] %v6033_v45  ;;  %76 = vst [vmem:[#allocation3 + $0x4c] sm:$0xf] %v6034_v46  ;;  %v6871_v48 = vld [vmem:[#allocation3 + $0x80] sm:$0xff]  }
  0x6a   :  { %3681 = vmatprep.subr.bf16.mxu0 %v7626_v2  ;;  %v6991_v34 = vld [vmem:[#allocation3 + $0xc0] sm:$0xff]   ;;  %v6907_v44 = vld [vmem:[%s10997_s1 + $0xcc] ss:$16 sps:$4 sm:$0xff]  }
  0x6b   :  { %3682 = vmatpush1.bf16.msra.mxu0 %v6942_v37  ;;  %v6909_v46 = vld [vmem:[%s10997_s1 + $0x1c0] ss:$16 sps:$4 sm:$0xff]  }
  0x6c   :  { %2565 = vmatpush1.bf16.msra.mxu1 %v6832_v51  ;;  %3683 = vmatprep.subr.bf16.mxu0 %v7626_v2  ;;  %v6884_v51 = vld [vmem:[#allocation3 + $0x88] sm:$0xff]  }
  0x6d   :  { %2566 = vmatprep.subr.bf16.mxu1 %v7626_v2 }
  0x6f   :  { %2326 = vmatmul.mubr.bf16.gmra.mrb[16].mxu0 %v6837_v52  ;;  %2518 = vmatmul.mubr.bf16.gmra.mrb[16].mxu1 %v6838_v57  ;;  %v6035_v52 = vld [vmem:[%s10998_s2 + $0xf4] sm:$0xf]  ;;  %v6877_v57 = vld [vmem:[%s10997_s1 + $0x28] ss:$16 sps:$4 sm:$0xff]  }
  0x70   :  { %2567 = vmatpush1.bf16.msra.mxu1 %v6839_v58  ;;  %2333 = vmatprep.mubr.bf16.mxu0 %v6841_v59  ;;  %78 = vst [vmem:[#allocation3 + $0x50] sm:$0xf] %v6035_v52  ;;  %v6950_v58 = vld [vmem:[#allocation3 + $0x38] sm:$0xff]   ;;  %v6878_v59 = vld [vmem:[%s10997_s1 + $0x144] ss:$16 sps:$4 sm:$0xff]  }
  0x71   :  { %2568 = vmatprep.subr.bf16.mxu1 %v7626_v2  ;;  %2525 = vmatprep.mubr.bf16.mxu1 %v6843_v60  ;;  %v6880_v60 = vld [vmem:[%s10997_s1 + $0x4c] ss:$16 sps:$4 sm:$0xff]   ;;  %v6070_v52 = vld [vmem:[%s10998_s2 + $0x298] sm:$0xf] }
  0x72   :  { %3684 = vmatpush1.bf16.msra.mxu0 %v6949_v50  ;;  %v6915_v50 = vld [vmem:[%s10997_s1 + $0xec] ss:$16 sps:$4 sm:$0xff]   ;;  %148 = vst [vmem:[#allocation3 + $0xdc] sm:$0xf] %v6070_v52 }
  0x73   :  { %3685 = vmatprep.subr.bf16.mxu0 %v7626_v2 }
  0x74   :  { %2569 = vmatpush1.bf16.msra.mxu1 %v6840_v62  ;;  %v6957_v62 = vld [vmem:[#allocation3 + $0x40] sm:$0xff]  }
  0x75   :  { %2570 = vmatprep.subr.bf16.mxu1 %v7626_v2 }
  0x76   :  { %3686 = vmatpush1.bf16.msra.mxu0 %v6950_v58  ;;  %v6923_v58 = vld [vmem:[%s10997_s1 + $0x200] ss:$16 sps:$4 sm:$0xff]  }
  0x77   :  { %2334 = vmatmul.mubr.bf16.gmra.mrb[20].mxu0 %v6845_v0  ;;  %2526 = vmatmul.mubr.bf16.gmra.mrb[20].mxu1 %v6846_v1  ;;  %v6040_v0 = vld [vmem:[%s10998_s2 + $0x130] sm:$0xf]  ;;  %v6911_v1 = vld [vmem:[#allocation3 + $0x98] sm:$0xff]  }
  0x78   :  { %2571 = vmatpush1.bf16.msra.mxu1 %v6847_v8  ;;  %2341 = vmatprep.mubr.bf16.mxu0 %v6849_v3  ;;  %88 = vst [vmem:[#allocation3 + $0x64] sm:$0xf] %v6040_v0  ;;  %v6959_v3 = vld [vmem:[#allocation3 + $0x48] sm:$0xff]   ;;  %v6966_v16 = vld [vmem:[#allocation3 + $0x50] sm:$0xff]  }
  0x79   :  { %2572 = vmatprep.subr.bf16.mxu1 %v7626_v2  ;;  %2533 = vmatprep.mubr.bf16.mxu1 %v6851_v9  ;;  %v6042_v8 = vld [vmem:[%s10998_s2 + $0x148] sm:$0xf]  ;;  %v6931_v0 = vld [vmem:[%s10997_s1 + $0x220] ss:$16 sps:$4 sm:$0xff]  }
  0x7a   :  { %3687 = vmatprep.subr.bf16.mxu0 %v7626_v2  ;;  %v6883_v9 = vld [vmem:[%s10997_s1 + $0x48] ss:$16 sps:$4 sm:$0xff]   ;;  %92 = vst [vmem:[#allocation3 + $0x6c] sm:$0xf] %v6042_v8  ;;  %v6943_v8 = vld [vmem:[%s10997_s1 + $0x264] ss:$16 sps:$4 sm:$0xff]  }
  0x7b   :  { %3688 = vmatpush1.bf16.msra.mxu0 %v6957_v62  ;;  %v6071_v62 = vld [vmem:[%s10998_s2 + $0x2a4] sm:$0xf] }
  0x7c   :  { %2573 = vmatpush1.bf16.msra.mxu1 %v6848_v12  ;;  %3689 = vmatprep.subr.bf16.mxu0 %v7626_v2  ;;  %v6926_v12 = vld [vmem:[#allocation3 + $0xa0] sm:$0xff]   ;;  %150 = vst [vmem:[#allocation3 + $0xe0] sm:$0xf] %v6071_v62 }
  0x7d   :  { %2574 = vmatprep.subr.bf16.mxu1 %v7626_v2 }
  0x7f   :  { %2342 = vmatmul.mubr.bf16.gmra.mrb[24].mxu0 %v6853_v13  ;;  %2534 = vmatmul.mubr.bf16.gmra.mrb[24].mxu1 %v6854_v14  ;;  %v6043_v13 = vld [vmem:[%s10998_s2 + $0x154] sm:$0xf]  ;;  %v6044_v14 = vld [vmem:[%s10998_s2 + $0x160] sm:$0xf] }
  0x80   :  { %2575 = vmatpush1.bf16.msra.mxu1 %v6855_v20  ;;  %2349 = vmatprep.mubr.bf16.mxu0 %v6857_v15  ;;  %v6045_v15 = vld [vmem:[%s10998_s2 + $0x16c] sm:$0xf]  ;;  %94 = vst [vmem:[#allocation3 + $0x70] sm:$0xf] %v6043_v13  ;;  %96 = vst [vmem:[#allocation3 + $0x74] sm:$0xf] %v6044_v14 }
  0x81   :  { %2576 = vmatprep.subr.bf16.mxu1 %v7626_v2  ;;  %2541 = vmatprep.mubr.bf16.mxu1 %v6859_v18  ;;  %98 = vst [vmem:[#allocation3 + $0x78] sm:$0xf] %v6045_v15  ;;  %v6889_v18 = vld [vmem:[%s10997_s1 + $0x160] ss:$16 sps:$4 sm:$0xff]   ;;  %v6967_v20 = vld [vmem:[#allocation3 + $0x58] sm:$0xff]  }
  0x82   :  { %3690 = vmatpush1.bf16.msra.mxu0 %v6959_v3  ;;  %v6934_v3 = vld [vmem:[%s10997_s1 + $0x244] ss:$16 sps:$4 sm:$0xff]   ;;  %v6948_v13 = vld [vmem:[%s10997_s1 + $0x168] ss:$16 sps:$4 sm:$0xff]   ;;  %v6953_v15 = vld [vmem:[%s10997_s1 + $0x18c] ss:$16 sps:$4 sm:$0xff]  }
  0x83   :  { %3691 = vmatprep.subr.bf16.mxu0 %v7626_v2  ;;  %v7043_v5 = vld [vmem:[#allocation3 + $0xe0] sm:$0xff]  }
  0x84   :  { %2577 = vmatpush1.bf16.msra.mxu1 %v6856_v26  ;;  %v6958_v26 = vld [vmem:[#allocation3 + $0xb0] sm:$0xff]  }
  0x85   :  { %2578 = vmatprep.subr.bf16.mxu1 %v7626_v2  ;;  %v6951_v14 = vld [vmem:[%s10997_s1 + $0x284] ss:$16 sps:$4 sm:$0xff]  }
  0x86   :  { %3692 = vmatpush1.bf16.msra.mxu0 %v6966_v16 }
  0x87   :  { %2350 = vmatmul.mubr.bf16.gmra.mrb[28].mxu0 %v6861_v27  ;;  %2542 = vmatmul.mubr.bf16.gmra.mrb[28].mxu1 %v6862_v28  ;;  %v6974_v27 = vld [vmem:[#allocation3 + $0x60] sm:$0xff]   ;;  %v6983_v37 = vld [vmem:[#allocation3 + $0x70] sm:$0xff]  }
  0x88   :  { %2579 = vmatpush1.bf16.msra.mxu1 %v6863_v30  ;;  %2357 = vmatprep.mubr.bf16.mxu0 %v6865_v31  ;;  %v6895_v28 = vld [vmem:[%s10997_s1 + $0x180] ss:$16 sps:$4 sm:$0xff]   ;;  %v6976_v30 = vld [vmem:[#allocation3 + $0x68] sm:$0xff]  }
  0x89   :  { %2580 = vmatprep.subr.bf16.mxu1 %v7626_v2  ;;  %2582 = vmatprep.mubr.bf16.mxu1 %v6869_v36  ;;  %v6896_v31 = vld [vmem:[%s10997_s1 + $0x88] ss:$16 sps:$4 sm:$0xff]  }
  0x8a   :  { %3693 = vmatprep.subr.bf16.mxu0 %v7626_v2  ;;  %v6066_v36 = vld [vmem:[%s10998_s2 + $0x268] sm:$0xf] }
  0x8b   :  { %3694 = vmatpush1.bf16.msra.mxu0 %v6967_v20  ;;  %140 = vst [vmem:[#allocation3 + $0xcc] sm:$0xf] %v6066_v36  ;;  %v6962_v20 = vld [vmem:[%s10997_s1 + $0x1ac] ss:$16 sps:$4 sm:$0xff]  }
  0x8c   :  { %2581 = vmatpush1.bf16.msra.mxu1 %v6864_v38  ;;  %3695 = vmatprep.subr.bf16.mxu0 %v7626_v2  ;;  %v6902_v38 = vld [vmem:[%s10997_s1 + $0x1a0] ss:$16 sps:$4 sm:$0xff]   ;;  %v6985_v36 = vld [vmem:[%s10997_s1 + $0x20c] ss:$16 sps:$4 sm:$0xff]  }
  0x8d   :  { %3960 = vmatprep.subr.bf16.mxu1 %v7626_v2 }
  0x8f   :  { %2358 = vmatmul.mubr.bf16.gmra.mrb[32].mxu0 %v6870_v41  ;;  %2583 = vmatmul.mubr.bf16.vlgmr.msra.gmra.mrb[32].mxu1 %v6867_v40  ;;  %v6905_v40 = vld [vmem:[%s10997_s1 + $0x1c4] ss:$16 sps:$4 sm:$0xff]   ;;  %v6984_v41 = vld [vmem:[#allocation3 + $0x78] sm:$0xff]  }
  0x90   :  { %3961 = vmatpush1.bf16.msra.mxu1 %v6871_v48  ;;  %2365 = vmatprep.mubr.bf16.mxu0 %v6872_v47  ;;  %v6910_v47 = vld [vmem:[%s10997_s1 + $0xc8] ss:$16 sps:$4 sm:$0xff]   ;;  %v7017_v48 = vld [vmem:[#allocation3 + $0xd0] sm:$0xff]  }
  0x91   :  { %2590 = vmatprep.mubr.bf16.mxu1 %v6874_v49  ;;  %3962 = vmatprep.subr.bf16.mxu1 %v7626_v2  ;;  %v6913_v49 = vld [vmem:[%s10997_s1 + $0x1e4] ss:$16 sps:$4 sm:$0xff]  }
  0x92   :  { %3696 = vmatpush1.bf16.msra.mxu0 %v6974_v27  ;;  %v7004_v45 = vld [vmem:[#allocation3 + $0xc8] sm:$0xff]   ;;  %v7074_v27 = vld [vmem:[%s11002_s6] sm:$0xff]  }
  0x93   :  { %3697 = vmatprep.subr.bf16.mxu0 %v7626_v2 }
  0x94   :  { %3963 = vmatpush1.bf16.msra.mxu1 %v6884_v51  ;;  %v6069_v51 = vld [vmem:[%s10998_s2 + $0x28c] sm:$0xf] }
  0x95   :  { %3964 = vmatprep.subr.bf16.mxu1 %v7626_v2  ;;  %146 = vst [vmem:[#allocation3 + $0xd8] sm:$0xf] %v6069_v51  ;;  %v7007_v51 = vld [vmem:[%s10996_s0 + $0x64] ss:$16 sps:$4 sm:$0xff]  }
  0x96   :  { %3698 = vmatpush1.bf16.msra.mxu0 %v6976_v30  ;;  %v6973_v30 = vld [vmem:[%s10997_s1 + $0x1c8] ss:$16 sps:$4 sm:$0xff]  }
  0x97   :  { %2366 = vmatmul.mubr.bf16.gmra.mrb[36].mxu0 %v6876_v56  ;;  %2591 = vmatmul.mubr.bf16.gmra.mrb[36].mxu1 %v6877_v57  ;;  %v6921_v56 = vld [vmem:[%s10997_s1 + $0x10c] ss:$16 sps:$4 sm:$0xff]  }
  0x98   :  { %2373 = vmatprep.mubr.bf16.mxu0 %v6878_v59  ;;  %2598 = vmatprep.mubr.bf16.mxu1 %v6880_v60  ;;  %v6924_v59 = vld [vmem:[%s10997_s1 + $0x108] ss:$16 sps:$4 sm:$0xff]   ;;  %v6927_v60 = vld [vmem:[%s10997_s1 + $0x224] ss:$16 sps:$4 sm:$0xff]  }
  0x99   :  { %3965 = vmatpush1.bf16.msra.mxu1 %v6897_v61  ;;  %3699 = vmatprep.subr.bf16.mxu0 %v7626_v2  ;;  %v6929_v61 = vld [vmem:[%s10997_s1 + $0x12c] ss:$16 sps:$4 sm:$0xff]  }
  0x9a   :  { %3966 = vmatprep.subr.bf16.mxu1 %v7626_v2  ;;  %3700 = vmatpush1.bf16.msra.mxu0 %v6983_v37  ;;  %v6989_v37 = vld [vmem:[%s10996_s0 + $0x4] ss:$16 sps:$4 sm:$0xff]  }
  0x9b   :  { %3701 = vmatprep.subr.bf16.mxu0 %v7626_v2 }
  0x9c   :  { %v7030_v57 = vld [vmem:[#allocation3 + $0xd8] sm:$0xff]  }
  0x9d   :  { %3967 = vmatpush1.bf16.msra.mxu1 %v6911_v1  ;;  %v6932_v1 = vld [vmem:[%s10997_s1 + $0x128] ss:$16 sps:$4 sm:$0xff]  }
  0x9e   :  { %3968 = vmatprep.subr.bf16.mxu1 %v7626_v2  ;;  %3702 = vmatpush1.bf16.msra.mxu0 %v6984_v41  ;;  %v6992_v41 = vld [vmem:[%s10997_s1 + $0x22c] ss:$16 sps:$4 sm:$0xff]  }
  0x9f   :  { %2374 = vmatmul.mubr.bf16.gmra.mrb[40].mxu0 %v6882_v4  ;;  %2599 = vmatmul.mubr.bf16.gmra.mrb[40].mxu1 %v6883_v9  ;;  %v6936_v4 = vld [vmem:[%s10997_s1 + $0x14c] ss:$16 sps:$4 sm:$0xff]  }
  0xa0   :  { %2381 = vmatprep.mubr.bf16.mxu0 %v6885_v10  ;;  %2606 = vmatprep.mubr.bf16.mxu1 %v6887_v11  ;;  %v6945_v9 = vld [vmem:[%s10997_s1 + $0x16c] ss:$16 sps:$4 sm:$0xff]   ;;  %v6074_v11 = vld [vmem:[%s10998_s2 + $0x2c8] sm:$0xf] }
  0xa1   :  { %3969 = vmatpush1.bf16.msra.mxu1 %v6926_v12  ;;  %v6073_v10 = vld [vmem:[%s10998_s2 + $0x2bc] sm:$0xf]  ;;  %156 = vst [vmem:[#allocation3 + $0xec] sm:$0xf] %v6074_v11  ;;  %v6947_v12 = vld [vmem:[%s10997_s1 + $0x260] ss:$16 sps:$4 sm:$0xff]   ;;  %6672 = vmatprep.subr.bf16.mxu0 %v7074_v27 }
  0xa2   :  { %3970 = vmatprep.subr.bf16.mxu1 %v7626_v2  ;;  %154 = vst [vmem:[#allocation3 + $0xe8] sm:$0xf] %v6073_v10 }
  0xa5   :  { %3971 = vmatpush1.bf16.msra.mxu1 %v6941_v19  ;;  %v6960_v19 = vld [vmem:[%s10997_s1 + $0x2a4] ss:$16 sps:$4 sm:$0xff]  }
  0xa6   :  { %3972 = vmatprep.subr.bf16.mxu1 %v7626_v2 }
  0xa7   :  { %2382 = vmatmul.mubr.bf16.gmra.mrb[44].mxu0 %v6889_v18  ;;  %2607 = vmatmul.mubr.bf16.gmra.mrb[44].mxu1 %v6890_v21  ;;  %v6956_v18 = vld [vmem:[%s10997_s1 + $0x188] ss:$16 sps:$4 sm:$0xff]   ;;  %v6075_v21 = vld [vmem:[%s10998_s2 + $0x2d4] sm:$0xf] }
  0xa8   :  { %2389 = vmatprep.mubr.bf16.mxu0 %v6891_v22  ;;  %2614 = vmatprep.mubr.bf16.mxu1 %v6893_v23  ;;  %v6076_v22 = vld [vmem:[%s10998_s2 + $0x2e0] sm:$0xf]  ;;  %158 = vst [vmem:[#allocation3 + $0xf0] sm:$0xf] %v6075_v21  ;;  %v7026_v21 = vld [vmem:[%s10996_s0 + $0xc4] ss:$16 sps:$4 sm:$0xff]  }
  0xa9   :  { %3973 = vmatpush1.bf16.msra.mxu1 %v6958_v26  ;;  %v7056_v16 = vld [vmem:[#allocation3 + $0xe8] sm:$0xff]   ;;  %160 = vst [vmem:[#allocation3 + $0xf4] sm:$0xf] %v6076_v22  ;;  %v6964_v23 = vld [vmem:[%s10997_s1 + $0x2a0] ss:$16 sps:$4 sm:$0xff]  }
  0xaa   :  { %3974 = vmatprep.subr.bf16.mxu1 %v7626_v2  ;;  %v6970_v26 = vld [vmem:[%s10997_s1 + $0x1cc] ss:$16 sps:$4 sm:$0xff]  }
  0xad   :  { %3975 = vmatpush1.bf16.msra.mxu1 %v6975_v29  ;;  %v6972_v29 = vld [vmem:[%s10997_s1 + $0x2c0] ss:$16 sps:$4 sm:$0xff]  }
  0xae   :  { %3976 = vmatprep.subr.bf16.mxu1 %v7626_v2 }
  0xaf   :  { %2390 = vmatmul.mubr.bf16.gmra.mrb[48].mxu0 %v6895_v28  ;;  %2615 = vmatmul.mubr.bf16.gmra.mrb[48].mxu1 %v6896_v31  ;;  %v6977_v31 = vld [vmem:[%s10997_s1 + $0x2e4] ss:$16 sps:$4 sm:$0xff]  }
  0xb0   :  { %2397 = vmatprep.mubr.bf16.mxu0 %v6898_v32  ;;  %2622 = vmatprep.mubr.bf16.mxu1 %v6900_v33  ;;  %v7069_v28 = vld [vmem:[#allocation3 + $0xf0] sm:$0xff]   ;;  %v6979_v32 = vld [vmem:[%s10997_s1 + $0x1ec] ss:$16 sps:$4 sm:$0xff]  }
  0xb1   :  { %3977 = vmatpush1.bf16.msra.mxu1 %v6991_v34  ;;  %v6077_v33 = vld [vmem:[%s10998_s2 + $0x2ec] sm:$0xf]  ;;  %v6078_v34 = vld [vmem:[%s10998_s2 + $0x2f8] sm:$0xf] }
  0xb2   :  { %3978 = vmatprep.subr.bf16.mxu1 %v7626_v2  ;;  %162 = vst [vmem:[#allocation3 + $0xf8] sm:$0xf] %v6077_v33  ;;  %164 = vst [vmem:[#allocation3 + $0xfc] sm:$0xf] %v6078_v34  ;;  %v7031_v33 = vld [vmem:[%s10997_s1 + $0x2ec] ss:$16 sps:$4 sm:$0xff]  }
  0xb3   :  { %v7033_v34 = vld [vmem:[%s10996_s0 + $0xe4] ss:$16 sps:$4 sm:$0xff]  }
  0xb5   :  { %3979 = vmatpush1.bf16.msra.mxu1 %v7004_v45  ;;  %v6998_v45 = vld [vmem:[%s10997_s1 + $0x24c] ss:$16 sps:$4 sm:$0xff]  }
  0xb6   :  { %3980 = vmatprep.subr.bf16.mxu1 %v7626_v2 }
  0xb7   :  { %2398 = vmatmul.mubr.bf16.gmra.mrb[52].mxu0 %v6902_v38  ;;  %2623 = vmatmul.mubr.bf16.gmra.mrb[52].mxu1 %v6903_v39  ;;  %v6987_v39 = vld [vmem:[%s10996_s0] ss:$16 sps:$4 sm:$0xff]  }
  0xb8   :  { %2405 = vmatprep.mubr.bf16.mxu0 %v6905_v40  ;;  %2630 = vmatprep.mubr.bf16.mxu1 %v6907_v44  ;;  %v6990_v40 = vld [vmem:[%s10997_s1 + $0x208] ss:$16 sps:$4 sm:$0xff]   ;;  %v6997_v44 = vld [vmem:[%s10996_s0 + $0x20] ss:$16 sps:$4 sm:$0xff]  }
  0xb9   :  { %3981 = vmatpush1.bf16.msra.mxu1 %v7017_v48  ;;  %v7083_v38 = vld [vmem:[#allocation3 + $0xf8] sm:$0xff]  }
  0xba   :  { %3982 = vmatprep.subr.bf16.mxu1 %v7626_v2  ;;  %v7002_v48 = vld [vmem:[%s10997_s1 + $0x248] ss:$16 sps:$4 sm:$0xff]  }
  0xbd   :  { %3983 = vmatpush1.bf16.msra.mxu1 %v7030_v57 }
  0xbe   :  { %3984 = vmatprep.subr.bf16.mxu1 %v7626_v2 }
  0xbf   :  { %2406 = vmatmul.mubr.bf16.gmra.mrb[56].mxu0 %v6909_v46  ;;  %2631 = vmatmul.mubr.bf16.gmra.mrb[56].mxu1 %v6910_v47  ;;  %v7000_v46 = vld [vmem:[%s10996_s0 + $0x44] ss:$16 sps:$4 sm:$0xff]   ;;  %v7100_v47 = vld [vmem:[%s11002_s6 + $0x8] sm:$0xff]  }
  0xc0   :  { %2413 = vmatprep.mubr.bf16.mxu0 %v6913_v49  ;;  %2638 = vmatprep.mubr.bf16.mxu1 %v6915_v50  ;;  %v7003_v49 = vld [vmem:[%s10996_s0 + $0x40] ss:$16 sps:$4 sm:$0xff]   ;;  %v7005_v50 = vld [vmem:[%s10997_s1 + $0x26c] ss:$16 sps:$4 sm:$0xff]  }
  0xc1   :  { %3985 = vmatpush1.bf16.msra.mxu1 %v7043_v5  ;;  %v7016_v5 = vld [vmem:[%s10996_s0 + $0x80] ss:$16 sps:$4 sm:$0xff]  }
  0xc2   :  { %3986 = vmatprep.subr.bf16.mxu1 %v7626_v2 }
  0xc5   :  { %3987 = vmatpush1.bf16.msra.mxu1 %v7056_v16  ;;  %v7022_v16 = vld [vmem:[%s10997_s1 + $0x2a8] ss:$16 sps:$4 sm:$0xff]  }
  0xc6   :  { %3988 = vmatprep.subr.bf16.mxu1 %v7626_v2 }
  0xc7   :  { %2414 = vmatmul.mubr.bf16.gmra.mrb[60].mxu0 %v6917_v53  ;;  %2639 = vmatmul.mubr.bf16.gmra.mrb[60].mxu1 %v6918_v54 }
  0xc8   :  { %2421 = vmatprep.mubr.bf16.mxu0 %v6919_v55  ;;  %2646 = vmatprep.mubr.bf16.mxu1 %v6921_v56  ;;  %v7009_v55 = vld [vmem:[%s10997_s1 + $0x268] ss:$16 sps:$4 sm:$0xff]   ;;  %v7010_v56 = vld [vmem:[%s10996_s0 + $0x60] ss:$16 sps:$4 sm:$0xff]  }
  0xc9   :  { %3989 = vmatpush1.bf16.msra.mxu1 %v7069_v28 }
  0xca   :  { %3990 = vmatprep.subr.bf16.mxu1 %v7626_v2  ;;  %v6981_v2 = vld [vmem:[%s10997_s1 + $0x2e0] ss:$16 sps:$4 sm:$0xff]  }
  0xcd   :  { %3991 = vmatpush1.bf16.msra.mxu1 %v7083_v38 }
  0xcf   :  { %2422 = vmatmul.mubr.bf16.gmra.mrb[64].mxu0 %v6923_v58  ;;  %2647 = vmatmul.mubr.bf16.gmra.mrb[64].mxu1 %v6924_v59  ;;  %v7011_v59 = vld [vmem:[%s10997_s1 + $0x28c] ss:$16 sps:$4 sm:$0xff]  }
  0xd0   :  { %2429 = vmatprep.mubr.bf16.mxu0 %v6927_v60  ;;  %2654 = vmatprep.mubr.bf16.mxu1 %v6929_v61  ;;  %v7013_v60 = vld [vmem:[%s10996_s0 + $0x84] ss:$16 sps:$4 sm:$0xff]  }
  0xd7   :  { %2430 = vmatmul.mubr.bf16.gmra.mrb[68].mxu0 %v6931_v0  ;;  %2655 = vmatmul.mubr.bf16.gmra.mrb[68].mxu1 %v6932_v1 }
  0xd8   :  { %2437 = vmatprep.mubr.bf16.mxu0 %v6934_v3  ;;  %2662 = vmatprep.mubr.bf16.mxu1 %v6936_v4  ;;  %v7015_v4 = vld [vmem:[%s10997_s1 + $0x288] ss:$16 sps:$4 sm:$0xff]  }
  0xdf   :  { %2438 = vmatmul.mubr.bf16.gmra.mrb[72].mxu0 %v6938_v6  ;;  %2663 = vmatmul.mubr.bf16.gmra.mrb[72].mxu1 %v6939_v7 }
  0xe0   :  { %2445 = vmatprep.mubr.bf16.mxu0 %v6943_v8  ;;  %2670 = vmatprep.mubr.bf16.mxu1 %v6945_v9  ;;  %v7018_v8 = vld [vmem:[%s10997_s1 + $0x2ac] ss:$16 sps:$4 sm:$0xff]   ;;  %v7020_v9 = vld [vmem:[%s10996_s0 + $0xa4] ss:$16 sps:$4 sm:$0xff]  }
  0xe7   :  { %2446 = vmatmul.mubr.bf16.gmra.mrb[76].mxu0 %v6947_v12  ;;  %2671 = vmatmul.mubr.bf16.gmra.mrb[76].mxu1 %v6948_v13 }
  0xe8   :  { %2453 = vmatprep.mubr.bf16.mxu0 %v6951_v14  ;;  %2678 = vmatprep.mubr.bf16.mxu1 %v6953_v15 }
  0xef   :  { %2454 = vmatmul.mubr.bf16.gmra.mrb[80].mxu0 %v6955_v17  ;;  %2679 = vmatmul.mubr.bf16.gmra.mrb[80].mxu1 %v6956_v18  ;;  %v7023_v17 = vld [vmem:[%s10996_s0 + $0xa0] ss:$16 sps:$4 sm:$0xff]  }
  0xf0   :  { %2461 = vmatprep.mubr.bf16.mxu0 %v6960_v19  ;;  %2686 = vmatprep.mubr.bf16.mxu1 %v6962_v20  ;;  %v7024_v20 = vld [vmem:[%s10997_s1 + $0x2cc] ss:$16 sps:$4 sm:$0xff]  }
  0xf7   :  { %2462 = vmatmul.mubr.bf16.gmra.mrb[84].mxu0 %v6964_v23  ;;  %2687 = vmatmul.mubr.bf16.gmra.mrb[84].mxu1 %v6965_v24 }
  0xf8   :  { %2469 = vmatprep.mubr.bf16.mxu0 %v6968_v25  ;;  %2694 = vmatprep.mubr.bf16.mxu1 %v6970_v26  ;;  %v7125_v25 = vld [vmem:[%s11002_s6 + $0x10] sm:$0xff]  }
  0xff   :  { %2470 = vmatmul.mubr.bf16.gmra.mrb[88].mxu0 %v6972_v29  ;;  %2695 = vmatmul.mubr.bf16.gmra.mrb[88].mxu1 %v6973_v30  ;;  %v7028_v29 = vld [vmem:[%s10997_s1 + $0x2c8] ss:$16 sps:$4 sm:$0xff]   ;;  %v7029_v30 = vld [vmem:[%s10996_s0 + $0xc0] ss:$16 sps:$4 sm:$0xff]  }
 0x100   :  { %2477 = vmatprep.mubr.bf16.mxu0 %v6977_v31  ;;  %2702 = vmatprep.mubr.bf16.mxu1 %v6979_v32 }
 0x107   :  { %2478 = vmatmul.mubr.bf16.gmra.mrb[92].mxu0 %v6981_v2  ;;  %2703 = vmatmul.mubr.bf16.gmra.mrb[92].mxu1 %v6982_v35 }
 0x108   :  { %2710 = vmatprep.mubr.bf16.mxu1 %v6985_v36  ;;  %3703 = vmatprep.mubr.bf16.mxu0 %v6989_v37 }
 0x10f   :  { %2711 = vmatmul.mubr.bf16.gmra.mrb[96].mxu1 %v6990_v40  ;;  %3704 = vmatmul.mubr.bf16.vlgmr.msra.gmra.mrb[96].mxu0 %v6987_v39  ;;  %v7035_v40 = vld [vmem:[%s10997_s1 + $0x2e8] ss:$16 sps:$4 sm:$0xff]  }
 0x110   :  { %2718 = vmatprep.mubr.bf16.mxu1 %v6992_v41  ;;  %3711 = vmatprep.mubr.bf16.mxu0 %v6994_v42  ;;  %v7036_v41 = vld [vmem:[%s10996_s0 + $0xe0] ss:$16 sps:$4 sm:$0xff]  }
 0x111   :  { %6673 = vmatpush3.bf16.msra.mxu0 %v7074_v27 }
 0x112   :  { %6674 = vmatprep.subr.bf16.mxu0 %v7100_v47 }
 0x115   :  { %6675 = vmatpush3.bf16.msra.mxu0 %v7100_v47 }
 0x116   :  { %6676 = vmatprep.subr.bf16.mxu0 %v7125_v25 }
 0x117   :  { %2719 = vmatmul.mubr.bf16.gmra.mrb[100].mxu1 %v6996_v43  ;;  %3712 = vmatmul.mubr.bf16.gmra.mrb[100].mxu0 %v6997_v44  ;;  %v7037_v44 = vld [vmem:[%s10997_s1 + $0x30c] ss:$16 sps:$4 sm:$0xff]  }
 0x118   :  { %2726 = vmatprep.mubr.bf16.mxu1 %v6998_v45  ;;  %3719 = vmatprep.mubr.bf16.mxu0 %v7000_v46  ;;  %v7039_v45 = vld [vmem:[%s10996_s0 + $0x104] ss:$16 sps:$4 sm:$0xff]  }
 0x119   :  { %6677 = vmatpush3.bf16.msra.mxu0 %v7125_v25 }
 0x11f   :  { %2727 = vmatmul.mubr.bf16.gmra.mrb[104].mxu1 %v7002_v48  ;;  %3720 = vmatmul.mubr.bf16.gmra.mrb[104].mxu0 %v7003_v49 }
 0x120   :  { %2734 = vmatprep.mubr.bf16.mxu1 %v7005_v50  ;;  %3727 = vmatprep.mubr.bf16.mxu0 %v7007_v51 }
 0x122   :  { %v8477_v52 = vpop.f32.mrb[0].mxu1  ;;  %v8479_v53 = vpop.f32.mrb[0].mxu0 }
 0x123   :  { %v2489_v54 = vpop.f32.mrb[1].mxu1  ;;  %v2297_v57 = vpop.f32.mrb[1].mxu0 }
 0x124   :  { %v8487_v58 = vpop.f32.mrb[2].mxu1  ;;  %v8495_v61 = vpop.f32.mrb[2].mxu0  ;;  %v7041_v54 = vld [vmem:[%s10997_s1 + $0x308] ss:$16 sps:$4 sm:$0xff]  }
 0x125   :  { %v2492_v62 = vpop.f32.mrb[3].mxu1  ;;  %v2300_v63 = vpop.f32.mrb[3].mxu0 }
 0x127   :  { %2735 = vmatmul.mubr.bf16.gmra.mrb[108].mxu1 %v7009_v55  ;;  %3728 = vmatmul.mubr.bf16.gmra.mrb[108].mxu0 %v7010_v56  ;;  %v7042_v55 = vld [vmem:[%s10996_s0 + $0x100] ss:$16 sps:$4 sm:$0xff]  }
 0x128   :  { %2742 = vmatprep.mubr.bf16.mxu1 %v7011_v59  ;;  %3735 = vmatprep.mubr.bf16.mxu0 %v7013_v60  ;;  %v7044_v59 = vld [vmem:[%s10997_s1 + $0x32c] ss:$16 sps:$4 sm:$0xff]   ;;  %v7046_v60 = vld [vmem:[%s10996_s0 + $0x124] ss:$16 sps:$4 sm:$0xff]  }
 0x12a   :  { %v8497_v0 = vpop.f32.mrb[4].mxu1  ;;  %v8499_v1 = vpop.f32.mrb[4].mxu0 }
 0x12b   :  { %v2497_v3 = vpop.f32.mrb[5].mxu1  ;;  %v2305_v6 = vpop.f32.mrb[5].mxu0 }
 0x12c   :  { %v8507_v7 = vpop.f32.mrb[6].mxu1  ;;  %v8515_v10 = vpop.f32.mrb[6].mxu0 }
 0x12d   :  { %v2500_v11 = vpop.f32.mrb[7].mxu1  ;;  %v2308_v12 = vpop.f32.mrb[7].mxu0 }
 0x12f   :  { %2743 = vmatmul.mubr.bf16.gmra.mrb[112].mxu1 %v7015_v4  ;;  %3736 = vmatmul.mubr.bf16.gmra.mrb[112].mxu0 %v7016_v5 }
 0x130   :  { %2750 = vmatprep.mubr.bf16.mxu1 %v7018_v8  ;;  %3743 = vmatprep.mubr.bf16.mxu0 %v7020_v9  ;;  %v7048_v8 = vld [vmem:[%s10997_s1 + $0x328] ss:$16 sps:$4 sm:$0xff]   ;;  %v7049_v9 = vld [vmem:[%s10996_s0 + $0x120] ss:$16 sps:$4 sm:$0xff]  }
 0x132   :  { %v8517_v13 = vpop.f32.mrb[8].mxu1  ;;  %v8519_v14 = vpop.f32.mrb[8].mxu0 }
 0x133   :  { %v2505_v15 = vpop.f32.mrb[9].mxu1  ;;  %v2313_v18 = vpop.f32.mrb[9].mxu0 }
 0x134   :  { %v8527_v19 = vpop.f32.mrb[10].mxu1  ;;  %v8535_v22 = vpop.f32.mrb[10].mxu0  ;;  %v7050_v15 = vld [vmem:[%s10997_s1 + $0x34c] ss:$16 sps:$4 sm:$0xff]  }
 0x135   :  { %v2508_v23 = vpop.f32.mrb[11].mxu1  ;;  %v2316_v24 = vpop.f32.mrb[11].mxu0 }
 0x137   :  { %2751 = vmatmul.mubr.bf16.gmra.mrb[116].mxu1 %v7022_v16  ;;  %3744 = vmatmul.mubr.bf16.gmra.mrb[116].mxu0 %v7023_v17  ;;  %v7052_v16 = vld [vmem:[%s10996_s0 + $0x144] ss:$16 sps:$4 sm:$0xff]  }
 0x138   :  { %2758 = vmatprep.mubr.bf16.mxu1 %v7024_v20  ;;  %3751 = vmatprep.mubr.bf16.mxu0 %v7026_v21  ;;  %v7150_v21 = vld [vmem:[%s11002_s6 + $0x18] sm:$0xff]  }
 0x139   :  { %6678 = vmatprep.subr.bf16.mxu0 %v7150_v21 }
 0x13a   :  { %v8540_v26 = vpop.f32.mrb[12].mxu1  ;;  %v8542_v27 = vpop.f32.mrb[12].mxu0  ;;  %6679 = vmatpush3.bf16.msra.mxu0 %v7150_v21 }
 0x13b   :  { %v2513_v28 = vpop.f32.mrb[13].mxu1  ;;  %v2321_v31 = vpop.f32.mrb[13].mxu0 }
 0x13c   :  { %v8550_v32 = vpop.f32.mrb[14].mxu1  ;;  %v8558_v2 = vpop.f32.mrb[14].mxu0  ;;  %v7054_v28 = vld [vmem:[%s10997_s1 + $0x348] ss:$16 sps:$4 sm:$0xff]  }
 0x13d   :  { %v2516_v35 = vpop.f32.mrb[15].mxu1  ;;  %v2324_v36 = vpop.f32.mrb[15].mxu0 }
 0x13f   :  { %2759 = vmatmul.mubr.bf16.gmra.mrb[120].mxu1 %v7028_v29  ;;  %3752 = vmatmul.mubr.bf16.gmra.mrb[120].mxu0 %v7029_v30  ;;  %v7055_v29 = vld [vmem:[%s10996_s0 + $0x140] ss:$16 sps:$4 sm:$0xff]  }
 0x140   :  { %2766 = vmatprep.mubr.bf16.mxu1 %v7031_v33  ;;  %3759 = vmatprep.mubr.bf16.mxu0 %v7033_v34  ;;  %v7057_v33 = vld [vmem:[%s10997_s1 + $0x36c] ss:$16 sps:$4 sm:$0xff]   ;;  %v7059_v34 = vld [vmem:[%s10996_s0 + $0x164] ss:$16 sps:$4 sm:$0xff]  }
 0x142   :  { %v8560_v37 = vpop.f32.mrb[16].mxu1  ;;  %v8562_v38 = vpop.f32.mrb[16].mxu0 }
 0x143   :  { %v2521_v39 = vpop.f32.mrb[17].mxu1  ;;  %v2329_v42 = vpop.f32.mrb[17].mxu0 }
 0x144   :  { %v8570_v43 = vpop.f32.mrb[18].mxu1  ;;  %v8578_v46 = vpop.f32.mrb[18].mxu0 }
 0x145   :  { %11070 = vst [vmem:[#allocation6_spill] sm:$0xff] %v8570_v43  ;;  %v2524_v47 = vpop.f32.mrb[19].mxu1  ;;  %v2332_v48 = vpop.f32.mrb[19].mxu0  ;;  %v7144_v43 = vld [vmem:[%s10996_s0 + $0x300] ss:$16 sps:$4 sm:$0xff]  }
 0x146   :  { %v7062_v47 = vld [vmem:[%s10996_s0 + $0x160] ss:$16 sps:$4 sm:$0xff]  }
 0x147   :  { %2767 = vmatmul.mubr.bf16.gmra.mrb[124].mxu1 %v7035_v40  ;;  %3760 = vmatmul.mubr.bf16.gmra.mrb[124].mxu0 %v7036_v41 }
 0x148   :  { %2774 = vmatprep.mubr.bf16.mxu1 %v7037_v44  ;;  %3767 = vmatprep.mubr.bf16.mxu0 %v7039_v45  ;;  %v7061_v45 = vld [vmem:[%s10997_s1 + $0x368] ss:$16 sps:$4 sm:$0xff]  }
 0x14a   :  { %v8580_v49 = vpop.f32.mrb[20].mxu1  ;;  %v8582_v50 = vpop.f32.mrb[20].mxu0 }
 0x14b   :  { %11071 = vst [vmem:[#allocation7_spill] sm:$0xff] %v8580_v49  ;;  %v2529_v51 = vpop.f32.mrb[21].mxu1  ;;  %v2337_v56 = vpop.f32.mrb[21].mxu0 }
 0x14c   :  { %v8590_v57 = vpop.f32.mrb[22].mxu1  ;;  %v8598_v62 = vpop.f32.mrb[22].mxu0 }
 0x14d   :  { %11072 = vst [vmem:[#allocation8_spill] sm:$0xff] %v8590_v57  ;;  %v2532_v63 = vpop.f32.mrb[23].mxu1  ;;  %v2340_v3 = vpop.f32.mrb[23].mxu0  ;;  %v7138_v57 = vld [vmem:[%s10996_s0 + $0x2e0] ss:$16 sps:$4 sm:$0xff]  }
 0x14f   :  { %2775 = vmatmul.mubr.bf16.gmra.mrb[128].mxu1 %v7041_v54  ;;  %3768 = vmatmul.mubr.bf16.gmra.mrb[128].mxu0 %v7042_v55  ;;  %v7063_v54 = vld [vmem:[%s10997_s1 + $0x38c] ss:$16 sps:$4 sm:$0xff]  }
 0x150   :  { %2782 = vmatprep.mubr.bf16.mxu1 %v7044_v59  ;;  %3775 = vmatprep.mubr.bf16.mxu0 %v7046_v60 }
 0x152   :  { %v8600_v4 = vpop.f32.mrb[24].mxu1  ;;  %v8602_v5 = vpop.f32.mrb[24].mxu0 }
 0x153   :  { %11073 = vst [vmem:[#allocation9_spill] sm:$0xff] %v8600_v4  ;;  %v2537_v6 = vpop.f32.mrb[25].mxu1  ;;  %v2345_v11 = vpop.f32.mrb[25].mxu0 }
 0x154   :  { %v8610_v12 = vpop.f32.mrb[26].mxu1  ;;  %v8618_v17 = vpop.f32.mrb[26].mxu0 }
 0x155   :  { %11074 = vst [vmem:[#allocation10_spill] sm:$0xff] %v8610_v12  ;;  %v2540_v18 = vpop.f32.mrb[27].mxu1  ;;  %v2348_v20 = vpop.f32.mrb[27].mxu0 }
 0x157   :  { %2783 = vmatmul.mubr.bf16.gmra.mrb[132].mxu1 %v7048_v8  ;;  %3776 = vmatmul.mubr.bf16.gmra.mrb[132].mxu0 %v7049_v9  ;;  %v7067_v9 = vld [vmem:[%s10997_s1 + $0x388] ss:$16 sps:$4 sm:$0xff]  }
 0x158   :  { %2790 = vmatprep.mubr.bf16.mxu1 %v7050_v15  ;;  %3783 = vmatprep.mubr.bf16.mxu0 %v7052_v16  ;;  %v7070_v16 = vld [vmem:[%s10997_s1 + $0x3ac] ss:$16 sps:$4 sm:$0xff]  }
 0x15a   :  { %v8623_v23 = vpop.f32.mrb[28].mxu1  ;;  %v8625_v24 = vpop.f32.mrb[28].mxu0 }
 0x15b   :  { %11075 = vst [vmem:[#allocation11_spill] sm:$0xff] %v8623_v23  ;;  %v2545_v25 = vpop.f32.mrb[29].mxu1  ;;  %v2353_v30 = vpop.f32.mrb[29].mxu0 }
 0x15c   :  { %v8633_v31 = vpop.f32.mrb[30].mxu1  ;;  %v8641_v35 = vpop.f32.mrb[30].mxu0 }
 0x15d   :  { %11076 = vst [vmem:[#allocation12_spill] sm:$0xff] %v8633_v31  ;;  %v2548_v36 = vpop.f32.mrb[31].mxu1  ;;  %v2356_v39 = vpop.f32.mrb[31].mxu0  ;;  %v7126_v31 = vld [vmem:[%s10996_s0 + $0x2a0] ss:$16 sps:$4 sm:$0xff]  }
 0x15f   :  { %2791 = vmatmul.mubr.bf16.gmra.mrb[136].mxu1 %v7054_v28  ;;  %3784 = vmatmul.mubr.bf16.gmra.mrb[136].mxu0 %v7055_v29 }
 0x160   :  { %2798 = vmatprep.mubr.bf16.mxu1 %v7057_v33  ;;  %3791 = vmatprep.mubr.bf16.mxu0 %v7059_v34  ;;  %v7075_v34 = vld [vmem:[%s10997_s1 + $0x3a8] ss:$16 sps:$4 sm:$0xff]  }
 0x162   :  { %v2584_v40 = vpop.f32.mrb[32].mxu1  ;;  %v8643_v41 = vpop.f32.mrb[32].mxu0 }
 0x163   :  { %v8646_v42 = vadd.f32 %v2584_v40, %v8479_v53  ;;  %v2586_v44 = vpop.f32.mrb[33].mxu1  ;;  %v2361_v48 = vpop.f32.mrb[33].mxu0  ;;  %v7065_v53 = vld [vmem:[%s10996_s0 + $0x184] ss:$16 sps:$4 sm:$0xff]   ;;  %v7077_v40 = vld [vmem:[%s10997_s1 + $0x3cc] ss:$16 sps:$4 sm:$0xff]  }
 0x164   :  { %v2587_v51 = vpop.f32.mrb[34].mxu1  ;;  %v8660_v55 = vpop.f32.mrb[34].mxu0 }
 0x165   :  { %v8663_v56 = vadd.f32 %v2587_v51, %v8495_v61  ;;  %v2589_v59 = vpop.f32.mrb[35].mxu1  ;;  %v2364_v60 = vpop.f32.mrb[35].mxu0  ;;  %v7068_v61 = vld [vmem:[%s10996_s0 + $0x180] ss:$16 sps:$4 sm:$0xff]  }
 0x166   :  { %v7175_v51 = vld [vmem:[%s11002_s6 + $0x20] sm:$0xff]   ;;  %v7081_v60 = vld [vmem:[%s10997_s1 + $0x3c8] ss:$16 sps:$4 sm:$0xff]  }
 0x167   :  { %2799 = vmatmul.mubr.bf16.gmra.mrb[140].mxu1 %v7061_v45  ;;  %3792 = vmatmul.mubr.bf16.gmra.mrb[140].mxu0 %v7062_v47 }
 0x168   :  { %2806 = vmatprep.mubr.bf16.mxu1 %v7063_v54  ;;  %3799 = vmatprep.mubr.bf16.mxu0 %v7065_v53 }
 0x169   :  { %6680 = vmatprep.subr.bf16.mxu0 %v7175_v51 }
 0x16a   :  { %v2592_v63 = vpop.f32.mrb[36].mxu1  ;;  %v8665_v3 = vpop.f32.mrb[36].mxu0  ;;  %6681 = vmatpush3.bf16.msra.mxu0 %v7175_v51 }
 0x16b   :  { %v8668_v6 = vadd.f32 %v2592_v63, %v8499_v1  ;;  %v2594_v8 = vpop.f32.mrb[37].mxu1  ;;  %v2369_v11 = vpop.f32.mrb[37].mxu0  ;;  %v7072_v1 = vld [vmem:[%s10996_s0 + $0x1a4] ss:$16 sps:$4 sm:$0xff]   ;;  %v7082_v63 = vld [vmem:[%s10996_s0 + $0x1c0] ss:$16 sps:$4 sm:$0xff]  }
 0x16c   :  { %v2595_v15 = vpop.f32.mrb[38].mxu1  ;;  %v8682_v18 = vpop.f32.mrb[38].mxu0 }
 0x16d   :  { %v8685_v20 = vadd.f32 %v2595_v15, %v8515_v10  ;;  %v2597_v21 = vpop.f32.mrb[39].mxu1  ;;  %v2372_v25 = vpop.f32.mrb[39].mxu0  ;;  %v7076_v10 = vld [vmem:[%s10996_s0 + $0x1a0] ss:$16 sps:$4 sm:$0xff]  }
 0x16f   :  { %2807 = vmatmul.mubr.bf16.gmra.mrb[144].mxu1 %v7067_v9  ;;  %3800 = vmatmul.mubr.bf16.gmra.mrb[144].mxu0 %v7068_v61  ;;  %v7084_v61 = vld [vmem:[%s10997_s1 + $0x3ec] ss:$16 sps:$4 sm:$0xff]  }
 0x170   :  { %2814 = vmatprep.mubr.bf16.mxu1 %v7070_v16  ;;  %3807 = vmatprep.mubr.bf16.mxu0 %v7072_v1 }
 0x172   :  { %v2600_v28 = vpop.f32.mrb[40].mxu1  ;;  %v8687_v29 = vpop.f32.mrb[40].mxu0 }
 0x173   :  { %v8690_v30 = vadd.f32 %v2600_v28, %v8519_v14  ;;  %v2602_v33 = vpop.f32.mrb[41].mxu1  ;;  %v2377_v36 = vpop.f32.mrb[41].mxu0  ;;  %v7079_v14 = vld [vmem:[%s10996_s0 + $0x1c4] ss:$16 sps:$4 sm:$0xff]  }
 0x174   :  { %v2603_v39 = vpop.f32.mrb[42].mxu1  ;;  %v8704_v44 = vpop.f32.mrb[42].mxu0 }
 0x175   :  { %v8707_v45 = vadd.f32 %v2603_v39, %v8535_v22  ;;  %v2605_v47 = vpop.f32.mrb[43].mxu1  ;;  %v2380_v48 = vpop.f32.mrb[43].mxu0  ;;  %v7090_v39 = vld [vmem:[%s10996_s0 + $0x204] ss:$16 sps:$4 sm:$0xff]  }
 0x177   :  { %2815 = vmatmul.mubr.bf16.gmra.mrb[148].mxu1 %v7075_v34  ;;  %3808 = vmatmul.mubr.bf16.gmra.mrb[148].mxu0 %v7076_v10  ;;  %v7088_v34 = vld [vmem:[%s10997_s1 + $0x3e8] ss:$16 sps:$4 sm:$0xff]  }
 0x178   :  { %2822 = vmatprep.mubr.bf16.mxu1 %v7077_v40  ;;  %3815 = vmatprep.mubr.bf16.mxu0 %v7079_v14 }
 0x17a   :  { %v2608_v54 = vpop.f32.mrb[44].mxu1  ;;  %v8712_v53 = vpop.f32.mrb[44].mxu0 }
 0x17b   :  { %v8715_v59 = vadd.f32 %v2608_v54, %v8542_v27  ;;  %v2610_v22 = vpop.f32.mrb[45].mxu1  ;;  %v2385_v8 = vpop.f32.mrb[45].mxu0  ;;  %v7086_v27 = vld [vmem:[%s10996_s0 + $0x1e4] ss:$16 sps:$4 sm:$0xff]  }
 0x17c   :  { %v2611_v9 = vpop.f32.mrb[46].mxu1  ;;  %v8729_v11 = vpop.f32.mrb[46].mxu0 }
 0x17d   :  { %v8732_v15 = vadd.f32 %v2611_v9, %v8558_v2  ;;  %v2613_v16 = vpop.f32.mrb[47].mxu1  ;;  %v2388_v1 = vpop.f32.mrb[47].mxu0  ;;  %v7089_v2 = vld [vmem:[%s10996_s0 + $0x1e0] ss:$16 sps:$4 sm:$0xff]  }
 0x17f   :  { %2823 = vmatmul.mubr.bf16.gmra.mrb[152].mxu1 %v7081_v60  ;;  %3816 = vmatmul.mubr.bf16.gmra.mrb[152].mxu0 %v7082_v63  ;;  %v7092_v63 = vld [vmem:[%s10996_s0 + $0x8] ss:$16 sps:$4 sm:$0xff]  }
 0x180   :  { %2830 = vmatprep.mubr.bf16.mxu1 %v7084_v61  ;;  %3823 = vmatprep.mubr.bf16.mxu0 %v7086_v27  ;;  %v7096_v61 = vld [vmem:[%s10996_s0 + $0x224] ss:$16 sps:$4 sm:$0xff]  }
 0x182   :  { %v2616_v21 = vpop.f32.mrb[48].mxu1  ;;  %v8734_v25 = vpop.f32.mrb[48].mxu0 }
 0x183   :  { %v8737_v28 = vadd.f32 %v2616_v21, %v8562_v38  ;;  %v2618_v33 = vpop.f32.mrb[49].mxu1  ;;  %v2393_v10 = vpop.f32.mrb[49].mxu0  ;;  %v7094_v38 = vld [vmem:[%s10996_s0 + $0xc] ss:$16 sps:$4 sm:$0xff]  }
 0x184   :  { %v2619_v36 = vpop.f32.mrb[50].mxu1  ;;  %v8751_v40 = vpop.f32.mrb[50].mxu0 }
 0x185   :  { %v8754_v14 = vadd.f32 %v2619_v36, %v8578_v46  ;;  %v2621_v47 = vpop.f32.mrb[51].mxu1  ;;  %v2396_v48 = vpop.f32.mrb[51].mxu0  ;;  %v7095_v46 = vld [vmem:[%s10996_s0 + $0x200] ss:$16 sps:$4 sm:$0xff]  }
 0x186   :  { %v7101_v36 = vld [vmem:[%s10996_s0 + $0x220] ss:$16 sps:$4 sm:$0xff]   ;;  %v7103_v47 = vld [vmem:[%s10996_s0 + $0x244] ss:$16 sps:$4 sm:$0xff]  }
 0x187   :  { %2831 = vmatmul.mubr.bf16.gmra.mrb[156].mxu1 %v7088_v34  ;;  %3824 = vmatmul.mubr.bf16.gmra.mrb[156].mxu0 %v7089_v2 }
 0x188   :  { %3831 = vmatprep.mubr.bf16.mxu0 %v7090_v39  ;;  %3992 = vmatprep.mubr.bf16.mxu1 %v7094_v38 }
 0x18a   :  { %v2624_v51 = vpop.f32.mrb[52].mxu1  ;;  %v8756_v54 = vpop.f32.mrb[52].mxu0 }
 0x18b   :  { %v8759_v22 = vadd.f32 %v2624_v51, %v8582_v50  ;;  %v2626_v60 = vpop.f32.mrb[53].mxu1  ;;  %v2401_v8 = vpop.f32.mrb[53].mxu0  ;;  %v7098_v50 = vld [vmem:[%s10996_s0 + $0x2c] ss:$16 sps:$4 sm:$0xff]  }
 0x18c   :  { %v2627_v9 = vpop.f32.mrb[54].mxu1  ;;  %v8773_v27 = vpop.f32.mrb[54].mxu0 }
 0x18d   :  { %v8776_v16 = vadd.f32 %v2627_v9, %v8598_v62  ;;  %v2629_v1 = vpop.f32.mrb[55].mxu1  ;;  %v2404_v21 = vpop.f32.mrb[55].mxu0  ;;  %v7102_v62 = vld [vmem:[%s10996_s0 + $0x28] ss:$16 sps:$4 sm:$0xff]  }
 0x18e   :  { %v7108_v1 = vld [vmem:[%s10996_s0 + $0x48] ss:$16 sps:$4 sm:$0xff]  }
 0x18f   :  { %3832 = vmatmul.mubr.bf16.gmra.mrb[160].mxu0 %v7095_v46  ;;  %3993 = vmatmul.mubr.bf16.vlgmr.msra.gmra.mrb[160].mxu1 %v7092_v63  ;;  %v7195_v46 = vld [vmem:[%s11002_s6 + $0x28] sm:$0xff]  }
 0x190   :  { %3839 = vmatprep.mubr.bf16.mxu0 %v7096_v61  ;;  %4000 = vmatprep.mubr.bf16.mxu1 %v7098_v50  ;;  %v7107_v50 = vld [vmem:[%s10996_s0 + $0x240] ss:$16 sps:$4 sm:$0xff]  }
 0x191   :  { %6682 = vmatprep.subr.bf16.mxu0 %v7195_v46 }
 0x192   :  { %v2632_v33 = vpop.f32.mrb[56].mxu1  ;;  %v8778_v34 = vpop.f32.mrb[56].mxu0  ;;  %6683 = vmatpush3.bf16.msra.mxu0 %v7195_v46  ;;  %v7113_v46 = vld [vmem:[%s10996_s0 + $0x260] ss:$16 sps:$4 sm:$0xff]  }
 0x193   :  { %v8781_v2 = vadd.f32 %v2632_v33, %v8602_v5  ;;  %v2634_v10 = vpop.f32.mrb[57].mxu1  ;;  %v2409_v39 = vpop.f32.mrb[57].mxu0  ;;  %v7105_v5 = vld [vmem:[%s10996_s0 + $0x4c] ss:$16 sps:$4 sm:$0xff]  }
 0x194   :  { %v2635_v38 = vpop.f32.mrb[58].mxu1  ;;  %v8795_v48 = vpop.f32.mrb[58].mxu0  ;;  %v7109_v10 = vld [vmem:[%s10996_s0 + $0x264] ss:$16 sps:$4 sm:$0xff]  }
 0x195   :  { %v8798_v51 = vadd.f32 %v2635_v38, %v8618_v17  ;;  %v2637_v60 = vpop.f32.mrb[59].mxu1  ;;  %v2412_v63 = vpop.f32.mrb[59].mxu0 }
 0x197   :  { %3840 = vmatmul.mubr.bf16.gmra.mrb[164].mxu0 %v7101_v36  ;;  %4001 = vmatmul.mubr.bf16.gmra.mrb[164].mxu1 %v7102_v62 }
 0x198   :  { %3847 = vmatprep.mubr.bf16.mxu0 %v7103_v47  ;;  %4008 = vmatprep.mubr.bf16.mxu1 %v7105_v5 }
 0x19a   :  { %v2640_v8 = vpop.f32.mrb[60].mxu1  ;;  %v8803_v9 = vpop.f32.mrb[60].mxu0 }
 0x19b   :  { %v8806_v61 = vadd.f32 %v2640_v8, %v8625_v24  ;;  %v2642_v17 = vpop.f32.mrb[61].mxu1  ;;  %v2417_v21 = vpop.f32.mrb[61].mxu0  ;;  %v7111_v24 = vld [vmem:[%s10996_s0 + $0x6c] ss:$16 sps:$4 sm:$0xff]  }
 0x19c   :  { %v2643_v33 = vpop.f32.mrb[62].mxu1  ;;  %v8820_v36 = vpop.f32.mrb[62].mxu0 }
 0x19d   :  { %v8823_v62 = vadd.f32 %v2643_v33, %v8641_v35  ;;  %v2645_v39 = vpop.f32.mrb[63].mxu1  ;;  %v2420_v38 = vpop.f32.mrb[63].mxu0  ;;  %v7114_v35 = vld [vmem:[%s10996_s0 + $0x68] ss:$16 sps:$4 sm:$0xff]  }
 0x19f   :  { %3848 = vmatmul.mubr.bf16.gmra.mrb[168].mxu0 %v7107_v50  ;;  %4009 = vmatmul.mubr.bf16.gmra.mrb[168].mxu1 %v7108_v1  ;;  %v7115_v50 = vld [vmem:[%s10996_s0 + $0x284] ss:$16 sps:$4 sm:$0xff]  }
 0x1a0   :  { %3855 = vmatprep.mubr.bf16.mxu0 %v7109_v10  ;;  %4016 = vmatprep.mubr.bf16.mxu1 %v7111_v24 }
 0x1a2   :  { %v2648_v47 = vpop.f32.mrb[64].mxu1  ;;  %v8825_v5 = vpop.f32.mrb[64].mxu0 }
 0x1a3   :  { %v8828_v60 = vadd.f32 %v2648_v47, %v8643_v41  ;;  %v2650_v63 = vpop.f32.mrb[65].mxu1  ;;  %v2425_v8 = vpop.f32.mrb[65].mxu0  ;;  %v7117_v41 = vld [vmem:[%s10996_s0 + $0x8c] ss:$16 sps:$4 sm:$0xff]  }
 0x1a4   :  { %v2651_v17 = vpop.f32.mrb[66].mxu1  ;;  %v8842_v1 = vpop.f32.mrb[66].mxu0  ;;  %v7119_v63 = vld [vmem:[%s10996_s0 + $0x280] ss:$16 sps:$4 sm:$0xff]  }
 0x1a5   :  { %v8845_v21 = vadd.f32 %v2651_v17, %v8660_v55  ;;  %v2653_v33 = vpop.f32.mrb[67].mxu1  ;;  %v2428_v10 = vpop.f32.mrb[67].mxu0  ;;  %v7120_v55 = vld [vmem:[%s10996_s0 + $0x88] ss:$16 sps:$4 sm:$0xff]  }
 0x1a7   :  { %3856 = vmatmul.mubr.bf16.gmra.mrb[172].mxu0 %v7113_v46  ;;  %4017 = vmatmul.mubr.bf16.gmra.mrb[172].mxu1 %v7114_v35  ;;  %v7121_v35 = vld [vmem:[%s10996_s0 + $0x2a4] ss:$16 sps:$4 sm:$0xff]  }
 0x1a8   :  { %3863 = vmatprep.mubr.bf16.mxu0 %v7115_v50  ;;  %4024 = vmatprep.mubr.bf16.mxu1 %v7117_v41 }
 0x1aa   :  { %v2656_v24 = vpop.f32.mrb[68].mxu1  ;;  %v8847_v39 = vpop.f32.mrb[68].mxu0 }
 0x1ab   :  { %v8850_v38 = vadd.f32 %v2656_v24, %v8665_v3  ;;  %v2658_v47 = vpop.f32.mrb[69].mxu1  ;;  %v2433_v8 = vpop.f32.mrb[69].mxu0  ;;  %v7123_v3 = vld [vmem:[%s10996_s0 + $0xac] ss:$16 sps:$4 sm:$0xff]  }
 0x1ac   :  { %v2659_v46 = vpop.f32.mrb[70].mxu1  ;;  %v8864_v17 = vpop.f32.mrb[70].mxu0 }
 0x1ad   :  { %v8867_v50 = vadd.f32 %v2659_v46, %v8682_v18  ;;  %v2661_v41 = vpop.f32.mrb[71].mxu1  ;;  %v2436_v33 = vpop.f32.mrb[71].mxu0  ;;  %v7127_v18 = vld [vmem:[%s10996_s0 + $0xa8] ss:$16 sps:$4 sm:$0xff]  }
 0x1af   :  { %3864 = vmatmul.mubr.bf16.gmra.mrb[176].mxu0 %v7119_v63  ;;  %4025 = vmatmul.mubr.bf16.gmra.mrb[176].mxu1 %v7120_v55  ;;  %v7128_v55 = vld [vmem:[%s10996_s0 + $0x2c4] ss:$16 sps:$4 sm:$0xff]  }
 0x1b0   :  { %3871 = vmatprep.mubr.bf16.mxu0 %v7121_v35  ;;  %4032 = vmatprep.mubr.bf16.mxu1 %v7123_v3 }
 0x1b2   :  { %v2664_v10 = vpop.f32.mrb[72].mxu1  ;;  %v8869_v24 = vpop.f32.mrb[72].mxu0 }
 0x1b3   :  { %v8872_v47 = vadd.f32 %v2664_v10, %v8687_v29  ;;  %v2666_v8 = vpop.f32.mrb[73].mxu1  ;;  %v2441_v46 = vpop.f32.mrb[73].mxu0  ;;  %v7130_v29 = vld [vmem:[%s10996_s0 + $0xcc] ss:$16 sps:$4 sm:$0xff]   ;;  %v7208_v10 = vld [vmem:[%s11002_s6 + $0x30] sm:$0xff]  }
 0x1b4   :  { %v2667_v63 = vpop.f32.mrb[74].mxu1  ;;  %v8886_v35 = vpop.f32.mrb[74].mxu0  ;;  %6684 = vmatprep.subr.bf16.mxu0 %v7208_v10 }
 0x1b5   :  { %v8889_v3 = vadd.f32 %v2667_v63, %v8704_v44  ;;  %v2669_v41 = vpop.f32.mrb[75].mxu1  ;;  %v2444_v33 = vpop.f32.mrb[75].mxu0  ;;  %6685 = vmatpush3.bf16.msra.mxu0 %v7208_v10  ;;  %v7132_v63 = vld [vmem:[%s10996_s0 + $0x2c0] ss:$16 sps:$4 sm:$0xff]  }
 0x1b7   :  { %3872 = vmatmul.mubr.bf16.gmra.mrb[180].mxu0 %v7126_v31  ;;  %4033 = vmatmul.mubr.bf16.gmra.mrb[180].mxu1 %v7127_v18  ;;  %v7133_v31 = vld [vmem:[%s10996_s0 + $0xc8] ss:$16 sps:$4 sm:$0xff]  }
 0x1b8   :  { %3879 = vmatprep.mubr.bf16.mxu0 %v7128_v55  ;;  %4040 = vmatprep.mubr.bf16.mxu1 %v7130_v29  ;;  %v7134_v29 = vld [vmem:[%s10996_s0 + $0x2e4] ss:$16 sps:$4 sm:$0xff]  }
 0x1ba   :  { %v2672_v8 = vpop.f32.mrb[76].mxu1  ;;  %v8894_v46 = vpop.f32.mrb[76].mxu0 }
 0x1bb   :  { %v8897_v23 = vadd.f32 %v2672_v8, %v8712_v53  ;;  %v2674_v44 = vpop.f32.mrb[77].mxu1  ;;  %v2449_v18 = vpop.f32.mrb[77].mxu0  ;;  %v7136_v53 = vld [vmem:[%s10996_s0 + $0xec] ss:$16 sps:$4 sm:$0xff]  }
 0x1bc   :  { %v2675_v55 = vpop.f32.mrb[78].mxu1  ;;  %v8911_v41 = vpop.f32.mrb[78].mxu0 }
 0x1bd   :  { %v8914_v33 = vadd.f32 %v2675_v55, %v8729_v11  ;;  %v2677_v10 = vpop.f32.mrb[79].mxu1  ;;  %v2452_v8 = vpop.f32.mrb[79].mxu0  ;;  %v7139_v11 = vld [vmem:[%s10996_s0 + $0xe8] ss:$16 sps:$4 sm:$0xff]  }
 0x1bf   :  { %3880 = vmatmul.mubr.bf16.gmra.mrb[184].mxu0 %v7132_v63  ;;  %4041 = vmatmul.mubr.bf16.gmra.mrb[184].mxu1 %v7133_v31  ;;  %v7140_v31 = vld [vmem:[%s10996_s0 + $0x304] ss:$16 sps:$4 sm:$0xff]  }
 0x1c0   :  { %3887 = vmatprep.mubr.bf16.mxu0 %v7134_v29  ;;  %4048 = vmatprep.mubr.bf16.mxu1 %v7136_v53 }
 0x1c2   :  { %v2680_v44 = vpop.f32.mrb[80].mxu1  ;;  %v8916_v18 = vpop.f32.mrb[80].mxu0 }
 0x1c3   :  { %v8919_v12 = vadd.f32 %v2680_v44, %v8734_v25  ;;  %v2682_v4 = vpop.f32.mrb[81].mxu1  ;;  %v2457_v55 = vpop.f32.mrb[81].mxu0  ;;  %v7142_v25 = vld [vmem:[%s10996_s0 + $0x10c] ss:$16 sps:$4 sm:$0xff]  }
 0x1c4   :  { %v2683_v63 = vpop.f32.mrb[82].mxu1  ;;  %v8933_v29 = vpop.f32.mrb[82].mxu0 }
 0x1c5   :  { %v8936_v4 = vadd.f32 %v2683_v63, %v8751_v40  ;;  %v2685_v53 = vpop.f32.mrb[83].mxu1  ;;  %v2460_v10 = vpop.f32.mrb[83].mxu0  ;;  %v7145_v40 = vld [vmem:[%s10996_s0 + $0x108] ss:$16 sps:$4 sm:$0xff]  }
 0x1c7   :  { %11077 = vst [vmem:[#allocation13_spill] sm:$0xff] %v8936_v4  ;;  %3888 = vmatmul.mubr.bf16.gmra.mrb[188].mxu0 %v7138_v57  ;;  %4049 = vmatmul.mubr.bf16.gmra.mrb[188].mxu1 %v7139_v11  ;;  %v7146_v11 = vld [vmem:[%s10996_s0 + $0x324] ss:$16 sps:$4 sm:$0xff]   ;;  %v7151_v4 = vld [vmem:[%s10996_s0 + $0x320] ss:$16 sps:$4 sm:$0xff]  }
 0x1c8   :  { %3895 = vmatprep.mubr.bf16.mxu0 %v7140_v31  ;;  %4056 = vmatprep.mubr.bf16.mxu1 %v7142_v25 }
 0x1ca   :  { %v2688_v8 = vpop.f32.mrb[84].mxu1  ;;  %v8938_v44 = vpop.f32.mrb[84].mxu0 }
 0x1cb   :  { %v8941_v55 = vadd.f32 %v2688_v8, %v8756_v54  ;;  %v2690_v49 = vpop.f32.mrb[85].mxu1  ;;  %v2465_v63 = vpop.f32.mrb[85].mxu0  ;;  %v7148_v54 = vld [vmem:[%s10996_s0 + $0x12c] ss:$16 sps:$4 sm:$0xff]  }
 0x1cc   :  { %v2691_v57 = vpop.f32.mrb[86].mxu1  ;;  %v8955_v31 = vpop.f32.mrb[86].mxu0 }
 0x1cd   :  { %11078 = vst [vmem:[#allocation14_spill] sm:$0xff] %v8941_v55  ;;  %v8958_v49 = vadd.f32 %v2691_v57, %v8773_v27  ;;  %v2693_v25 = vpop.f32.mrb[87].mxu1  ;;  %v2468_v53 = vpop.f32.mrb[87].mxu0  ;;  %v7152_v27 = vld [vmem:[%s10996_s0 + $0x128] ss:$16 sps:$4 sm:$0xff]  }
 0x1ce   :  { %v7222_v53 = vld [vmem:[%s11002_s6 + $0x38] sm:$0xff]  }
 0x1cf   :  { %11079 = vst [vmem:[#allocation15_spill] sm:$0xff] %v8958_v49  ;;  %3896 = vmatmul.mubr.bf16.gmra.mrb[192].mxu0 %v7144_v43  ;;  %4057 = vmatmul.mubr.bf16.gmra.mrb[192].mxu1 %v7145_v40 }
 0x1d0   :  { %3903 = vmatprep.mubr.bf16.mxu0 %v7146_v11  ;;  %4064 = vmatprep.mubr.bf16.mxu1 %v7148_v54  ;;  %v7153_v11 = vld [vmem:[%s10996_s0 + $0x344] ss:$16 sps:$4 sm:$0xff]  }
 0x1d1   :  { %6686 = vmatprep.subr.bf16.mxu0 %v7222_v53 }
 0x1d2   :  { %v2696_v10 = vpop.f32.mrb[88].mxu1  ;;  %v8960_v8 = vpop.f32.mrb[88].mxu0  ;;  %6687 = vmatpush3.bf16.msra.mxu0 %v7222_v53 }
 0x1d3   :  { %v8963_v63 = vadd.f32 %v2696_v10, %v8778_v34  ;;  %v2698_v55 = vpop.f32.mrb[89].mxu1  ;;  %v2473_v57 = vpop.f32.mrb[89].mxu0  ;;  %v7155_v34 = vld [vmem:[%s10996_s0 + $0x14c] ss:$16 sps:$4 sm:$0xff]  }
 0x1d4   :  { %v2699_v43 = vpop.f32.mrb[90].mxu1  ;;  %v8971_v40 = vpop.f32.mrb[90].mxu0 }
 0x1d5   :  { %11080 = vst [vmem:[#allocation16_spill] sm:$0xff] %v8963_v63  ;;  %v8980_v55 = vadd.f32 %v2699_v43, %v8795_v48  ;;  %v2701_v54 = vpop.f32.mrb[91].mxu1  ;;  %v2476_v25 = vpop.f32.mrb[91].mxu0  ;;  %v624_v48 = vld [vmem:[%s11000_s4] sm:$0xf] }
 0x1d6   :  { %v626_v43 = vld [vmem:[%s11000_s4 + $0xc] sm:$0xf]  ;;  %625 = vst [vmem:[#allocation5] sm:$0xf] %v624_v48  ;;  %v628_v63 = vld [vmem:[%s11000_s4 + $0x18] sm:$0xf] }
 0x1d7   :  { %11081 = vst [vmem:[#allocation17_spill] sm:$0xff] %v8980_v55  ;;  %3904 = vmatmul.mubr.bf16.gmra.mrb[196].mxu0 %v7151_v4  ;;  %4065 = vmatmul.mubr.bf16.gmra.mrb[196].mxu1 %v7152_v27  ;;  %627 = vst [vmem:[#allocation5 + $0x4] sm:$0xf] %v626_v43  ;;  %v7163_v55 = vld [vmem:[%s10996_s0 + $0x360] ss:$16 sps:$4 sm:$0xff]  }
 0x1d8   :  { %3911 = vmatprep.mubr.bf16.mxu0 %v7153_v11  ;;  %4072 = vmatprep.mubr.bf16.mxu1 %v7155_v34  ;;  %v7157_v11 = vld [vmem:[%s10996_s0 + $0x340] ss:$16 sps:$4 sm:$0xff]   ;;  %v7158_v34 = vld [vmem:[%s10996_s0 + $0x148] ss:$16 sps:$4 sm:$0xff]   ;;  %629 = vst [vmem:[#allocation5 + $0x8] sm:$0xf] %v628_v63 }
 0x1da   :  { %v2704_v10 = vpop.f32.mrb[92].mxu1  ;;  %v8985_v57 = vpop.f32.mrb[92].mxu0 }
 0x1db   :  { %v8994_v54 = vadd.f32 %v2704_v10, %v8803_v9  ;;  %v2706_v4 = vpop.f32.mrb[93].mxu1  ;;  %v2481_v27 = vpop.f32.mrb[93].mxu0  ;;  %v7159_v9 = vld [vmem:[%s10996_s0 + $0x364] ss:$16 sps:$4 sm:$0xff]   ;;  %v7161_v10 = vld [vmem:[%s10996_s0 + $0x16c] ss:$16 sps:$4 sm:$0xff]  }
 0x1dc   :  { %v2707_v25 = vpop.f32.mrb[94].mxu1  ;;  %v9002_v53 = vpop.f32.mrb[94].mxu0 }
 0x1dd   :  { %11082 = vst [vmem:[#allocation18_spill] sm:$0xff] %v8994_v54  ;;  %v9011_v4 = vadd.f32 %v2707_v25, %v8820_v36  ;;  %v2709_v27 = vpop.f32.mrb[95].mxu1  ;;  %v2484_v54 = vpop.f32.mrb[95].mxu0  ;;  %v630_v25 = vld [vmem:[%s11000_s4 + $0x24] sm:$0xf] }
 0x1de   :  { %631 = vst [vmem:[#allocation5 + $0xc] sm:$0xf] %v630_v25 }
 0x1df   :  { %3912 = vmatmul.mubr.bf16.gmra.mrb[200].mxu0 %v7157_v11  ;;  %4073 = vmatmul.mubr.bf16.gmra.mrb[200].mxu1 %v7158_v34  ;;  %v7164_v34 = vld [vmem:[%s10996_s0 + $0x168] ss:$16 sps:$4 sm:$0xff]  }
 0x1e0   :  { %3919 = vmatprep.mubr.bf16.mxu0 %v7159_v9  ;;  %4080 = vmatprep.mubr.bf16.mxu1 %v7161_v10 }
 0x1e2   :  { %v2712_v48 = vpop.f32.mrb[96].mxu1  ;;  %v3705_v43 = vpop.f32.mrb[96].mxu0 }
 0x1e3   :  { %v9020_v49 = vadd.f32 %v2712_v48, %v8825_v5  ;;  %v9023_v36 = vadd.f32 %v3705_v43, %v8646_v42  ;;  %v2714_v54 = vpop.f32.mrb[97].mxu1  ;;  %v3707_v11 = vpop.f32.mrb[97].mxu0  ;;  %v7165_v5 = vld [vmem:[%s10996_s0 + $0x384] ss:$16 sps:$4 sm:$0xff]   ;;  %v7167_v42 = vld [vmem:[%s10996_s0 + $0x18c] ss:$16 sps:$4 sm:$0xff]  }
 0x1e4   :  { %v2715_v9 = vpop.f32.mrb[98].mxu1  ;;  %v3708_v10 = vpop.f32.mrb[98].mxu0 }
 0x1e5   :  { %11083 = vst [vmem:[#allocation19_spill] sm:$0xff] %v9023_v36  ;;  %v9038_v27 = vadd.f32 %v2715_v9, %v8842_v1  ;;  %v9041_v63 = vadd.f32 %v3708_v10, %v8663_v56  ;;  %v2717_v48 = vpop.f32.mrb[99].mxu1  ;;  %v3710_v43 = vpop.f32.mrb[99].mxu0  ;;  %v632_v36 = vld [vmem:[%s11000_s4 + $0x30] sm:$0xf] }
 0x1e6   :  { %v634_v1 = vld [vmem:[%s11000_s4 + $0x3c] sm:$0xf]  ;;  %v7169_v9 = vld [vmem:[%s10996_s0 + $0x380] ss:$16 sps:$4 sm:$0xff]   ;;  %v7170_v10 = vld [vmem:[%s10996_s0 + $0x188] ss:$16 sps:$4 sm:$0xff]  }
 0x1e7   :  { %3920 = vmatmul.mubr.bf16.gmra.mrb[204].mxu0 %v7163_v55  ;;  %4081 = vmatmul.mubr.bf16.gmra.mrb[204].mxu1 %v7164_v34  ;;  %633 = vst [vmem:[#allocation5 + $0x10] sm:$0xf] %v632_v36  ;;  %635 = vst [vmem:[#allocation5 + $0x14] sm:$0xf] %v634_v1 }
 0x1e8   :  { %3927 = vmatprep.mubr.bf16.mxu0 %v7165_v5  ;;  %4088 = vmatprep.mubr.bf16.mxu1 %v7167_v42 }
 0x1ea   :  { %v2720_v54 = vpop.f32.mrb[100].mxu1  ;;  %v3713_v11 = vpop.f32.mrb[100].mxu0 }
 0x1eb   :  { %v9050_v25 = vadd.f32 %v2720_v54, %v8847_v39  ;;  %v9053_v56 = vadd.f32 %v3713_v11, %v8668_v6  ;;  %v2722_v55 = vpop.f32.mrb[101].mxu1  ;;  %v3715_v34 = vpop.f32.mrb[101].mxu0  ;;  %v7171_v39 = vld [vmem:[%s10996_s0 + $0x3a4] ss:$16 sps:$4 sm:$0xff]   ;;  %v7173_v6 = vld [vmem:[%s10996_s0 + $0x1ac] ss:$16 sps:$4 sm:$0xff]  }
 0x1ec   :  { %v2723_v5 = vpop.f32.mrb[102].mxu1  ;;  %v3716_v42 = vpop.f32.mrb[102].mxu0  ;;  %v7176_v55 = vld [vmem:[%s10996_s0 + $0x3a0] ss:$16 sps:$4 sm:$0xff]  }
 0x1ed   :  { %v9068_v48 = vadd.f32 %v2723_v5, %v8864_v17  ;;  %v9071_v43 = vadd.f32 %v3716_v42, %v8685_v20  ;;  %v2725_v54 = vpop.f32.mrb[103].mxu1  ;;  %v3718_v11 = vpop.f32.mrb[103].mxu0  ;;  %v636_v17 = vld [vmem:[%s11000_s4 + $0x48] sm:$0xf]  ;;  %v638_v42 = vld [vmem:[%s11000_s4 + $0x54] sm:$0xf] }
 0x1ee   :  { %v7177_v5 = vld [vmem:[%s10996_s0 + $0x1a8] ss:$16 sps:$4 sm:$0xff]   ;;  %637 = vst [vmem:[#allocation5 + $0x18] sm:$0xf] %v636_v17  ;;  %639 = vst [vmem:[#allocation5 + $0x1c] sm:$0xf] %v638_v42 }
 0x1ef   :  { %3928 = vmatmul.mubr.bf16.gmra.mrb[208].mxu0 %v7169_v9  ;;  %4089 = vmatmul.mubr.bf16.gmra.mrb[208].mxu1 %v7170_v10 }
 0x1f0   :  { %3935 = vmatprep.mubr.bf16.mxu0 %v7171_v39  ;;  %4096 = vmatprep.mubr.bf16.mxu1 %v7173_v6 }
 0x1f2   :  { %v2728_v36 = vpop.f32.mrb[104].mxu1  ;;  %v3721_v1 = vpop.f32.mrb[104].mxu0 }
 0x1f3   :  { %v9080_v34 = vadd.f32 %v2728_v36, %v8869_v24  ;;  %v9083_v20 = vadd.f32 %v3721_v1, %v8690_v30  ;;  %v2730_v9 = vpop.f32.mrb[105].mxu1  ;;  %v3723_v10 = vpop.f32.mrb[105].mxu0  ;;  %v7178_v24 = vld [vmem:[%s10996_s0 + $0x3c4] ss:$16 sps:$4 sm:$0xff]   ;;  %v7180_v30 = vld [vmem:[%s10996_s0 + $0x1cc] ss:$16 sps:$4 sm:$0xff]  }
 0x1f4   :  { %v2731_v39 = vpop.f32.mrb[106].mxu1  ;;  %v3724_v6 = vpop.f32.mrb[106].mxu0  ;;  %v640_v10 = vld [vmem:[%s11000_s4 + $0x60] sm:$0xf] }
 0x1f5   :  { %v9098_v54 = vadd.f32 %v2731_v39, %v8886_v35  ;;  %v9101_v11 = vadd.f32 %v3724_v6, %v8707_v45  ;;  %v2733_v36 = vpop.f32.mrb[107].mxu1  ;;  %v3726_v1 = vpop.f32.mrb[107].mxu0  ;;  %v642_v35 = vld [vmem:[%s11000_s4 + $0x6c] sm:$0xf]  ;;  %v7182_v39 = vld [vmem:[%s10996_s0 + $0x3c0] ss:$16 sps:$4 sm:$0xff]  }
 0x1f6   :  { %v7183_v6 = vld [vmem:[%s10996_s0 + $0x1c8] ss:$16 sps:$4 sm:$0xff]   ;;  %641 = vst [vmem:[#allocation5 + $0x20] sm:$0xf] %v640_v10  ;;  %643 = vst [vmem:[#allocation5 + $0x24] sm:$0xf] %v642_v35 }
 0x1f7   :  { %3936 = vmatmul.mubr.bf16.gmra.mrb[212].mxu0 %v7176_v55  ;;  %4097 = vmatmul.mubr.bf16.gmra.mrb[212].mxu1 %v7177_v5 }
 0x1f8   :  { %3943 = vmatprep.mubr.bf16.mxu0 %v7178_v24  ;;  %4104 = vmatprep.mubr.bf16.mxu1 %v7180_v30 }
 0x1fa   :  { %v2736_v17 = vpop.f32.mrb[108].mxu1  ;;  %v3729_v9 = vpop.f32.mrb[108].mxu0 }
 0x1fb   :  { %v9110_v42 = vadd.f32 %v2736_v17, %v8894_v46  ;;  %v9113_v45 = vadd.f32 %v3729_v9, %v8715_v59  ;;  %v2738_v55 = vpop.f32.mrb[109].mxu1  ;;  %v3731_v5 = vpop.f32.mrb[109].mxu0  ;;  %v7184_v46 = vld [vmem:[%s10996_s0 + $0x3e4] ss:$16 sps:$4 sm:$0xff]   ;;  %v7186_v59 = vld [vmem:[%s10996_s0 + $0x1ec] ss:$16 sps:$4 sm:$0xff]  }
 0x1fc   :  { %v2739_v24 = vpop.f32.mrb[110].mxu1  ;;  %v3732_v30 = vpop.f32.mrb[110].mxu0  ;;  %v7188_v55 = vld [vmem:[%s10996_s0 + $0x3e0] ss:$16 sps:$4 sm:$0xff]  }
 0x1fd   :  { %v9128_v36 = vadd.f32 %v2739_v24, %v8911_v41  ;;  %v9131_v1 = vadd.f32 %v3732_v30, %v8732_v15  ;;  %v2741_v17 = vpop.f32.mrb[111].mxu1  ;;  %v3734_v9 = vpop.f32.mrb[111].mxu0  ;;  %v644_v41 = vld [vmem:[%s11000_s4 + $0x78] sm:$0xf]  ;;  %v646_v30 = vld [vmem:[%s11000_s4 + $0x84] sm:$0xf] }
 0x1fe   :  { %v7189_v24 = vld [vmem:[%s10996_s0 + $0x1e8] ss:$16 sps:$4 sm:$0xff]   ;;  %645 = vst [vmem:[#allocation5 + $0x28] sm:$0xf] %v644_v41  ;;  %647 = vst [vmem:[#allocation5 + $0x2c] sm:$0xf] %v646_v30 }
 0x1ff   :  { %3944 = vmatmul.mubr.bf16.gmra.mrb[216].mxu0 %v7182_v39  ;;  %4105 = vmatmul.mubr.bf16.gmra.mrb[216].mxu1 %v7183_v6 }
 0x200   :  { %3951 = vmatprep.mubr.bf16.mxu0 %v7184_v46  ;;  %4112 = vmatprep.mubr.bf16.mxu1 %v7186_v59 }
 0x202   :  { %v2744_v10 = vpop.f32.mrb[112].mxu1  ;;  %v3737_v35 = vpop.f32.mrb[112].mxu0 }
 0x203   :  { %v9140_v5 = vadd.f32 %v2744_v10, %v8916_v18  ;;  %v9143_v15 = vadd.f32 %v3737_v35, %v8737_v28  ;;  %v2746_v39 = vpop.f32.mrb[113].mxu1  ;;  %v3739_v6 = vpop.f32.mrb[113].mxu0  ;;  %v7190_v18 = vld [vmem:[%s10996_s0 + $0x20c] ss:$16 sps:$4 sm:$0xff]  }
 0x204   :  { %v2747_v46 = vpop.f32.mrb[114].mxu1  ;;  %v3740_v59 = vpop.f32.mrb[114].mxu0  ;;  %v648_v39 = vld [vmem:[%s11000_s4 + $0x90] sm:$0xf]  ;;  %v650_v6 = vld [vmem:[%s11000_s4 + $0x9c] sm:$0xf] }
 0x205   :  { %v9155_v28 = vadd.f32 %v2747_v46, %v8933_v29  ;;  %v9158_v17 = vadd.f32 %v3740_v59, %v8754_v14  ;;  %v2749_v9 = vpop.f32.mrb[115].mxu1  ;;  %v3742_v10 = vpop.f32.mrb[115].mxu0  ;;  %649 = vst [vmem:[#allocation5 + $0x30] sm:$0xf] %v648_v39  ;;  %651 = vst [vmem:[#allocation5 + $0x34] sm:$0xf] %v650_v6 }
 0x206   :  { %v652_v39 = vld [vmem:[%s11000_s4 + $0xa8] sm:$0xf] }
 0x207   :  { %3952 = vmatmul.mubr.bf16.gmra.mrb[220].mxu0 %v7188_v55  ;;  %4113 = vmatmul.mubr.bf16.gmra.mrb[220].mxu1 %v7189_v24  ;;  %v7192_v24 = vld [vmem:[%s10996_s0 + $0x208] ss:$16 sps:$4 sm:$0xff]   ;;  %653 = vst [vmem:[#allocation5 + $0x38] sm:$0xf] %v652_v39  ;;  %v656_v39 = vld [vmem:[%s11000_s4 + $0xc0] sm:$0xf] }
 0x208   :  { %4120 = vmatprep.mubr.bf16.mxu1 %v7190_v18  ;;  %v7193_v18 = vld [vmem:[%s10996_s0 + $0x22c] ss:$16 sps:$4 sm:$0xff]   ;;  %657 = vst [vmem:[#allocation5 + $0x40] sm:$0xf] %v656_v39  ;;  %v660_v39 = vld [vmem:[%s11000_s4 + $0xd8] sm:$0xf] }
 0x209   :  { %661 = vst [vmem:[#allocation5 + $0x48] sm:$0xf] %v660_v39  ;;  %v664_v39 = vld [vmem:[%s11000_s4 + $0xf0] sm:$0xf] }
 0x20a   :  { %v2752_v35 = vpop.f32.mrb[116].mxu1  ;;  %v3745_v41 = vpop.f32.mrb[116].mxu0  ;;  %665 = vst [vmem:[#allocation5 + $0x50] sm:$0xf] %v664_v39  ;;  %v668_v39 = vld [vmem:[%s11000_s4 + $0x108] sm:$0xf] }
 0x20b   :  { %v9167_v29 = vadd.f32 %v2752_v35, %v8938_v44  ;;  %v9170_v14 = vadd.f32 %v3745_v41, %v8759_v22  ;;  %v2754_v30 = vpop.f32.mrb[117].mxu1  ;;  %v3747_v55 = vpop.f32.mrb[117].mxu0  ;;  %669 = vst [vmem:[#allocation5 + $0x58] sm:$0xf] %v668_v39  ;;  %v672_v39 = vld [vmem:[%s11000_s4 + $0x120] sm:$0xf] }
 0x20c   :  { %v2755_v46 = vpop.f32.mrb[118].mxu1  ;;  %v3748_v59 = vpop.f32.mrb[118].mxu0  ;;  %673 = vst [vmem:[#allocation5 + $0x60] sm:$0xf] %v672_v39  ;;  %v676_v39 = vld [vmem:[%s11000_s4 + $0x138] sm:$0xf] }
 0x20d   :  { %v9179_v44 = vadd.f32 %v2755_v46, %v8955_v31  ;;  %v9182_v22 = vadd.f32 %v3748_v59, %v8776_v16  ;;  %v2757_v9 = vpop.f32.mrb[119].mxu1  ;;  %v3750_v10 = vpop.f32.mrb[119].mxu0  ;;  %v7196_v16 = vld [vmem:[%s10996_s0 + $0x228] ss:$16 sps:$4 sm:$0xff]   ;;  %677 = vst [vmem:[#allocation5 + $0x68] sm:$0xf] %v676_v39 }
 0x20f   :  { %4121 = vmatmul.mubr.bf16.gmra.mrb[224].mxu1 %v7192_v24  ;;  %v654_v24 = vld [vmem:[%s11000_s4 + $0xb4] sm:$0xf] }
 0x210   :  { %4128 = vmatprep.mubr.bf16.mxu1 %v7193_v18  ;;  %655 = vst [vmem:[#allocation5 + $0x3c] sm:$0xf] %v654_v24 }
 0x212   :  { %v2760_v35 = vpop.f32.mrb[120].mxu1  ;;  %v3753_v41 = vpop.f32.mrb[120].mxu0 }
 0x213   :  { %v9188_v6 = vadd.f32 %v2760_v35, %v8960_v8  ;;  %v9191_v30 = vadd.f32 %v3753_v41, %v8781_v2  ;;  %v2762_v31 = vpop.f32.mrb[121].mxu1  ;;  %v3755_v55 = vpop.f32.mrb[121].mxu0  ;;  %v7197_v8 = vld [vmem:[%s10996_s0 + $0x24c] ss:$16 sps:$4 sm:$0xff]  }
 0x214   :  { %v2763_v46 = vpop.f32.mrb[122].mxu1  ;;  %v3756_v59 = vpop.f32.mrb[122].mxu0  ;;  %v658_v31 = vld [vmem:[%s11000_s4 + $0xcc] sm:$0xf] }
 0x215   :  { %v9203_v2 = vadd.f32 %v2763_v46, %v8971_v40  ;;  %v9206_v18 = vadd.f32 %v3756_v59, %v8798_v51  ;;  %v2765_v9 = vpop.f32.mrb[123].mxu1  ;;  %v3758_v10 = vpop.f32.mrb[123].mxu0  ;;  %659 = vst [vmem:[#allocation5 + $0x44] sm:$0xf] %v658_v31 }
 0x217   :  { %4129 = vmatmul.mubr.bf16.gmra.mrb[228].mxu1 %v7196_v16  ;;  %v7199_v16 = vld [vmem:[%s10996_s0 + $0x248] ss:$16 sps:$4 sm:$0xff]  }
 0x218   :  { %4136 = vmatprep.mubr.bf16.mxu1 %v7197_v8  ;;  %v7200_v8 = vld [vmem:[%s10996_s0 + $0x26c] ss:$16 sps:$4 sm:$0xff]  }
 0x21a   :  { %v2768_v35 = vpop.f32.mrb[124].mxu1  ;;  %v3761_v41 = vpop.f32.mrb[124].mxu0 }
 0x21b   :  { %v9215_v40 = vadd.f32 %v2768_v35, %v8985_v57  ;;  %v9218_v51 = vadd.f32 %v3761_v41, %v8806_v61  ;;  %v2770_v55 = vpop.f32.mrb[125].mxu1  ;;  %v3763_v24 = vpop.f32.mrb[125].mxu0 }
 0x21c   :  { %v2771_v46 = vpop.f32.mrb[126].mxu1  ;;  %v3764_v59 = vpop.f32.mrb[126].mxu0 }
 0x21d   :  { %v9227_v57 = vadd.f32 %v2771_v46, %v9002_v53  ;;  %v9230_v61 = vadd.f32 %v3764_v59, %v8823_v62  ;;  %v2773_v9 = vpop.f32.mrb[127].mxu1  ;;  %v3766_v10 = vpop.f32.mrb[127].mxu0  ;;  %v7202_v62 = vld [vmem:[%s10996_s0 + $0x268] ss:$16 sps:$4 sm:$0xff]  }
 0x21f   :  { %4137 = vmatmul.mubr.bf16.gmra.mrb[232].mxu1 %v7199_v16  ;;  %v662_v16 = vld [vmem:[%s11000_s4 + $0xe4] sm:$0xf] }
 0x220   :  { %4144 = vmatprep.mubr.bf16.mxu1 %v7200_v8  ;;  %663 = vst [vmem:[#allocation5 + $0x4c] sm:$0xf] %v662_v16 }
 0x222   :  { %v2776_v35 = vpop.f32.mrb[128].mxu1  ;;  %v3769_v41 = vpop.f32.mrb[128].mxu0 }
 0x223   :  { %v9236_v31 = vadd.f32 %v2776_v35, %v8477_v52  ;;  %v9239_v55 = vadd.f32 %v3769_v41, %v8828_v60  ;;  %v2778_v53 = vpop.f32.mrb[129].mxu1  ;;  %v3771_v24 = vpop.f32.mrb[129].mxu0  ;;  %v7203_v52 = vld [vmem:[%s10996_s0 + $0x28c] ss:$16 sps:$4 sm:$0xff]  }
 0x224   :  { %v2779_v46 = vpop.f32.mrb[130].mxu1  ;;  %v3772_v59 = vpop.f32.mrb[130].mxu0  ;;  %v666_v53 = vld [vmem:[%s11000_s4 + $0xfc] sm:$0xf] }
 0x225   :  { %v9251_v60 = vadd.f32 %v2779_v46, %v8487_v58  ;;  %v9254_v8 = vadd.f32 %v3772_v59, %v8845_v21  ;;  %v2781_v9 = vpop.f32.mrb[131].mxu1  ;;  %v3774_v10 = vpop.f32.mrb[131].mxu0  ;;  %667 = vst [vmem:[#allocation5 + $0x54] sm:$0xf] %v666_v53 }
 0x227   :  { %4145 = vmatmul.mubr.bf16.gmra.mrb[236].mxu1 %v7202_v62  ;;  %v7205_v62 = vld [vmem:[%s10996_s0 + $0x288] ss:$16 sps:$4 sm:$0xff]  }
 0x228   :  { %4152 = vmatprep.mubr.bf16.mxu1 %v7203_v52  ;;  %v7206_v52 = vld [vmem:[%s10996_s0 + $0x2ac] ss:$16 sps:$4 sm:$0xff]  }
 0x22a   :  { %v2784_v35 = vpop.f32.mrb[132].mxu1  ;;  %v3777_v41 = vpop.f32.mrb[132].mxu0 }
 0x22b   :  { %v9263_v58 = vadd.f32 %v2784_v35, %v8497_v0  ;;  %v9266_v21 = vadd.f32 %v3777_v41, %v8850_v38  ;;  %v2786_v24 = vpop.f32.mrb[133].mxu1  ;;  %v3779_v16 = vpop.f32.mrb[133].mxu0 }
 0x22c   :  { %v2787_v46 = vpop.f32.mrb[134].mxu1  ;;  %v3780_v59 = vpop.f32.mrb[134].mxu0 }
 0x22d   :  { %v9275_v0 = vadd.f32 %v2787_v46, %v8507_v7  ;;  %v9278_v38 = vadd.f32 %v3780_v59, %v8867_v50  ;;  %v2789_v9 = vpop.f32.mrb[135].mxu1  ;;  %v3782_v10 = vpop.f32.mrb[135].mxu0  ;;  %v7209_v50 = vld [vmem:[%s10996_s0 + $0x2a8] ss:$16 sps:$4 sm:$0xff]  }
 0x22f   :  { %4153 = vmatmul.mubr.bf16.gmra.mrb[240].mxu1 %v7205_v62  ;;  %v670_v62 = vld [vmem:[%s11000_s4 + $0x114] sm:$0xf] }
 0x230   :  { %4160 = vmatprep.mubr.bf16.mxu1 %v7206_v52  ;;  %671 = vst [vmem:[#allocation5 + $0x5c] sm:$0xf] %v670_v62 }
 0x232   :  { %v2792_v35 = vpop.f32.mrb[136].mxu1  ;;  %v3785_v41 = vpop.f32.mrb[136].mxu0 }
 0x233   :  { %v9284_v53 = vadd.f32 %v2792_v35, %v8517_v13  ;;  %v9287_v24 = vadd.f32 %v3785_v41, %v8872_v47  ;;  %v2794_v7 = vpop.f32.mrb[137].mxu1  ;;  %v3787_v16 = vpop.f32.mrb[137].mxu0  ;;  %v7210_v13 = vld [vmem:[%s10996_s0 + $0x2cc] ss:$16 sps:$4 sm:$0xff]  }
 0x234   :  { %v2795_v46 = vpop.f32.mrb[138].mxu1  ;;  %v3788_v59 = vpop.f32.mrb[138].mxu0  ;;  %v674_v7 = vld [vmem:[%s11000_s4 + $0x12c] sm:$0xf] }
 0x235   :  { %v9299_v47 = vadd.f32 %v2795_v46, %v8527_v19  ;;  %v9302_v52 = vadd.f32 %v3788_v59, %v8889_v3  ;;  %v2797_v9 = vpop.f32.mrb[139].mxu1  ;;  %v3790_v10 = vpop.f32.mrb[139].mxu0  ;;  %675 = vst [vmem:[#allocation5 + $0x64] sm:$0xf] %v674_v7 }
 0x237   :  { %4161 = vmatmul.mubr.bf16.gmra.mrb[244].mxu1 %v7209_v50  ;;  %v7212_v50 = vld [vmem:[%s10996_s0 + $0x2c8] ss:$16 sps:$4 sm:$0xff]  }
 0x238   :  { %4168 = vmatprep.mubr.bf16.mxu1 %v7210_v13  ;;  %v7213_v13 = vld [vmem:[%s10996_s0 + $0x2ec] ss:$16 sps:$4 sm:$0xff]  }
 0x23a   :  { %v2800_v35 = vpop.f32.mrb[140].mxu1  ;;  %v3793_v41 = vpop.f32.mrb[140].mxu0 }
 0x23b   :  { %v9311_v19 = vadd.f32 %v2800_v35, %v8540_v26  ;;  %v9314_v3 = vadd.f32 %v3793_v41, %v8897_v23  ;;  %v2802_v16 = vpop.f32.mrb[141].mxu1  ;;  %v3795_v62 = vpop.f32.mrb[141].mxu0 }
 0x23c   :  { %v2803_v46 = vpop.f32.mrb[142].mxu1  ;;  %v3796_v59 = vpop.f32.mrb[142].mxu0 }
 0x23d   :  { %v9323_v26 = vadd.f32 %v2803_v46, %v8550_v32  ;;  %v9326_v23 = vadd.f32 %v3796_v59, %v8914_v33  ;;  %v2805_v9 = vpop.f32.mrb[143].mxu1  ;;  %v3798_v10 = vpop.f32.mrb[143].mxu0  ;;  %v7215_v33 = vld [vmem:[%s10996_s0 + $0x2e8] ss:$16 sps:$4 sm:$0xff]  }
 0x23e   :  { %v11089_v9 = vld [vmem:[#allocation13_spill] sm:$0xff] }
 0x23f   :  { %11084 = vst [vmem:[#allocation20_spill] sm:$0xff] %v9326_v23  ;;  %4169 = vmatmul.mubr.bf16.gmra.mrb[248].mxu1 %v7212_v50  ;;  %v678_v50 = vld [vmem:[%s11000_s4 + $0x144] sm:$0xf] }
 0x240   :  { %4176 = vmatprep.mubr.bf16.mxu1 %v7213_v13  ;;  %679 = vst [vmem:[#allocation5 + $0x6c] sm:$0xf] %v678_v50  ;;  %v682_v50 = vld [vmem:[%s11000_s4 + $0x15c] sm:$0xf] }
 0x241   :  { %683 = vst [vmem:[#allocation5 + $0x74] sm:$0xf] %v682_v50  ;;  %v11097_v50 = vld [vmem:[#allocation9_spill] sm:$0xff] }
 0x242   :  { %v2808_v35 = vpop.f32.mrb[144].mxu1  ;;  %v3801_v41 = vpop.f32.mrb[144].mxu0 }
 0x243   :  { %v9332_v7 = vadd.f32 %v2808_v35, %v8560_v37  ;;  %v9335_v16 = vadd.f32 %v3801_v41, %v8919_v12  ;;  %v2810_v32 = vpop.f32.mrb[145].mxu1  ;;  %v3803_v62 = vpop.f32.mrb[145].mxu0  ;;  %v7218_v37 = vld [vmem:[%s10996_s0 + $0x30c] ss:$16 sps:$4 sm:$0xff]   ;;  %v11087_v12 = vld [vmem:[#allocation6_spill] sm:$0xff] }
 0x244   :  { %v2811_v46 = vpop.f32.mrb[146].mxu1  ;;  %v3804_v59 = vpop.f32.mrb[146].mxu0  ;;  %v680_v62 = vld [vmem:[%s11000_s4 + $0x150] sm:$0xf] }
 0x245   :  { %11085 = vst [vmem:[#allocation21_spill] sm:$0xff] %v9332_v7  ;;  %11086 = vst [vmem:[#allocation22_spill] sm:$0xff] %v9335_v16  ;;  %v9347_v13 = vadd.f32 %v2811_v46, %v11087_v12  ;;  %v9350_v10 = vadd.f32 %v3804_v59, %v11089_v9  ;;  %v2813_v35 = vpop.f32.mrb[147].mxu1  ;;  %v3806_v41 = vpop.f32.mrb[147].mxu0  ;;  %v11091_v16 = vld [vmem:[#allocation7_spill] sm:$0xff]  ;;  %v11093_v12 = vld [vmem:[#allocation14_spill] sm:$0xff] }
 0x246   :  { %681 = vst [vmem:[#allocation5 + $0x70] sm:$0xf] %v680_v62  ;;  %v684_v62 = vld [vmem:[%s11000_s4 + $0x168] sm:$0xf]  ;;  %v11099_v7 = vld [vmem:[#allocation16_spill] sm:$0xff] }
 0x247   :  { %11088 = vst [vmem:[#allocation6_spill] sm:$0xff] %v9347_v13  ;;  %11090 = vst [vmem:[#allocation13_spill] sm:$0xff] %v9350_v10  ;;  %4177 = vmatmul.mubr.bf16.gmra.mrb[252].mxu1 %v7215_v33  ;;  %v7216_v33 = vld [vmem:[%s10996_s0 + $0x308] ss:$16 sps:$4 sm:$0xff]   ;;  %v7221_v10 = vld [vmem:[%s10996_s0 + $0x32c] ss:$16 sps:$4 sm:$0xff]  }
 0x248   :  { %4184 = vmatprep.mubr.bf16.mxu1 %v7218_v37  ;;  %v11095_v13 = vld [vmem:[#allocation8_spill] sm:$0xff]  ;;  %685 = vst [vmem:[#allocation5 + $0x78] sm:$0xf] %v684_v62 }
 0x24a   :  { %v2816_v39 = vpop.f32.mrb[148].mxu1  ;;  %v3809_v32 = vpop.f32.mrb[148].mxu0 }
 0x24b   :  { %v9359_v46 = vadd.f32 %v2816_v39, %v11091_v16  ;;  %v9362_v59 = vadd.f32 %v3809_v32, %v11093_v12  ;;  %v2818_v9 = vpop.f32.mrb[149].mxu1  ;;  %v3811_v35 = vpop.f32.mrb[149].mxu0  ;;  %v11096_v39 = vld [vmem:[#allocation15_spill] sm:$0xff] }
 0x24c   :  { %v2819_v37 = vpop.f32.mrb[150].mxu1  ;;  %v3812_v41 = vpop.f32.mrb[150].mxu0 }
 0x24d   :  { %11092 = vst [vmem:[#allocation7_spill] sm:$0xff] %v9359_v46  ;;  %11094 = vst [vmem:[#allocation14_spill] sm:$0xff] %v9362_v59  ;;  %v9371_v16 = vadd.f32 %v2819_v37, %v11095_v13  ;;  %v9374_v32 = vadd.f32 %v3812_v41, %v11096_v39  ;;  %v2821_v12 = vpop.f32.mrb[151].mxu1  ;;  %v3814_v9 = vpop.f32.mrb[151].mxu0  ;;  %v7219_v41 = vld [vmem:[%s10996_s0 + $0x328] ss:$16 sps:$4 sm:$0xff]  }
 0x24e   :  { %v7225_v12 = vld [vmem:[%s10996_s0 + $0x34c] ss:$16 sps:$4 sm:$0xff]  }
 0x24f   :  { %4185 = vmatmul.mubr.bf16.gmra.mrb[0].mxu1 %v7216_v33  ;;  %v11103_v9 = vld [vmem:[#allocation17_spill] sm:$0xff] }
 0x250   :  { %4192 = vmatprep.mubr.bf16.mxu1 %v7221_v10  ;;  %v686_v10 = vld [vmem:[%s11000_s4 + $0x174] sm:$0xf] }
 0x251   :  { %687 = vst [vmem:[#allocation5 + $0x7c] sm:$0xf] %v686_v10  ;;  %v690_v10 = vld [vmem:[%s11000_s4 + $0x18c] sm:$0xf] }
 0x252   :  { %v2824_v35 = vpop.f32.mrb[152].mxu1  ;;  %v3817_v59 = vpop.f32.mrb[152].mxu0  ;;  %691 = vst [vmem:[#allocation5 + $0x84] sm:$0xf] %v690_v10 }
 0x253   :  { %v9380_v46 = vadd.f32 %v2824_v35, %v11097_v50  ;;  %v9383_v23 = vadd.f32 %v3817_v59, %v11099_v7  ;;  %v2826_v13 = vpop.f32.mrb[153].mxu1  ;;  %v3819_v37 = vpop.f32.mrb[153].mxu0  ;;  %v11101_v7 = vld [vmem:[#allocation10_spill] sm:$0xff] }
 0x254   :  { %v2827_v33 = vpop.f32.mrb[154].mxu1  ;;  %v3820_v39 = vpop.f32.mrb[154].mxu0 }
 0x255   :  { %11098 = vst [vmem:[#allocation8_spill] sm:$0xff] %v9380_v46  ;;  %11100 = vst [vmem:[#allocation15_spill] sm:$0xff] %v9383_v23  ;;  %v9395_v59 = vadd.f32 %v2827_v33, %v11101_v7  ;;  %v9398_v35 = vadd.f32 %v3820_v39, %v11103_v9  ;;  %v2829_v50 = vpop.f32.mrb[155].mxu1  ;;  %v3822_v13 = vpop.f32.mrb[155].mxu0  ;;  %v688_v23 = vld [vmem:[%s11000_s4 + $0x180] sm:$0xf] }
 0x256   :  { %v11105_v46 = vld [vmem:[#allocation11_spill] sm:$0xff]  ;;  %v11107_v7 = vld [vmem:[#allocation18_spill] sm:$0xff]  ;;  %689 = vst [vmem:[#allocation5 + $0x80] sm:$0xf] %v688_v23 }
 0x257   :  { %11102 = vst [vmem:[#allocation9_spill] sm:$0xff] %v9395_v59  ;;  %11104 = vst [vmem:[#allocation16_spill] sm:$0xff] %v9398_v35  ;;  %4193 = vmatmul.mubr.bf16.gmra.mrb[4].mxu1 %v7219_v41  ;;  %v7223_v41 = vld [vmem:[%s10996_s0 + $0x348] ss:$16 sps:$4 sm:$0xff]   ;;  %v7228_v35 = vld [vmem:[%s10996_s0 + $0x36c] ss:$16 sps:$4 sm:$0xff]  }
 0x258   :  { %4200 = vmatprep.mubr.bf16.mxu1 %v7225_v12  ;;  %v11109_v59 = vld [vmem:[#allocation12_spill] sm:$0xff] }
 0x25a   :  { %v2832_v62 = vpop.f32.mrb[156].mxu1  ;;  %v3825_v37 = vpop.f32.mrb[156].mxu0 }
 0x25b   :  { %v9407_v33 = vadd.f32 %v2832_v62, %v11105_v46  ;;  %v9410_v39 = vadd.f32 %v3825_v37, %v11107_v7  ;;  %v2834_v9 = vpop.f32.mrb[157].mxu1  ;;  %v3827_v50 = vpop.f32.mrb[157].mxu0 }
 0x25c   :  { %v2835_v12 = vpop.f32.mrb[158].mxu1  ;;  %v3828_v13 = vpop.f32.mrb[158].mxu0  ;;  %v6474_v9 = vld [vmem:[#allocation5] sm:$0xff]  }
 0x25d   :  { %11106 = vst [vmem:[#allocation10_spill] sm:$0xff] %v9407_v33  ;;  %11108 = vst [vmem:[#allocation17_spill] sm:$0xff] %v9410_v39  ;;  %v9419_v46 = vadd.f32 %v2835_v12, %v11109_v59  ;;  %v9422_v62 = vadd.f32 %v3828_v13, %v9011_v4  ;;  %v2837_v37 = vpop.f32.mrb[159].mxu1  ;;  %v3830_v7 = vpop.f32.mrb[159].mxu0  ;;  %v6475_v50 = vunpack.c.l.bf16 %v6474_v9  ;;  %v692_v39 = vld [vmem:[%s11000_s4 + $0x198] sm:$0xf]  ;;  %v6476_v13 = vunpack.c.h.bf16 %v6474_v9 }
 0x25e   :  { %v11113_v59 = vld [vmem:[#allocation19_spill] sm:$0xff]  ;;  %693 = vst [vmem:[#allocation5 + $0x88] sm:$0xf] %v692_v39  ;;  %v9447_v39 = vld [vmem:[%s11001_s5] ss:$0 sm:$0xff] }
 0x25f   :  { %11110 = vst [vmem:[#allocation11_spill] sm:$0xff] %v9419_v46  ;;  %11111 = vst [vmem:[#allocation18_spill] sm:$0xff] %v9422_v62  ;;  %4201 = vmatmul.mubr.bf16.gmra.mrb[8].mxu1 %v7223_v41  ;;  %v7226_v41 = vld [vmem:[%s10996_s0 + $0x368] ss:$16 sps:$4 sm:$0xff]  }
 0x260   :  { %4208 = vmatprep.mubr.bf16.mxu1 %v7228_v35  ;;  %v694_v35 = vld [vmem:[%s11000_s4 + $0x1a4] sm:$0xf] }
 0x261   :  { %695 = vst [vmem:[#allocation5 + $0x8c] sm:$0xf] %v694_v35 }
 0x262   :  { %v3833_v23 = vpop.f32.mrb[160].mxu0  ;;  %v3994_v10 = vpop.f32.mrb[160].mxu1 }
 0x263   :  { %v9428_v33 = vadd.f32 %v3833_v23, %v9020_v49  ;;  %v3995_v12 = vadd.f32 %v3994_v10, %v11113_v59  ;;  %v3835_v46 = vpop.f32.mrb[161].mxu0  ;;  %v3996_v4 = vpop.f32.mrb[161].mxu1  ;;  %v7231_v49 = vld [vmem:[%s10996_s0 + $0x38c] ss:$16 sps:$4 sm:$0xff]  }
 0x264   :  { %v3836_v37 = vpop.f32.mrb[162].mxu0  ;;  %v3997_v7 = vpop.f32.mrb[162].mxu1  ;;  %v6601_v4 = vld [vmem:[#allocation5 + $0x8] sm:$0xff]  }
 0x265   :  { %11112 = vst [vmem:[#allocation12_spill] sm:$0xff] %v9428_v33  ;;  %v4572_v23 = vadd.f32 %v6475_v50, %v3995_v12  ;;  %v9441_v46 = vadd.f32 %v3836_v37, %v9038_v27  ;;  %v3998_v9 = vadd.f32 %v3997_v7, %v9041_v63  ;;  %v3999_v10 = vpop.f32.mrb[163].mxu1  ;;  %v3838_v59 = vpop.f32.mrb[163].mxu0  ;;  %v6479_v12 = vunpack.c.l.bf16 %v6601_v4  ;;  %v696_v63 = vld [vmem:[%s11000_s4 + $0x1b0] sm:$0xf] }
 0x266   :  { %v698_v37 = vld [vmem:[%s11000_s4 + $0x1bc] sm:$0xf]  ;;  %697 = vst [vmem:[#allocation5 + $0x90] sm:$0xf] %v696_v63 }
 0x267   :  { %11114 = vst [vmem:[#allocation19_spill] sm:$0xff] %v9441_v46  ;;  %v4573_v33 = vadd.f32 %v6476_v13, %v3998_v9  ;;  %4209 = vmatmul.mubr.bf16.gmra.mrb[12].mxu1 %v7226_v41  ;;  %v4643_v62 = vadd.f32 %v9447_v39, %v4572_v23  ;;  %v6480_v23 = vunpack.c.h.bf16 %v6601_v4  ;;  %v7229_v9 = vld [vmem:[%s10996_s0 + $0x388] ss:$16 sps:$4 sm:$0xff]   ;;  %699 = vst [vmem:[#allocation5 + $0x94] sm:$0xf] %v698_v37 }
 0x268   :  { %4216 = vmatprep.mubr.bf16.mxu1 %v7231_v49  ;;  %v7234_v46 = vld [vmem:[%s10996_s0 + $0x3ac] ss:$16 sps:$4 sm:$0xff]  }
 0x269   :  { %v4644_v50 = vadd.f32 %v9447_v39, %v4573_v33 }
 0x26a   :  { %v3841_v27 = vpop.f32.mrb[164].mxu0  ;;  %v4002_v35 = vpop.f32.mrb[164].mxu1 }
 0x26b   :  { %v9458_v7 = vadd.f32 %v3841_v27, %v9050_v25  ;;  %v4003_v13 = vadd.f32 %v4002_v35, %v9053_v56  ;;  %v3843_v41 = vpop.f32.mrb[165].mxu0  ;;  %v4004_v49 = vpop.f32.mrb[165].mxu1  ;;  %v4707_v33 = vpack.c.bf16 %v4644_v50, %v4643_v62  ;;  %v6602_v50 = vld [vmem:[#allocation5 + $0x10] sm:$0xff]  }
 0x26c   :  { %v3844_v10 = vpop.f32.mrb[166].mxu0  ;;  %v4005_v59 = vpop.f32.mrb[166].mxu1  ;;  %v6483_v41 = vunpack.c.l.bf16 %v6602_v50 }
 0x26d   :  { %11115 = vst [vmem:[#allocation23_spill] sm:$0xff] %v9458_v7  ;;  %v4574_v25 = vadd.f32 %v6479_v12, %v4003_v13  ;;  %v9468_v27 = vadd.f32 %v3844_v10, %v9068_v48  ;;  %v4006_v56 = vadd.f32 %v4005_v59, %v9071_v43  ;;  %v4007_v4 = vpop.f32.mrb[167].mxu1  ;;  %6688 = vmatprep.mubr.bf16.mxu0 %v4707_v33  ;;  %v3846_v62 = vpop.f32.mrb[167].mxu0  ;;  %v700_v48 = vld [vmem:[%s11000_s4 + $0x1c8] sm:$0xf] }
 0x26e   :  { %701 = vst [vmem:[#allocation5 + $0x98] sm:$0xf] %v700_v48  ;;  %v702_v10 = vld [vmem:[%s11000_s4 + $0x1d4] sm:$0xf] }
 0x26f   :  { %v4575_v35 = vadd.f32 %v6480_v23, %v4006_v56  ;;  %4217 = vmatmul.mubr.bf16.gmra.mrb[16].mxu1 %v7229_v9  ;;  %v4645_v63 = vadd.f32 %v9447_v39, %v4574_v25  ;;  %v7232_v9 = vld [vmem:[%s10996_s0 + $0x3a8] ss:$16 sps:$4 sm:$0xff]   ;;  %703 = vst [vmem:[#allocation5 + $0x9c] sm:$0xf] %v702_v10 }
 0x270   :  { %4224 = vmatprep.mubr.bf16.mxu1 %v7234_v46  ;;  %v6484_v46 = vunpack.c.h.bf16 %v6602_v50  ;;  %v6603_v50 = vld [vmem:[#allocation5 + $0x18] sm:$0xff]  }
 0x271   :  { %v4646_v37 = vadd.f32 %v9447_v39, %v4575_v35  ;;  %v7235_v10 = vld [vmem:[%s10996_s0 + $0x3c8] ss:$16 sps:$4 sm:$0xff]  }
 0x272   :  { %v3849_v49 = vpop.f32.mrb[168].mxu0  ;;  %v4010_v7 = vpop.f32.mrb[168].mxu1 }
 0x273   :  { %v4708_v12 = vpack.c.bf16 %v4646_v37, %v4645_v63  ;;  %v9477_v43 = vadd.f32 %v3849_v49, %v9080_v34  ;;  %v4011_v13 = vadd.f32 %v4010_v7, %v9083_v20  ;;  %v3851_v23 = vpop.f32.mrb[169].mxu0  ;;  %v4012_v33 = vpop.f32.mrb[169].mxu1  ;;  %v7237_v34 = vld [vmem:[%s10996_s0 + $0x3cc] ss:$16 sps:$4 sm:$0xff]   ;;  %v6487_v49 = vunpack.c.l.bf16 %v6603_v50 }
 0x274   :  { %v3852_v59 = vpop.f32.mrb[170].mxu0  ;;  %v4013_v25 = vpop.f32.mrb[170].mxu1 }
 0x275   :  { %v4576_v20 = vadd.f32 %v6483_v41, %v4011_v13  ;;  %v9490_v7 = vadd.f32 %v3852_v59, %v9098_v54  ;;  %v4014_v56 = vadd.f32 %v4013_v25, %v9101_v11  ;;  %v4015_v4 = vpop.f32.mrb[171].mxu1  ;;  %6689 = vmatmul.mubr.bf16.vlgmr.msra.gmra.mrb[224].mxu0 %v4708_v12  ;;  %v3854_v62 = vpop.f32.mrb[171].mxu0  ;;  %v704_v54 = vld [vmem:[%s11000_s4 + $0x1e0] sm:$0xf]  ;;  %v706_v11 = vld [vmem:[%s11000_s4 + $0x1ec] sm:$0xf] }
 0x276   :  { %705 = vst [vmem:[#allocation5 + $0xa0] sm:$0xf] %v704_v54  ;;  %707 = vst [vmem:[#allocation5 + $0xa4] sm:$0xf] %v706_v11  ;;  %v6604_v62 = vld [vmem:[#allocation5 + $0x20] sm:$0xff]  }
 0x277   :  { %v4577_v35 = vadd.f32 %v6484_v46, %v4014_v56  ;;  %4225 = vmatmul.mubr.bf16.gmra.mrb[20].mxu1 %v7232_v9  ;;  %v4647_v63 = vadd.f32 %v9447_v39, %v4576_v20  ;;  %v6488_v46 = vunpack.c.h.bf16 %v6603_v50 }
 0x278   :  { %4232 = vmatprep.mubr.bf16.mxu1 %v7237_v34  ;;  %v7240_v34 = vld [vmem:[%s10996_s0 + $0x3ec] ss:$16 sps:$4 sm:$0xff]  }
 0x279   :  { %v4648_v37 = vadd.f32 %v9447_v39, %v4577_v35 }
 0x27a   :  { %v3857_v48 = vpop.f32.mrb[172].mxu0  ;;  %v4018_v23 = vpop.f32.mrb[172].mxu1 }
 0x27b   :  { %v9502_v41 = vadd.f32 %v3857_v48, %v9110_v42  ;;  %v4019_v12 = vadd.f32 %v4018_v23, %v9113_v45  ;;  %v3859_v13 = vpop.f32.mrb[173].mxu0  ;;  %v4020_v33 = vpop.f32.mrb[173].mxu1  ;;  %v4709_v9 = vpack.c.bf16 %v4648_v37, %v4647_v63  ;;  %v6491_v37 = vunpack.c.l.bf16 %v6604_v62 }
 0x27c   :  { %v3860_v59 = vpop.f32.mrb[174].mxu0  ;;  %v4021_v25 = vpop.f32.mrb[174].mxu1  ;;  %v7238_v33 = vld [vmem:[%s10996_s0 + $0x3e8] ss:$16 sps:$4 sm:$0xff]  }
 0x27d   :  { %v4578_v42 = vadd.f32 %v6487_v49, %v4019_v12  ;;  %v9512_v20 = vadd.f32 %v3860_v59, %v9128_v36  ;;  %v4022_v45 = vadd.f32 %v4021_v25, %v9131_v1  ;;  %v4023_v56 = vpop.f32.mrb[175].mxu1  ;;  %6692 = vmatprep.mubr.bf16.mxu0 %v4709_v9  ;;  %v3862_v4 = vpop.f32.mrb[175].mxu0  ;;  %v708_v36 = vld [vmem:[%s11000_s4 + $0x1f8] sm:$0xf]  ;;  %v6492_v12 = vunpack.c.h.bf16 %v6604_v62 }
 0x27e   :  { %709 = vst [vmem:[#allocation5 + $0xa8] sm:$0xf] %v708_v36 }
 0x27f   :  { %v4579_v50 = vadd.f32 %v6488_v46, %v4022_v45  ;;  %4233 = vmatmul.mubr.bf16.gmra.mrb[24].mxu1 %v7235_v10  ;;  %v4649_v35 = vadd.f32 %v9447_v39, %v4578_v42  ;;  %v710_v46 = vld [vmem:[%s11000_s4 + $0x204] sm:$0xf]  ;;  %v6605_v42 = vld [vmem:[#allocation5 + $0x28] sm:$0xff]  }
 0x280   :  { %4240 = vmatprep.mubr.bf16.mxu1 %v7240_v34  ;;  %711 = vst [vmem:[#allocation5 + $0xac] sm:$0xf] %v710_v46  ;;  %v6495_v62 = vunpack.c.l.bf16 %v6605_v42  ;;  %v6496_v36 = vunpack.c.h.bf16 %v6605_v42  ;;  %v716_v42 = vld [vmem:[%s11000_s4 + $0x228] sm:$0xf] }
 0x281   :  { %v4650_v63 = vadd.f32 %v9447_v39, %v4579_v50  ;;  %717 = vst [vmem:[#allocation5 + $0xb8] sm:$0xf] %v716_v42 }
 0x282   :  { %v3865_v48 = vpop.f32.mrb[176].mxu0  ;;  %v4026_v23 = vpop.f32.mrb[176].mxu1 }
 0x283   :  { %v9521_v1 = vadd.f32 %v3865_v48, %v9140_v5  ;;  %v4027_v49 = vadd.f32 %v4026_v23, %v9143_v15  ;;  %v3867_v54 = vpop.f32.mrb[177].mxu0  ;;  %v4028_v11 = vpop.f32.mrb[177].mxu1  ;;  %v4710_v13 = vpack.c.bf16 %v4650_v63, %v4649_v35 }
 0x284   :  { %v3868_v9 = vpop.f32.mrb[178].mxu0  ;;  %v4029_v10 = vpop.f32.mrb[178].mxu1 }
 0x285   :  { %v4580_v5 = vadd.f32 %v6491_v37, %v4027_v49  ;;  %v9531_v59 = vadd.f32 %v3868_v9, %v9155_v28  ;;  %v4030_v15 = vadd.f32 %v4029_v10, %v9158_v17  ;;  %v4031_v25 = vpop.f32.mrb[179].mxu1  ;;  %6693 = vmatmul.mubr.bf16.gmra.mrb[228].mxu0 %v4710_v13  ;;  %v3870_v34 = vpop.f32.mrb[179].mxu0  ;;  %v712_v28 = vld [vmem:[%s11000_s4 + $0x210] sm:$0xf]  ;;  %v714_v17 = vld [vmem:[%s11000_s4 + $0x21c] sm:$0xf] }
 0x286   :  { %713 = vst [vmem:[#allocation5 + $0xb0] sm:$0xf] %v712_v28  ;;  %715 = vst [vmem:[#allocation5 + $0xb4] sm:$0xf] %v714_v17  ;;  %v6606_v9 = vld [vmem:[#allocation5 + $0x30] sm:$0xff]  }
 0x287   :  { %v4581_v45 = vadd.f32 %v6492_v12, %v4030_v15  ;;  %4241 = vmatmul.mubr.bf16.gmra.mrb[28].mxu1 %v7238_v33  ;;  %v4651_v56 = vadd.f32 %v9447_v39, %v4580_v5  ;;  %v6499_v15 = vunpack.c.l.bf16 %v6606_v9 }
 0x289   :  { %v4652_v4 = vadd.f32 %v9447_v39, %v4581_v45 }
 0x28a   :  { %v3873_v50 = vpop.f32.mrb[180].mxu0  ;;  %v4034_v35 = vpop.f32.mrb[180].mxu1 }
 0x28b   :  { %v9543_v63 = vadd.f32 %v3873_v50, %v9167_v29  ;;  %v4035_v37 = vadd.f32 %v4034_v35, %v9170_v14  ;;  %v3875_v48 = vpop.f32.mrb[181].mxu0  ;;  %v4036_v23 = vpop.f32.mrb[181].mxu1  ;;  %v4711_v49 = vpack.c.bf16 %v4652_v4, %v4651_v56  ;;  %v6500_v4 = vunpack.c.h.bf16 %v6606_v9  ;;  %v718_v50 = vld [vmem:[%s11000_s4 + $0x234] sm:$0xf] }
 0x28c   :  { %v3876_v54 = vpop.f32.mrb[182].mxu0  ;;  %v4037_v11 = vpop.f32.mrb[182].mxu1  ;;  %719 = vst [vmem:[#allocation5 + $0xbc] sm:$0xf] %v718_v50  ;;  %v6607_v23 = vld [vmem:[#allocation5 + $0x38] sm:$0xff]  }
 0x28d   :  { %v4582_v12 = vadd.f32 %v6495_v62, %v4035_v37  ;;  %v9547_v13 = vadd.f32 %v3876_v54, %v9179_v44  ;;  %v4038_v33 = vadd.f32 %v4037_v11, %v9182_v22  ;;  %v4039_v46 = vpop.f32.mrb[183].mxu1  ;;  %6696 = vmatprep.mubr.bf16.mxu0 %v4711_v49  ;;  %v3878_v29 = vpop.f32.mrb[183].mxu0  ;;  %v6503_v11 = vunpack.c.l.bf16 %v6607_v23 }
 0x28e   :  { %v720_v46 = vld [vmem:[%s11000_s4 + $0x240] sm:$0xf] }
 0x28f   :  { %v4583_v10 = vadd.f32 %v6496_v36, %v4038_v33  ;;  %v4653_v14 = vadd.f32 %v9447_v39, %v4582_v12  ;;  %721 = vst [vmem:[#allocation5 + $0xc0] sm:$0xf] %v720_v46  ;;  %v6609_v46 = vld [vmem:[#allocation5 + $0x48] sm:$0xff]  }
 0x291   :  { %v4654_v5 = vadd.f32 %v9447_v39, %v4583_v10 }
 0x292   :  { %v3881_v25 = vpop.f32.mrb[184].mxu0  ;;  %v4042_v34 = vpop.f32.mrb[184].mxu1 }
 0x293   :  { %v9556_v44 = vadd.f32 %v3881_v25, %v9188_v6  ;;  %v4043_v22 = vadd.f32 %v4042_v34, %v9191_v30  ;;  %v3883_v45 = vpop.f32.mrb[185].mxu0  ;;  %v4044_v56 = vpop.f32.mrb[185].mxu1  ;;  %v4712_v62 = vpack.c.bf16 %v4654_v5, %v4653_v14  ;;  %v6504_v14 = vunpack.c.h.bf16 %v6607_v23 }
 0x294   :  { %v3884_v35 = vpop.f32.mrb[186].mxu0  ;;  %v4045_v28 = vpop.f32.mrb[186].mxu1  ;;  %v6608_v56 = vld [vmem:[#allocation5 + $0x40] sm:$0xff]  }
 0x295   :  { %v4584_v17 = vadd.f32 %v6499_v15, %v4043_v22  ;;  %v9563_v37 = vadd.f32 %v3884_v35, %v9203_v2  ;;  %v4046_v6 = vadd.f32 %v4045_v28, %v9206_v18  ;;  %v4047_v48 = vpop.f32.mrb[187].mxu1  ;;  %6697 = vmatmul.mubr.bf16.gmra.mrb[232].mxu0 %v4712_v62  ;;  %v3886_v30 = vpop.f32.mrb[187].mxu0  ;;  %v722_v2 = vld [vmem:[%s11000_s4 + $0x24c] sm:$0xf]  ;;  %v6507_v50 = vunpack.c.l.bf16 %v6608_v56 }
 0x296   :  { %723 = vst [vmem:[#allocation5 + $0xc4] sm:$0xf] %v722_v2  ;;  %v6508_v30 = vunpack.c.h.bf16 %v6608_v56 }
 0x297   :  { %v4585_v36 = vadd.f32 %v6500_v4, %v4046_v6  ;;  %v4655_v49 = vadd.f32 %v9447_v39, %v4584_v17  ;;  %v724_v17 = vld [vmem:[%s11000_s4 + $0x258] sm:$0xf] }
 0x298   :  { %725 = vst [vmem:[#allocation5 + $0xc8] sm:$0xf] %v724_v17 }
 0x299   :  { %v4656_v54 = vadd.f32 %v9447_v39, %v4585_v36  ;;  %v726_v36 = vld [vmem:[%s11000_s4 + $0x264] sm:$0xf] }
 0x29a   :  { %v3889_v12 = vpop.f32.mrb[188].mxu0  ;;  %v4050_v33 = vpop.f32.mrb[188].mxu1  ;;  %727 = vst [vmem:[#allocation5 + $0xcc] sm:$0xf] %v726_v36 }
 0x29b   :  { %v9575_v18 = vadd.f32 %v3889_v12, %v9215_v40  ;;  %v4051_v29 = vadd.f32 %v4050_v33, %v9218_v51  ;;  %v3891_v9 = vpop.f32.mrb[189].mxu0  ;;  %v4052_v10 = vpop.f32.mrb[189].mxu1  ;;  %v4713_v5 = vpack.c.bf16 %v4656_v54, %v4655_v49 }
 0x29c   :  { %v3892_v15 = vpop.f32.mrb[190].mxu0  ;;  %v4053_v25 = vpop.f32.mrb[190].mxu1  ;;  %v6511_v10 = vunpack.c.l.bf16 %v6609_v46 }
 0x29d   :  { %v4586_v34 = vadd.f32 %v6503_v11, %v4051_v29  ;;  %v9579_v42 = vadd.f32 %v3892_v15, %v9227_v57  ;;  %v4054_v22 = vadd.f32 %v4053_v25, %v9230_v61  ;;  %v4055_v45 = vpop.f32.mrb[191].mxu1  ;;  %6700 = vmatprep.mubr.bf16.mxu0 %v4713_v5  ;;  %v3894_v40 = vpop.f32.mrb[191].mxu0  ;;  %v728_v15 = vld [vmem:[%s11000_s4 + $0x270] sm:$0xf] }
 0x29e   :  { %v6512_v45 = vunpack.c.h.bf16 %v6609_v46  ;;  %729 = vst [vmem:[#allocation5 + $0xd0] sm:$0xf] %v728_v15 }
 0x29f   :  { %v4587_v4 = vadd.f32 %v6504_v14, %v4054_v22  ;;  %v4657_v51 = vadd.f32 %v9447_v39, %v4586_v34 }
 0x2a1   :  { %v4658_v62 = vadd.f32 %v9447_v39, %v4587_v4 }
 0x2a2   :  { %v3897_v35 = vpop.f32.mrb[192].mxu0  ;;  %v4058_v28 = vpop.f32.mrb[192].mxu1 }
 0x2a3   :  { %v9588_v57 = vadd.f32 %v3897_v35, %v9236_v31  ;;  %v4059_v61 = vadd.f32 %v4058_v28, %v9239_v55  ;;  %v3899_v6 = vpop.f32.mrb[193].mxu0  ;;  %v4060_v48 = vpop.f32.mrb[193].mxu1  ;;  %v4714_v23 = vpack.c.bf16 %v4658_v62, %v4657_v51  ;;  %v6610_v28 = vld [vmem:[#allocation5 + $0x50] sm:$0xff]  }
 0x2a4   :  { %v3900_v49 = vpop.f32.mrb[194].mxu0  ;;  %v4061_v54 = vpop.f32.mrb[194].mxu1  ;;  %v6515_v6 = vunpack.c.l.bf16 %v6610_v28 }
 0x2a5   :  { %v4588_v11 = vadd.f32 %v6507_v50, %v4059_v61  ;;  %v9595_v12 = vadd.f32 %v3900_v49, %v9251_v60  ;;  %v4062_v31 = vadd.f32 %v4061_v54, %v9254_v8  ;;  %v4063_v33 = vpop.f32.mrb[195].mxu1  ;;  %6701 = vmatmul.mubr.bf16.gmra.mrb[236].mxu0 %v4714_v23  ;;  %v3902_v55 = vpop.f32.mrb[195].mxu0  ;;  %v730_v60 = vld [vmem:[%s11000_s4 + $0x27c] sm:$0xf]  ;;  %v732_v23 = vld [vmem:[%s11000_s4 + $0x288] sm:$0xf]  ;;  %v6516_v54 = vunpack.c.h.bf16 %v6610_v28 }
 0x2a6   :  { %731 = vst [vmem:[#allocation5 + $0xd4] sm:$0xf] %v730_v60  ;;  %733 = vst [vmem:[#allocation5 + $0xd8] sm:$0xf] %v732_v23  ;;  %v11116_v28 = vld [vmem:[#allocation20_spill] sm:$0xff] }
 0x2a7   :  { %v4589_v2 = vadd.f32 %v6508_v30, %v4062_v31  ;;  %v4659_v29 = vadd.f32 %v9447_v39, %v4588_v11  ;;  %v734_v31 = vld [vmem:[%s11000_s4 + $0x294] sm:$0xf] }
 0x2a8   :  { %735 = vst [vmem:[#allocation5 + $0xdc] sm:$0xf] %v734_v31 }
 0x2a9   :  { %v4660_v9 = vadd.f32 %v9447_v39, %v4589_v2 }
 0x2aa   :  { %v3905_v14 = vpop.f32.mrb[196].mxu0  ;;  %v4066_v5 = vpop.f32.mrb[196].mxu1 }
 0x2ab   :  { %v9607_v8 = vadd.f32 %v3905_v14, %v9263_v58  ;;  %v4067_v25 = vadd.f32 %v4066_v5, %v9266_v21  ;;  %v3907_v34 = vpop.f32.mrb[197].mxu0  ;;  %v4068_v22 = vpop.f32.mrb[197].mxu1  ;;  %v4715_v40 = vpack.c.bf16 %v4660_v9, %v4659_v29  ;;  %v6611_v9 = vld [vmem:[#allocation5 + $0x58] sm:$0xff]  }
 0x2ac   :  { %v3908_v56 = vpop.f32.mrb[198].mxu0  ;;  %v4069_v4 = vpop.f32.mrb[198].mxu1  ;;  %v6519_v15 = vunpack.c.l.bf16 %v6611_v9  ;;  %v736_v34 = vld [vmem:[%s11000_s4 + $0x2a0] sm:$0xf] }
 0x2ad   :  { %v4590_v51 = vadd.f32 %v6511_v10, %v4067_v25  ;;  %v9611_v62 = vadd.f32 %v3908_v56, %v9275_v0  ;;  %v4070_v50 = vadd.f32 %v4069_v4, %v9278_v38  ;;  %v4071_v35 = vpop.f32.mrb[199].mxu1  ;;  %6704 = vmatprep.mubr.bf16.mxu0 %v4715_v40  ;;  %v3910_v58 = vpop.f32.mrb[199].mxu0  ;;  %v6520_v56 = vunpack.c.h.bf16 %v6611_v9  ;;  %737 = vst [vmem:[#allocation5 + $0xe0] sm:$0xf] %v736_v34  ;;  %v6613_v34 = vld [vmem:[#allocation5 + $0x68] sm:$0xff]  }
 0x2af   :  { %v4591_v17 = vadd.f32 %v6512_v45, %v4070_v50  ;;  %v4661_v21 = vadd.f32 %v9447_v39, %v4590_v51 }
 0x2b1   :  { %v4662_v61 = vadd.f32 %v9447_v39, %v4591_v17 }
 0x2b2   :  { %v3913_v48 = vpop.f32.mrb[200].mxu0  ;;  %v4074_v30 = vpop.f32.mrb[200].mxu1 }
 0x2b3   :  { %v9620_v0 = vadd.f32 %v3913_v48, %v9284_v53  ;;  %v4075_v38 = vadd.f32 %v4074_v30, %v9287_v24  ;;  %v3915_v36 = vpop.f32.mrb[201].mxu0  ;;  %v4076_v49 = vpop.f32.mrb[201].mxu1  ;;  %v4716_v11 = vpack.c.bf16 %v4662_v61, %v4661_v21  ;;  %v6612_v61 = vld [vmem:[#allocation5 + $0x60] sm:$0xff]  }
 0x2b4   :  { %v3916_v33 = vpop.f32.mrb[202].mxu0  ;;  %v4077_v55 = vpop.f32.mrb[202].mxu1  ;;  %v6523_v30 = vunpack.c.l.bf16 %v6612_v61  ;;  %v740_v36 = vld [vmem:[%s11000_s4 + $0x2b8] sm:$0xf] }
 0x2b5   :  { %v4592_v46 = vadd.f32 %v6515_v6, %v4075_v38  ;;  %v9627_v2 = vadd.f32 %v3916_v33, %v9299_v47  ;;  %v4078_v53 = vadd.f32 %v4077_v55, %v9302_v52  ;;  %v4079_v29 = vpop.f32.mrb[203].mxu1  ;;  %6705 = vmatmul.mubr.bf16.gmra.mrb[240].mxu0 %v4716_v11  ;;  %v3918_v24 = vpop.f32.mrb[203].mxu0  ;;  %v738_v47 = vld [vmem:[%s11000_s4 + $0x2ac] sm:$0xf]  ;;  %v6524_v55 = vunpack.c.h.bf16 %v6612_v61  ;;  %741 = vst [vmem:[#allocation5 + $0xe8] sm:$0xf] %v740_v36 }
 0x2b6   :  { %739 = vst [vmem:[#allocation5 + $0xe4] sm:$0xf] %v738_v47 }
 0x2b7   :  { %v4593_v10 = vadd.f32 %v6516_v54, %v4078_v53  ;;  %v4663_v14 = vadd.f32 %v9447_v39, %v4592_v46  ;;  %v11118_v54 = vld [vmem:[#allocation22_spill] sm:$0xff] }
 0x2b8   :  { %v742_v53 = vld [vmem:[%s11000_s4 + $0x2c4] sm:$0xf] }
 0x2b9   :  { %v4664_v5 = vadd.f32 %v9447_v39, %v4593_v10  ;;  %743 = vst [vmem:[#allocation5 + $0xec] sm:$0xf] %v742_v53  ;;  %v11119_v10 = vld [vmem:[#allocation6_spill] sm:$0xff] }
 0x2ba   :  { %v3921_v60 = vpop.f32.mrb[204].mxu0  ;;  %v4082_v25 = vpop.f32.mrb[204].mxu1 }
 0x2bb   :  { %v9639_v52 = vadd.f32 %v3921_v60, %v9311_v19  ;;  %v4083_v22 = vadd.f32 %v4082_v25, %v9314_v3  ;;  %v3923_v45 = vpop.f32.mrb[205].mxu0  ;;  %v4084_v40 = vpop.f32.mrb[205].mxu1  ;;  %v4717_v4 = vpack.c.bf16 %v4664_v5, %v4663_v14  ;;  %v11120_v5 = vld [vmem:[#allocation13_spill] sm:$0xff] }
 0x2bc   :  { %v3924_v51 = vpop.f32.mrb[206].mxu0  ;;  %v4085_v50 = vpop.f32.mrb[206].mxu1  ;;  %v6527_v40 = vunpack.c.l.bf16 %v6613_v34 }
 0x2bd   :  { %v4594_v35 = vadd.f32 %v6519_v15, %v4083_v22  ;;  %v9643_v58 = vadd.f32 %v3924_v51, %v9323_v26  ;;  %v4086_v17 = vadd.f32 %v4085_v50, %v11116_v28  ;;  %v4087_v21 = vpop.f32.mrb[207].mxu1  ;;  %6708 = vmatprep.mubr.bf16.mxu0 %v4717_v4  ;;  %v3926_v19 = vpop.f32.mrb[207].mxu0  ;;  %v11117_v26 = vld [vmem:[#allocation21_spill] sm:$0xff]  ;;  %v744_v51 = vld [vmem:[%s11000_s4 + $0x2d0] sm:$0xf] }
 0x2be   :  { %v746_v50 = vld [vmem:[%s11000_s4 + $0x2dc] sm:$0xf]  ;;  %745 = vst [vmem:[#allocation5 + $0xf0] sm:$0xf] %v744_v51 }
 0x2bf   :  { %v4595_v6 = vadd.f32 %v6520_v56, %v4086_v17  ;;  %v4665_v3 = vadd.f32 %v9447_v39, %v4594_v35  ;;  %v11121_v35 = vld [vmem:[#allocation7_spill] sm:$0xff]  ;;  %v11122_v17 = vld [vmem:[#allocation14_spill] sm:$0xff]  ;;  %747 = vst [vmem:[#allocation5 + $0xf4] sm:$0xf] %v746_v50 }
 0x2c1   :  { %v4666_v48 = vadd.f32 %v9447_v39, %v4595_v6  ;;  %v6528_v6 = vunpack.c.h.bf16 %v6613_v34  ;;  %v750_v34 = vld [vmem:[%s11000_s4 + $0x2f4] sm:$0xf] }
 0x2c2   :  { %v3929_v23 = vpop.f32.mrb[208].mxu0  ;;  %v4090_v38 = vpop.f32.mrb[208].mxu1  ;;  %751 = vst [vmem:[#allocation5 + $0xfc] sm:$0xf] %v750_v34 }
 0x2c3   :  { %v9652_v49 = vadd.f32 %v3929_v23, %v11117_v26  ;;  %v4091_v11 = vadd.f32 %v4090_v38, %v11118_v54  ;;  %v3931_v31 = vpop.f32.mrb[209].mxu0  ;;  %v4092_v33 = vpop.f32.mrb[209].mxu1  ;;  %v4718_v46 = vpack.c.bf16 %v4666_v48, %v4665_v3 }
 0x2c4   :  { %v3932_v29 = vpop.f32.mrb[210].mxu0  ;;  %v4093_v24 = vpop.f32.mrb[210].mxu1 }
 0x2c5   :  { %v4596_v9 = vadd.f32 %v6523_v30, %v4091_v11  ;;  %v9659_v14 = vadd.f32 %v3932_v29, %v11119_v10  ;;  %v4094_v15 = vadd.f32 %v4093_v24, %v11120_v5  ;;  %v4095_v60 = vpop.f32.mrb[211].mxu1  ;;  %6709 = vmatmul.mubr.bf16.gmra.mrb[244].mxu0 %v4718_v46  ;;  %v3934_v25 = vpop.f32.mrb[211].mxu0  ;;  %v6614_v11 = vld [vmem:[#allocation5 + $0x70] sm:$0xff]   ;;  %v748_v24 = vld [vmem:[%s11000_s4 + $0x2e8] sm:$0xf] }
 0x2c6   :  { %v6531_v46 = vunpack.c.l.bf16 %v6614_v11  ;;  %v6532_v60 = vunpack.c.h.bf16 %v6614_v11  ;;  %749 = vst [vmem:[#allocation5 + $0xf8] sm:$0xf] %v748_v24 }
 0x2c7   :  { %v4597_v47 = vadd.f32 %v6524_v55, %v4094_v15  ;;  %v4667_v22 = vadd.f32 %v9447_v39, %v4596_v9 }
 0x2c9   :  { %v4668_v45 = vadd.f32 %v9447_v39, %v4597_v47 }
 0x2ca   :  { %v3937_v56 = vpop.f32.mrb[212].mxu0  ;;  %v4098_v4 = vpop.f32.mrb[212].mxu1 }
 0x2cb   :  { %v9671_v28 = vadd.f32 %v3937_v56, %v11121_v35  ;;  %v4099_v21 = vadd.f32 %v4098_v4, %v11122_v17  ;;  %v3939_v19 = vpop.f32.mrb[213].mxu0  ;;  %v4100_v61 = vpop.f32.mrb[213].mxu1  ;;  %v4719_v3 = vpack.c.bf16 %v4668_v45, %v4667_v22  ;;  %v11126_v4 = vld [vmem:[#allocation16_spill] sm:$0xff]  ;;  %v6615_v17 = vld [vmem:[#allocation5 + $0x78] sm:$0xff]  }
 0x2cc   :  { %v3940_v48 = vpop.f32.mrb[214].mxu0  ;;  %v4101_v30 = vpop.f32.mrb[214].mxu1 }
 0x2cd   :  { %v4598_v23 = vadd.f32 %v6527_v40, %v4099_v21  ;;  %v9675_v38 = vadd.f32 %v3940_v48, %v9371_v16  ;;  %v4102_v36 = vadd.f32 %v4101_v30, %v9374_v32  ;;  %v4103_v26 = vpop.f32.mrb[215].mxu1  ;;  %6712 = vmatprep.mubr.bf16.mxu0 %v4719_v3  ;;  %v3942_v54 = vpop.f32.mrb[215].mxu0  ;;  %v11123_v16 = vld [vmem:[#allocation8_spill] sm:$0xff]  ;;  %v11124_v32 = vld [vmem:[#allocation15_spill] sm:$0xff]  ;;  %v11125_v40 = vld [vmem:[#allocation9_spill] sm:$0xff] }
 0x2ce   :  { %v11127_v30 = vld [vmem:[#allocation10_spill] sm:$0xff] }
 0x2cf   :  { %v4599_v31 = vadd.f32 %v6528_v6, %v4102_v36  ;;  %v4669_v33 = vadd.f32 %v9447_v39, %v4598_v23  ;;  %v6535_v6 = vunpack.c.l.bf16 %v6615_v17  ;;  %v11128_v36 = vld [vmem:[#allocation17_spill] sm:$0xff] }
 0x2d1   :  { %v4670_v55 = vadd.f32 %v9447_v39, %v4599_v31  ;;  %v6536_v31 = vunpack.c.h.bf16 %v6615_v17 }
 0x2d2   :  { %v3945_v53 = vpop.f32.mrb[216].mxu0  ;;  %v4106_v29 = vpop.f32.mrb[216].mxu1 }
 0x2d3   :  { %v9684_v9 = vadd.f32 %v3945_v53, %v11123_v16  ;;  %v4107_v10 = vadd.f32 %v4106_v29, %v11124_v32  ;;  %v3947_v5 = vpop.f32.mrb[217].mxu0  ;;  %v4108_v15 = vpop.f32.mrb[217].mxu1  ;;  %v4720_v25 = vpack.c.bf16 %v4670_v55, %v4669_v33  ;;  %v11129_v29 = vld [vmem:[#allocation11_spill] sm:$0xff]  ;;  %v11130_v16 = vld [vmem:[#allocation18_spill] sm:$0xff] }
 0x2d4   :  { %v3948_v47 = vpop.f32.mrb[218].mxu0  ;;  %v4109_v22 = vpop.f32.mrb[218].mxu1  ;;  %v6616_v15 = vld [vmem:[#allocation5 + $0x80] sm:$0xff]  }
 0x2d5   :  { %v4600_v45 = vadd.f32 %v6531_v46, %v4107_v10  ;;  %v9691_v56 = vadd.f32 %v3948_v47, %v11125_v40  ;;  %v4110_v51 = vadd.f32 %v4109_v22, %v11126_v4  ;;  %v4111_v50 = vpop.f32.mrb[219].mxu1  ;;  %6713 = vmatmul.mubr.bf16.gmra.mrb[248].mxu0 %v4720_v25  ;;  %v3950_v35 = vpop.f32.mrb[219].mxu0  ;;  %v6539_v47 = vunpack.c.l.bf16 %v6616_v15 }
 0x2d7   :  { %v4601_v21 = vadd.f32 %v6532_v60, %v4110_v51  ;;  %v4671_v19 = vadd.f32 %v9447_v39, %v4600_v45  ;;  %v11131_v45 = vld [vmem:[#allocation12_spill] sm:$0xff]  ;;  %v6540_v51 = vunpack.c.h.bf16 %v6616_v15 }
 0x2d9   :  { %v4672_v61 = vadd.f32 %v9447_v39, %v4601_v21  ;;  %v11132_v21 = vld [vmem:[#allocation19_spill] sm:$0xff] }
 0x2da   :  { %v3953_v3 = vpop.f32.mrb[220].mxu0  ;;  %v4114_v48 = vpop.f32.mrb[220].mxu1 }
 0x2db   :  { %v9697_v23 = vadd.f32 %v3953_v3, %v11127_v30  ;;  %v4115_v26 = vadd.f32 %v4114_v48, %v11128_v36  ;;  %v3955_v54 = vpop.f32.mrb[221].mxu0  ;;  %v4116_v11 = vpop.f32.mrb[221].mxu1  ;;  %v4721_v33 = vpack.c.bf16 %v4672_v61, %v4671_v19 }
 0x2dc   :  { %v3956_v55 = vpop.f32.mrb[222].mxu0  ;;  %v4117_v46 = vpop.f32.mrb[222].mxu1  ;;  %v11133_v54 = vld [vmem:[#allocation23_spill] sm:$0xff] }
 0x2dd   :  { %v4602_v53 = vadd.f32 %v6535_v6, %v4115_v26  ;;  %v9701_v24 = vadd.f32 %v3956_v55, %v11129_v29  ;;  %v4118_v32 = vadd.f32 %v4117_v46, %v11130_v16  ;;  %v4119_v10 = vpop.f32.mrb[223].mxu1  ;;  %6716 = vmatprep.mubr.bf16.mxu0 %v4721_v33  ;;  %v3958_v5 = vpop.f32.mrb[223].mxu0  ;;  %v6617_v6 = vld [vmem:[#allocation5 + $0x88] sm:$0xff]  }
 0x2de   :  { %v6543_v36 = vunpack.c.l.bf16 %v6617_v6  ;;  %v6544_v33 = vunpack.c.h.bf16 %v6617_v6 }
 0x2df   :  { %v4603_v60 = vadd.f32 %v6536_v31, %v4118_v32  ;;  %v4673_v25 = vadd.f32 %v9447_v39, %v4602_v53  ;;  %v6618_v32 = vld [vmem:[#allocation5 + $0x90] sm:$0xff]  }
 0x2e1   :  { %v4674_v34 = vadd.f32 %v9447_v39, %v4603_v60  ;;  %v6547_v60 = vunpack.c.l.bf16 %v6618_v32 }
 0x2e2   :  { %v4122_v22 = vpop.f32.mrb[224].mxu1 }
 0x2e3   :  { %v4123_v40 = vadd.f32 %v4122_v22, %v11131_v45  ;;  %v4124_v4 = vpop.f32.mrb[225].mxu1  ;;  %v4722_v50 = vpack.c.bf16 %v4674_v34, %v4673_v25  ;;  %v6548_v45 = vunpack.c.h.bf16 %v6618_v32 }
 0x2e4   :  { %v4125_v35 = vpop.f32.mrb[226].mxu1 }
 0x2e5   :  { %v4604_v17 = vadd.f32 %v6539_v47, %v4123_v40  ;;  %v4126_v19 = vadd.f32 %v4125_v35, %v11132_v21  ;;  %v4127_v61 = vpop.f32.mrb[227].mxu1  ;;  %6717 = vmatmul.mubr.bf16.gmra.mrb[252].mxu0 %v4722_v50  ;;  %v6619_v50 = vld [vmem:[#allocation5 + $0x98] sm:$0xff]  }
 0x2e7   :  { %v4605_v3 = vadd.f32 %v6540_v51, %v4126_v19  ;;  %v4675_v48 = vadd.f32 %v9447_v39, %v4604_v17  ;;  %v6551_v19 = vunpack.c.l.bf16 %v6619_v50 }
 0x2e9   :  { %v4676_v30 = vadd.f32 %v9447_v39, %v4605_v3 }
 0x2ea   :  { %v4130_v26 = vpop.f32.mrb[228].mxu1 }
 0x2eb   :  { %v4131_v11 = vadd.f32 %v4130_v26, %v11133_v54  ;;  %v4132_v31 = vpop.f32.mrb[229].mxu1  ;;  %v4723_v55 = vpack.c.bf16 %v4676_v30, %v4675_v48  ;;  %v6620_v54 = vld [vmem:[#allocation5 + $0xa0] sm:$0xff]  }
 0x2ec   :  { %v4133_v46 = vpop.f32.mrb[230].mxu1 }
 0x2ed   :  { %v4606_v53 = vadd.f32 %v6543_v36, %v4131_v11  ;;  %v4134_v29 = vadd.f32 %v4133_v46, %v9468_v27  ;;  %v4135_v16 = vpop.f32.mrb[231].mxu1  ;;  %6720 = vmatprep.mubr.bf16.mxu0 %v4723_v55  ;;  %v6555_v55 = vunpack.c.l.bf16 %v6620_v54 }
 0x2ee   :  { %v6556_v16 = vunpack.c.h.bf16 %v6620_v54 }
 0x2ef   :  { %v4607_v10 = vadd.f32 %v6544_v33, %v4134_v29  ;;  %v4677_v5 = vadd.f32 %v9447_v39, %v4606_v53 }
 0x2f1   :  { %v4678_v15 = vadd.f32 %v9447_v39, %v4607_v10 }
 0x2f2   :  { %v4138_v25 = vpop.f32.mrb[232].mxu1 }
 0x2f3   :  { %v4724_v34 = vpack.c.bf16 %v4678_v15, %v4677_v5  ;;  %v4139_v47 = vadd.f32 %v4138_v25, %v9477_v43  ;;  %v4140_v22 = vpop.f32.mrb[233].mxu1  ;;  %v6552_v43 = vunpack.c.h.bf16 %v6619_v50  ;;  %v6621_v15 = vld [vmem:[#allocation5 + $0xa8] sm:$0xff]  }
 0x2f4   :  { %v4141_v40 = vpop.f32.mrb[234].mxu1 }
 0x2f5   :  { %v4608_v4 = vadd.f32 %v6547_v60, %v4139_v47  ;;  %v4142_v51 = vadd.f32 %v4141_v40, %v9490_v7  ;;  %v4143_v27 = vpop.f32.mrb[235].mxu1  ;;  %6721 = vmatmul.mubr.bf16.gmra.mrb[0].mxu0 %v4724_v34  ;;  %v6559_v47 = vunpack.c.l.bf16 %v6621_v15 }
 0x2f7   :  { %v4609_v35 = vadd.f32 %v6548_v45, %v4142_v51  ;;  %v4679_v17 = vadd.f32 %v9447_v39, %v4608_v4 }
 0x2f9   :  { %v4680_v21 = vadd.f32 %v9447_v39, %v4609_v35  ;;  %v6622_v35 = vld [vmem:[#allocation5 + $0xb0] sm:$0xff]  }
 0x2fa   :  { %v4146_v61 = vpop.f32.mrb[236].mxu1 }
 0x2fb   :  { %v4147_v6 = vadd.f32 %v4146_v61, %v9502_v41  ;;  %v4148_v3 = vpop.f32.mrb[237].mxu1  ;;  %v4725_v48 = vpack.c.bf16 %v4680_v21, %v4679_v17  ;;  %v6563_v61 = vunpack.c.l.bf16 %v6622_v35 }
 0x2fc   :  { %v4149_v30 = vpop.f32.mrb[238].mxu1 }
 0x2fd   :  { %v4610_v36 = vadd.f32 %v6551_v19, %v4147_v6  ;;  %v4150_v26 = vadd.f32 %v4149_v30, %v9512_v20  ;;  %v4151_v7 = vpop.f32.mrb[239].mxu1  ;;  %6724 = vmatprep.mubr.bf16.mxu0 %v4725_v48  ;;  %v6564_v48 = vunpack.c.h.bf16 %v6622_v35 }
 0x2fe   :  { %v6623_v7 = vld [vmem:[#allocation5 + $0xb8] sm:$0xff]  }
 0x2ff   :  { %v4611_v11 = vadd.f32 %v6552_v43, %v4150_v26  ;;  %v4681_v31 = vadd.f32 %v9447_v39, %v4610_v36 }
 0x301   :  { %v4682_v33 = vadd.f32 %v9447_v39, %v4611_v11 }
 0x302   :  { %v4154_v46 = vpop.f32.mrb[240].mxu1 }
 0x303   :  { %v4726_v53 = vpack.c.bf16 %v4682_v33, %v4681_v31  ;;  %v4155_v41 = vadd.f32 %v4154_v46, %v9521_v1  ;;  %v4156_v29 = vpop.f32.mrb[241].mxu1  ;;  %v6560_v1 = vunpack.c.h.bf16 %v6621_v15  ;;  %v6567_v33 = vunpack.c.l.bf16 %v6623_v7 }
 0x304   :  { %v4157_v32 = vpop.f32.mrb[242].mxu1 }
 0x305   :  { %v4612_v10 = vadd.f32 %v6555_v55, %v4155_v41  ;;  %v4158_v5 = vadd.f32 %v4157_v32, %v9531_v59  ;;  %v4159_v20 = vpop.f32.mrb[243].mxu1  ;;  %6725 = vmatmul.mubr.bf16.gmra.mrb[4].mxu0 %v4726_v53 }
 0x307   :  { %v4613_v60 = vadd.f32 %v6556_v16, %v4158_v5  ;;  %v4683_v25 = vadd.f32 %v9447_v39, %v4612_v10  ;;  %v6624_v10 = vld [vmem:[#allocation5 + $0xc0] sm:$0xff]  }
 0x309   :  { %v4684_v34 = vadd.f32 %v9447_v39, %v4613_v60  ;;  %v6571_v60 = vunpack.c.l.bf16 %v6624_v10 }
 0x30a   :  { %v4162_v22 = vpop.f32.mrb[244].mxu1 }
 0x30b   :  { %v4163_v45 = vadd.f32 %v4162_v22, %v9543_v63  ;;  %v4164_v40 = vpop.f32.mrb[245].mxu1  ;;  %v4727_v4 = vpack.c.bf16 %v4684_v34, %v4683_v25  ;;  %v6572_v22 = vunpack.c.h.bf16 %v6624_v10 }
 0x30c   :  { %v4165_v51 = vpop.f32.mrb[246].mxu1 }
 0x30d   :  { %v4614_v27 = vadd.f32 %v6559_v47, %v4163_v45  ;;  %v4166_v50 = vadd.f32 %v4165_v51, %v9547_v13  ;;  %v4167_v59 = vpop.f32.mrb[247].mxu1  ;;  %6728 = vmatprep.mubr.bf16.mxu0 %v4727_v4  ;;  %v6625_v4 = vld [vmem:[#allocation5 + $0xc8] sm:$0xff]  }
 0x30f   :  { %v4615_v17 = vadd.f32 %v6560_v1, %v4166_v50  ;;  %v4685_v21 = vadd.f32 %v9447_v39, %v4614_v27  ;;  %v9743_v27 = vld [vmem:[%s11001_s5] ss:$0 sm:$0xff] }
 0x311   :  { %v4686_v19 = vadd.f32 %v9447_v39, %v4615_v17 }
 0x312   :  { %v4170_v6 = vpop.f32.mrb[248].mxu1 }
 0x313   :  { %v4728_v3 = vpack.c.bf16 %v4686_v19, %v4685_v21  ;;  %v4171_v63 = vadd.f32 %v4170_v6, %v9556_v44  ;;  %v4172_v43 = vpop.f32.mrb[249].mxu1  ;;  %v6568_v44 = vunpack.c.h.bf16 %v6623_v7  ;;  %v6576_v21 = vunpack.c.h.bf16 %v6625_v4 }
 0x314   :  { %v4173_v30 = vpop.f32.mrb[250].mxu1 }
 0x315   :  { %v4616_v36 = vadd.f32 %v6563_v61, %v4171_v63  ;;  %v4174_v26 = vadd.f32 %v4173_v30, %v9563_v37  ;;  %v4175_v13 = vpop.f32.mrb[251].mxu1  ;;  %6729 = vmatmul.mubr.bf16.gmra.mrb[8].mxu0 %v4728_v3  ;;  %v6626_v63 = vld [vmem:[#allocation5 + $0xd0] sm:$0xff]  }
 0x317   :  { %v4617_v54 = vadd.f32 %v6564_v48, %v4174_v26  ;;  %v4687_v11 = vadd.f32 %v9447_v39, %v4616_v36  ;;  %v6579_v36 = vunpack.c.l.bf16 %v6626_v63 }
 0x319   :  { %v4688_v31 = vadd.f32 %v9447_v39, %v4617_v54  ;;  %v6580_v54 = vunpack.c.h.bf16 %v6626_v63 }
 0x31a   :  { %v4178_v55 = vpop.f32.mrb[252].mxu1 }
 0x31b   :  { %v4179_v46 = vadd.f32 %v4178_v55, %v9575_v18  ;;  %v4180_v53 = vpop.f32.mrb[253].mxu1  ;;  %v4729_v41 = vpack.c.bf16 %v4688_v31, %v4687_v11  ;;  %v6627_v55 = vld [vmem:[#allocation5 + $0xd8] sm:$0xff]  }
 0x31c   :  { %v4181_v29 = vpop.f32.mrb[254].mxu1 }
 0x31d   :  { %v4618_v16 = vadd.f32 %v6567_v33, %v4179_v46  ;;  %v4182_v32 = vadd.f32 %v4181_v29, %v9579_v42  ;;  %v4183_v37 = vpop.f32.mrb[255].mxu1  ;;  %6732 = vmatprep.mubr.bf16.mxu0 %v4729_v41  ;;  %v6583_v41 = vunpack.c.l.bf16 %v6627_v55 }
 0x31f   :  { %v4619_v5 = vadd.f32 %v6568_v44, %v4182_v32  ;;  %v4689_v20 = vadd.f32 %v9447_v39, %v4618_v16 }
 0x321   :  { %v4690_v15 = vadd.f32 %v9447_v39, %v4619_v5 }
 0x322   :  { %v4186_v25 = vpop.f32.mrb[0].mxu1 }
 0x323   :  { %v4730_v34 = vpack.c.bf16 %v4690_v15, %v4689_v20  ;;  %v4187_v18 = vadd.f32 %v4186_v25, %v9588_v57  ;;  %v4188_v47 = vpop.f32.mrb[1].mxu1  ;;  %v6575_v57 = vunpack.c.l.bf16 %v6625_v4  ;;  %v6628_v15 = vld [vmem:[#allocation5 + $0xe0] sm:$0xff]  }
 0x324   :  { %v4189_v45 = vpop.f32.mrb[2].mxu1 }
 0x325   :  { %v4620_v40 = vadd.f32 %v6571_v60, %v4187_v18  ;;  %v4190_v1 = vadd.f32 %v4189_v45, %v9595_v12  ;;  %v4191_v42 = vpop.f32.mrb[3].mxu1  ;;  %6733 = vmatmul.mubr.bf16.gmra.mrb[12].mxu0 %v4730_v34  ;;  %v6587_v18 = vunpack.c.l.bf16 %v6628_v15 }
 0x327   :  { %v4621_v51 = vadd.f32 %v6572_v22, %v4190_v1  ;;  %v4691_v39 = vadd.f32 %v9743_v27, %v4620_v40  ;;  %v6588_v40 = vunpack.c.h.bf16 %v6628_v15 }
 0x329   :  { %v4692_v50 = vadd.f32 %v9743_v27, %v4621_v51  ;;  %v9764_v51 = vld [vmem:[%s11003_s7] ss:$0 sm:$0xff] }
 0x32a   :  { %v4194_v59 = vpop.f32.mrb[4].mxu1 }
 0x32b   :  { %v4195_v35 = vadd.f32 %v4194_v59, %v9607_v8  ;;  %v4196_v17 = vpop.f32.mrb[5].mxu1  ;;  %v4731_v12 = vpack.c.bf16 %v4692_v50, %v4691_v39  ;;  %v6629_v39 = vld [vmem:[#allocation5 + $0xe8] sm:$0xff]  }
 0x32c   :  { %v4197_v19 = vpop.f32.mrb[6].mxu1  ;;  %v6592_v63 = vunpack.c.h.bf16 %v6629_v39 }
 0x32d   :  { %v4622_v61 = vadd.f32 %v6575_v57, %v4195_v35  ;;  %v4198_v6 = vadd.f32 %v4197_v19, %v9611_v62  ;;  %v4199_v3 = vpop.f32.mrb[7].mxu1  ;;  %6736 = vmatprep.mubr.bf16.mxu0 %v4731_v12 }
 0x32f   :  { %v4623_v43 = vadd.f32 %v6576_v21, %v4198_v6  ;;  %v4693_v48 = vadd.f32 %v9743_v27, %v4622_v61  ;;  %v6591_v21 = vunpack.c.l.bf16 %v6629_v39 }
 0x331   :  { %v4694_v30 = vadd.f32 %v9743_v27, %v4623_v43 }
 0x332   :  { %v4202_v26 = vpop.f32.mrb[8].mxu1 }
 0x333   :  { %v4732_v13 = vpack.c.bf16 %v4694_v30, %v4693_v48  ;;  %v4203_v8 = vadd.f32 %v4202_v26, %v9620_v0  ;;  %v4204_v7 = vpop.f32.mrb[9].mxu1  ;;  %v6584_v0 = vunpack.c.h.bf16 %v6627_v55 }
 0x334   :  { %v4205_v11 = vpop.f32.mrb[10].mxu1 }
 0x335   :  { %v4624_v31 = vadd.f32 %v6579_v36, %v4203_v8  ;;  %v4206_v33 = vadd.f32 %v4205_v11, %v9627_v2  ;;  %v4207_v62 = vpop.f32.mrb[11].mxu1  ;;  %6737 = vmatmul.mubr.bf16.gmra.mrb[16].mxu0 %v4732_v13 }
 0x337   :  { %v4625_v46 = vadd.f32 %v6580_v54, %v4206_v33  ;;  %v4695_v53 = vadd.f32 %v9743_v27, %v4624_v31 }
 0x339   :  { %v4696_v44 = vadd.f32 %v9743_v27, %v4625_v46 }
 0x33a   :  { %v4210_v29 = vpop.f32.mrb[12].mxu1 }
 0x33b   :  { %v4211_v16 = vadd.f32 %v4210_v29, %v9639_v52  ;;  %v4212_v32 = vpop.f32.mrb[13].mxu1  ;;  %v4733_v37 = vpack.c.bf16 %v4696_v44, %v4695_v53 }
 0x33c   :  { %v4213_v10 = vpop.f32.mrb[14].mxu1 }
 0x33d   :  { %v4626_v5 = vadd.f32 %v6583_v41, %v4211_v16  ;;  %v4214_v20 = vadd.f32 %v4213_v10, %v9643_v58  ;;  %v4215_v2 = vpop.f32.mrb[15].mxu1  ;;  %6740 = vmatprep.mubr.bf16.mxu0 %v4733_v37  ;;  %v6631_v16 = vld [vmem:[#allocation5 + $0xf8] sm:$0xff]  }
 0x33f   :  { %v4627_v60 = vadd.f32 %v6584_v0, %v4214_v20  ;;  %v4697_v25 = vadd.f32 %v9743_v27, %v4626_v5 }
 0x341   :  { %v4698_v34 = vadd.f32 %v9743_v27, %v4627_v60 }
 0x342   :  { %v4218_v47 = vpop.f32.mrb[16].mxu1 }
 0x343   :  { %v4734_v22 = vpack.c.bf16 %v4698_v34, %v4697_v25  ;;  %v4219_v52 = vadd.f32 %v4218_v47, %v9652_v49  ;;  %v4220_v45 = vpop.f32.mrb[17].mxu1 }
 0x344   :  { %v4221_v1 = vpop.f32.mrb[18].mxu1 }
 0x345   :  { %v4628_v42 = vadd.f32 %v6587_v18, %v4219_v52  ;;  %v4222_v4 = vadd.f32 %v4221_v1, %v9659_v14  ;;  %v4223_v58 = vpop.f32.mrb[19].mxu1  ;;  %6741 = vmatmul.mubr.bf16.gmra.mrb[20].mxu0 %v4734_v22  ;;  %v6600_v18 = vunpack.c.h.bf16 %v6631_v16 }
 0x347   :  { %v4629_v50 = vadd.f32 %v6588_v40, %v4222_v4  ;;  %v4699_v59 = vadd.f32 %v9743_v27, %v4628_v42 }
 0x348   :  { %v6690_v57 = vpop.f32.mrb[224].mxu0 }
 0x349   :  { %v4700_v49 = vadd.f32 %v9743_v27, %v4629_v50  ;;  %v9769_v35 = vadd.f32 %v6690_v57, %v9764_v51  ;;  %v4844_v17 = vpop.f32.mrb[225].mxu0 }
 0x34a   :  { %v9772_v14 = vadd.f32 %v9764_v51, %v4844_v17  ;;  %v4226_v12 = vpop.f32.mrb[20].mxu1  ;;  %v6691_v19 = vpop.f32.mrb[226].mxu0 }
 0x34b   :  { %v4227_v61 = vadd.f32 %v4226_v12, %v9671_v28  ;;  %v4228_v6 = vpop.f32.mrb[21].mxu1  ;;  %5103 = vmax.xlane.f32.xlu1 %v9769_v35  ;;  %v4847_v3 = vpop.f32.mrb[227].mxu0  ;;  %v4735_v43 = vpack.c.bf16 %v4700_v49, %v4699_v59  ;;  %v9778_v36 = vadd.f32 %v6691_v19, %v9764_v51  ;;  %v6630_v28 = vld [vmem:[#allocation5 + $0xf0] sm:$0xff]  }
 0x34c   :  { %v4229_v48 = vpop.f32.mrb[22].mxu1  ;;  %5099 = vmax.xlane.f32.xlu0 %v9772_v14  ;;  %v9782_v8 = vadd.f32 %v9764_v51, %v4847_v3  ;;  %v6595_v31 = vunpack.c.l.bf16 %v6630_v28  ;;  %v6596_v46 = vunpack.c.h.bf16 %v6630_v28 }
 0x34d   :  { %v4630_v30 = vadd.f32 %v6591_v21, %v4227_v61  ;;  %v4230_v26 = vadd.f32 %v4229_v48, %v9675_v38  ;;  %v4231_v13 = vpop.f32.mrb[23].mxu1  ;;  %6744 = vmatprep.mubr.bf16.mxu0 %v4735_v43 }
 0x34f   :  { %v4631_v7 = vadd.f32 %v6592_v63, %v4230_v26  ;;  %5105 = vmax.xlane.f32.xlu1 %v9778_v36  ;;  %v4701_v54 = vadd.f32 %v9743_v27, %v4630_v30 }
 0x350   :  { %5101 = vmax.xlane.f32.xlu0 %v9782_v8 }
 0x351   :  { %v4702_v11 = vadd.f32 %v9743_v27, %v4631_v7 }
 0x352   :  { %v4234_v33 = vpop.f32.mrb[24].mxu1 }
 0x353   :  { %v4736_v62 = vpack.c.bf16 %v4702_v11, %v4701_v54  ;;  %v4235_v38 = vadd.f32 %v4234_v33, %v9684_v9  ;;  %v4236_v55 = vpop.f32.mrb[25].mxu1  ;;  %v6599_v9 = vunpack.c.l.bf16 %v6631_v16 }
 0x354   :  { %v4237_v53 = vpop.f32.mrb[26].mxu1 }
 0x355   :  { %v4632_v44 = vadd.f32 %v6595_v31, %v4235_v38  ;;  %v4238_v41 = vadd.f32 %v4237_v53, %v9691_v56  ;;  %v4239_v29 = vpop.f32.mrb[27].mxu1  ;;  %6745 = vmatmul.mubr.bf16.gmra.mrb[24].mxu0 %v4736_v62 }
 0x357   :  { %v4633_v32 = vadd.f32 %v6596_v46, %v4238_v41  ;;  %v4703_v37 = vadd.f32 %v9743_v27, %v4632_v44 }
 0x358   :  { %v6694_v0 = vpop.f32.mrb[228].mxu0 }
 0x359   :  { %v4704_v10 = vadd.f32 %v9743_v27, %v4633_v32  ;;  %v9793_v5 = vadd.f32 %v6694_v0, %v9764_v51  ;;  %v4860_v20 = vpop.f32.mrb[229].mxu0 }
 0x35a   :  { %v4242_v2 = vpop.f32.mrb[28].mxu1  ;;  %v6695_v15 = vpop.f32.mrb[230].mxu0  ;;  %v9801_v52 = vadd.f32 %v9764_v51, %v4860_v20 }
 0x35b   :  { %v4243_v60 = vadd.f32 %v4242_v2, %v9697_v23  ;;  %v9797_v56 = vadd.f32 %v6695_v15, %v9764_v51  ;;  %v4244_v25 = vpop.f32.mrb[29].mxu1  ;;  %v4863_v34 = vpop.f32.mrb[231].mxu0  ;;  %5111 = vmax.xlane.f32.xlu0 %v9793_v5  ;;  %v4737_v47 = vpack.c.bf16 %v4704_v10, %v4703_v37 }
 0x35c   :  { %v4245_v22 = vpop.f32.mrb[30].mxu1  ;;  %v9806_v23 = vadd.f32 %v9764_v51, %v4863_v34 }
 0x35d   :  { %v4634_v45 = vadd.f32 %v6599_v9, %v4243_v60  ;;  %v4246_v40 = vadd.f32 %v4245_v22, %v9701_v24  ;;  %v4247_v1 = vpop.f32.mrb[31].mxu1  ;;  %6748 = vmatprep.mubr.bf16.mxu0 %v4737_v47  ;;  %5113 = vmax.xlane.f32.xlu1 %v9797_v56 }
 0x35f   :  { %v4635_v42 = vadd.f32 %v6600_v18, %v4246_v40  ;;  %5107 = vmax.xlane.f32.xlu0 %v9801_v52  ;;  %v4705_v4 = vadd.f32 %v9743_v27, %v4634_v45 }
 0x361   :  { %v4706_v58 = vadd.f32 %v9743_v27, %v4635_v42  ;;  %5109 = vmax.xlane.f32.xlu1 %v9806_v23 }
 0x363   :  { %v4738_v39 = vpack.c.bf16 %v4706_v58, %v4705_v4 }
 0x365   :  { %6749 = vmatmul.mubr.bf16.gmra.mrb[28].mxu0 %v4738_v39 }
 0x368   :  { %v6698_v50 = vpop.f32.mrb[232].mxu0 }
 0x369   :  { %v9813_v24 = vadd.f32 %v6698_v50, %v9764_v51  ;;  %v4876_v57 = vpop.f32.mrb[233].mxu0 }
 0x36a   :  { %v6699_v59 = vpop.f32.mrb[234].mxu0  ;;  %v9820_v21 = vadd.f32 %v9764_v51, %v4876_v57 }
 0x36b   :  { %v9816_v49 = vadd.f32 %v6699_v59, %v9764_v51  ;;  %v4879_v17 = vpop.f32.mrb[235].mxu0  ;;  %5119 = vmax.xlane.f32.xlu0 %v9813_v24 }
 0x36c   :  { %v9824_v27 = vadd.f32 %v9764_v51, %v4879_v17 }
 0x36d   :  { %5121 = vmax.xlane.f32.xlu1 %v9816_v49 }
 0x36f   :  { %5115 = vmax.xlane.f32.xlu0 %v9820_v21 }
 0x371   :  { %5117 = vmax.xlane.f32.xlu1 %v9824_v27 }
 0x378   :  { %v6702_v12 = vpop.f32.mrb[236].mxu0 }
 0x379   :  { %v9829_v19 = vadd.f32 %v6702_v12, %v9764_v51  ;;  %v4892_v61 = vpop.f32.mrb[237].mxu0 }
 0x37a   :  { %v6703_v6 = vpop.f32.mrb[238].mxu0  ;;  %v9836_v43 = vadd.f32 %v9764_v51, %v4892_v61 }
 0x37b   :  { %v9832_v3 = vadd.f32 %v6703_v6, %v9764_v51  ;;  %v4895_v63 = vpop.f32.mrb[239].mxu0  ;;  %5127 = vmax.xlane.f32.xlu0 %v9829_v19 }
 0x37c   :  { %v9840_v48 = vadd.f32 %v9764_v51, %v4895_v63 }
 0x37d   :  { %5129 = vmax.xlane.f32.xlu1 %v9832_v3 }
 0x37f   :  { %5123 = vmax.xlane.f32.xlu0 %v9836_v43 }
 0x381   :  { %5125 = vmax.xlane.f32.xlu1 %v9840_v48 }
 0x388   :  { %v6706_v30 = vpop.f32.mrb[240].mxu0 }
 0x389   :  { %v9845_v26 = vadd.f32 %v6706_v30, %v9764_v51  ;;  %v4908_v13 = vpop.f32.mrb[241].mxu0 }
 0x38a   :  { %v6707_v28 = vpop.f32.mrb[242].mxu0  ;;  %v9852_v11 = vadd.f32 %v9764_v51, %v4908_v13 }
 0x38b   :  { %v9848_v7 = vadd.f32 %v6707_v28, %v9764_v51  ;;  %v4911_v54 = vpop.f32.mrb[243].mxu0  ;;  %5135 = vmax.xlane.f32.xlu0 %v9845_v26 }
 0x38c   :  { %v9856_v31 = vadd.f32 %v9764_v51, %v4911_v54 }
 0x38d   :  { %5137 = vmax.xlane.f32.xlu1 %v9848_v7 }
 0x38f   :  { %5131 = vmax.xlane.f32.xlu0 %v9852_v11 }
 0x391   :  { %5133 = vmax.xlane.f32.xlu1 %v9856_v31 }
 0x398   :  { %v6710_v33 = vpop.f32.mrb[244].mxu0 }
 0x399   :  { %v9861_v62 = vadd.f32 %v6710_v33, %v9764_v51  ;;  %v4924_v38 = vpop.f32.mrb[245].mxu0 }
 0x39a   :  { %v6711_v55 = vpop.f32.mrb[246].mxu0  ;;  %v9868_v44 = vadd.f32 %v9764_v51, %v4924_v38 }
 0x39b   :  { %v9864_v46 = vadd.f32 %v6711_v55, %v9764_v51  ;;  %v4927_v53 = vpop.f32.mrb[247].mxu0  ;;  %5143 = vmax.xlane.f32.xlu0 %v9861_v62 }
 0x39c   :  { %v9872_v41 = vadd.f32 %v9764_v51, %v4927_v53 }
 0x39d   :  { %5145 = vmax.xlane.f32.xlu1 %v9864_v46 }
 0x39f   :  { %5139 = vmax.xlane.f32.xlu0 %v9868_v44 }
 0x3a1   :  { %5141 = vmax.xlane.f32.xlu1 %v9872_v41 }
 0x3a8   :  { %v6714_v29 = vpop.f32.mrb[248].mxu0 }
 0x3a9   :  { %v9877_v16 = vadd.f32 %v6714_v29, %v9764_v51  ;;  %v4940_v32 = vpop.f32.mrb[249].mxu0 }
 0x3aa   :  { %v6715_v0 = vpop.f32.mrb[250].mxu0  ;;  %v9884_v20 = vadd.f32 %v9764_v51, %v4940_v32 }
 0x3ab   :  { %v9880_v37 = vadd.f32 %v6715_v0, %v9764_v51  ;;  %v4943_v10 = vpop.f32.mrb[251].mxu0  ;;  %5151 = vmax.xlane.f32.xlu0 %v9877_v16 }
 0x3ac   :  { %v9888_v9 = vadd.f32 %v9764_v51, %v4943_v10 }
 0x3ad   :  { %5153 = vmax.xlane.f32.xlu1 %v9880_v37 }
 0x3af   :  { %5147 = vmax.xlane.f32.xlu0 %v9884_v20 }
 0x3b1   :  { %5149 = vmax.xlane.f32.xlu1 %v9888_v9 }
 0x3b8   :  { %v6718_v2 = vpop.f32.mrb[252].mxu0 }
 0x3b9   :  { %v9893_v15 = vadd.f32 %v6718_v2, %v9764_v51  ;;  %v4956_v60 = vpop.f32.mrb[253].mxu0 }
 0x3ba   :  { %v6719_v25 = vpop.f32.mrb[254].mxu0  ;;  %v9900_v47 = vadd.f32 %v9764_v51, %v4956_v60 }
 0x3bb   :  { %v9896_v34 = vadd.f32 %v6719_v25, %v9764_v51  ;;  %v4959_v18 = vpop.f32.mrb[255].mxu0  ;;  %5159 = vmax.xlane.f32.xlu0 %v9893_v15 }
 0x3bc   :  { %v9904_v22 = vadd.f32 %v9764_v51, %v4959_v18 }
 0x3bd   :  { %5161 = vmax.xlane.f32.xlu1 %v9896_v34 }
 0x3bf   :  { %5155 = vmax.xlane.f32.xlu0 %v9900_v47 }
 0x3c1   :  { %5157 = vmax.xlane.f32.xlu1 %v9904_v22 }
 0x3c8   :  { %v6722_v45 = vpop.f32.mrb[0].mxu0 }
 0x3c9   :  { %v9909_v40 = vadd.f32 %v6722_v45, %v9764_v51  ;;  %v4972_v1 = vpop.f32.mrb[1].mxu0 }
 0x3ca   :  { %v6723_v42 = vpop.f32.mrb[2].mxu0  ;;  %v9916_v39 = vadd.f32 %v9764_v51, %v4972_v1 }
 0x3cb   :  { %v9912_v4 = vadd.f32 %v6723_v42, %v9764_v51  ;;  %v4975_v58 = vpop.f32.mrb[3].mxu0  ;;  %5167 = vmax.xlane.f32.xlu0 %v9909_v40 }
 0x3cc   :  { %v9920_v50 = vadd.f32 %v9764_v51, %v4975_v58 }
 0x3cd   :  { %5169 = vmax.xlane.f32.xlu1 %v9912_v4 }
 0x3cf   :  { %5163 = vmax.xlane.f32.xlu0 %v9916_v39 }
 0x3d1   :  { %5165 = vmax.xlane.f32.xlu1 %v9920_v50 }
 0x3d8   :  { %v5104_v57 = vpop.xlane.xlu1 %5103  ;;  %v6726_v59 = vpop.f32.mrb[4].mxu0 }
 0x3d9   :  { %v9925_v17 = vsub.f32 %v9769_v35, %v5104_v57  ;;  %v9928_v12 = vadd.f32 %v6726_v59, %v9764_v51  ;;  %v4988_v61 = vpop.f32.mrb[5].mxu0  ;;  %v5100_v6 = vpop.xlane.xlu0 %5099 }
 0x3da   :  { %v9931_v63 = vsub.f32 %v9772_v14, %v5100_v6  ;;  %v6727_v30 = vpop.f32.mrb[6].mxu0  ;;  %v9940_v38 = vadd.f32 %v9764_v51, %v4988_v61 }
 0x3db   :  { %v5295_v13 = vmul.f32 1.442695, %v9925_v17  ;;  %v9935_v28 = vadd.f32 %v6727_v30, %v9764_v51  ;;  %v4991_v54 = vpop.f32.mrb[7].mxu0  ;;  %5175 = vmax.xlane.f32.xlu0 %v9928_v12 }
 0x3dc   :  { %v5291_v35 = vmul.f32 1.442695, %v9931_v63  ;;  %v5106_v33 = vpop.xlane.xlu1 %5105  ;;  %v9950_v29 = vadd.f32 %v9764_v51, %v4991_v54 }
 0x3dd   :  { %7241 = vpow2.f32 %v5295_v13  ;;  %v9943_v55 = vsub.f32 %v9778_v36, %v5106_v33  ;;  %5177 = vmax.xlane.f32.xlu1 %v9935_v28  ;;  %v5102_v14 = vpop.xlane.xlu0 %5101 }
 0x3de   :  { %v9947_v53 = vsub.f32 %v9782_v8, %v5102_v14  ;;  %7243 = vpow2.f32 %v5291_v35 }
 0x3df   :  { %v5297_v32 = vmul.f32 1.442695, %v9943_v55  ;;  %5171 = vmax.xlane.f32.xlu0 %v9940_v38 }
 0x3e0   :  { %v5293_v0 = vmul.f32 1.442695, %v9947_v53 }
 0x3e1   :  { %7245 = vpow2.f32 %v5297_v32  ;;  %5173 = vmax.xlane.f32.xlu1 %v9950_v29 }
 0x3e2   :  { %7247 = vpow2.f32 %v5293_v0 }
 0x3e7   :  { %v9956_v36 = vpop.eup %7241 }
 0x3e8   :  { %v6730_v10 = vpop.f32.mrb[8].mxu0  ;;  %5423 = vadd.xlane.f32.xlu0 %v9956_v36  ;;  %v5112_v8 = vpop.xlane.xlu0 %5111 }
 0x3e9   :  { %v9960_v2 = vsub.f32 %v9793_v5, %v5112_v8  ;;  %v5004_v60 = vpop.f32.mrb[9].mxu0  ;;  %v9962_v25 = vpop.eup %7243  ;;  %v9977_v6 = vadd.f32 %v6730_v10, %v9764_v51 }
 0x3ea   :  { %v5114_v18 = vpop.xlane.xlu1 %5113  ;;  %v6731_v45 = vpop.f32.mrb[10].mxu0  ;;  %v9989_v35 = vadd.f32 %v9764_v51, %v5004_v60 }
 0x3eb   :  { %v9964_v1 = vpop.eup %7245  ;;  %v5303_v42 = vmul.f32 1.442695, %v9960_v2  ;;  %v9968_v58 = vsub.f32 %v9797_v56, %v5114_v18  ;;  %v5007_v57 = vpop.f32.mrb[11].mxu0  ;;  %v9992_v33 = vadd.f32 %v6731_v45, %v9764_v51 }
 0x3ec   :  { %5425 = vadd.xlane.f32.xlu1 %v9964_v1  ;;  %5419 = vadd.xlane.f32.xlu0 %v9962_v25  ;;  %v5108_v59 = vpop.xlane.xlu0 %5107  ;;  %v9979_v13 = vpop.eup %7247 }
 0x3ed   :  { %7249 = vpow2.f32 %v5303_v42  ;;  %v5305_v5 = vmul.f32 1.442695, %v9968_v58  ;;  %v9974_v61 = vsub.f32 %v9801_v52, %v5108_v59 }
 0x3ee   :  { %v5110_v30 = vpop.xlane.xlu1 %5109 }
 0x3ef   :  { %11134 = vst [vmem:[#allocation20_spill] sm:$0xff] %v9974_v61  ;;  %v5299_v56 = vmul.f32 1.442695, %v9974_v61  ;;  %v9983_v54 = vsub.f32 %v9806_v23, %v5110_v30  ;;  %7251 = vpow2.f32 %v5305_v5  ;;  %v9997_v23 = vadd.f32 %v9764_v51, %v5007_v57 }
 0x3f0   :  { %5183 = vmax.xlane.f32.xlu0 %v9977_v6  ;;  %5421 = vadd.xlane.f32.xlu1 %v9979_v13 }
 0x3f1   :  { %11135 = vst [vmem:[#allocation21_spill] sm:$0xff] %v9983_v54  ;;  %7253 = vpow2.f32 %v5299_v56  ;;  %v5301_v52 = vmul.f32 1.442695, %v9983_v54 }
 0x3f3   :  { %7255 = vpow2.f32 %v5301_v52 }
 0x3f4   :  { %5179 = vmax.xlane.f32.xlu0 %v9989_v35  ;;  %5185 = vmax.xlane.f32.xlu1 %v9992_v33 }
 0x3f7   :  { %v9999_v14 = vpop.eup %7249 }
 0x3f8   :  { %v6734_v32 = vpop.f32.mrb[12].mxu0  ;;  %5181 = vmax.xlane.f32.xlu1 %v9997_v23  ;;  %5431 = vadd.xlane.f32.xlu0 %v9999_v14  ;;  %v5120_v0 = vpop.xlane.xlu0 %5119 }
 0x3f9   :  { %v10004_v10 = vsub.f32 %v9813_v24, %v5120_v0  ;;  %v5020_v8 = vpop.f32.mrb[13].mxu0  ;;  %v10006_v60 = vpop.eup %7251  ;;  %v10021_v52 = vadd.f32 %v6734_v32, %v9764_v51 }
 0x3fa   :  { %v6735_v18 = vpop.f32.mrb[14].mxu0  ;;  %v5122_v45 = vpop.xlane.xlu1 %5121 }
 0x3fb   :  { %11136 = vst [vmem:[#allocation22_spill] sm:$0xff] %v10004_v10  ;;  %v10008_v42 = vpop.eup %7253  ;;  %v5311_v57 = vmul.f32 1.442695, %v10004_v10  ;;  %v10012_v59 = vsub.f32 %v9816_v49, %v5122_v45  ;;  %v5023_v5 = vpop.f32.mrb[15].mxu0  ;;  %v10036_v32 = vadd.f32 %v6735_v18, %v9764_v51 }
 0x3fc   :  { %5433 = vadd.xlane.f32.xlu1 %v10006_v60  ;;  %5427 = vadd.xlane.f32.xlu0 %v10008_v42  ;;  %v5116_v30 = vpop.xlane.xlu0 %5115 }
 0x3fd   :  { %11137 = vst [vmem:[#allocation6_spill] sm:$0xff] %v10012_v59  ;;  %7257 = vpow2.f32 %v5311_v57  ;;  %v5313_v24 = vmul.f32 1.442695, %v10012_v59  ;;  %v10018_v56 = vsub.f32 %v9820_v21, %v5116_v30  ;;  %v10023_v10 = vpop.eup %7255  ;;  %v10033_v57 = vadd.f32 %v9764_v51, %v5020_v8 }
 0x3fe   :  { %v5118_v0 = vpop.xlane.xlu1 %5117  ;;  %11139 = vst [vmem:[#allocation7_spill] sm:$0xff] %v10023_v10 }
 0x3ff   :  { %11138 = vst [vmem:[#allocation13_spill] sm:$0xff] %v10018_v56  ;;  %v5307_v49 = vmul.f32 1.442695, %v10018_v56  ;;  %v10027_v45 = vsub.f32 %v9824_v27, %v5118_v0  ;;  %7259 = vpow2.f32 %v5313_v24  ;;  %v10041_v27 = vadd.f32 %v9764_v51, %v5023_v5 }
 0x400   :  { %5429 = vadd.xlane.f32.xlu1 %v10023_v10  ;;  %5191 = vmax.xlane.f32.xlu0 %v10021_v52 }
 0x401   :  { %11140 = vst [vmem:[#allocation14_spill] sm:$0xff] %v10027_v45  ;;  %7261 = vpow2.f32 %v5307_v49  ;;  %v5309_v21 = vmul.f32 1.442695, %v10027_v45 }
 0x403   :  { %7263 = vpow2.f32 %v5309_v21 }
 0x404   :  { %5193 = vmax.xlane.f32.xlu1 %v10036_v32  ;;  %5187 = vmax.xlane.f32.xlu0 %v10033_v57 }
 0x407   :  { %v10043_v30 = vpop.eup %7257 }
 0x408   :  { %11141 = vst [vmem:[#allocation8_spill] sm:$0xff] %v10043_v30  ;;  %v6738_v24 = vpop.f32.mrb[16].mxu0  ;;  %5189 = vmax.xlane.f32.xlu1 %v10041_v27  ;;  %5439 = vadd.xlane.f32.xlu0 %v10043_v30  ;;  %v5128_v8 = vpop.xlane.xlu0 %5127 }
 0x409   :  { %v10048_v0 = vsub.f32 %v9829_v19, %v5128_v8  ;;  %v5036_v18 = vpop.f32.mrb[17].mxu0  ;;  %v10050_v49 = vpop.eup %7259  ;;  %v10065_v10 = vadd.f32 %v6738_v24, %v9764_v51 }
 0x40a   :  { %11143 = vst [vmem:[#allocation9_spill] sm:$0xff] %v10050_v49  ;;  %v6739_v45 = vpop.f32.mrb[18].mxu0  ;;  %v5130_v56 = vpop.xlane.xlu1 %5129 }
 0x40b   :  { %11142 = vst [vmem:[#allocation15_spill] sm:$0xff] %v10048_v0  ;;  %v10052_v21 = vpop.eup %7261  ;;  %v5319_v5 = vmul.f32 1.442695, %v10048_v0  ;;  %v10056_v59 = vsub.f32 %v9832_v3, %v5130_v56  ;;  %v5039_v54 = vpop.f32.mrb[19].mxu0  ;;  %v10080_v24 = vadd.f32 %v6739_v45, %v9764_v51 }
 0x40c   :  { %11144 = vst [vmem:[#allocation16_spill] sm:$0xff] %v10052_v21  ;;  %5441 = vadd.xlane.f32.xlu1 %v10050_v49  ;;  %5435 = vadd.xlane.f32.xlu0 %v10052_v21  ;;  %v5124_v30 = vpop.xlane.xlu0 %5123 }
 0x40d   :  { %11145 = vst [vmem:[#allocation10_spill] sm:$0xff] %v10056_v59  ;;  %7265 = vpow2.f32 %v5319_v5  ;;  %v5321_v19 = vmul.f32 1.442695, %v10056_v59  ;;  %v10062_v8 = vsub.f32 %v9836_v43, %v5124_v30  ;;  %v10067_v0 = vpop.eup %7263  ;;  %v10077_v30 = vadd.f32 %v9764_v51, %v5036_v18 }
 0x40e   :  { %v5126_v61 = vpop.xlane.xlu1 %5125  ;;  %11147 = vst [vmem:[#allocation11_spill] sm:$0xff] %v10067_v0 }
 0x40f   :  { %11146 = vst [vmem:[#allocation17_spill] sm:$0xff] %v10062_v8  ;;  %v5315_v3 = vmul.f32 1.442695, %v10062_v8  ;;  %v10071_v56 = vsub.f32 %v9840_v48, %v5126_v61  ;;  %7267 = vpow2.f32 %v5321_v19  ;;  %v10085_v48 = vadd.f32 %v9764_v51, %v5039_v54 }
 0x410   :  { %5437 = vadd.xlane.f32.xlu1 %v10067_v0  ;;  %5199 = vmax.xlane.f32.xlu0 %v10065_v10 }
 0x411   :  { %11148 = vst [vmem:[#allocation18_spill] sm:$0xff] %v10071_v56  ;;  %7269 = vpow2.f32 %v5315_v3  ;;  %v5317_v43 = vmul.f32 1.442695, %v10071_v56 }
 0x413   :  { %7271 = vpow2.f32 %v5317_v43 }
 0x414   :  { %5201 = vmax.xlane.f32.xlu1 %v10080_v24  ;;  %5195 = vmax.xlane.f32.xlu0 %v10077_v30 }
 0x417   :  { %v10087_v61 = vpop.eup %7265 }
 0x418   :  { %11149 = vst [vmem:[#allocation12_spill] sm:$0xff] %v10087_v61  ;;  %v6742_v5 = vpop.f32.mrb[20].mxu0  ;;  %5197 = vmax.xlane.f32.xlu1 %v10085_v48  ;;  %5447 = vadd.xlane.f32.xlu0 %v10087_v61  ;;  %v5136_v18 = vpop.xlane.xlu0 %5135 }
 0x419   :  { %v10092_v19 = vsub.f32 %v9845_v26, %v5136_v18  ;;  %v5052_v45 = vpop.f32.mrb[21].mxu0  ;;  %v10094_v3 = vpop.eup %7267  ;;  %v10109_v21 = vadd.f32 %v6742_v5, %v9764_v51 }
 0x41a   :  { %11151 = vst [vmem:[#allocation23_spill] sm:$0xff] %v10094_v3  ;;  %v6743_v56 = vpop.f32.mrb[22].mxu0  ;;  %v5138_v8 = vpop.xlane.xlu1 %5137 }
 0x41b   :  { %11150 = vst [vmem:[#allocation19_spill] sm:$0xff] %v10092_v19  ;;  %v10096_v43 = vpop.eup %7269  ;;  %v5327_v54 = vmul.f32 1.442695, %v10092_v19  ;;  %v10100_v59 = vsub.f32 %v9848_v7, %v5138_v8  ;;  %v5055_v0 = vpop.f32.mrb[23].mxu0  ;;  %v10124_v5 = vadd.f32 %v6743_v56, %v9764_v51 }
 0x41c   :  { %11152 = vst [vmem:[#allocation24_spill] sm:$0xff] %v10096_v43  ;;  %5449 = vadd.xlane.f32.xlu1 %v10094_v3  ;;  %5443 = vadd.xlane.f32.xlu0 %v10096_v43  ;;  %v5132_v61 = vpop.xlane.xlu0 %5131 }
 0x41d   :  { %11153 = vst [vmem:[#allocation25_spill] sm:$0xff] %v10100_v59  ;;  %7273 = vpow2.f32 %v5327_v54  ;;  %v5329_v26 = vmul.f32 1.442695, %v10100_v59  ;;  %v10106_v18 = vsub.f32 %v9852_v11, %v5132_v61  ;;  %v10111_v19 = vpop.eup %7271  ;;  %v10121_v61 = vadd.f32 %v9764_v51, %v5052_v45 }
 0x41e   :  { %v5134_v49 = vpop.xlane.xlu1 %5133  ;;  %11155 = vst [vmem:[#allocation27_spill] sm:$0xff] %v10111_v19 }
 0x41f   :  { %11154 = vst [vmem:[#allocation26_spill] sm:$0xff] %v10106_v18  ;;  %v5323_v7 = vmul.f32 1.442695, %v10106_v18  ;;  %v10115_v8 = vsub.f32 %v9856_v31, %v5134_v49  ;;  %7275 = vpow2.f32 %v5329_v26  ;;  %v10129_v31 = vadd.f32 %v9764_v51, %v5055_v0 }
 0x420   :  { %5445 = vadd.xlane.f32.xlu1 %v10111_v19  ;;  %5207 = vmax.xlane.f32.xlu0 %v10109_v21 }
 0x421   :  { %11156 = vst [vmem:[#allocation28_spill] sm:$0xff] %v10115_v8  ;;  %7277 = vpow2.f32 %v5323_v7  ;;  %v5325_v11 = vmul.f32 1.442695, %v10115_v8  ;;  %11157 = vst [vmem:[#allocation29_spill] sm:$0xff] %v10129_v31 }
 0x423   :  { %7279 = vpow2.f32 %v5325_v11 }
 0x424   :  { %5209 = vmax.xlane.f32.xlu1 %v10124_v5  ;;  %5203 = vmax.xlane.f32.xlu0 %v10121_v61 }
 0x427   :  { %v10131_v49 = vpop.eup %7273 }
 0x428   :  { %11158 = vst [vmem:[#allocation30_spill] sm:$0xff] %v10131_v49  ;;  %v6746_v54 = vpop.f32.mrb[24].mxu0  ;;  %5205 = vmax.xlane.f32.xlu1 %v10129_v31  ;;  %5455 = vadd.xlane.f32.xlu0 %v10131_v49  ;;  %v5144_v45 = vpop.xlane.xlu0 %5143 }
 0x429   :  { %v5068_v26 = vpop.f32.mrb[25].mxu0  ;;  %v10135_v7 = vpop.eup %7275  ;;  %v10142_v11 = vadd.f32 %v6746_v54, %v9764_v51  ;;  %v10161_v54 = vsub.f32 %v9861_v62, %v5144_v45 }
 0x42a   :  { %11159 = vst [vmem:[#allocation31_spill] sm:$0xff] %v10135_v7  ;;  %v6747_v56 = vpop.f32.mrb[26].mxu0  ;;  %v5146_v8 = vpop.xlane.xlu1 %5145  ;;  %v10152_v3 = vadd.f32 %v9764_v51, %v5068_v26 }
 0x42b   :  { %v10137_v18 = vpop.eup %7277  ;;  %v5071_v59 = vpop.f32.mrb[27].mxu0  ;;  %11163 = vst [vmem:[#allocation35_spill] sm:$0xff] %v10161_v54 }
 0x42c   :  { %11160 = vst [vmem:[#allocation32_spill] sm:$0xff] %v10137_v18  ;;  %5457 = vadd.xlane.f32.xlu1 %v10135_v7  ;;  %5451 = vadd.xlane.f32.xlu0 %v10137_v18  ;;  %v5140_v0 = vpop.xlane.xlu0 %5139  ;;  %v10155_v7 = vadd.f32 %v6747_v56, %v9764_v51  ;;  %v10170_v26 = vadd.f32 %v9764_v51, %v5071_v59 }
 0x42d   :  { %v10144_v19 = vpop.eup %7279  ;;  %v10147_v43 = vsub.f32 %v9868_v44, %v5140_v0  ;;  %v10167_v44 = vsub.f32 %v9864_v46, %v5146_v8 }
 0x42e   :  { %v5142_v49 = vpop.xlane.xlu1 %5141 }
 0x42f   :  { %11161 = vst [vmem:[#allocation33_spill] sm:$0xff] %v10147_v43  ;;  %v10158_v18 = vsub.f32 %v9872_v41, %v5142_v49  ;;  %v5331_v31 = vmul.f32 1.442695, %v10147_v43  ;;  %v5335_v41 = vmul.f32 1.442695, %v10161_v54 }
 0x430   :  { %5453 = vadd.xlane.f32.xlu1 %v10144_v19  ;;  %5215 = vmax.xlane.f32.xlu0 %v10142_v11  ;;  %v5337_v8 = vmul.f32 1.442695, %v10167_v44 }
 0x431   :  { %11162 = vst [vmem:[#allocation34_spill] sm:$0xff] %v10158_v18  ;;  %v5333_v56 = vmul.f32 1.442695, %v10158_v18  ;;  %7281 = vpow2.f32 %v5331_v31 }
 0x433   :  { %7283 = vpow2.f32 %v5333_v56 }
 0x434   :  { %5217 = vmax.xlane.f32.xlu1 %v10155_v7  ;;  %5211 = vmax.xlane.f32.xlu0 %v10152_v3  ;;  %7285 = vpow2.f32 %v5335_v41 }
 0x435   :  { %7287 = vpow2.f32 %v5337_v8 }
 0x438   :  { %v6750_v49 = vpop.f32.mrb[28].mxu0  ;;  %5213 = vmax.xlane.f32.xlu1 %v10170_v26  ;;  %v5152_v62 = vpop.xlane.xlu0 %5151 }
 0x439   :  { %v10176_v45 = vadd.f32 %v6750_v49, %v9764_v51  ;;  %v10179_v0 = vsub.f32 %v9877_v16, %v5152_v62  ;;  %v5084_v46 = vpop.f32.mrb[29].mxu0 }
 0x43a   :  { %v6751_v59 = vpop.f32.mrb[30].mxu0  ;;  %v5154_v43 = vpop.xlane.xlu1 %5153  ;;  %v10191_v62 = vadd.f32 %v9764_v51, %v5084_v46 }
 0x43b   :  { %11164 = vst [vmem:[#allocation36_spill] sm:$0xff] %v10179_v0  ;;  %v10183_v18 = vadd.f32 %v6751_v59, %v9764_v51  ;;  %v10186_v31 = vsub.f32 %v9880_v37, %v5154_v43  ;;  %v5087_v54 = vpop.f32.mrb[31].mxu0  ;;  %5223 = vmax.xlane.f32.xlu0 %v10176_v45  ;;  %v5343_v49 = vmul.f32 1.442695, %v10179_v0 }
 0x43c   :  { %v5148_v16 = vpop.xlane.xlu0 %5147  ;;  %v10199_v43 = vadd.f32 %v9764_v51, %v5087_v54 }
 0x43d   :  { %11165 = vst [vmem:[#allocation37_spill] sm:$0xff] %v10186_v31  ;;  %v10194_v56 = vsub.f32 %v9884_v20, %v5148_v16  ;;  %5225 = vmax.xlane.f32.xlu1 %v10183_v18  ;;  %v5345_v59 = vmul.f32 1.442695, %v10186_v31  ;;  %7289 = vpow2.f32 %v5343_v49  ;;  %v10207_v20 = vpop.eup %7281 }
 0x43e   :  { %v5150_v37 = vpop.xlane.xlu1 %5149  ;;  %v10211_v16 = vpop.eup %7283 }
 0x43f   :  { %11166 = vst [vmem:[#allocation38_spill] sm:$0xff] %v10194_v56  ;;  %v10202_v41 = vsub.f32 %v9888_v9, %v5150_v37  ;;  %5219 = vmax.xlane.f32.xlu0 %v10191_v62  ;;  %v5339_v46 = vmul.f32 1.442695, %v10194_v56  ;;  %7291 = vpow2.f32 %v5345_v59  ;;  %v10214_v51 = vpop.eup %7285 }
 0x440   :  { %v10217_v9 = vpop.eup %7287 }
 0x441   :  { %11167 = vst [vmem:[#allocation39_spill] sm:$0xff] %v10202_v41  ;;  %5221 = vmax.xlane.f32.xlu1 %v10199_v43  ;;  %v5341_v8 = vmul.f32 1.442695, %v10202_v41  ;;  %7293 = vpow2.f32 %v5339_v46 }
 0x443   :  { %5459 = vadd.xlane.f32.xlu0 %v10207_v20  ;;  %7295 = vpow2.f32 %v5341_v8 }
 0x445   :  { %5461 = vadd.xlane.f32.xlu1 %v10211_v16 }
 0x447   :  { %5463 = vadd.xlane.f32.xlu0 %v10214_v51  ;;  %v10223_v59 = vpop.eup %7289 }
 0x448   :  { %v5160_v54 = vpop.xlane.xlu0 %5159 }
 0x449   :  { %v10220_v49 = vsub.f32 %v9893_v15, %v5160_v54  ;;  %5465 = vadd.xlane.f32.xlu1 %v10217_v9  ;;  %v10230_v8 = vpop.eup %7291 }
 0x44a   :  { %v5162_v37 = vpop.xlane.xlu1 %5161 }
 0x44b   :  { %11168 = vst [vmem:[#allocation40_spill] sm:$0xff] %v10220_v49  ;;  %v5351_v46 = vmul.f32 1.442695, %v10220_v49  ;;  %v10227_v41 = vsub.f32 %v9896_v34, %v5162_v37  ;;  %5471 = vadd.xlane.f32.xlu0 %v10223_v59  ;;  %v10237_v54 = vpop.eup %7293 }
 0x44c   :  { %v5156_v56 = vpop.xlane.xlu0 %5155 }
 0x44d   :  { %11169 = vst [vmem:[#allocation41_spill] sm:$0xff] %v10227_v41  ;;  %7297 = vpow2.f32 %v5351_v46  ;;  %v5353_v31 = vmul.f32 1.442695, %v10227_v41  ;;  %v10234_v15 = vsub.f32 %v9900_v47, %v5156_v56  ;;  %5473 = vadd.xlane.f32.xlu1 %v10230_v8  ;;  %v10244_v49 = vpop.eup %7295 }
 0x44e   :  { %v5158_v0 = vpop.xlane.xlu1 %5157 }
 0x44f   :  { %11170 = vst [vmem:[#allocation42_spill] sm:$0xff] %v10234_v15  ;;  %7299 = vpow2.f32 %v5353_v31  ;;  %v5347_v34 = vmul.f32 1.442695, %v10234_v15  ;;  %v10241_v37 = vsub.f32 %v9904_v22, %v5158_v0  ;;  %5467 = vadd.xlane.f32.xlu0 %v10237_v54 }
 0x451   :  { %11171 = vst [vmem:[#allocation43_spill] sm:$0xff] %v10241_v37  ;;  %7301 = vpow2.f32 %v5347_v34  ;;  %v5349_v46 = vmul.f32 1.442695, %v10241_v37  ;;  %5469 = vadd.xlane.f32.xlu1 %v10244_v49 }
 0x453   :  { %7303 = vpow2.f32 %v5349_v46 }
 0x457   :  { %v10248_v47 = vpop.eup %7297 }
 0x458   :  { %11172 = vst [vmem:[#allocation44_spill] sm:$0xff] %v10248_v47  ;;  %5479 = vadd.xlane.f32.xlu0 %v10248_v47  ;;  %v5168_v31 = vpop.xlane.xlu0 %5167 }
 0x459   :  { %v10251_v56 = vpop.eup %7299  ;;  %v10254_v22 = vsub.f32 %v9909_v40, %v5168_v31 }
 0x45a   :  { %v5170_v0 = vpop.xlane.xlu1 %5169  ;;  %5481 = vadd.xlane.f32.xlu1 %v10251_v56 }
 0x45b   :  { %11173 = vst [vmem:[#allocation45_spill] sm:$0xff] %v10254_v22  ;;  %v10257_v15 = vpop.eup %7301  ;;  %v5359_v34 = vmul.f32 1.442695, %v10254_v22  ;;  %v10261_v37 = vsub.f32 %v9912_v4, %v5170_v0 }
 0x45c   :  { %11174 = vst [vmem:[#allocation46_spill] sm:$0xff] %v10257_v15  ;;  %5475 = vadd.xlane.f32.xlu0 %v10257_v15  ;;  %v5164_v46 = vpop.xlane.xlu0 %5163 }
 0x45d   :  { %v10264_v41 = vpop.eup %7303  ;;  %7305 = vpow2.f32 %v5359_v34  ;;  %v5361_v47 = vmul.f32 1.442695, %v10261_v37  ;;  %v10268_v40 = vsub.f32 %v9916_v39, %v5164_v46 }
 0x45e   :  { %v5166_v31 = vpop.xlane.xlu1 %5165  ;;  %5477 = vadd.xlane.f32.xlu1 %v10264_v41 }
 0x45f   :  { %11175 = vst [vmem:[#allocation47_spill] sm:$0xff] %v10268_v40  ;;  %7307 = vpow2.f32 %v5361_v47  ;;  %v5355_v22 = vmul.f32 1.442695, %v10268_v40  ;;  %v10273_v4 = vsub.f32 %v9920_v50, %v5166_v31 }
 0x461   :  { %11176 = vst [vmem:[#allocation48_spill] sm:$0xff] %v10273_v4  ;;  %7309 = vpow2.f32 %v5355_v22  ;;  %v5357_v0 = vmul.f32 1.442695, %v10273_v4 }
 0x463   :  { %7311 = vpow2.f32 %v5357_v0 }
 0x467   :  { %v10276_v15 = vpop.eup %7305 }
 0x468   :  { %5487 = vadd.xlane.f32.xlu0 %v10276_v15  ;;  %v5176_v34 = vpop.xlane.xlu0 %5175 }
 0x469   :  { %v10279_v39 = vpop.eup %7307  ;;  %v10282_v46 = vsub.f32 %v9928_v12, %v5176_v34 }
 0x46a   :  { %v5178_v47 = vpop.xlane.xlu1 %5177  ;;  %5489 = vadd.xlane.f32.xlu1 %v10279_v39 }
 0x46b   :  { %11177 = vst [vmem:[#allocation49_spill] sm:$0xff] %v10282_v46  ;;  %v10285_v40 = vpop.eup %7309  ;;  %v5367_v50 = vmul.f32 1.442695, %v10282_v46  ;;  %v10289_v22 = vsub.f32 %v9935_v28, %v5178_v47 }
 0x46c   :  { %11178 = vst [vmem:[#allocation50_spill] sm:$0xff] %v10285_v40  ;;  %5483 = vadd.xlane.f32.xlu0 %v10285_v40  ;;  %v5172_v31 = vpop.xlane.xlu0 %5171 }
 0x46d   :  { %11179 = vst [vmem:[#allocation51_spill] sm:$0xff] %v10289_v22  ;;  %v10292_v0 = vpop.eup %7311  ;;  %7313 = vpow2.f32 %v5367_v50  ;;  %v5369_v4 = vmul.f32 1.442695, %v10289_v22  ;;  %v10296_v12 = vsub.f32 %v9940_v38, %v5172_v31 }
 0x46e   :  { %11180 = vst [vmem:[#allocation52_spill] sm:$0xff] %v10292_v0  ;;  %v5174_v34 = vpop.xlane.xlu1 %5173  ;;  %5485 = vadd.xlane.f32.xlu1 %v10292_v0 }
 0x46f   :  { %11181 = vst [vmem:[#allocation53_spill] sm:$0xff] %v10296_v12  ;;  %7315 = vpow2.f32 %v5369_v4  ;;  %v5363_v46 = vmul.f32 1.442695, %v10296_v12  ;;  %v10301_v28 = vsub.f32 %v9950_v29, %v5174_v34 }
 0x471   :  { %11182 = vst [vmem:[#allocation54_spill] sm:$0xff] %v10301_v28  ;;  %7317 = vpow2.f32 %v5363_v46  ;;  %v5365_v47 = vmul.f32 1.442695, %v10301_v28 }
 0x473   :  { %7319 = vpow2.f32 %v5365_v47 }
 0x475   :  { %v5424_v40 = vpop.xlane.xlu0 %5423 }
 0x476   :  { %7321 = vlog2.f32 %v5424_v40 }
 0x477   :  { %v10304_v50 = vpop.eup %7313  ;;  %7323 = vrcp.f32 %v5424_v40 }
 0x478   :  { %11183 = vst [vmem:[#allocation55_spill] sm:$0xff] %v10304_v50  ;;  %5495 = vadd.xlane.f32.xlu0 %v10304_v50 }
 0x479   :  { %v10307_v38 = vpop.eup %7315  ;;  %v5426_v31 = vpop.xlane.xlu1 %5425 }
 0x47a   :  { %11184 = vst [vmem:[#allocation56_spill] sm:$0xff] %v10307_v38  ;;  %v5420_v4 = vpop.xlane.xlu0 %5419  ;;  %7325 = vlog2.f32 %v5426_v31  ;;  %5497 = vadd.xlane.f32.xlu1 %v10307_v38 }
 0x47b   :  { %v10310_v29 = vpop.eup %7317  ;;  %7327 = vrcp.f32 %v5426_v31 }
 0x47c   :  { %11185 = vst [vmem:[#allocation57_spill] sm:$0xff] %v10310_v29  ;;  %7329 = vlog2.f32 %v5420_v4  ;;  %5491 = vadd.xlane.f32.xlu0 %v10310_v29 }
 0x47d   :  { %v10313_v46 = vpop.eup %7319  ;;  %7331 = vrcp.f32 %v5420_v4  ;;  %v5422_v34 = vpop.xlane.xlu1 %5421 }
 0x47e   :  { %v5184_v40 = vpop.xlane.xlu0 %5183  ;;  %7333 = vlog2.f32 %v5422_v34  ;;  %5493 = vadd.xlane.f32.xlu1 %v10313_v46 }
 0x47f   :  { %v10316_v47 = vsub.f32 %v9977_v6, %v5184_v40  ;;  %7335 = vrcp.f32 %v5422_v34 }
 0x480   :  { %v7322_v28 = vpop.eup %7321 }
 0x481   :  { %11186 = vst [vmem:[#allocation58_spill] sm:$0xff] %v10316_v47  ;;  %v5375_v12 = vmul.f32 1.442695, %v10316_v47  ;;  %v7324_v22 = vpop.eup %7323  ;;  %v5552_v31 = vmul.f32 0.6931472, %v7322_v28  ;;  %v5186_v38 = vpop.xlane.xlu1 %5185 }
 0x482   :  { %v5180_v50 = vpop.xlane.xlu0 %5179  ;;  %v5869_v29 = vmul.f32 %v7324_v22, %v9956_v36  ;;  %v10322_v4 = vsub.f32 %v9992_v33, %v5186_v38 }
 0x483   :  { %7337 = vpow2.f32 %v5375_v12  ;;  %v10325_v0 = vsub.f32 %v9989_v35, %v5180_v50  ;;  %v5677_v6 = vsub.f32 %v9925_v17, %v5552_v31 }
 0x484   :  { %v7326_v40 = vpop.eup %7325  ;;  %5933 = vst [vmem:[%s11005_s9 + $0x10] sm:$0xff] %v5869_v29  ;;  %v5377_v28 = vmul.f32 1.442695, %v10322_v4 }
 0x485   :  { %v5371_v34 = vmul.f32 1.442695, %v10325_v0  ;;  %v7328_v47 = vpop.eup %7327  ;;  %5741 = vst [vmem:[%s11004_s8 + $0x10] sm:$0xff] %v5677_v6  ;;  %v5554_v36 = vmul.f32 0.6931472, %v7326_v40  ;;  %v5182_v33 = vpop.xlane.xlu1 %5181 }
 0x486   :  { %v5432_v35 = vpop.xlane.xlu0 %5431  ;;  %v7330_v22 = vpop.eup %7329  ;;  %v5870_v17 = vmul.f32 %v7328_v47, %v9964_v1  ;;  %7339 = vpow2.f32 %v5377_v28  ;;  %v10338_v12 = vsub.f32 %v9997_v23, %v5182_v33 }
 0x487   :  { %v7332_v50 = vpop.eup %7331  ;;  %v5678_v38 = vsub.f32 %v9943_v55, %v5554_v36  ;;  %v5548_v29 = vmul.f32 0.6931472, %v7330_v22  ;;  %7341 = vpow2.f32 %v5371_v34 }
 0x488   :  { %v7334_v31 = vpop.eup %7333  ;;  %5934 = vst [vmem:[%s11005_s9 + $0x18] sm:$0xff] %v5870_v17  ;;  %v5867_v6 = vmul.f32 %v7332_v50, %v9962_v25  ;;  %v5373_v40 = vmul.f32 1.442695, %v10338_v12  ;;  %7343 = vlog2.f32 %v5432_v35 }
 0x489   :  { %v7336_v1 = vpop.eup %7335  ;;  %5742 = vst [vmem:[%s11004_s8 + $0x18] sm:$0xff] %v5678_v38  ;;  %v5675_v23 = vsub.f32 %v9931_v63, %v5548_v29  ;;  %v5550_v55 = vmul.f32 0.6931472, %v7334_v31  ;;  %7345 = vrcp.f32 %v5432_v35  ;;  %v5434_v47 = vpop.xlane.xlu1 %5433 }
 0x48a   :  { %v5428_v28 = vpop.xlane.xlu0 %5427  ;;  %5931 = vst [vmem:[%s11005_s9] sm:$0xff] %v5867_v6  ;;  %v5868_v25 = vmul.f32 %v7336_v1, %v9979_v13  ;;  %7347 = vpow2.f32 %v5373_v40 }
 0x48b   :  { %5739 = vst [vmem:[%s11004_s8] sm:$0xff] %v5675_v23  ;;  %v5676_v34 = vsub.f32 %v9947_v53, %v5550_v55  ;;  %7349 = vlog2.f32 %v5434_v47 }
 0x48c   :  { %5932 = vst [vmem:[%s11005_s9 + $0x8] sm:$0xff] %v5868_v25  ;;  %7351 = vrcp.f32 %v5434_v47 }
 0x48d   :  { %v10358_v36 = vpop.eup %7337  ;;  %5740 = vst [vmem:[%s11004_s8 + $0x8] sm:$0xff] %v5676_v34  ;;  %7353 = vlog2.f32 %v5428_v28  ;;  %v5430_v63 = vpop.xlane.xlu1 %5429 }
 0x48e   :  { %5503 = vadd.xlane.f32.xlu0 %v10358_v36  ;;  %v5192_v13 = vpop.xlane.xlu0 %5191  ;;  %7355 = vrcp.f32 %v5428_v28 }
 0x48f   :  { %v10368_v53 = vsub.f32 %v10021_v52, %v5192_v13  ;;  %7357 = vlog2.f32 %v5430_v63 }
 0x490   :  { %v10370_v33 = vpop.eup %7339  ;;  %7359 = vrcp.f32 %v5430_v63 }
 0x491   :  { %v5383_v35 = vmul.f32 1.442695, %v10368_v53  ;;  %v10373_v22 = vpop.eup %7341  ;;  %5505 = vadd.xlane.f32.xlu1 %v10370_v33  ;;  %v5194_v17 = vpop.xlane.xlu1 %5193 }
 0x492   :  { %v5188_v50 = vpop.xlane.xlu0 %5187  ;;  %v7344_v38 = vpop.eup %7343  ;;  %v10377_v29 = vsub.f32 %v10036_v32, %v5194_v17  ;;  %5499 = vadd.xlane.f32.xlu0 %v10373_v22 }
 0x493   :  { %7361 = vpow2.f32 %v5383_v35  ;;  %v10381_v52 = vsub.f32 %v10033_v57, %v5188_v50  ;;  %v7346_v31 = vpop.eup %7345  ;;  %v5560_v6 = vmul.f32 0.6931472, %v7344_v38 }
 0x494   :  { %v10383_v40 = vpop.eup %7347  ;;  %v5873_v1 = vmul.f32 %v7346_v31, %v9999_v14  ;;  %v5385_v23 = vmul.f32 1.442695, %v10377_v29 }
 0x495   :  { %v5379_v55 = vmul.f32 1.442695, %v10381_v52  ;;  %v7350_v47 = vpop.eup %7349  ;;  %v5681_v28 = vsub.f32 %v9960_v2, %v5560_v6  ;;  %5501 = vadd.xlane.f32.xlu1 %v10383_v40  ;;  %v5190_v32 = vpop.xlane.xlu1 %5189 }
 0x496   :  { %v5440_v25 = vpop.xlane.xlu0 %5439  ;;  %v7352_v34 = vpop.eup %7351  ;;  %5937 = vst [vmem:[%s11005_s9 + $0x30] sm:$0xff] %v5873_v1  ;;  %v5562_v57 = vmul.f32 0.6931472, %v7350_v47  ;;  %7363 = vpow2.f32 %v5385_v23  ;;  %v10394_v14 = vsub.f32 %v10041_v27, %v5190_v32 }
 0x497   :  { %v7354_v63 = vpop.eup %7353  ;;  %5745 = vst [vmem:[%s11004_s8 + $0x30] sm:$0xff] %v5681_v28  ;;  %v5874_v2 = vmul.f32 %v7352_v34, %v10006_v60  ;;  %7365 = vpow2.f32 %v5379_v55  ;;  %v11188_v55 = vld [vmem:[#allocation7_spill] sm:$0xff]  ;;  %v11189_v28 = vld [vmem:[#allocation21_spill] sm:$0xff] }
 0x498   :  { %v7356_v13 = vpop.eup %7355  ;;  %v5682_v35 = vsub.f32 %v9968_v58, %v5562_v57  ;;  %v5556_v17 = vmul.f32 0.6931472, %v7354_v63  ;;  %v5381_v50 = vmul.f32 1.442695, %v10394_v14  ;;  %7367 = vlog2.f32 %v5440_v25  ;;  %v11187_v58 = vld [vmem:[#allocation20_spill] sm:$0xff] }
 0x499   :  { %v7358_v38 = vpop.eup %7357  ;;  %5938 = vst [vmem:[%s11005_s9 + $0x38] sm:$0xff] %v5874_v2  ;;  %v5871_v27 = vmul.f32 %v7356_v13, %v10008_v42  ;;  %7369 = vrcp.f32 %v5440_v25  ;;  %v5442_v31 = vpop.xlane.xlu1 %5441 }
 0x49a   :  { %v5436_v6 = vpop.xlane.xlu0 %5435  ;;  %v7360_v1 = vpop.eup %7359  ;;  %5746 = vst [vmem:[%s11004_s8 + $0x38] sm:$0xff] %v5682_v35  ;;  %v5679_v60 = vsub.f32 %v11187_v58, %v5556_v17  ;;  %v5558_v23 = vmul.f32 0.6931472, %v7358_v38  ;;  %7371 = vpow2.f32 %v5381_v50 }
 0x49b   :  { %5935 = vst [vmem:[%s11005_s9 + $0x20] sm:$0xff] %v5871_v27  ;;  %v5872_v47 = vmul.f32 %v7360_v1, %v11188_v55  ;;  %7373 = vlog2.f32 %v5442_v31  ;;  %v11190_v1 = vld [vmem:[#allocation8_spill] sm:$0xff] }
 0x49c   :  { %5743 = vst [vmem:[%s11004_s8 + $0x20] sm:$0xff] %v5679_v60  ;;  %v5680_v32 = vsub.f32 %v11189_v28, %v5558_v23  ;;  %7375 = vrcp.f32 %v5442_v31 }
 0x49d   :  { %v10414_v42 = vpop.eup %7361  ;;  %5936 = vst [vmem:[%s11005_s9 + $0x28] sm:$0xff] %v5872_v47  ;;  %7377 = vlog2.f32 %v5436_v6  ;;  %v5438_v25 = vpop.xlane.xlu1 %5437  ;;  %v11191_v47 = vld [vmem:[#allocation22_spill] sm:$0xff] }
 0x49e   :  { %5511 = vadd.xlane.f32.xlu0 %v10414_v42  ;;  %v5200_v34 = vpop.xlane.xlu0 %5199  ;;  %5744 = vst [vmem:[%s11004_s8 + $0x28] sm:$0xff] %v5680_v32  ;;  %7379 = vrcp.f32 %v5436_v6 }
 0x49f   :  { %v10428_v57 = vsub.f32 %v10065_v10, %v5200_v34  ;;  %7381 = vlog2.f32 %v5438_v25 }
 0x4a0   :  { %v10430_v63 = vpop.eup %7363  ;;  %7383 = vrcp.f32 %v5438_v25 }
 0x4a1   :  { %v5391_v2 = vmul.f32 1.442695, %v10428_v57  ;;  %v10433_v13 = vpop.eup %7365  ;;  %5513 = vadd.xlane.f32.xlu1 %v10430_v63  ;;  %v5202_v35 = vpop.xlane.xlu1 %5201 }
 0x4a2   :  { %v5196_v17 = vpop.xlane.xlu0 %5195  ;;  %v7368_v50 = vpop.eup %7367  ;;  %v10437_v38 = vsub.f32 %v10080_v24, %v5202_v35  ;;  %5507 = vadd.xlane.f32.xlu0 %v10433_v13  ;;  %v11193_v35 = vld [vmem:[#allocation9_spill] sm:$0xff] }
 0x4a3   :  { %7385 = vpow2.f32 %v5391_v2  ;;  %v10441_v10 = vsub.f32 %v10077_v30, %v5196_v17  ;;  %v7370_v27 = vpop.eup %7369  ;;  %v5568_v31 = vmul.f32 0.6931472, %v7368_v50 }
 0x4a4   :  { %v10443_v6 = vpop.eup %7371  ;;  %v5877_v58 = vmul.f32 %v7370_v27, %v11190_v1  ;;  %v5393_v60 = vmul.f32 1.442695, %v10437_v38  ;;  %v11194_v27 = vld [vmem:[#allocation6_spill] sm:$0xff] }
 0x4a5   :  { %v5387_v23 = vmul.f32 1.442695, %v10441_v10  ;;  %v7374_v55 = vpop.eup %7373  ;;  %v5685_v28 = vsub.f32 %v11191_v47, %v5568_v31  ;;  %5509 = vadd.xlane.f32.xlu1 %v10443_v6  ;;  %v5198_v24 = vpop.xlane.xlu1 %5197 }
 0x4a6   :  { %v5448_v32 = vpop.xlane.xlu0 %5447  ;;  %v7376_v25 = vpop.eup %7375  ;;  %5941 = vst [vmem:[%s11005_s9 + $0x50] sm:$0xff] %v5877_v58  ;;  %v5570_v30 = vmul.f32 0.6931472, %v7374_v55  ;;  %7387 = vpow2.f32 %v5393_v60  ;;  %v10454_v34 = vsub.f32 %v10085_v48, %v5198_v24  ;;  %v11195_v48 = vld [vmem:[#allocation16_spill] sm:$0xff] }
 0x4a7   :  { %v7378_v2 = vpop.eup %7377  ;;  %5749 = vst [vmem:[%s11004_s8 + $0x50] sm:$0xff] %v5685_v28  ;;  %v5878_v17 = vmul.f32 %v7376_v25, %v11193_v35  ;;  %7389 = vpow2.f32 %v5387_v23  ;;  %v11196_v23 = vld [vmem:[#allocation13_spill] sm:$0xff] }
 0x4a8   :  { %11192 = vst [vmem:[#allocation20_spill] sm:$0xff] %v10454_v34  ;;  %v7380_v50 = vpop.eup %7379  ;;  %v5686_v31 = vsub.f32 %v11194_v27, %v5570_v30  ;;  %v5564_v1 = vmul.f32 0.6931472, %v7378_v2  ;;  %v5389_v47 = vmul.f32 1.442695, %v10454_v34  ;;  %7391 = vlog2.f32 %v5448_v32  ;;  %v11197_v2 = vld [vmem:[#allocation11_spill] sm:$0xff] }
 0x4a9   :  { %v7382_v58 = vpop.eup %7381  ;;  %5942 = vst [vmem:[%s11005_s9 + $0x58] sm:$0xff] %v5878_v17  ;;  %v5875_v60 = vmul.f32 %v7380_v50, %v11195_v48  ;;  %7393 = vrcp.f32 %v5448_v32  ;;  %v5450_v55 = vpop.xlane.xlu1 %5449  ;;  %v11198_v32 = vld [vmem:[#allocation14_spill] sm:$0xff] }
 0x4aa   :  { %v5444_v28 = vpop.xlane.xlu0 %5443  ;;  %v7384_v24 = vpop.eup %7383  ;;  %5750 = vst [vmem:[%s11004_s8 + $0x58] sm:$0xff] %v5686_v31  ;;  %v5683_v25 = vsub.f32 %v11196_v23, %v5564_v1  ;;  %v5566_v30 = vmul.f32 0.6931472, %v7382_v58  ;;  %7395 = vpow2.f32 %v5389_v47 }
 0x4ab   :  { %5939 = vst [vmem:[%s11005_s9 + $0x40] sm:$0xff] %v5875_v60  ;;  %v5876_v35 = vmul.f32 %v7384_v24, %v11197_v2  ;;  %7397 = vlog2.f32 %v5450_v55  ;;  %v11203_v2 = vld [vmem:[#allocation12_spill] sm:$0xff] }
 0x4ac   :  { %5747 = vst [vmem:[%s11004_s8 + $0x40] sm:$0xff] %v5683_v25  ;;  %v5684_v50 = vsub.f32 %v11198_v32, %v5566_v30  ;;  %7399 = vrcp.f32 %v5450_v55 }
 0x4ad   :  { %v10474_v17 = vpop.eup %7385  ;;  %5940 = vst [vmem:[%s11005_s9 + $0x48] sm:$0xff] %v5876_v35  ;;  %7401 = vlog2.f32 %v5444_v28  ;;  %v5446_v27 = vpop.xlane.xlu1 %5445 }
 0x4ae   :  { %5519 = vadd.xlane.f32.xlu0 %v10474_v17  ;;  %v5208_v31 = vpop.xlane.xlu0 %5207  ;;  %5748 = vst [vmem:[%s11004_s8 + $0x48] sm:$0xff] %v5684_v50  ;;  %7403 = vrcp.f32 %v5444_v28 }
 0x4af   :  { %v10488_v1 = vsub.f32 %v10109_v21, %v5208_v31  ;;  %7405 = vlog2.f32 %v5446_v27  ;;  %v11204_v31 = vld [vmem:[#allocation15_spill] sm:$0xff] }
 0x4b0   :  { %v10490_v47 = vpop.eup %7387  ;;  %7407 = vrcp.f32 %v5446_v27 }
 0x4b1   :  { %11199 = vst [vmem:[#allocation7_spill] sm:$0xff] %v10488_v1  ;;  %v5399_v58 = vmul.f32 1.442695, %v10488_v1  ;;  %v10493_v48 = vpop.eup %7389  ;;  %5521 = vadd.xlane.f32.xlu1 %v10490_v47  ;;  %v5210_v60 = vpop.xlane.xlu1 %5209 }
 0x4b2   :  { %v5204_v55 = vpop.xlane.xlu0 %5203  ;;  %v7392_v24 = vpop.eup %7391  ;;  %v10497_v23 = vsub.f32 %v10124_v5, %v5210_v60  ;;  %5515 = vadd.xlane.f32.xlu0 %v10493_v48 }
 0x4b3   :  { %7409 = vpow2.f32 %v5399_v58  ;;  %v10501_v21 = vsub.f32 %v10121_v61, %v5204_v55  ;;  %v7394_v28 = vpop.eup %7393  ;;  %v5576_v25 = vmul.f32 0.6931472, %v7392_v24  ;;  %v11205_v55 = vld [vmem:[#allocation29_spill] sm:$0xff] }
 0x4b4   :  { %11200 = vst [vmem:[#allocation21_spill] sm:$0xff] %v10497_v23  ;;  %v10503_v30 = vpop.eup %7395  ;;  %v5881_v35 = vmul.f32 %v7394_v28, %v11203_v2  ;;  %v5401_v32 = vmul.f32 1.442695, %v10497_v23 }
 0x4b5   :  { %11201 = vst [vmem:[#allocation8_spill] sm:$0xff] %v10501_v21  ;;  %11202 = vst [vmem:[#allocation22_spill] sm:$0xff] %v10503_v30  ;;  %v5395_v50 = vmul.f32 1.442695, %v10501_v21  ;;  %v7398_v27 = vpop.eup %7397  ;;  %v5689_v58 = vsub.f32 %v11204_v31, %v5576_v25  ;;  %5517 = vadd.xlane.f32.xlu1 %v10503_v30  ;;  %v5206_v5 = vpop.xlane.xlu1 %5205  ;;  %v11206_v25 = vld [vmem:[#allocation23_spill] sm:$0xff]  ;;  %v11207_v21 = vld [vmem:[#allocation10_spill] sm:$0xff] }
 0x4b6   :  { %v5456_v60 = vpop.xlane.xlu0 %5455  ;;  %v7400_v1 = vpop.eup %7399  ;;  %5945 = vst [vmem:[%s11005_s9 + $0x70] sm:$0xff] %v5881_v35  ;;  %v5578_v61 = vmul.f32 0.6931472, %v7398_v27  ;;  %7411 = vpow2.f32 %v5401_v32  ;;  %v10514_v24 = vsub.f32 %v11205_v55, %v5206_v5  ;;  %v11208_v32 = vld [vmem:[#allocation24_spill] sm:$0xff] }
 0x4b7   :  { %v7402_v28 = vpop.eup %7401  ;;  %5753 = vst [vmem:[%s11004_s8 + $0x70] sm:$0xff] %v5689_v58  ;;  %v5882_v2 = vmul.f32 %v7400_v1, %v11206_v25  ;;  %7413 = vpow2.f32 %v5395_v50  ;;  %v11209_v1 = vld [vmem:[#allocation17_spill] sm:$0xff] }
 0x4b8   :  { %v7404_v31 = vpop.eup %7403  ;;  %v5690_v23 = vsub.f32 %v11207_v21, %v5578_v61  ;;  %v5572_v34 = vmul.f32 0.6931472, %v7402_v28  ;;  %v5397_v30 = vmul.f32 1.442695, %v10514_v24  ;;  %7415 = vlog2.f32 %v5456_v60  ;;  %v11210_v61 = vld [vmem:[#allocation27_spill] sm:$0xff] }
 0x4b9   :  { %v7406_v35 = vpop.eup %7405  ;;  %5946 = vst [vmem:[%s11005_s9 + $0x78] sm:$0xff] %v5882_v2  ;;  %v5879_v27 = vmul.f32 %v7404_v31, %v11208_v32  ;;  %7417 = vrcp.f32 %v5456_v60  ;;  %v5458_v5 = vpop.xlane.xlu1 %5457  ;;  %v11211_v60 = vld [vmem:[#allocation18_spill] sm:$0xff] }
 0x4ba   :  { %v5452_v58 = vpop.xlane.xlu0 %5451  ;;  %v7408_v55 = vpop.eup %7407  ;;  %5754 = vst [vmem:[%s11004_s8 + $0x78] sm:$0xff] %v5690_v23  ;;  %v5687_v21 = vsub.f32 %v11209_v1, %v5572_v34  ;;  %v5574_v50 = vmul.f32 0.6931472, %v7406_v35  ;;  %7419 = vpow2.f32 %v5397_v30 }
 0x4bb   :  { %5943 = vst [vmem:[%s11005_s9 + $0x60] sm:$0xff] %v5879_v27  ;;  %v5880_v28 = vmul.f32 %v7408_v55, %v11210_v61  ;;  %7421 = vlog2.f32 %v5458_v5  ;;  %v11215_v61 = vld [vmem:[#allocation30_spill] sm:$0xff] }
 0x4bc   :  { %5751 = vst [vmem:[%s11004_s8 + $0x60] sm:$0xff] %v5687_v21  ;;  %v5688_v2 = vsub.f32 %v11211_v60, %v5574_v50  ;;  %7423 = vrcp.f32 %v5458_v5 }
 0x4bd   :  { %v10534_v25 = vpop.eup %7409  ;;  %5944 = vst [vmem:[%s11005_s9 + $0x68] sm:$0xff] %v5880_v28  ;;  %7425 = vlog2.f32 %v5452_v58  ;;  %v5454_v34 = vpop.xlane.xlu1 %5453 }
 0x4be   :  { %5527 = vadd.xlane.f32.xlu0 %v10534_v25  ;;  %v5216_v23 = vpop.xlane.xlu0 %5215  ;;  %5752 = vst [vmem:[%s11004_s8 + $0x68] sm:$0xff] %v5688_v2  ;;  %7427 = vrcp.f32 %v5452_v58 }
 0x4bf   :  { %v10548_v30 = vsub.f32 %v10142_v11, %v5216_v23  ;;  %7429 = vlog2.f32 %v5454_v34  ;;  %v11216_v23 = vld [vmem:[#allocation19_spill] sm:$0xff] }
 0x4c0   :  { %v10550_v31 = vpop.eup %7411  ;;  %7431 = vrcp.f32 %v5454_v34 }
 0x4c1   :  { %11212 = vst [vmem:[#allocation9_spill] sm:$0xff] %v10548_v30  ;;  %v5407_v35 = vmul.f32 1.442695, %v10548_v30  ;;  %v10553_v32 = vpop.eup %7413  ;;  %5529 = vadd.xlane.f32.xlu1 %v10550_v31  ;;  %v5218_v27 = vpop.xlane.xlu1 %5217 }
 0x4c2   :  { %v5212_v5 = vpop.xlane.xlu0 %5211  ;;  %v7416_v55 = vpop.eup %7415  ;;  %v10557_v1 = vsub.f32 %v10155_v7, %v5218_v27  ;;  %5523 = vadd.xlane.f32.xlu0 %v10553_v32 }
 0x4c3   :  { %7433 = vpow2.f32 %v5407_v35  ;;  %v10561_v11 = vsub.f32 %v10152_v3, %v5212_v5  ;;  %v7418_v58 = vpop.eup %7417  ;;  %v5584_v21 = vmul.f32 0.6931472, %v7416_v55 }
 0x4c4   :  { %11213 = vst [vmem:[#allocation6_spill] sm:$0xff] %v10557_v1  ;;  %v10563_v50 = vpop.eup %7419  ;;  %v5885_v28 = vmul.f32 %v7418_v58, %v11215_v61  ;;  %v5409_v60 = vmul.f32 1.442695, %v10557_v1  ;;  %v11217_v58 = vld [vmem:[#allocation31_spill] sm:$0xff] }
 0x4c5   :  { %11214 = vst [vmem:[#allocation16_spill] sm:$0xff] %v10561_v11  ;;  %v5403_v2 = vmul.f32 1.442695, %v10561_v11  ;;  %v7422_v34 = vpop.eup %7421  ;;  %v5693_v35 = vsub.f32 %v11216_v23, %v5584_v21  ;;  %5525 = vadd.xlane.f32.xlu1 %v10563_v50  ;;  %v5214_v7 = vpop.xlane.xlu1 %5213  ;;  %v11218_v23 = vld [vmem:[#allocation25_spill] sm:$0xff] }
 0x4c6   :  { %v7424_v27 = vpop.eup %7423  ;;  %5949 = vst [vmem:[%s11005_s9 + $0x90] sm:$0xff] %v5885_v28  ;;  %v5586_v3 = vmul.f32 0.6931472, %v7422_v34  ;;  %7435 = vpow2.f32 %v5409_v60  ;;  %v10574_v5 = vsub.f32 %v10170_v26, %v5214_v7  ;;  %v11219_v26 = vld [vmem:[#allocation32_spill] sm:$0xff] }
 0x4c7   :  { %v7426_v55 = vpop.eup %7425  ;;  %5757 = vst [vmem:[%s11004_s8 + $0x90] sm:$0xff] %v5693_v35  ;;  %v5886_v21 = vmul.f32 %v7424_v27, %v11217_v58  ;;  %7437 = vpow2.f32 %v5403_v2  ;;  %v11221_v2 = vld [vmem:[#allocation26_spill] sm:$0xff] }
 0x4c8   :  { %v7428_v61 = vpop.eup %7427  ;;  %v5694_v11 = vsub.f32 %v11218_v23, %v5586_v3  ;;  %v5580_v1 = vmul.f32 0.6931472, %v7426_v55  ;;  %v5405_v30 = vmul.f32 1.442695, %v10574_v5  ;;  %v5224_v28 = vpop.xlane.xlu0 %5223 }
 0x4c9   :  { %v7430_v34 = vpop.eup %7429  ;;  %5950 = vst [vmem:[%s11005_s9 + $0x98] sm:$0xff] %v5886_v21  ;;  %v5883_v60 = vmul.f32 %v7428_v61, %v11219_v26  ;;  %v10587_v7 = vsub.f32 %v10176_v45, %v5224_v28 }
 0x4ca   :  { %v7432_v35 = vpop.eup %7431  ;;  %5758 = vst [vmem:[%s11004_s8 + $0x98] sm:$0xff] %v5694_v11  ;;  %v5691_v27 = vsub.f32 %v11221_v2, %v5580_v1  ;;  %v5582_v3 = vmul.f32 0.6931472, %v7430_v34  ;;  %7439 = vpow2.f32 %v5405_v30  ;;  %v5226_v55 = vpop.xlane.xlu1 %5225  ;;  %v11223_v1 = vld [vmem:[#allocation28_spill] sm:$0xff] }
 0x4cb   :  { %11220 = vst [vmem:[#allocation13_spill] sm:$0xff] %v10587_v7  ;;  %5947 = vst [vmem:[%s11005_s9 + $0x80] sm:$0xff] %v5883_v60  ;;  %v5884_v58 = vmul.f32 %v7432_v35, %v10144_v19  ;;  %v5415_v21 = vmul.f32 1.442695, %v10587_v7  ;;  %v10599_v45 = vsub.f32 %v10183_v18, %v5226_v55 }
 0x4cc   :  { %5755 = vst [vmem:[%s11004_s8 + $0x80] sm:$0xff] %v5691_v27  ;;  %v5692_v30 = vsub.f32 %v11223_v1, %v5582_v3  ;;  %v5220_v11 = vpop.xlane.xlu0 %5219 }
 0x4cd   :  { %11222 = vst [vmem:[#allocation11_spill] sm:$0xff] %v10599_v45  ;;  %v10601_v61 = vpop.eup %7433  ;;  %5948 = vst [vmem:[%s11005_s9 + $0x88] sm:$0xff] %v5884_v58  ;;  %v5417_v19 = vmul.f32 1.442695, %v10599_v45  ;;  %v10612_v23 = vsub.f32 %v10191_v62, %v5220_v11  ;;  %7441 = vpow2.f32 %v5415_v21 }
 0x4ce   :  { %5535 = vadd.xlane.f32.xlu0 %v10601_v61  ;;  %5756 = vst [vmem:[%s11004_s8 + $0x88] sm:$0xff] %v5692_v30  ;;  %v5222_v18 = vpop.xlane.xlu1 %5221 }
 0x4cf   :  { %v5411_v28 = vmul.f32 1.442695, %v10612_v23  ;;  %v10620_v34 = vsub.f32 %v10199_v43, %v5222_v18  ;;  %7443 = vpow2.f32 %v5417_v19 }
 0x4d0   :  { %v10622_v26 = vpop.eup %7435  ;;  %v5460_v60 = vpop.xlane.xlu0 %5459 }
 0x4d1   :  { %11224 = vst [vmem:[#allocation14_spill] sm:$0xff] %v10620_v34  ;;  %v10624_v35 = vpop.eup %7437  ;;  %7445 = vpow2.f32 %v5411_v28  ;;  %v5413_v62 = vmul.f32 1.442695, %v10620_v34  ;;  %5537 = vadd.xlane.f32.xlu1 %v10622_v26 }
 0x4d2   :  { %7447 = vlog2.f32 %v5460_v60  ;;  %5531 = vadd.xlane.f32.xlu0 %v10624_v35  ;;  %v5462_v2 = vpop.xlane.xlu1 %5461 }
 0x4d3   :  { %7449 = vpow2.f32 %v5413_v62 }
 0x4d4   :  { %v10629_v27 = vpop.eup %7439  ;;  %7451 = vrcp.f32 %v5460_v60  ;;  %v5464_v43 = vpop.xlane.xlu0 %5463 }
 0x4d5   :  { %7453 = vlog2.f32 %v5462_v2  ;;  %5533 = vadd.xlane.f32.xlu1 %v10629_v27 }
 0x4d6   :  { %7455 = vrcp.f32 %v5462_v2  ;;  %v5466_v3 = vpop.xlane.xlu1 %5465 }
 0x4d7   :  { %7457 = vlog2.f32 %v5464_v43  ;;  %v10632_v58 = vpop.eup %7441 }
 0x4d8   :  { %7459 = vrcp.f32 %v5464_v43  ;;  %v5472_v55 = vpop.xlane.xlu0 %5471  ;;  %v11225_v43 = vld [vmem:[#allocation33_spill] sm:$0xff] }
 0x4d9   :  { %7461 = vlog2.f32 %v5466_v3  ;;  %v10634_v21 = vpop.eup %7443 }
 0x4da   :  { %7463 = vrcp.f32 %v5466_v3  ;;  %v5474_v1 = vpop.xlane.xlu1 %5473 }
 0x4db   :  { %v10636_v30 = vpop.eup %7445  ;;  %7465 = vlog2.f32 %v5472_v55 }
 0x4dc   :  { %v7448_v11 = vpop.eup %7447  ;;  %7467 = vrcp.f32 %v5472_v55  ;;  %5539 = vadd.xlane.f32.xlu0 %v10636_v30  ;;  %v5468_v19 = vpop.xlane.xlu0 %5467 }
 0x4dd   :  { %v10639_v18 = vpop.eup %7449  ;;  %v5588_v28 = vmul.f32 0.6931472, %v7448_v11  ;;  %7469 = vlog2.f32 %v5474_v1 }
 0x4de   :  { %v7452_v60 = vpop.eup %7451  ;;  %7471 = vrcp.f32 %v5474_v1  ;;  %5541 = vadd.xlane.f32.xlu1 %v10639_v18  ;;  %v5470_v62 = vpop.xlane.xlu1 %5469 }
 0x4df   :  { %v7454_v2 = vpop.eup %7453  ;;  %v5695_v3 = vsub.f32 %v11225_v43, %v5588_v28  ;;  %v5887_v45 = vmul.f32 %v7452_v60, %v10207_v20  ;;  %7473 = vlog2.f32 %v5468_v19  ;;  %v11226_v20 = vld [vmem:[#allocation34_spill] sm:$0xff] }
 0x4e0   :  { %v7456_v7 = vpop.eup %7455  ;;  %v5590_v55 = vmul.f32 0.6931472, %v7454_v2  ;;  %7475 = vrcp.f32 %v5468_v19  ;;  %5543 = vadd.xlane.f32.xlu0 %v10632_v58 }
 0x4e1   :  { %v7458_v34 = vpop.eup %7457  ;;  %5759 = vst [vmem:[%s11004_s8 + $0xa0] sm:$0xff] %v5695_v3  ;;  %5951 = vst [vmem:[%s11005_s9 + $0xa0] sm:$0xff] %v5887_v45  ;;  %v5888_v1 = vmul.f32 %v7456_v7, %v10211_v16  ;;  %7477 = vlog2.f32 %v5470_v62  ;;  %v11227_v16 = vld [vmem:[#allocation35_spill] sm:$0xff] }
 0x4e2   :  { %v7460_v11 = vpop.eup %7459  ;;  %v5696_v28 = vsub.f32 %v11226_v20, %v5590_v55  ;;  %v5592_v60 = vmul.f32 0.6931472, %v7458_v34  ;;  %7479 = vrcp.f32 %v5470_v62  ;;  %5545 = vadd.xlane.f32.xlu1 %v10634_v21 }
 0x4e3   :  { %v7462_v19 = vpop.eup %7461  ;;  %5952 = vst [vmem:[%s11005_s9 + $0xa8] sm:$0xff] %v5888_v1  ;;  %v5889_v2 = vmul.f32 %v7460_v11, %v10214_v51 }
 0x4e4   :  { %v7464_v43 = vpop.eup %7463  ;;  %5760 = vst [vmem:[%s11004_s8 + $0xa8] sm:$0xff] %v5696_v28  ;;  %v5697_v7 = vsub.f32 %v11227_v16, %v5592_v60  ;;  %v5594_v45 = vmul.f32 0.6931472, %v7462_v19  ;;  %v11228_v60 = vld [vmem:[#allocation36_spill] sm:$0xff] }
 0x4e5   :  { %v7466_v3 = vpop.eup %7465  ;;  %5953 = vst [vmem:[%s11005_s9 + $0xb0] sm:$0xff] %v5889_v2  ;;  %v5890_v34 = vmul.f32 %v7464_v43, %v10217_v9  ;;  %v5480_v62 = vpop.xlane.xlu0 %5479 }
 0x4e6   :  { %v7468_v55 = vpop.eup %7467  ;;  %5761 = vst [vmem:[%s11004_s8 + $0xb0] sm:$0xff] %v5697_v7  ;;  %v5698_v51 = vsub.f32 %v10167_v44, %v5594_v45  ;;  %v5600_v1 = vmul.f32 0.6931472, %v7466_v3  ;;  %7481 = vlog2.f32 %v5480_v62  ;;  %v11229_v7 = vld [vmem:[#allocation37_spill] sm:$0xff] }
 0x4e7   :  { %v7470_v11 = vpop.eup %7469  ;;  %5954 = vst [vmem:[%s11005_s9 + $0xb8] sm:$0xff] %v5890_v34  ;;  %v5893_v20 = vmul.f32 %v7468_v55, %v10223_v59  ;;  %7483 = vrcp.f32 %v5480_v62  ;;  %v5482_v28 = vpop.xlane.xlu1 %5481 }
 0x4e8   :  { %v7472_v9 = vpop.eup %7471  ;;  %5762 = vst [vmem:[%s11004_s8 + $0xb8] sm:$0xff] %v5698_v51  ;;  %v5701_v19 = vsub.f32 %v11228_v60, %v5600_v1  ;;  %v5602_v2 = vmul.f32 0.6931472, %v7470_v11  ;;  %7485 = vlog2.f32 %v5482_v28  ;;  %v11230_v51 = vld [vmem:[#allocation38_spill] sm:$0xff] }
 0x4e9   :  { %v7474_v44 = vpop.eup %7473  ;;  %5957 = vst [vmem:[%s11005_s9 + $0xd0] sm:$0xff] %v5893_v20  ;;  %v5894_v43 = vmul.f32 %v7472_v9, %v10230_v8  ;;  %7487 = vrcp.f32 %v5482_v28  ;;  %v5476_v59 = vpop.xlane.xlu0 %5475 }
 0x4ea   :  { %v7476_v16 = vpop.eup %7475  ;;  %5765 = vst [vmem:[%s11004_s8 + $0xd0] sm:$0xff] %v5701_v19  ;;  %v5702_v45 = vsub.f32 %v11229_v7, %v5602_v2  ;;  %v5596_v3 = vmul.f32 0.6931472, %v7474_v44  ;;  %7489 = vlog2.f32 %v5476_v59 }
 0x4eb   :  { %v7478_v34 = vpop.eup %7477  ;;  %5958 = vst [vmem:[%s11005_s9 + $0xd8] sm:$0xff] %v5894_v43  ;;  %v5891_v62 = vmul.f32 %v7476_v16, %v10237_v54  ;;  %7491 = vrcp.f32 %v5476_v59  ;;  %v5478_v8 = vpop.xlane.xlu1 %5477  ;;  %v11231_v54 = vld [vmem:[#allocation39_spill] sm:$0xff]  ;;  %v11233_v59 = vld [vmem:[#allocation40_spill] sm:$0xff] }
 0x4ec   :  { %v7480_v55 = vpop.eup %7479  ;;  %5766 = vst [vmem:[%s11004_s8 + $0xd8] sm:$0xff] %v5702_v45  ;;  %v5699_v1 = vsub.f32 %v11230_v51, %v5596_v3  ;;  %v5598_v11 = vmul.f32 0.6931472, %v7478_v34  ;;  %7493 = vlog2.f32 %v5478_v8 }
 0x4ed   :  { %5955 = vst [vmem:[%s11005_s9 + $0xc0] sm:$0xff] %v5891_v62  ;;  %v5892_v20 = vmul.f32 %v7480_v55, %v10244_v49  ;;  %7495 = vrcp.f32 %v5478_v8  ;;  %v11232_v49 = vld [vmem:[#allocation44_spill] sm:$0xff]  ;;  %v11234_v62 = vld [vmem:[#allocation41_spill] sm:$0xff] }
 0x4ee   :  { %5763 = vst [vmem:[%s11004_s8 + $0xc0] sm:$0xff] %v5699_v1  ;;  %v5700_v28 = vsub.f32 %v11231_v54, %v5598_v11  ;;  %v11235_v11 = vld [vmem:[#allocation46_spill] sm:$0xff] }
 0x4ef   :  { %5956 = vst [vmem:[%s11005_s9 + $0xc8] sm:$0xff] %v5892_v20 }
 0x4f0   :  { %v7482_v9 = vpop.eup %7481  ;;  %5764 = vst [vmem:[%s11004_s8 + $0xc8] sm:$0xff] %v5700_v28 }
 0x4f1   :  { %v7484_v60 = vpop.eup %7483  ;;  %v5608_v19 = vmul.f32 0.6931472, %v7482_v9 }
 0x4f2   :  { %v7486_v2 = vpop.eup %7485  ;;  %v5897_v44 = vmul.f32 %v7484_v60, %v11232_v49 }
 0x4f3   :  { %v7488_v43 = vpop.eup %7487  ;;  %v5705_v16 = vsub.f32 %v11233_v59, %v5608_v19  ;;  %v5610_v7 = vmul.f32 0.6931472, %v7486_v2  ;;  %v11237_v2 = vld [vmem:[#allocation43_spill] sm:$0xff] }
 0x4f4   :  { %v7490_v45 = vpop.eup %7489  ;;  %5961 = vst [vmem:[%s11005_s9 + $0xf0] sm:$0xff] %v5897_v44  ;;  %v5898_v3 = vmul.f32 %v7488_v43, %v10251_v56  ;;  %v11236_v56 = vld [vmem:[#allocation42_spill] sm:$0xff] }
 0x4f5   :  { %v7492_v34 = vpop.eup %7491  ;;  %5769 = vst [vmem:[%s11004_s8 + $0xf0] sm:$0xff] %v5705_v16  ;;  %v5706_v8 = vsub.f32 %v11234_v62, %v5610_v7  ;;  %v5604_v55 = vmul.f32 0.6931472, %v7490_v45  ;;  %v5488_v51 = vpop.xlane.xlu0 %5487 }
 0x4f6   :  { %v7494_v1 = vpop.eup %7493  ;;  %5962 = vst [vmem:[%s11005_s9 + $0xf8] sm:$0xff] %v5898_v3  ;;  %v5895_v20 = vmul.f32 %v7492_v34, %v11235_v11  ;;  %7497 = vlog2.f32 %v5488_v51  ;;  %v11238_v34 = vld [vmem:[#allocation45_spill] sm:$0xff] }
 0x4f7   :  { %v7496_v54 = vpop.eup %7495  ;;  %5770 = vst [vmem:[%s11004_s8 + $0xf8] sm:$0xff] %v5706_v8  ;;  %v5703_v28 = vsub.f32 %v11236_v56, %v5604_v55  ;;  %v5606_v9 = vmul.f32 0.6931472, %v7494_v1  ;;  %7499 = vrcp.f32 %v5488_v51  ;;  %v5490_v60 = vpop.xlane.xlu1 %5489  ;;  %v11239_v56 = vld [vmem:[#allocation50_spill] sm:$0xff] }
 0x4f8   :  { %5959 = vst [vmem:[%s11005_s9 + $0xe0] sm:$0xff] %v5895_v20  ;;  %v5896_v19 = vmul.f32 %v7496_v54, %v10264_v41  ;;  %7501 = vlog2.f32 %v5490_v60 }
 0x4f9   :  { %5767 = vst [vmem:[%s11004_s8 + $0xe0] sm:$0xff] %v5703_v28  ;;  %v5704_v49 = vsub.f32 %v11237_v2, %v5606_v9  ;;  %7503 = vrcp.f32 %v5490_v60  ;;  %v5484_v44 = vpop.xlane.xlu0 %5483  ;;  %v11241_v2 = vld [vmem:[#allocation52_spill] sm:$0xff] }
 0x4fa   :  { %5960 = vst [vmem:[%s11005_s9 + $0xe8] sm:$0xff] %v5896_v19  ;;  %7505 = vlog2.f32 %v5484_v44 }
 0x4fb   :  { %5768 = vst [vmem:[%s11004_s8 + $0xe8] sm:$0xff] %v5704_v49  ;;  %7507 = vrcp.f32 %v5484_v44  ;;  %v5486_v41 = vpop.xlane.xlu1 %5485  ;;  %v11242_v44 = vld [vmem:[#allocation48_spill] sm:$0xff] }
 0x4fc   :  { %7509 = vlog2.f32 %v5486_v41 }
 0x4fd   :  { %7511 = vrcp.f32 %v5486_v41 }
 0x500   :  { %v7498_v43 = vpop.eup %7497 }
 0x501   :  { %v7500_v59 = vpop.eup %7499  ;;  %v5616_v16 = vmul.f32 0.6931472, %v7498_v43 }
 0x502   :  { %v7502_v7 = vpop.eup %7501  ;;  %v5901_v45 = vmul.f32 %v7500_v59, %v10276_v15 }
 0x503   :  { %v7504_v3 = vpop.eup %7503  ;;  %v5709_v62 = vsub.f32 %v11238_v34, %v5616_v16  ;;  %v5618_v8 = vmul.f32 0.6931472, %v7502_v7  ;;  %v11243_v34 = vld [vmem:[#allocation55_spill] sm:$0xff] }
 0x504   :  { %v7506_v55 = vpop.eup %7505  ;;  %5965 = vst [vmem:[%s11005_s9 + $0x110] sm:$0xff] %v5901_v45  ;;  %v5902_v51 = vmul.f32 %v7504_v3, %v10279_v39  ;;  %v11240_v39 = vld [vmem:[#allocation47_spill] sm:$0xff] }
 0x505   :  { %v7508_v1 = vpop.eup %7507  ;;  %5773 = vst [vmem:[%s11004_s8 + $0x110] sm:$0xff] %v5709_v62  ;;  %v5710_v11 = vsub.f32 %v10261_v37, %v5618_v8  ;;  %v5612_v20 = vmul.f32 0.6931472, %v7506_v55  ;;  %v5496_v15 = vpop.xlane.xlu0 %5495  ;;  %v11244_v55 = vld [vmem:[#allocation49_spill] sm:$0xff] }
 0x506   :  { %v7510_v54 = vpop.eup %7509  ;;  %5966 = vst [vmem:[%s11005_s9 + $0x118] sm:$0xff] %v5902_v51  ;;  %v5899_v28 = vmul.f32 %v7508_v1, %v11239_v56  ;;  %7513 = vlog2.f32 %v5496_v15  ;;  %v11246_v56 = vld [vmem:[#allocation51_spill] sm:$0xff] }
 0x507   :  { %v7512_v9 = vpop.eup %7511  ;;  %5774 = vst [vmem:[%s11004_s8 + $0x118] sm:$0xff] %v5710_v11  ;;  %v5707_v60 = vsub.f32 %v11240_v39, %v5612_v20  ;;  %v5614_v19 = vmul.f32 0.6931472, %v7510_v54  ;;  %7515 = vrcp.f32 %v5496_v15  ;;  %v5498_v37 = vpop.xlane.xlu1 %5497  ;;  %v11245_v20 = vld [vmem:[#allocation56_spill] sm:$0xff] }
 0x508   :  { %5963 = vst [vmem:[%s11005_s9 + $0x100] sm:$0xff] %v5899_v28  ;;  %v5900_v49 = vmul.f32 %v7512_v9, %v11241_v2  ;;  %7517 = vlog2.f32 %v5498_v37  ;;  %v11248_v2 = vld [vmem:[#allocation53_spill] sm:$0xff] }
 0x509   :  { %5771 = vst [vmem:[%s11004_s8 + $0x100] sm:$0xff] %v5707_v60  ;;  %v5708_v41 = vsub.f32 %v11242_v44, %v5614_v19  ;;  %7519 = vrcp.f32 %v5498_v37  ;;  %v5492_v43 = vpop.xlane.xlu0 %5491  ;;  %v11247_v60 = vld [vmem:[#allocation57_spill] sm:$0xff] }
 0x50a   :  { %5964 = vst [vmem:[%s11005_s9 + $0x108] sm:$0xff] %v5900_v49  ;;  %7521 = vlog2.f32 %v5492_v43 }
 0x50b   :  { %5772 = vst [vmem:[%s11004_s8 + $0x108] sm:$0xff] %v5708_v41  ;;  %7523 = vrcp.f32 %v5492_v43  ;;  %v5494_v59 = vpop.xlane.xlu1 %5493  ;;  %v11249_v43 = vld [vmem:[#allocation54_spill] sm:$0xff] }
 0x50c   :  { %7525 = vlog2.f32 %v5494_v59 }
 0x50d   :  { %7527 = vrcp.f32 %v5494_v59 }
 0x510   :  { %v7514_v16 = vpop.eup %7513 }
 0x511   :  { %v7516_v7 = vpop.eup %7515  ;;  %v5624_v45 = vmul.f32 0.6931472, %v7514_v16 }
 0x512   :  { %v7518_v3 = vpop.eup %7517  ;;  %v5905_v62 = vmul.f32 %v7516_v7, %v11243_v34 }
 0x513   :  { %v7520_v8 = vpop.eup %7519  ;;  %v5713_v51 = vsub.f32 %v11244_v55, %v5624_v45  ;;  %v5626_v1 = vmul.f32 0.6931472, %v7518_v3  ;;  %v11250_v55 = vld [vmem:[#allocation58_spill] sm:$0xff] }
 0x514   :  { %v7522_v11 = vpop.eup %7521  ;;  %5969 = vst [vmem:[%s11005_s9 + $0x130] sm:$0xff] %v5905_v62  ;;  %v5906_v15 = vmul.f32 %v7520_v8, %v11245_v20 }
 0x515   :  { %v7524_v54 = vpop.eup %7523  ;;  %5777 = vst [vmem:[%s11004_s8 + $0x130] sm:$0xff] %v5713_v51  ;;  %v5714_v28 = vsub.f32 %v11246_v56, %v5626_v1  ;;  %v5620_v9 = vmul.f32 0.6931472, %v7522_v11 }
 0x516   :  { %v7526_v39 = vpop.eup %7525  ;;  %5970 = vst [vmem:[%s11005_s9 + $0x138] sm:$0xff] %v5906_v15  ;;  %v5903_v19 = vmul.f32 %v7524_v54, %v11247_v60 }
 0x517   :  { %v7528_v37 = vpop.eup %7527  ;;  %5778 = vst [vmem:[%s11004_s8 + $0x138] sm:$0xff] %v5714_v28  ;;  %v5711_v49 = vsub.f32 %v11248_v2, %v5620_v9  ;;  %v5622_v44 = vmul.f32 0.6931472, %v7526_v39 }
 0x518   :  { %5967 = vst [vmem:[%s11005_s9 + $0x120] sm:$0xff] %v5903_v19  ;;  %v5904_v41 = vmul.f32 %v7528_v37, %v10313_v46 }
 0x519   :  { %5775 = vst [vmem:[%s11004_s8 + $0x120] sm:$0xff] %v5711_v49  ;;  %v5712_v59 = vsub.f32 %v11249_v43, %v5622_v44 }
 0x51a   :  { %5968 = vst [vmem:[%s11005_s9 + $0x128] sm:$0xff] %v5904_v41 }
 0x51b   :  { %v5504_v16 = vpop.xlane.xlu0 %5503  ;;  %5776 = vst [vmem:[%s11004_s8 + $0x128] sm:$0xff] %v5712_v59 }
 0x51c   :  { %7529 = vlog2.f32 %v5504_v16 }
 0x51d   :  { %7531 = vrcp.f32 %v5504_v16 }
 0x51e   :  { %v5506_v7 = vpop.xlane.xlu1 %5505 }
 0x51f   :  { %7533 = vlog2.f32 %v5506_v7  ;;  %v5500_v46 = vpop.xlane.xlu0 %5499 }
 0x520   :  { %7535 = vrcp.f32 %v5506_v7 }
 0x521   :  { %7537 = vlog2.f32 %v5500_v46 }
 0x522   :  { %7539 = vrcp.f32 %v5500_v46  ;;  %v5502_v45 = vpop.xlane.xlu1 %5501 }
 0x523   :  { %7541 = vlog2.f32 %v5502_v45 }
 0x524   :  { %7543 = vrcp.f32 %v5502_v45 }
 0x526   :  { %v7530_v3 = vpop.eup %7529 }
 0x527   :  { %v7532_v34 = vpop.eup %7531  ;;  %v5632_v62 = vmul.f32 0.6931472, %v7530_v3 }
 0x528   :  { %v5909_v8 = vmul.f32 %v7532_v34, %v10358_v36 }
 0x529   :  { %v5717_v51 = vsub.f32 %v11250_v55, %v5632_v62  ;;  %v7534_v1 = vpop.eup %7533 }
 0x52a   :  { %5973 = vst [vmem:[%s11005_s9 + $0x150] sm:$0xff] %v5909_v8  ;;  %v7536_v11 = vpop.eup %7535  ;;  %v5634_v20 = vmul.f32 0.6931472, %v7534_v1 }
 0x52b   :  { %5781 = vst [vmem:[%s11004_s8 + $0x150] sm:$0xff] %v5717_v51  ;;  %v5512_v15 = vpop.xlane.xlu0 %5511  ;;  %v7538_v54 = vpop.eup %7537  ;;  %v5910_v56 = vmul.f32 %v7536_v11, %v10370_v33 }
 0x52c   :  { %7545 = vlog2.f32 %v5512_v15  ;;  %v7540_v28 = vpop.eup %7539  ;;  %v5718_v36 = vsub.f32 %v10322_v4, %v5634_v20  ;;  %v5628_v9 = vmul.f32 0.6931472, %v7538_v54 }
 0x52d   :  { %7547 = vrcp.f32 %v5512_v15  ;;  %v7542_v39 = vpop.eup %7541  ;;  %5974 = vst [vmem:[%s11005_s9 + $0x158] sm:$0xff] %v5910_v56  ;;  %v5907_v60 = vmul.f32 %v7540_v28, %v10373_v22 }
 0x52e   :  { %v7544_v19 = vpop.eup %7543  ;;  %5782 = vst [vmem:[%s11004_s8 + $0x158] sm:$0xff] %v5718_v36  ;;  %v5715_v33 = vsub.f32 %v10325_v0, %v5628_v9  ;;  %v5630_v37 = vmul.f32 0.6931472, %v7542_v39  ;;  %v5514_v2 = vpop.xlane.xlu1 %5513 }
 0x52f   :  { %5971 = vst [vmem:[%s11005_s9 + $0x140] sm:$0xff] %v5907_v60  ;;  %v5908_v4 = vmul.f32 %v7544_v19, %v10383_v40  ;;  %7549 = vlog2.f32 %v5514_v2  ;;  %v5508_v49 = vpop.xlane.xlu0 %5507 }
 0x530   :  { %5779 = vst [vmem:[%s11004_s8 + $0x140] sm:$0xff] %v5715_v33  ;;  %v5716_v22 = vsub.f32 %v10338_v12, %v5630_v37  ;;  %7551 = vrcp.f32 %v5514_v2 }
 0x531   :  { %5972 = vst [vmem:[%s11005_s9 + $0x148] sm:$0xff] %v5908_v4  ;;  %7553 = vlog2.f32 %v5508_v49 }
 0x532   :  { %5780 = vst [vmem:[%s11004_s8 + $0x148] sm:$0xff] %v5716_v22  ;;  %7555 = vrcp.f32 %v5508_v49  ;;  %v5510_v0 = vpop.xlane.xlu1 %5509 }
 0x533   :  { %7557 = vlog2.f32 %v5510_v0 }
 0x534   :  { %7559 = vrcp.f32 %v5510_v0 }
 0x536   :  { %v7546_v40 = vpop.eup %7545 }
 0x537   :  { %v7548_v44 = vpop.eup %7547  ;;  %v5640_v41 = vmul.f32 0.6931472, %v7546_v40 }
 0x538   :  { %v5913_v43 = vmul.f32 %v7548_v44, %v10414_v42 }
 0x539   :  { %v5721_v12 = vsub.f32 %v10368_v53, %v5640_v41  ;;  %v7550_v59 = vpop.eup %7549 }
 0x53a   :  { %5977 = vst [vmem:[%s11005_s9 + $0x170] sm:$0xff] %v5913_v43  ;;  %v7552_v16 = vpop.eup %7551  ;;  %v5642_v7 = vmul.f32 0.6931472, %v7550_v59  ;;  %v11253_v59 = vld [vmem:[#allocation7_spill] sm:$0xff] }
 0x53b   :  { %5785 = vst [vmem:[%s11004_s8 + $0x170] sm:$0xff] %v5721_v12  ;;  %v5520_v46 = vpop.xlane.xlu0 %5519  ;;  %v7554_v45 = vpop.eup %7553  ;;  %v5914_v3 = vmul.f32 %v7552_v16, %v10430_v63 }
 0x53c   :  { %7561 = vlog2.f32 %v5520_v46  ;;  %v7556_v34 = vpop.eup %7555  ;;  %v5722_v42 = vsub.f32 %v10377_v29, %v5642_v7  ;;  %v5636_v53 = vmul.f32 0.6931472, %v7554_v45 }
 0x53d   :  { %7563 = vrcp.f32 %v5520_v46  ;;  %v7558_v62 = vpop.eup %7557  ;;  %5978 = vst [vmem:[%s11005_s9 + $0x178] sm:$0xff] %v5914_v3  ;;  %v5911_v8 = vmul.f32 %v7556_v34, %v10433_v13 }
 0x53e   :  { %v7560_v55 = vpop.eup %7559  ;;  %5786 = vst [vmem:[%s11004_s8 + $0x178] sm:$0xff] %v5722_v42  ;;  %v5719_v63 = vsub.f32 %v10381_v52, %v5636_v53  ;;  %v5638_v51 = vmul.f32 0.6931472, %v7558_v62  ;;  %v5522_v1 = vpop.xlane.xlu1 %5521 }
 0x53f   :  { %5975 = vst [vmem:[%s11005_s9 + $0x160] sm:$0xff] %v5911_v8  ;;  %v5912_v29 = vmul.f32 %v7560_v55, %v10443_v6  ;;  %7565 = vlog2.f32 %v5522_v1  ;;  %v5516_v11 = vpop.xlane.xlu0 %5515 }
 0x540   :  { %5783 = vst [vmem:[%s11004_s8 + $0x160] sm:$0xff] %v5719_v63  ;;  %v5720_v13 = vsub.f32 %v10394_v14, %v5638_v51  ;;  %7567 = vrcp.f32 %v5522_v1  ;;  %v11255_v1 = vld [vmem:[#allocation8_spill] sm:$0xff] }
 0x541   :  { %5976 = vst [vmem:[%s11005_s9 + $0x168] sm:$0xff] %v5912_v29  ;;  %7569 = vlog2.f32 %v5516_v11 }
 0x542   :  { %5784 = vst [vmem:[%s11004_s8 + $0x168] sm:$0xff] %v5720_v13  ;;  %7571 = vrcp.f32 %v5516_v11  ;;  %v5518_v52 = vpop.xlane.xlu1 %5517 }
 0x543   :  { %7573 = vlog2.f32 %v5518_v52 }
 0x544   :  { %7575 = vrcp.f32 %v5518_v52 }
 0x546   :  { %v7562_v6 = vpop.eup %7561 }
 0x547   :  { %v7564_v20 = vpop.eup %7563  ;;  %v5648_v15 = vmul.f32 0.6931472, %v7562_v6 }
 0x548   :  { %v5917_v54 = vmul.f32 %v7564_v20, %v10474_v17 }
 0x549   :  { %v5725_v14 = vsub.f32 %v10428_v57, %v5648_v15  ;;  %v7566_v56 = vpop.eup %7565 }
 0x54a   :  { %5981 = vst [vmem:[%s11005_s9 + $0x190] sm:$0xff] %v5917_v54  ;;  %v7568_v28 = vpop.eup %7567  ;;  %v5650_v36 = vmul.f32 0.6931472, %v7566_v56 }
 0x54b   :  { %5789 = vst [vmem:[%s11004_s8 + $0x190] sm:$0xff] %v5725_v14  ;;  %v5528_v9 = vpop.xlane.xlu0 %5527  ;;  %v7570_v39 = vpop.eup %7569  ;;  %v5918_v60 = vmul.f32 %v7568_v28, %v10490_v47 }
 0x54c   :  { %7577 = vlog2.f32 %v5528_v9  ;;  %v7572_v19 = vpop.eup %7571  ;;  %v5726_v17 = vsub.f32 %v10437_v38, %v5650_v36  ;;  %v5644_v57 = vmul.f32 0.6931472, %v7570_v39  ;;  %v11251_v38 = vld [vmem:[#allocation22_spill] sm:$0xff] }
 0x54d   :  { %7579 = vrcp.f32 %v5528_v9  ;;  %v7574_v33 = vpop.eup %7573  ;;  %5982 = vst [vmem:[%s11005_s9 + $0x198] sm:$0xff] %v5918_v60  ;;  %v5915_v37 = vmul.f32 %v7572_v19, %v10493_v48  ;;  %v11252_v48 = vld [vmem:[#allocation20_spill] sm:$0xff] }
 0x54e   :  { %v7576_v2 = vpop.eup %7575  ;;  %5790 = vst [vmem:[%s11004_s8 + $0x198] sm:$0xff] %v5726_v17  ;;  %v5723_v47 = vsub.f32 %v10441_v10, %v5644_v57  ;;  %v5646_v4 = vmul.f32 0.6931472, %v7574_v33  ;;  %v5530_v49 = vpop.xlane.xlu1 %5529  ;;  %v11257_v17 = vld [vmem:[#allocation6_spill] sm:$0xff] }
 0x54f   :  { %5979 = vst [vmem:[%s11005_s9 + $0x180] sm:$0xff] %v5915_v37  ;;  %v5916_v22 = vmul.f32 %v7576_v2, %v11251_v38  ;;  %7581 = vlog2.f32 %v5530_v49  ;;  %v5524_v0 = vpop.xlane.xlu0 %5523 }
 0x550   :  { %5787 = vst [vmem:[%s11004_s8 + $0x180] sm:$0xff] %v5723_v47  ;;  %v5724_v40 = vsub.f32 %v11252_v48, %v5646_v4  ;;  %7583 = vrcp.f32 %v5530_v49 }
 0x551   :  { %5980 = vst [vmem:[%s11005_s9 + $0x188] sm:$0xff] %v5916_v22  ;;  %7585 = vlog2.f32 %v5524_v0 }
 0x552   :  { %5788 = vst [vmem:[%s11004_s8 + $0x188] sm:$0xff] %v5724_v40  ;;  %7587 = vrcp.f32 %v5524_v0  ;;  %v5526_v10 = vpop.xlane.xlu1 %5525 }
 0x553   :  { %7589 = vlog2.f32 %v5526_v10 }
 0x554   :  { %7591 = vrcp.f32 %v5526_v10 }
 0x556   :  { %v7578_v44 = vpop.eup %7577 }
 0x557   :  { %v7580_v41 = vpop.eup %7579  ;;  %v5656_v43 = vmul.f32 0.6931472, %v7578_v44 }
 0x558   :  { %v5921_v12 = vmul.f32 %v7580_v41, %v10534_v25  ;;  %v11254_v25 = vld [vmem:[#allocation21_spill] sm:$0xff] }
 0x559   :  { %v5729_v16 = vsub.f32 %v11253_v59, %v5656_v43  ;;  %v7582_v7 = vpop.eup %7581 }
 0x55a   :  { %5985 = vst [vmem:[%s11005_s9 + $0x1b0] sm:$0xff] %v5921_v12  ;;  %v7584_v46 = vpop.eup %7583  ;;  %v5658_v45 = vmul.f32 0.6931472, %v7582_v7  ;;  %v11259_v7 = vld [vmem:[#allocation14_spill] sm:$0xff] }
 0x55b   :  { %5793 = vst [vmem:[%s11004_s8 + $0x1b0] sm:$0xff] %v5729_v16  ;;  %v5536_v3 = vpop.xlane.xlu0 %5535  ;;  %v7586_v34 = vpop.eup %7585  ;;  %v5922_v42 = vmul.f32 %v7584_v46, %v10550_v31 }
 0x55c   :  { %7593 = vlog2.f32 %v5536_v3  ;;  %v7588_v53 = vpop.eup %7587  ;;  %v5730_v62 = vsub.f32 %v11254_v25, %v5658_v45  ;;  %v5652_v8 = vmul.f32 0.6931472, %v7586_v34  ;;  %v11261_v25 = vld [vmem:[#allocation11_spill] sm:$0xff] }
 0x55d   :  { %7595 = vrcp.f32 %v5536_v3  ;;  %v7590_v55 = vpop.eup %7589  ;;  %5986 = vst [vmem:[%s11005_s9 + $0x1b8] sm:$0xff] %v5922_v42  ;;  %v5919_v63 = vmul.f32 %v7588_v53, %v10553_v32 }
 0x55e   :  { %v7592_v51 = vpop.eup %7591  ;;  %5794 = vst [vmem:[%s11004_s8 + $0x1b8] sm:$0xff] %v5730_v62  ;;  %v5727_v31 = vsub.f32 %v11255_v1, %v5652_v8  ;;  %v5654_v29 = vmul.f32 0.6931472, %v7590_v55  ;;  %v5538_v11 = vpop.xlane.xlu1 %5537 }
 0x55f   :  { %5983 = vst [vmem:[%s11005_s9 + $0x1a0] sm:$0xff] %v5919_v63  ;;  %v5920_v13 = vmul.f32 %v7592_v51, %v10563_v50  ;;  %7597 = vlog2.f32 %v5538_v11  ;;  %v5532_v52 = vpop.xlane.xlu0 %5531 }
 0x560   :  { %5791 = vst [vmem:[%s11004_s8 + $0x1a0] sm:$0xff] %v5727_v31  ;;  %v5728_v32 = vsub.f32 %v10514_v24, %v5654_v29  ;;  %7599 = vrcp.f32 %v5538_v11  ;;  %v11256_v24 = vld [vmem:[#allocation9_spill] sm:$0xff] }
 0x561   :  { %5984 = vst [vmem:[%s11005_s9 + $0x1a8] sm:$0xff] %v5920_v13  ;;  %7601 = vlog2.f32 %v5532_v52 }
 0x562   :  { %5792 = vst [vmem:[%s11004_s8 + $0x1a8] sm:$0xff] %v5728_v32  ;;  %7603 = vrcp.f32 %v5532_v52  ;;  %v5534_v50 = vpop.xlane.xlu1 %5533 }
 0x563   :  { %7605 = vlog2.f32 %v5534_v50 }
 0x564   :  { %7607 = vrcp.f32 %v5534_v50 }
 0x566   :  { %v7594_v6 = vpop.eup %7593 }
 0x567   :  { %v7596_v20 = vpop.eup %7595  ;;  %v5664_v15 = vmul.f32 0.6931472, %v7594_v6 }
 0x568   :  { %v5925_v54 = vmul.f32 %v7596_v20, %v10601_v61 }
 0x569   :  { %v5733_v14 = vsub.f32 %v11256_v24, %v5664_v15  ;;  %v7598_v56 = vpop.eup %7597  ;;  %v5540_v28 = vpop.xlane.xlu0 %5539 }
 0x56a   :  { %5989 = vst [vmem:[%s11005_s9 + $0x1d0] sm:$0xff] %v5925_v54  ;;  %v7600_v36 = vpop.eup %7599  ;;  %v5666_v9 = vmul.f32 0.6931472, %v7598_v56  ;;  %7609 = vlog2.f32 %v5540_v28 }
 0x56b   :  { %5797 = vst [vmem:[%s11004_s8 + $0x1d0] sm:$0xff] %v5733_v14  ;;  %v7602_v39 = vpop.eup %7601  ;;  %v5926_v60 = vmul.f32 %v7600_v36, %v10622_v26  ;;  %7611 = vrcp.f32 %v5540_v28  ;;  %v5542_v61 = vpop.xlane.xlu1 %5541  ;;  %v11258_v26 = vld [vmem:[#allocation16_spill] sm:$0xff] }
 0x56c   :  { %v7604_v19 = vpop.eup %7603  ;;  %v5734_v57 = vsub.f32 %v11257_v17, %v5666_v9  ;;  %v5660_v33 = vmul.f32 0.6931472, %v7602_v39  ;;  %7613 = vlog2.f32 %v5542_v61 }
 0x56d   :  { %v7606_v37 = vpop.eup %7605  ;;  %5990 = vst [vmem:[%s11005_s9 + $0x1d8] sm:$0xff] %v5926_v60  ;;  %v5923_v2 = vmul.f32 %v7604_v19, %v10624_v35  ;;  %7615 = vrcp.f32 %v5542_v61  ;;  %v5544_v47 = vpop.xlane.xlu0 %5543 }
 0x56e   :  { %v7608_v4 = vpop.eup %7607  ;;  %5798 = vst [vmem:[%s11004_s8 + $0x1d8] sm:$0xff] %v5734_v57  ;;  %v5731_v49 = vsub.f32 %v11258_v26, %v5660_v33  ;;  %v5662_v38 = vmul.f32 0.6931472, %v7606_v37  ;;  %7617 = vlog2.f32 %v5544_v47 }
 0x56f   :  { %5987 = vst [vmem:[%s11005_s9 + $0x1c0] sm:$0xff] %v5923_v2  ;;  %v5924_v22 = vmul.f32 %v7608_v4, %v10629_v27  ;;  %7619 = vrcp.f32 %v5544_v47  ;;  %v5546_v0 = vpop.xlane.xlu1 %5545 }
 0x570   :  { %5795 = vst [vmem:[%s11004_s8 + $0x1c0] sm:$0xff] %v5731_v49  ;;  %v5732_v35 = vsub.f32 %v10574_v5, %v5662_v38  ;;  %7621 = vlog2.f32 %v5546_v0 }
 0x571   :  { %5988 = vst [vmem:[%s11005_s9 + $0x1c8] sm:$0xff] %v5924_v22  ;;  %7623 = vrcp.f32 %v5546_v0 }
 0x572   :  { %5796 = vst [vmem:[%s11004_s8 + $0x1c8] sm:$0xff] %v5732_v35 }
 0x574   :  { %v7610_v48 = vpop.eup %7609 }
 0x575   :  { %v7612_v27 = vpop.eup %7611  ;;  %v5668_v40 = vmul.f32 0.6931472, %v7610_v48 }
 0x576   :  { %v7614_v10 = vpop.eup %7613  ;;  %v5927_v44 = vmul.f32 %v7612_v27, %v10636_v30 }
 0x577   :  { %v7616_v41 = vpop.eup %7615  ;;  %v5735_v43 = vsub.f32 %v10612_v23, %v5668_v40  ;;  %v5670_v5 = vmul.f32 0.6931472, %v7614_v10 }
 0x578   :  { %v7618_v12 = vpop.eup %7617  ;;  %5991 = vst [vmem:[%s11005_s9 + $0x1e0] sm:$0xff] %v5927_v44  ;;  %v5928_v59 = vmul.f32 %v7616_v41, %v10639_v18  ;;  %v11260_v18 = vld [vmem:[#allocation13_spill] sm:$0xff] }
 0x579   :  { %v7620_v16 = vpop.eup %7619  ;;  %5799 = vst [vmem:[%s11004_s8 + $0x1e0] sm:$0xff] %v5735_v43  ;;  %v5736_v46 = vsub.f32 %v11259_v7, %v5670_v5  ;;  %v5672_v45 = vmul.f32 0.6931472, %v7618_v12 }
 0x57a   :  { %v7622_v30 = vpop.eup %7621  ;;  %5992 = vst [vmem:[%s11005_s9 + $0x1e8] sm:$0xff] %v5928_v59  ;;  %v5929_v23 = vmul.f32 %v7620_v16, %v10632_v58 }
 0x57b   :  { %v7624_v3 = vpop.eup %7623  ;;  %5800 = vst [vmem:[%s11004_s8 + $0x1e8] sm:$0xff] %v5736_v46  ;;  %v5737_v34 = vsub.f32 %v11260_v18, %v5672_v45  ;;  %v5674_v42 = vmul.f32 0.6931472, %v7622_v30 }
 0x57c   :  { %5993 = vst [vmem:[%s11005_s9 + $0x1f0] sm:$0xff] %v5929_v23  ;;  %v5930_v53 = vmul.f32 %v7624_v3, %v10634_v21 }
 0x57d   :  { %5801 = vst [vmem:[%s11004_s8 + $0x1f0] sm:$0xff] %v5737_v34  ;;  %v5738_v58 = vsub.f32 %v11261_v25, %v5674_v42 }
 0x57e   :  { %5994 = vst [vmem:[%s11005_s9 + $0x1f8] sm:$0xff] %v5930_v53 }
 0x57f   :  { %5802 = vst [vmem:[%s11004_s8 + $0x1f8] sm:$0xff] %v5738_v58 }

// kernel: digcn_ib_forward.3
= control target key start
LH: loop header
LB: loop body
LE: loop exit
PB: predicated region body
PF: predicated region fallthrough
CT: control target
= control target key end

     0   :  { %v3322_v1 = vmov 0   ;;  %s3958_s1 = inlined_call_operand.vmem [shape: bf16[128,384], index: 1, kind: input, shape index: {}]   ;;  %s3959_s0 = inlined_call_operand.vmem [shape: bf16[512,128], index: 0, kind: input, shape index: {}]   ;;  %s3960_s2 = inlined_call_operand.vmem [shape: bf16[512,384], index: 2, kind: output, shape index: {}]  }
   0x1   :  { %v3258_v0 = vld [vmem:[%s3958_s1 + $0x4] ss:$12 sps:$4 sm:$0xff]   ;;  %848 = vmatprep.mubr.bf16.mxu0 %v3322_v1  ;;  %1088 = vmatprep.mubr.bf16.mxu1 %v3322_v1  ;;  %v3260_v2 = vld [vmem:[%s3958_s1] ss:$12 sps:$4 sm:$0xff]   ;;  %v3261_v3 = vld [vmem:[%s3958_s1 + $0x1c] ss:$12 sps:$4 sm:$0xff]  }
   0x2   :  { %816 = vmatprep.subr.bf16.mxu0 %v3258_v0  ;;  %3241 = vmatprep.subr.bf16.mxu1 %v3258_v0  ;;  %v3263_v4 = vld [vmem:[%s3958_s1 + $0x18] ss:$12 sps:$4 sm:$0xff]   ;;  %v3264_v5 = vld [vmem:[%s3958_s1 + $0x34] ss:$12 sps:$4 sm:$0xff]   ;;  %v3266_v6 = vld [vmem:[%s3958_s1 + $0x30] ss:$12 sps:$4 sm:$0xff]  }
   0x3   :  { %817 = vmatpush1.bf16.msra.mxu0 %v3260_v2  ;;  %3249 = vmatpush1.bf16.msra.mxu1 %v3260_v2  ;;  %v3267_v7 = vld [vmem:[%s3958_s1 + $0x4c] ss:$12 sps:$4 sm:$0xff]   ;;  %v3269_v8 = vld [vmem:[%s3958_s1 + $0x48] ss:$12 sps:$4 sm:$0xff]   ;;  %v3270_v9 = vld [vmem:[%s3958_s1 + $0x64] ss:$12 sps:$4 sm:$0xff]  }
   0x4   :  { %818 = vmatprep.subr.bf16.mxu0 %v3261_v3  ;;  %3242 = vmatprep.subr.bf16.mxu1 %v3261_v3  ;;  %v3272_v10 = vld [vmem:[%s3958_s1 + $0x60] ss:$12 sps:$4 sm:$0xff]   ;;  %v3273_v11 = vld [vmem:[%s3958_s1 + $0x7c] ss:$12 sps:$4 sm:$0xff]   ;;  %v3275_v12 = vld [vmem:[%s3958_s1 + $0x78] ss:$12 sps:$4 sm:$0xff]  }
   0x5   :  { %v3276_v13 = vld [vmem:[%s3958_s1 + $0x94] ss:$12 sps:$4 sm:$0xff]   ;;  %v3278_v14 = vld [vmem:[%s3958_s1 + $0x90] ss:$12 sps:$4 sm:$0xff]   ;;  %v3279_v15 = vld [vmem:[%s3958_s1 + $0xac] ss:$12 sps:$4 sm:$0xff]  }
   0x6   :  { %v3281_v16 = vld [vmem:[%s3958_s1 + $0xa8] ss:$12 sps:$4 sm:$0xff]   ;;  %v3394_v18 = vld [vmem:[%s3959_s0] sm:$0xff]   ;;  %v3293_v24 = vld [vmem:[%s3958_s1 + $0x50] ss:$12 sps:$4 sm:$0xff]  }
   0x7   :  { %819 = vmatpush1.bf16.msra.mxu0 %v3263_v4  ;;  %3250 = vmatpush1.bf16.msra.mxu1 %v3263_v4  ;;  %v3284_v17 = vld [vmem:[%s3958_s1 + $0x8] ss:$12 sps:$4 sm:$0xff]   ;;  %v3399_v19 = vld [vmem:[%s3959_s0 + $0xc0] sm:$0xff]   ;;  %v3291_v30 = vld [vmem:[%s3959_s0 + $0x18] sm:$0xff]  }
   0x8   :  { %820 = vmatprep.subr.bf16.mxu0 %v3264_v5  ;;  %3243 = vmatprep.subr.bf16.mxu1 %v3264_v5  ;;  %v3287_v20 = vld [vmem:[%s3958_s1 + $0x20] ss:$12 sps:$4 sm:$0xff]   ;;  %v3290_v21 = vld [vmem:[%s3958_s1 + $0x38] ss:$12 sps:$4 sm:$0xff]   ;;  %v3288_v25 = vld [vmem:[%s3959_s0 + $0x10] sm:$0xff]  }
   0x9   :  { %v3285_v22 = vld [vmem:[%s3959_s0 + $0x8] sm:$0xff]   ;;  %v3434_v27 = vld [vmem:[%s3959_s0 + $0xd0] sm:$0xff]   ;;  %v3302_v29 = vld [vmem:[%s3958_s1 + $0x98] ss:$12 sps:$4 sm:$0xff]  }
   0xa   :  { %v3417_v23 = vld [vmem:[%s3959_s0 + $0xc8] sm:$0xff]   ;;  %v3451_v31 = vld [vmem:[%s3959_s0 + $0xd8] sm:$0xff]   ;;  %v3294_v33 = vld [vmem:[%s3959_s0 + $0x20] sm:$0xff]  }
   0xb   :  { %821 = vmatpush1.bf16.msra.mxu0 %v3266_v6  ;;  %3251 = vmatpush1.bf16.msra.mxu1 %v3266_v6  ;;  %v3296_v26 = vld [vmem:[%s3958_s1 + $0x68] ss:$12 sps:$4 sm:$0xff]   ;;  %v3299_v28 = vld [vmem:[%s3958_s1 + $0x80] ss:$12 sps:$4 sm:$0xff]   ;;  %v3305_v32 = vld [vmem:[%s3958_s1 + $0xb0] ss:$12 sps:$4 sm:$0xff]  }
   0xc   :  { %822 = vmatprep.subr.bf16.mxu0 %v3267_v7  ;;  %3244 = vmatprep.subr.bf16.mxu1 %v3267_v7  ;;  %v3465_v34 = vld [vmem:[%s3959_s0 + $0xe0] sm:$0xff]   ;;  %v3297_v35 = vld [vmem:[%s3959_s0 + $0x28] sm:$0xff]   ;;  %v3300_v37 = vld [vmem:[%s3959_s0 + $0x30] sm:$0xff]  }
   0xd   :  { %v3476_v36 = vld [vmem:[%s3959_s0 + $0xe8] sm:$0xff]   ;;  %v3487_v38 = vld [vmem:[%s3959_s0 + $0xf0] sm:$0xff]   ;;  %v3303_v39 = vld [vmem:[%s3959_s0 + $0x38] sm:$0xff]  }
   0xe   :  { %v3498_v40 = vld [vmem:[%s3959_s0 + $0xf8] sm:$0xff]   ;;  %v3306_v41 = vld [vmem:[%s3959_s0 + $0x40] sm:$0xff]   ;;  %v3307_v42 = vld [vmem:[%s3959_s0 + $0x48] sm:$0xff]  }
   0xf   :  { %823 = vmatpush1.bf16.msra.mxu0 %v3269_v8  ;;  %3252 = vmatpush1.bf16.msra.mxu1 %v3269_v8  ;;  %v3308_v43 = vld [vmem:[%s3959_s0 + $0x50] sm:$0xff]   ;;  %v3309_v44 = vld [vmem:[%s3959_s0 + $0x58] sm:$0xff]   ;;  %v3310_v45 = vld [vmem:[%s3959_s0 + $0x60] sm:$0xff]  }
  0x10   :  { %824 = vmatprep.subr.bf16.mxu0 %v3270_v9  ;;  %3245 = vmatprep.subr.bf16.mxu1 %v3270_v9  ;;  %v3311_v46 = vld [vmem:[%s3959_s0 + $0x68] sm:$0xff]   ;;  %v3312_v47 = vld [vmem:[%s3959_s0 + $0x70] sm:$0xff]   ;;  %v3313_v48 = vld [vmem:[%s3959_s0 + $0x78] sm:$0xff]  }
  0x11   :  { %v3314_v49 = vld [vmem:[%s3959_s0 + $0x80] sm:$0xff]   ;;  %v3315_v50 = vld [vmem:[%s3959_s0 + $0x88] sm:$0xff]   ;;  %v3316_v51 = vld [vmem:[%s3959_s0 + $0x90] sm:$0xff]  }
  0x12   :  { %v3317_v52 = vld [vmem:[%s3959_s0 + $0x98] sm:$0xff]   ;;  %v3318_v53 = vld [vmem:[%s3959_s0 + $0xa0] sm:$0xff]   ;;  %v3319_v54 = vld [vmem:[%s3959_s0 + $0xa8] sm:$0xff]  }
  0x13   :  { %825 = vmatpush1.bf16.msra.mxu0 %v3272_v10  ;;  %3253 = vmatpush1.bf16.msra.mxu1 %v3272_v10  ;;  %v3320_v55 = vld [vmem:[%s3959_s0 + $0xb0] sm:$0xff]   ;;  %v3321_v56 = vld [vmem:[%s3959_s0 + $0xb8] sm:$0xff]  }
  0x14   :  { %826 = vmatprep.subr.bf16.mxu0 %v3273_v11  ;;  %3246 = vmatprep.subr.bf16.mxu1 %v3273_v11 }
  0x17   :  { %827 = vmatpush1.bf16.msra.mxu0 %v3275_v12  ;;  %3254 = vmatpush1.bf16.msra.mxu1 %v3275_v12 }
  0x18   :  { %828 = vmatprep.subr.bf16.mxu0 %v3276_v13  ;;  %3247 = vmatprep.subr.bf16.mxu1 %v3276_v13 }
  0x1b   :  { %829 = vmatpush1.bf16.msra.mxu0 %v3278_v14  ;;  %3255 = vmatpush1.bf16.msra.mxu1 %v3278_v14 }
  0x1c   :  { %830 = vmatprep.subr.bf16.mxu0 %v3279_v15  ;;  %3248 = vmatprep.subr.bf16.mxu1 %v3279_v15 }
  0x1f   :  { %831 = vmatpush1.bf16.msra.mxu0 %v3281_v16  ;;  %3256 = vmatpush1.bf16.msra.mxu1 %v3281_v16 }
  0x20   :  { %3161 = vmatprep.subr.bf16.mxu1 %v3284_v17 }
  0x22   :  { %849 = vmatmul.mubr.bf16.vlgmr.msra.gmra.mrb[0].mxu0 %v3394_v18  ;;  %1089 = vmatmul.mubr.bf16.vlgmr.msra.gmra.mrb[0].mxu1 %v3399_v19 }
  0x23   :  { %3162 = vmatpush3.bf16.msra.mxu1 %v3284_v17  ;;  %858 = vmatprep.mubr.bf16.mxu0 %v3322_v1 }
  0x24   :  { %1098 = vmatprep.mubr.bf16.mxu1 %v3322_v1  ;;  %3163 = vmatprep.subr.bf16.mxu1 %v3287_v20 }
  0x27   :  { %3164 = vmatpush3.bf16.msra.mxu1 %v3287_v20 }
  0x28   :  { %3165 = vmatprep.subr.bf16.mxu1 %v3290_v21 }
  0x2a   :  { %859 = vmatmul.mubr.bf16.gmra.mrb[4].mxu0 %v3285_v22  ;;  %1099 = vmatmul.mubr.bf16.gmra.mrb[4].mxu1 %v3417_v23 }
  0x2b   :  { %868 = vmatprep.mubr.bf16.mxu0 %v3322_v1  ;;  %1108 = vmatprep.mubr.bf16.mxu1 %v3322_v1 }
  0x2c   :  { %3166 = vmatpush3.bf16.msra.mxu1 %v3290_v21 }
  0x2d   :  { %3167 = vmatprep.subr.bf16.mxu1 %v3293_v24 }
  0x30   :  { %3168 = vmatpush3.bf16.msra.mxu1 %v3293_v24 }
  0x31   :  { %3169 = vmatprep.subr.bf16.mxu1 %v3296_v26 }
  0x32   :  { %869 = vmatmul.mubr.bf16.gmra.mrb[8].mxu0 %v3288_v25  ;;  %1109 = vmatmul.mubr.bf16.gmra.mrb[8].mxu1 %v3434_v27 }
  0x33   :  { %878 = vmatprep.mubr.bf16.mxu0 %v3322_v1  ;;  %1118 = vmatprep.mubr.bf16.mxu1 %v3322_v1 }
  0x34   :  { %3170 = vmatpush3.bf16.msra.mxu1 %v3296_v26 }
  0x35   :  { %3171 = vmatprep.subr.bf16.mxu1 %v3299_v28 }
  0x38   :  { %3172 = vmatpush3.bf16.msra.mxu1 %v3299_v28 }
  0x39   :  { %3173 = vmatprep.subr.bf16.mxu1 %v3302_v29 }
  0x3a   :  { %879 = vmatmul.mubr.bf16.gmra.mrb[12].mxu0 %v3291_v30  ;;  %1119 = vmatmul.mubr.bf16.gmra.mrb[12].mxu1 %v3451_v31 }
  0x3b   :  { %888 = vmatprep.mubr.bf16.mxu0 %v3322_v1  ;;  %1128 = vmatprep.mubr.bf16.mxu1 %v3322_v1 }
  0x3c   :  { %3174 = vmatpush3.bf16.msra.mxu1 %v3302_v29 }
  0x3d   :  { %3175 = vmatprep.subr.bf16.mxu1 %v3305_v32 }
  0x40   :  { %3176 = vmatpush3.bf16.msra.mxu1 %v3305_v32 }
  0x42   :  { %889 = vmatmul.mubr.bf16.gmra.mrb[16].mxu0 %v3294_v33  ;;  %1129 = vmatmul.mubr.bf16.gmra.mrb[16].mxu1 %v3465_v34 }
  0x43   :  { %898 = vmatprep.mubr.bf16.mxu0 %v3322_v1  ;;  %1138 = vmatprep.mubr.bf16.mxu1 %v3322_v1 }
  0x4a   :  { %899 = vmatmul.mubr.bf16.gmra.mrb[20].mxu0 %v3297_v35  ;;  %1139 = vmatmul.mubr.bf16.gmra.mrb[20].mxu1 %v3476_v36 }
  0x4b   :  { %908 = vmatprep.mubr.bf16.mxu0 %v3322_v1  ;;  %1148 = vmatprep.mubr.bf16.mxu1 %v3322_v1 }
  0x52   :  { %909 = vmatmul.mubr.bf16.gmra.mrb[24].mxu0 %v3300_v37  ;;  %1149 = vmatmul.mubr.bf16.gmra.mrb[24].mxu1 %v3487_v38 }
  0x53   :  { %918 = vmatprep.mubr.bf16.mxu0 %v3322_v1  ;;  %1158 = vmatprep.mubr.bf16.mxu1 %v3322_v1 }
  0x5a   :  { %919 = vmatmul.mubr.bf16.gmra.mrb[28].mxu0 %v3303_v39  ;;  %1159 = vmatmul.mubr.bf16.gmra.mrb[28].mxu1 %v3498_v40 }
  0x5b   :  { %928 = vmatprep.mubr.bf16.mxu0 %v3322_v1  ;;  %3177 = vmatprep.mubr.bf16.mxu1 %v3394_v18 }
  0x62   :  { %929 = vmatmul.mubr.bf16.gmra.mrb[32].mxu0 %v3306_v41  ;;  %3178 = vmatmul.mubr.bf16.vlgmr.msra.gmra.mrb[32].mxu1 %v3285_v22 }
  0x63   :  { %938 = vmatprep.mubr.bf16.mxu0 %v3322_v1  ;;  %3181 = vmatprep.mubr.bf16.mxu1 %v3288_v25 }
  0x6a   :  { %939 = vmatmul.mubr.bf16.gmra.mrb[36].mxu0 %v3307_v42  ;;  %3182 = vmatmul.mubr.bf16.gmra.mrb[36].mxu1 %v3291_v30 }
  0x6b   :  { %948 = vmatprep.mubr.bf16.mxu0 %v3322_v1  ;;  %3185 = vmatprep.mubr.bf16.mxu1 %v3294_v33 }
  0x72   :  { %949 = vmatmul.mubr.bf16.gmra.mrb[40].mxu0 %v3308_v43  ;;  %3186 = vmatmul.mubr.bf16.gmra.mrb[40].mxu1 %v3297_v35 }
  0x73   :  { %958 = vmatprep.mubr.bf16.mxu0 %v3322_v1  ;;  %3189 = vmatprep.mubr.bf16.mxu1 %v3300_v37 }
  0x7a   :  { %959 = vmatmul.mubr.bf16.gmra.mrb[44].mxu0 %v3309_v44  ;;  %3190 = vmatmul.mubr.bf16.gmra.mrb[44].mxu1 %v3303_v39 }
  0x7b   :  { %968 = vmatprep.mubr.bf16.mxu0 %v3322_v1  ;;  %3193 = vmatprep.mubr.bf16.mxu1 %v3306_v41 }
  0x82   :  { %969 = vmatmul.mubr.bf16.gmra.mrb[48].mxu0 %v3310_v45  ;;  %3194 = vmatmul.mubr.bf16.gmra.mrb[48].mxu1 %v3307_v42 }
  0x83   :  { %978 = vmatprep.mubr.bf16.mxu0 %v3322_v1  ;;  %3197 = vmatprep.mubr.bf16.mxu1 %v3308_v43 }
  0x8a   :  { %979 = vmatmul.mubr.bf16.gmra.mrb[52].mxu0 %v3311_v46  ;;  %3198 = vmatmul.mubr.bf16.gmra.mrb[52].mxu1 %v3309_v44 }
  0x8b   :  { %988 = vmatprep.mubr.bf16.mxu0 %v3322_v1  ;;  %3201 = vmatprep.mubr.bf16.mxu1 %v3310_v45 }
  0x92   :  { %989 = vmatmul.mubr.bf16.gmra.mrb[56].mxu0 %v3312_v47  ;;  %3202 = vmatmul.mubr.bf16.gmra.mrb[56].mxu1 %v3311_v46 }
  0x93   :  { %998 = vmatprep.mubr.bf16.mxu0 %v3322_v1  ;;  %3205 = vmatprep.mubr.bf16.mxu1 %v3312_v47 }
  0x9a   :  { %999 = vmatmul.mubr.bf16.gmra.mrb[60].mxu0 %v3313_v48  ;;  %3206 = vmatmul.mubr.bf16.gmra.mrb[60].mxu1 %v3313_v48 }
  0x9b   :  { %1008 = vmatprep.mubr.bf16.mxu0 %v3322_v1  ;;  %3209 = vmatprep.mubr.bf16.mxu1 %v3314_v49 }
  0xa2   :  { %1009 = vmatmul.mubr.bf16.gmra.mrb[64].mxu0 %v3314_v49  ;;  %3210 = vmatmul.mubr.bf16.gmra.mrb[64].mxu1 %v3315_v50 }
  0xa3   :  { %1018 = vmatprep.mubr.bf16.mxu0 %v3322_v1  ;;  %3213 = vmatprep.mubr.bf16.mxu1 %v3316_v51 }
  0xaa   :  { %1019 = vmatmul.mubr.bf16.gmra.mrb[68].mxu0 %v3315_v50  ;;  %3214 = vmatmul.mubr.bf16.gmra.mrb[68].mxu1 %v3317_v52 }
  0xab   :  { %1028 = vmatprep.mubr.bf16.mxu0 %v3322_v1  ;;  %3217 = vmatprep.mubr.bf16.mxu1 %v3318_v53 }
  0xb2   :  { %1029 = vmatmul.mubr.bf16.gmra.mrb[72].mxu0 %v3316_v51  ;;  %3218 = vmatmul.mubr.bf16.gmra.mrb[72].mxu1 %v3319_v54 }
  0xb3   :  { %1038 = vmatprep.mubr.bf16.mxu0 %v3322_v1  ;;  %3221 = vmatprep.mubr.bf16.mxu1 %v3320_v55 }
  0xba   :  { %1039 = vmatmul.mubr.bf16.gmra.mrb[76].mxu0 %v3317_v52  ;;  %3222 = vmatmul.mubr.bf16.gmra.mrb[76].mxu1 %v3321_v56 }
  0xbb   :  { %1048 = vmatprep.mubr.bf16.mxu0 %v3322_v1  ;;  %3225 = vmatprep.mubr.bf16.mxu1 %v3399_v19 }
  0xc2   :  { %1049 = vmatmul.mubr.bf16.gmra.mrb[80].mxu0 %v3318_v53  ;;  %3226 = vmatmul.mubr.bf16.gmra.mrb[80].mxu1 %v3417_v23 }
  0xc3   :  { %1058 = vmatprep.mubr.bf16.mxu0 %v3322_v1  ;;  %3229 = vmatprep.mubr.bf16.mxu1 %v3434_v27 }
  0xca   :  { %1059 = vmatmul.mubr.bf16.gmra.mrb[84].mxu0 %v3319_v54  ;;  %3230 = vmatmul.mubr.bf16.gmra.mrb[84].mxu1 %v3451_v31 }
  0xcb   :  { %1068 = vmatprep.mubr.bf16.mxu0 %v3322_v1  ;;  %3233 = vmatprep.mubr.bf16.mxu1 %v3465_v34 }
  0xd2   :  { %1069 = vmatmul.mubr.bf16.gmra.mrb[88].mxu0 %v3320_v55  ;;  %3234 = vmatmul.mubr.bf16.gmra.mrb[88].mxu1 %v3476_v36 }
  0xd3   :  { %1078 = vmatprep.mubr.bf16.mxu0 %v3322_v1  ;;  %3237 = vmatprep.mubr.bf16.mxu1 %v3487_v38 }
  0xda   :  { %1079 = vmatmul.mubr.bf16.gmra.mrb[92].mxu0 %v3321_v56  ;;  %3238 = vmatmul.mubr.bf16.gmra.mrb[92].mxu1 %v3498_v40 }
  0xf5   :  { %v850_v57 = vpop.f32.mrb[0].mxu0  ;;  %v1090_v58 = vpop.f32.mrb[0].mxu1 }
  0xf6   :  { %v852_v59 = vpop.f32.mrb[1].mxu0  ;;  %v1092_v60 = vpop.f32.mrb[1].mxu1 }
  0xf7   :  { %v2993_v61 = vpack.c.bf16 %v852_v59, %v850_v57  ;;  %v3089_v62 = vpack.c.bf16 %v1092_v60, %v1090_v58  ;;  %v854_v63 = vpop.f32.mrb[2].mxu0  ;;  %v1094_v0 = vpop.f32.mrb[2].mxu1 }
  0xf8   :  { %v856_v2 = vpop.f32.mrb[3].mxu0  ;;  %v1096_v3 = vpop.f32.mrb[3].mxu1 }
  0xf9   :  { %2677 = vst [vmem:[%s3960_s2] sm:$0xff] %v2993_v61  ;;  %2773 = vst [vmem:[%s3960_s2 + $0x240] sm:$0xff] %v3089_v62  ;;  %v2995_v1 = vpack.c.bf16 %v856_v2, %v854_v63  ;;  %v3091_v4 = vpack.c.bf16 %v1096_v3, %v1094_v0 }
  0xfb   :  { %2679 = vst [vmem:[%s3960_s2 + $0xc] sm:$0xff] %v2995_v1  ;;  %2775 = vst [vmem:[%s3960_s2 + $0x24c] sm:$0xff] %v3091_v4 }
  0xfd   :  { %v860_v5 = vpop.f32.mrb[4].mxu0  ;;  %v1100_v6 = vpop.f32.mrb[4].mxu1 }
  0xfe   :  { %v862_v7 = vpop.f32.mrb[5].mxu0  ;;  %v1102_v8 = vpop.f32.mrb[5].mxu1 }
  0xff   :  { %v2997_v9 = vpack.c.bf16 %v862_v7, %v860_v5  ;;  %v3093_v10 = vpack.c.bf16 %v1102_v8, %v1100_v6  ;;  %v864_v11 = vpop.f32.mrb[6].mxu0  ;;  %v1104_v12 = vpop.f32.mrb[6].mxu1 }
 0x100   :  { %v866_v13 = vpop.f32.mrb[7].mxu0  ;;  %v1106_v14 = vpop.f32.mrb[7].mxu1 }
 0x101   :  { %2681 = vst [vmem:[%s3960_s2 + $0x18] sm:$0xff] %v2997_v9  ;;  %2777 = vst [vmem:[%s3960_s2 + $0x258] sm:$0xff] %v3093_v10  ;;  %v2999_v15 = vpack.c.bf16 %v866_v13, %v864_v11  ;;  %v3095_v16 = vpack.c.bf16 %v1106_v14, %v1104_v12 }
 0x103   :  { %2683 = vst [vmem:[%s3960_s2 + $0x24] sm:$0xff] %v2999_v15  ;;  %2779 = vst [vmem:[%s3960_s2 + $0x264] sm:$0xff] %v3095_v16 }
 0x105   :  { %v870_v17 = vpop.f32.mrb[8].mxu0  ;;  %v1110_v18 = vpop.f32.mrb[8].mxu1 }
 0x106   :  { %v872_v19 = vpop.f32.mrb[9].mxu0  ;;  %v1112_v20 = vpop.f32.mrb[9].mxu1 }
 0x107   :  { %v3001_v21 = vpack.c.bf16 %v872_v19, %v870_v17  ;;  %v3097_v22 = vpack.c.bf16 %v1112_v20, %v1110_v18  ;;  %v874_v23 = vpop.f32.mrb[10].mxu0  ;;  %v1114_v24 = vpop.f32.mrb[10].mxu1 }
 0x108   :  { %v876_v25 = vpop.f32.mrb[11].mxu0  ;;  %v1116_v26 = vpop.f32.mrb[11].mxu1 }
 0x109   :  { %2685 = vst [vmem:[%s3960_s2 + $0x30] sm:$0xff] %v3001_v21  ;;  %2781 = vst [vmem:[%s3960_s2 + $0x270] sm:$0xff] %v3097_v22  ;;  %v3003_v27 = vpack.c.bf16 %v876_v25, %v874_v23  ;;  %v3099_v28 = vpack.c.bf16 %v1116_v26, %v1114_v24 }
 0x10b   :  { %2687 = vst [vmem:[%s3960_s2 + $0x3c] sm:$0xff] %v3003_v27  ;;  %2783 = vst [vmem:[%s3960_s2 + $0x27c] sm:$0xff] %v3099_v28 }
 0x10d   :  { %v880_v29 = vpop.f32.mrb[12].mxu0  ;;  %v1120_v30 = vpop.f32.mrb[12].mxu1 }
 0x10e   :  { %v882_v31 = vpop.f32.mrb[13].mxu0  ;;  %v1122_v32 = vpop.f32.mrb[13].mxu1 }
 0x10f   :  { %v3005_v33 = vpack.c.bf16 %v882_v31, %v880_v29  ;;  %v3101_v34 = vpack.c.bf16 %v1122_v32, %v1120_v30  ;;  %v884_v35 = vpop.f32.mrb[14].mxu0  ;;  %v1124_v36 = vpop.f32.mrb[14].mxu1 }
 0x110   :  { %v886_v37 = vpop.f32.mrb[15].mxu0  ;;  %v1126_v38 = vpop.f32.mrb[15].mxu1 }
 0x111   :  { %2689 = vst [vmem:[%s3960_s2 + $0x48] sm:$0xff] %v3005_v33  ;;  %2785 = vst [vmem:[%s3960_s2 + $0x288] sm:$0xff] %v3101_v34  ;;  %v3007_v39 = vpack.c.bf16 %v886_v37, %v884_v35  ;;  %v3103_v40 = vpack.c.bf16 %v1126_v38, %v1124_v36 }
 0x113   :  { %2691 = vst [vmem:[%s3960_s2 + $0x54] sm:$0xff] %v3007_v39  ;;  %2787 = vst [vmem:[%s3960_s2 + $0x294] sm:$0xff] %v3103_v40 }
 0x115   :  { %v890_v41 = vpop.f32.mrb[16].mxu0  ;;  %v1130_v42 = vpop.f32.mrb[16].mxu1 }
 0x116   :  { %v892_v43 = vpop.f32.mrb[17].mxu0  ;;  %v1132_v44 = vpop.f32.mrb[17].mxu1 }
 0x117   :  { %v3009_v45 = vpack.c.bf16 %v892_v43, %v890_v41  ;;  %v3105_v46 = vpack.c.bf16 %v1132_v44, %v1130_v42  ;;  %v894_v47 = vpop.f32.mrb[18].mxu0  ;;  %v1134_v48 = vpop.f32.mrb[18].mxu1 }
 0x118   :  { %v896_v49 = vpop.f32.mrb[19].mxu0  ;;  %v1136_v50 = vpop.f32.mrb[19].mxu1 }
 0x119   :  { %2693 = vst [vmem:[%s3960_s2 + $0x60] sm:$0xff] %v3009_v45  ;;  %2789 = vst [vmem:[%s3960_s2 + $0x2a0] sm:$0xff] %v3105_v46  ;;  %v3011_v51 = vpack.c.bf16 %v896_v49, %v894_v47  ;;  %v3107_v52 = vpack.c.bf16 %v1136_v50, %v1134_v48 }
 0x11b   :  { %2695 = vst [vmem:[%s3960_s2 + $0x6c] sm:$0xff] %v3011_v51  ;;  %2791 = vst [vmem:[%s3960_s2 + $0x2ac] sm:$0xff] %v3107_v52 }
 0x11d   :  { %v900_v53 = vpop.f32.mrb[20].mxu0  ;;  %v1140_v54 = vpop.f32.mrb[20].mxu1 }
 0x11e   :  { %v902_v55 = vpop.f32.mrb[21].mxu0  ;;  %v1142_v56 = vpop.f32.mrb[21].mxu1 }
 0x11f   :  { %v3013_v57 = vpack.c.bf16 %v902_v55, %v900_v53  ;;  %v3109_v58 = vpack.c.bf16 %v1142_v56, %v1140_v54  ;;  %v904_v59 = vpop.f32.mrb[22].mxu0  ;;  %v1144_v60 = vpop.f32.mrb[22].mxu1 }
 0x120   :  { %v906_v61 = vpop.f32.mrb[23].mxu0  ;;  %v1146_v62 = vpop.f32.mrb[23].mxu1 }
 0x121   :  { %2697 = vst [vmem:[%s3960_s2 + $0x78] sm:$0xff] %v3013_v57  ;;  %2793 = vst [vmem:[%s3960_s2 + $0x2b8] sm:$0xff] %v3109_v58  ;;  %v3015_v63 = vpack.c.bf16 %v906_v61, %v904_v59  ;;  %v3111_v0 = vpack.c.bf16 %v1146_v62, %v1144_v60 }
 0x123   :  { %2699 = vst [vmem:[%s3960_s2 + $0x84] sm:$0xff] %v3015_v63  ;;  %2795 = vst [vmem:[%s3960_s2 + $0x2c4] sm:$0xff] %v3111_v0 }
 0x125   :  { %v910_v2 = vpop.f32.mrb[24].mxu0  ;;  %v1150_v3 = vpop.f32.mrb[24].mxu1 }
 0x126   :  { %v912_v1 = vpop.f32.mrb[25].mxu0  ;;  %v1152_v4 = vpop.f32.mrb[25].mxu1 }
 0x127   :  { %v3017_v5 = vpack.c.bf16 %v912_v1, %v910_v2  ;;  %v3113_v6 = vpack.c.bf16 %v1152_v4, %v1150_v3  ;;  %v914_v7 = vpop.f32.mrb[26].mxu0  ;;  %v1154_v8 = vpop.f32.mrb[26].mxu1 }
 0x128   :  { %v916_v9 = vpop.f32.mrb[27].mxu0  ;;  %v1156_v10 = vpop.f32.mrb[27].mxu1 }
 0x129   :  { %2701 = vst [vmem:[%s3960_s2 + $0x90] sm:$0xff] %v3017_v5  ;;  %2797 = vst [vmem:[%s3960_s2 + $0x2d0] sm:$0xff] %v3113_v6  ;;  %v3019_v11 = vpack.c.bf16 %v916_v9, %v914_v7  ;;  %v3115_v12 = vpack.c.bf16 %v1156_v10, %v1154_v8 }
 0x12b   :  { %2703 = vst [vmem:[%s3960_s2 + $0x9c] sm:$0xff] %v3019_v11  ;;  %2799 = vst [vmem:[%s3960_s2 + $0x2dc] sm:$0xff] %v3115_v12 }
 0x12d   :  { %v920_v13 = vpop.f32.mrb[28].mxu0  ;;  %v1160_v14 = vpop.f32.mrb[28].mxu1 }
 0x12e   :  { %v922_v15 = vpop.f32.mrb[29].mxu0  ;;  %v1162_v16 = vpop.f32.mrb[29].mxu1 }
 0x12f   :  { %v3021_v17 = vpack.c.bf16 %v922_v15, %v920_v13  ;;  %v3117_v18 = vpack.c.bf16 %v1162_v16, %v1160_v14  ;;  %v924_v19 = vpop.f32.mrb[30].mxu0  ;;  %v1164_v20 = vpop.f32.mrb[30].mxu1 }
 0x130   :  { %v926_v21 = vpop.f32.mrb[31].mxu0  ;;  %v1166_v22 = vpop.f32.mrb[31].mxu1 }
 0x131   :  { %2705 = vst [vmem:[%s3960_s2 + $0xa8] sm:$0xff] %v3021_v17  ;;  %2801 = vst [vmem:[%s3960_s2 + $0x2e8] sm:$0xff] %v3117_v18  ;;  %v3023_v23 = vpack.c.bf16 %v926_v21, %v924_v19  ;;  %v3119_v24 = vpack.c.bf16 %v1166_v22, %v1164_v20 }
 0x133   :  { %2707 = vst [vmem:[%s3960_s2 + $0xb4] sm:$0xff] %v3023_v23  ;;  %2803 = vst [vmem:[%s3960_s2 + $0x2f4] sm:$0xff] %v3119_v24 }
 0x135   :  { %v930_v25 = vpop.f32.mrb[32].mxu0  ;;  %v3179_v26 = vpop.f32.mrb[32].mxu1 }
 0x136   :  { %v2998_v27 = vpack.c.bf16 %v3179_v26, %v3179_v26  ;;  %v932_v28 = vpop.f32.mrb[33].mxu0  ;;  %v1203_v29 = vpop.f32.mrb[33].mxu1 }
 0x137   :  { %v3025_v30 = vpack.c.bf16 %v932_v28, %v930_v25  ;;  %v2994_v31 = vpack.c.bf16 %v1203_v29, %v1203_v29  ;;  %v934_v32 = vpop.f32.mrb[34].mxu0  ;;  %v3180_v33 = vpop.f32.mrb[34].mxu1 }
 0x138   :  { %2682 = vst [vmem:[%s3960_s2 + $0x20] sm:$0xf] %v2998_v27  ;;  %v3000_v34 = vpack.c.bf16 %v3180_v33, %v3180_v33  ;;  %v936_v35 = vpop.f32.mrb[35].mxu0  ;;  %v1206_v36 = vpop.f32.mrb[35].mxu1 }
 0x139   :  { %2709 = vst [vmem:[%s3960_s2 + $0xc0] sm:$0xff] %v3025_v30  ;;  %2678 = vst [vmem:[%s3960_s2 + $0x8] sm:$0xf] %v2994_v31  ;;  %v3027_v37 = vpack.c.bf16 %v936_v35, %v934_v32  ;;  %v2996_v38 = vpack.c.bf16 %v1206_v36, %v1206_v36 }
 0x13a   :  { %2684 = vst [vmem:[%s3960_s2 + $0x2c] sm:$0xf] %v3000_v34 }
 0x13b   :  { %2711 = vst [vmem:[%s3960_s2 + $0xcc] sm:$0xff] %v3027_v37  ;;  %2680 = vst [vmem:[%s3960_s2 + $0x14] sm:$0xf] %v2996_v38 }
 0x13d   :  { %v940_v39 = vpop.f32.mrb[36].mxu0  ;;  %v3183_v40 = vpop.f32.mrb[36].mxu1 }
 0x13e   :  { %v3006_v41 = vpack.c.bf16 %v3183_v40, %v3183_v40  ;;  %v942_v42 = vpop.f32.mrb[37].mxu0  ;;  %v1219_v43 = vpop.f32.mrb[37].mxu1 }
 0x13f   :  { %v3029_v44 = vpack.c.bf16 %v942_v42, %v940_v39  ;;  %v3002_v45 = vpack.c.bf16 %v1219_v43, %v1219_v43  ;;  %v944_v46 = vpop.f32.mrb[38].mxu0  ;;  %v3184_v47 = vpop.f32.mrb[38].mxu1 }
 0x140   :  { %2690 = vst [vmem:[%s3960_s2 + $0x50] sm:$0xf] %v3006_v41  ;;  %v3008_v48 = vpack.c.bf16 %v3184_v47, %v3184_v47  ;;  %v946_v49 = vpop.f32.mrb[39].mxu0  ;;  %v1222_v50 = vpop.f32.mrb[39].mxu1 }
 0x141   :  { %2713 = vst [vmem:[%s3960_s2 + $0xd8] sm:$0xff] %v3029_v44  ;;  %2686 = vst [vmem:[%s3960_s2 + $0x38] sm:$0xf] %v3002_v45  ;;  %v3031_v51 = vpack.c.bf16 %v946_v49, %v944_v46  ;;  %v3004_v52 = vpack.c.bf16 %v1222_v50, %v1222_v50 }
 0x142   :  { %2692 = vst [vmem:[%s3960_s2 + $0x5c] sm:$0xf] %v3008_v48 }
 0x143   :  { %2715 = vst [vmem:[%s3960_s2 + $0xe4] sm:$0xff] %v3031_v51  ;;  %2688 = vst [vmem:[%s3960_s2 + $0x44] sm:$0xf] %v3004_v52 }
 0x145   :  { %v950_v53 = vpop.f32.mrb[40].mxu0  ;;  %v3187_v54 = vpop.f32.mrb[40].mxu1 }
 0x146   :  { %v3014_v55 = vpack.c.bf16 %v3187_v54, %v3187_v54  ;;  %v952_v56 = vpop.f32.mrb[41].mxu0  ;;  %v1235_v57 = vpop.f32.mrb[41].mxu1 }
 0x147   :  { %v3033_v58 = vpack.c.bf16 %v952_v56, %v950_v53  ;;  %v3010_v59 = vpack.c.bf16 %v1235_v57, %v1235_v57  ;;  %v954_v60 = vpop.f32.mrb[42].mxu0  ;;  %v3188_v61 = vpop.f32.mrb[42].mxu1 }
 0x148   :  { %2698 = vst [vmem:[%s3960_s2 + $0x80] sm:$0xf] %v3014_v55  ;;  %v3016_v62 = vpack.c.bf16 %v3188_v61, %v3188_v61  ;;  %v956_v63 = vpop.f32.mrb[43].mxu0  ;;  %v1238_v0 = vpop.f32.mrb[43].mxu1 }
 0x149   :  { %2717 = vst [vmem:[%s3960_s2 + $0xf0] sm:$0xff] %v3033_v58  ;;  %2694 = vst [vmem:[%s3960_s2 + $0x68] sm:$0xf] %v3010_v59  ;;  %v3035_v2 = vpack.c.bf16 %v956_v63, %v954_v60  ;;  %v3012_v3 = vpack.c.bf16 %v1238_v0, %v1238_v0 }
 0x14a   :  { %2700 = vst [vmem:[%s3960_s2 + $0x8c] sm:$0xf] %v3016_v62 }
 0x14b   :  { %2719 = vst [vmem:[%s3960_s2 + $0xfc] sm:$0xff] %v3035_v2  ;;  %2696 = vst [vmem:[%s3960_s2 + $0x74] sm:$0xf] %v3012_v3 }
 0x14d   :  { %v960_v1 = vpop.f32.mrb[44].mxu0  ;;  %v3191_v4 = vpop.f32.mrb[44].mxu1 }
 0x14e   :  { %v3022_v5 = vpack.c.bf16 %v3191_v4, %v3191_v4  ;;  %v962_v6 = vpop.f32.mrb[45].mxu0  ;;  %v1251_v7 = vpop.f32.mrb[45].mxu1 }
 0x14f   :  { %v3037_v8 = vpack.c.bf16 %v962_v6, %v960_v1  ;;  %v3018_v9 = vpack.c.bf16 %v1251_v7, %v1251_v7  ;;  %v964_v10 = vpop.f32.mrb[46].mxu0  ;;  %v3192_v11 = vpop.f32.mrb[46].mxu1 }
 0x150   :  { %2706 = vst [vmem:[%s3960_s2 + $0xb0] sm:$0xf] %v3022_v5  ;;  %v3024_v12 = vpack.c.bf16 %v3192_v11, %v3192_v11  ;;  %v966_v13 = vpop.f32.mrb[47].mxu0  ;;  %v1254_v14 = vpop.f32.mrb[47].mxu1 }
 0x151   :  { %2721 = vst [vmem:[%s3960_s2 + $0x108] sm:$0xff] %v3037_v8  ;;  %2702 = vst [vmem:[%s3960_s2 + $0x98] sm:$0xf] %v3018_v9  ;;  %v3039_v15 = vpack.c.bf16 %v966_v13, %v964_v10  ;;  %v3020_v16 = vpack.c.bf16 %v1254_v14, %v1254_v14 }
 0x152   :  { %2708 = vst [vmem:[%s3960_s2 + $0xbc] sm:$0xf] %v3024_v12 }
 0x153   :  { %2723 = vst [vmem:[%s3960_s2 + $0x114] sm:$0xff] %v3039_v15  ;;  %2704 = vst [vmem:[%s3960_s2 + $0xa4] sm:$0xf] %v3020_v16 }
 0x155   :  { %v970_v17 = vpop.f32.mrb[48].mxu0  ;;  %v3195_v18 = vpop.f32.mrb[48].mxu1 }
 0x156   :  { %v3030_v19 = vpack.c.bf16 %v3195_v18, %v3195_v18  ;;  %v972_v20 = vpop.f32.mrb[49].mxu0  ;;  %v1267_v21 = vpop.f32.mrb[49].mxu1 }
 0x157   :  { %v3041_v22 = vpack.c.bf16 %v972_v20, %v970_v17  ;;  %v3026_v23 = vpack.c.bf16 %v1267_v21, %v1267_v21  ;;  %v974_v24 = vpop.f32.mrb[50].mxu0  ;;  %v3196_v25 = vpop.f32.mrb[50].mxu1 }
 0x158   :  { %2714 = vst [vmem:[%s3960_s2 + $0xe0] sm:$0xf] %v3030_v19  ;;  %v3032_v26 = vpack.c.bf16 %v3196_v25, %v3196_v25  ;;  %v976_v27 = vpop.f32.mrb[51].mxu0  ;;  %v1270_v28 = vpop.f32.mrb[51].mxu1 }
 0x159   :  { %2725 = vst [vmem:[%s3960_s2 + $0x120] sm:$0xff] %v3041_v22  ;;  %2710 = vst [vmem:[%s3960_s2 + $0xc8] sm:$0xf] %v3026_v23  ;;  %v3043_v29 = vpack.c.bf16 %v976_v27, %v974_v24  ;;  %v3028_v30 = vpack.c.bf16 %v1270_v28, %v1270_v28 }
 0x15a   :  { %2716 = vst [vmem:[%s3960_s2 + $0xec] sm:$0xf] %v3032_v26 }
 0x15b   :  { %2727 = vst [vmem:[%s3960_s2 + $0x12c] sm:$0xff] %v3043_v29  ;;  %2712 = vst [vmem:[%s3960_s2 + $0xd4] sm:$0xf] %v3028_v30 }
 0x15d   :  { %v980_v31 = vpop.f32.mrb[52].mxu0  ;;  %v3199_v32 = vpop.f32.mrb[52].mxu1 }
 0x15e   :  { %v3038_v33 = vpack.c.bf16 %v3199_v32, %v3199_v32  ;;  %v982_v34 = vpop.f32.mrb[53].mxu0  ;;  %v1283_v35 = vpop.f32.mrb[53].mxu1 }
 0x15f   :  { %v3045_v36 = vpack.c.bf16 %v982_v34, %v980_v31  ;;  %v3034_v37 = vpack.c.bf16 %v1283_v35, %v1283_v35  ;;  %v984_v38 = vpop.f32.mrb[54].mxu0  ;;  %v3200_v39 = vpop.f32.mrb[54].mxu1 }
 0x160   :  { %2722 = vst [vmem:[%s3960_s2 + $0x110] sm:$0xf] %v3038_v33  ;;  %v3040_v40 = vpack.c.bf16 %v3200_v39, %v3200_v39  ;;  %v986_v41 = vpop.f32.mrb[55].mxu0  ;;  %v1286_v42 = vpop.f32.mrb[55].mxu1 }
 0x161   :  { %2729 = vst [vmem:[%s3960_s2 + $0x138] sm:$0xff] %v3045_v36  ;;  %2718 = vst [vmem:[%s3960_s2 + $0xf8] sm:$0xf] %v3034_v37  ;;  %v3047_v43 = vpack.c.bf16 %v986_v41, %v984_v38  ;;  %v3036_v44 = vpack.c.bf16 %v1286_v42, %v1286_v42 }
 0x162   :  { %2724 = vst [vmem:[%s3960_s2 + $0x11c] sm:$0xf] %v3040_v40 }
 0x163   :  { %2731 = vst [vmem:[%s3960_s2 + $0x144] sm:$0xff] %v3047_v43  ;;  %2720 = vst [vmem:[%s3960_s2 + $0x104] sm:$0xf] %v3036_v44 }
 0x165   :  { %v990_v45 = vpop.f32.mrb[56].mxu0  ;;  %v3203_v46 = vpop.f32.mrb[56].mxu1 }
 0x166   :  { %v3046_v47 = vpack.c.bf16 %v3203_v46, %v3203_v46  ;;  %v992_v48 = vpop.f32.mrb[57].mxu0  ;;  %v1299_v49 = vpop.f32.mrb[57].mxu1 }
 0x167   :  { %v3049_v50 = vpack.c.bf16 %v992_v48, %v990_v45  ;;  %v3042_v51 = vpack.c.bf16 %v1299_v49, %v1299_v49  ;;  %v994_v52 = vpop.f32.mrb[58].mxu0  ;;  %v3204_v53 = vpop.f32.mrb[58].mxu1 }
 0x168   :  { %2730 = vst [vmem:[%s3960_s2 + $0x140] sm:$0xf] %v3046_v47  ;;  %v3048_v54 = vpack.c.bf16 %v3204_v53, %v3204_v53  ;;  %v996_v55 = vpop.f32.mrb[59].mxu0  ;;  %v1302_v56 = vpop.f32.mrb[59].mxu1 }
 0x169   :  { %2733 = vst [vmem:[%s3960_s2 + $0x150] sm:$0xff] %v3049_v50  ;;  %2726 = vst [vmem:[%s3960_s2 + $0x128] sm:$0xf] %v3042_v51  ;;  %v3051_v57 = vpack.c.bf16 %v996_v55, %v994_v52  ;;  %v3044_v58 = vpack.c.bf16 %v1302_v56, %v1302_v56 }
 0x16a   :  { %2732 = vst [vmem:[%s3960_s2 + $0x14c] sm:$0xf] %v3048_v54 }
 0x16b   :  { %2735 = vst [vmem:[%s3960_s2 + $0x15c] sm:$0xff] %v3051_v57  ;;  %2728 = vst [vmem:[%s3960_s2 + $0x134] sm:$0xf] %v3044_v58 }
 0x16d   :  { %v1000_v59 = vpop.f32.mrb[60].mxu0  ;;  %v3207_v60 = vpop.f32.mrb[60].mxu1 }
 0x16e   :  { %v3054_v61 = vpack.c.bf16 %v3207_v60, %v3207_v60  ;;  %v1002_v62 = vpop.f32.mrb[61].mxu0  ;;  %v1315_v63 = vpop.f32.mrb[61].mxu1 }
 0x16f   :  { %v3053_v0 = vpack.c.bf16 %v1002_v62, %v1000_v59  ;;  %v3050_v2 = vpack.c.bf16 %v1315_v63, %v1315_v63  ;;  %v1004_v3 = vpop.f32.mrb[62].mxu0  ;;  %v3208_v1 = vpop.f32.mrb[62].mxu1 }
 0x170   :  { %2738 = vst [vmem:[%s3960_s2 + $0x170] sm:$0xf] %v3054_v61  ;;  %v3056_v4 = vpack.c.bf16 %v3208_v1, %v3208_v1  ;;  %v1006_v5 = vpop.f32.mrb[63].mxu0  ;;  %v1318_v6 = vpop.f32.mrb[63].mxu1 }
 0x171   :  { %2737 = vst [vmem:[%s3960_s2 + $0x168] sm:$0xff] %v3053_v0  ;;  %2734 = vst [vmem:[%s3960_s2 + $0x158] sm:$0xf] %v3050_v2  ;;  %v3055_v7 = vpack.c.bf16 %v1006_v5, %v1004_v3  ;;  %v3052_v8 = vpack.c.bf16 %v1318_v6, %v1318_v6 }
 0x172   :  { %2740 = vst [vmem:[%s3960_s2 + $0x17c] sm:$0xf] %v3056_v4 }
 0x173   :  { %2739 = vst [vmem:[%s3960_s2 + $0x174] sm:$0xff] %v3055_v7  ;;  %2736 = vst [vmem:[%s3960_s2 + $0x164] sm:$0xf] %v3052_v8 }
 0x175   :  { %v1010_v9 = vpop.f32.mrb[64].mxu0  ;;  %v3211_v10 = vpop.f32.mrb[64].mxu1 }
 0x176   :  { %v3062_v11 = vpack.c.bf16 %v3211_v10, %v3211_v10  ;;  %v1012_v12 = vpop.f32.mrb[65].mxu0  ;;  %v1331_v13 = vpop.f32.mrb[65].mxu1 }
 0x177   :  { %v3057_v14 = vpack.c.bf16 %v1012_v12, %v1010_v9  ;;  %v3058_v15 = vpack.c.bf16 %v1331_v13, %v1331_v13  ;;  %v1014_v16 = vpop.f32.mrb[66].mxu0  ;;  %v3212_v17 = vpop.f32.mrb[66].mxu1 }
 0x178   :  { %2746 = vst [vmem:[%s3960_s2 + $0x1a0] sm:$0xf] %v3062_v11  ;;  %v3064_v18 = vpack.c.bf16 %v3212_v17, %v3212_v17  ;;  %v1016_v19 = vpop.f32.mrb[67].mxu0  ;;  %v1334_v20 = vpop.f32.mrb[67].mxu1 }
 0x179   :  { %2741 = vst [vmem:[%s3960_s2 + $0x180] sm:$0xff] %v3057_v14  ;;  %2742 = vst [vmem:[%s3960_s2 + $0x188] sm:$0xf] %v3058_v15  ;;  %v3059_v21 = vpack.c.bf16 %v1016_v19, %v1014_v16  ;;  %v3060_v22 = vpack.c.bf16 %v1334_v20, %v1334_v20 }
 0x17a   :  { %2748 = vst [vmem:[%s3960_s2 + $0x1ac] sm:$0xf] %v3064_v18 }
 0x17b   :  { %2743 = vst [vmem:[%s3960_s2 + $0x18c] sm:$0xff] %v3059_v21  ;;  %2744 = vst [vmem:[%s3960_s2 + $0x194] sm:$0xf] %v3060_v22 }
 0x17d   :  { %v1020_v23 = vpop.f32.mrb[68].mxu0  ;;  %v3215_v24 = vpop.f32.mrb[68].mxu1 }
 0x17e   :  { %v3070_v25 = vpack.c.bf16 %v3215_v24, %v3215_v24  ;;  %v1022_v26 = vpop.f32.mrb[69].mxu0  ;;  %v1347_v27 = vpop.f32.mrb[69].mxu1 }
 0x17f   :  { %v3061_v28 = vpack.c.bf16 %v1022_v26, %v1020_v23  ;;  %v3066_v29 = vpack.c.bf16 %v1347_v27, %v1347_v27  ;;  %v1024_v30 = vpop.f32.mrb[70].mxu0  ;;  %v3216_v31 = vpop.f32.mrb[70].mxu1 }
 0x180   :  { %2754 = vst [vmem:[%s3960_s2 + $0x1d0] sm:$0xf] %v3070_v25  ;;  %v3072_v32 = vpack.c.bf16 %v3216_v31, %v3216_v31  ;;  %v1026_v33 = vpop.f32.mrb[71].mxu0  ;;  %v1350_v34 = vpop.f32.mrb[71].mxu1 }
 0x181   :  { %2745 = vst [vmem:[%s3960_s2 + $0x198] sm:$0xff] %v3061_v28  ;;  %2750 = vst [vmem:[%s3960_s2 + $0x1b8] sm:$0xf] %v3066_v29  ;;  %v3063_v35 = vpack.c.bf16 %v1026_v33, %v1024_v30  ;;  %v3068_v36 = vpack.c.bf16 %v1350_v34, %v1350_v34 }
 0x182   :  { %2756 = vst [vmem:[%s3960_s2 + $0x1dc] sm:$0xf] %v3072_v32 }
 0x183   :  { %2747 = vst [vmem:[%s3960_s2 + $0x1a4] sm:$0xff] %v3063_v35  ;;  %2752 = vst [vmem:[%s3960_s2 + $0x1c4] sm:$0xf] %v3068_v36 }
 0x185   :  { %v1030_v37 = vpop.f32.mrb[72].mxu0  ;;  %v3219_v38 = vpop.f32.mrb[72].mxu1 }
 0x186   :  { %v3078_v39 = vpack.c.bf16 %v3219_v38, %v3219_v38  ;;  %v1032_v40 = vpop.f32.mrb[73].mxu0  ;;  %v1363_v41 = vpop.f32.mrb[73].mxu1 }
 0x187   :  { %v3065_v42 = vpack.c.bf16 %v1032_v40, %v1030_v37  ;;  %v3074_v43 = vpack.c.bf16 %v1363_v41, %v1363_v41  ;;  %v1034_v44 = vpop.f32.mrb[74].mxu0  ;;  %v3220_v45 = vpop.f32.mrb[74].mxu1 }
 0x188   :  { %2762 = vst [vmem:[%s3960_s2 + $0x200] sm:$0xf] %v3078_v39  ;;  %v3080_v46 = vpack.c.bf16 %v3220_v45, %v3220_v45  ;;  %v1036_v47 = vpop.f32.mrb[75].mxu0  ;;  %v1366_v48 = vpop.f32.mrb[75].mxu1 }
 0x189   :  { %2749 = vst [vmem:[%s3960_s2 + $0x1b0] sm:$0xff] %v3065_v42  ;;  %2758 = vst [vmem:[%s3960_s2 + $0x1e8] sm:$0xf] %v3074_v43  ;;  %v3067_v49 = vpack.c.bf16 %v1036_v47, %v1034_v44  ;;  %v3076_v50 = vpack.c.bf16 %v1366_v48, %v1366_v48 }
 0x18a   :  { %2764 = vst [vmem:[%s3960_s2 + $0x20c] sm:$0xf] %v3080_v46 }
 0x18b   :  { %2751 = vst [vmem:[%s3960_s2 + $0x1bc] sm:$0xff] %v3067_v49  ;;  %2760 = vst [vmem:[%s3960_s2 + $0x1f4] sm:$0xf] %v3076_v50 }
 0x18d   :  { %v1040_v51 = vpop.f32.mrb[76].mxu0  ;;  %v3223_v52 = vpop.f32.mrb[76].mxu1 }
 0x18e   :  { %v3086_v53 = vpack.c.bf16 %v3223_v52, %v3223_v52  ;;  %v1042_v54 = vpop.f32.mrb[77].mxu0  ;;  %v1379_v55 = vpop.f32.mrb[77].mxu1 }
 0x18f   :  { %v3069_v56 = vpack.c.bf16 %v1042_v54, %v1040_v51  ;;  %v3082_v57 = vpack.c.bf16 %v1379_v55, %v1379_v55  ;;  %v1044_v58 = vpop.f32.mrb[78].mxu0  ;;  %v3224_v59 = vpop.f32.mrb[78].mxu1 }
 0x190   :  { %2770 = vst [vmem:[%s3960_s2 + $0x230] sm:$0xf] %v3086_v53  ;;  %v3088_v60 = vpack.c.bf16 %v3224_v59, %v3224_v59  ;;  %v1046_v61 = vpop.f32.mrb[79].mxu0  ;;  %v1382_v62 = vpop.f32.mrb[79].mxu1 }
 0x191   :  { %2753 = vst [vmem:[%s3960_s2 + $0x1c8] sm:$0xff] %v3069_v56  ;;  %2766 = vst [vmem:[%s3960_s2 + $0x218] sm:$0xf] %v3082_v57  ;;  %v3071_v63 = vpack.c.bf16 %v1046_v61, %v1044_v58  ;;  %v3084_v0 = vpack.c.bf16 %v1382_v62, %v1382_v62 }
 0x192   :  { %2772 = vst [vmem:[%s3960_s2 + $0x23c] sm:$0xf] %v3088_v60 }
 0x193   :  { %2755 = vst [vmem:[%s3960_s2 + $0x1d4] sm:$0xff] %v3071_v63  ;;  %2768 = vst [vmem:[%s3960_s2 + $0x224] sm:$0xf] %v3084_v0 }
 0x195   :  { %v1050_v2 = vpop.f32.mrb[80].mxu0  ;;  %v3227_v3 = vpop.f32.mrb[80].mxu1 }
 0x196   :  { %v3094_v1 = vpack.c.bf16 %v3227_v3, %v3227_v3  ;;  %v1052_v4 = vpop.f32.mrb[81].mxu0  ;;  %v1395_v5 = vpop.f32.mrb[81].mxu1 }
 0x197   :  { %v3073_v6 = vpack.c.bf16 %v1052_v4, %v1050_v2  ;;  %v3090_v7 = vpack.c.bf16 %v1395_v5, %v1395_v5  ;;  %v1054_v8 = vpop.f32.mrb[82].mxu0  ;;  %v3228_v9 = vpop.f32.mrb[82].mxu1 }
 0x198   :  { %2778 = vst [vmem:[%s3960_s2 + $0x260] sm:$0xf] %v3094_v1  ;;  %v3096_v10 = vpack.c.bf16 %v3228_v9, %v3228_v9  ;;  %v1056_v11 = vpop.f32.mrb[83].mxu0  ;;  %v1398_v12 = vpop.f32.mrb[83].mxu1 }
 0x199   :  { %2757 = vst [vmem:[%s3960_s2 + $0x1e0] sm:$0xff] %v3073_v6  ;;  %2774 = vst [vmem:[%s3960_s2 + $0x248] sm:$0xf] %v3090_v7  ;;  %v3075_v13 = vpack.c.bf16 %v1056_v11, %v1054_v8  ;;  %v3092_v14 = vpack.c.bf16 %v1398_v12, %v1398_v12 }
 0x19a   :  { %2780 = vst [vmem:[%s3960_s2 + $0x26c] sm:$0xf] %v3096_v10 }
 0x19b   :  { %2759 = vst [vmem:[%s3960_s2 + $0x1ec] sm:$0xff] %v3075_v13  ;;  %2776 = vst [vmem:[%s3960_s2 + $0x254] sm:$0xf] %v3092_v14 }
 0x19d   :  { %v1060_v15 = vpop.f32.mrb[84].mxu0  ;;  %v3231_v16 = vpop.f32.mrb[84].mxu1 }
 0x19e   :  { %v3102_v17 = vpack.c.bf16 %v3231_v16, %v3231_v16  ;;  %v1062_v18 = vpop.f32.mrb[85].mxu0  ;;  %v1411_v19 = vpop.f32.mrb[85].mxu1 }
 0x19f   :  { %v3077_v20 = vpack.c.bf16 %v1062_v18, %v1060_v15  ;;  %v3098_v21 = vpack.c.bf16 %v1411_v19, %v1411_v19  ;;  %v1064_v22 = vpop.f32.mrb[86].mxu0  ;;  %v3232_v23 = vpop.f32.mrb[86].mxu1 }
 0x1a0   :  { %2786 = vst [vmem:[%s3960_s2 + $0x290] sm:$0xf] %v3102_v17  ;;  %v3104_v24 = vpack.c.bf16 %v3232_v23, %v3232_v23  ;;  %v1066_v25 = vpop.f32.mrb[87].mxu0  ;;  %v1414_v26 = vpop.f32.mrb[87].mxu1 }
 0x1a1   :  { %2761 = vst [vmem:[%s3960_s2 + $0x1f8] sm:$0xff] %v3077_v20  ;;  %2782 = vst [vmem:[%s3960_s2 + $0x278] sm:$0xf] %v3098_v21  ;;  %v3079_v27 = vpack.c.bf16 %v1066_v25, %v1064_v22  ;;  %v3100_v28 = vpack.c.bf16 %v1414_v26, %v1414_v26 }
 0x1a2   :  { %2788 = vst [vmem:[%s3960_s2 + $0x29c] sm:$0xf] %v3104_v24 }
 0x1a3   :  { %2763 = vst [vmem:[%s3960_s2 + $0x204] sm:$0xff] %v3079_v27  ;;  %2784 = vst [vmem:[%s3960_s2 + $0x284] sm:$0xf] %v3100_v28 }
 0x1a5   :  { %v1070_v29 = vpop.f32.mrb[88].mxu0  ;;  %v3235_v30 = vpop.f32.mrb[88].mxu1 }
 0x1a6   :  { %v3110_v31 = vpack.c.bf16 %v3235_v30, %v3235_v30  ;;  %v1072_v32 = vpop.f32.mrb[89].mxu0  ;;  %v1427_v33 = vpop.f32.mrb[89].mxu1 }
 0x1a7   :  { %v3081_v34 = vpack.c.bf16 %v1072_v32, %v1070_v29  ;;  %v3106_v35 = vpack.c.bf16 %v1427_v33, %v1427_v33  ;;  %v1074_v36 = vpop.f32.mrb[90].mxu0  ;;  %v3236_v37 = vpop.f32.mrb[90].mxu1 }
 0x1a8   :  { %2794 = vst [vmem:[%s3960_s2 + $0x2c0] sm:$0xf] %v3110_v31  ;;  %v3112_v38 = vpack.c.bf16 %v3236_v37, %v3236_v37  ;;  %v1076_v39 = vpop.f32.mrb[91].mxu0  ;;  %v1430_v40 = vpop.f32.mrb[91].mxu1 }
 0x1a9   :  { %2765 = vst [vmem:[%s3960_s2 + $0x210] sm:$0xff] %v3081_v34  ;;  %2790 = vst [vmem:[%s3960_s2 + $0x2a8] sm:$0xf] %v3106_v35  ;;  %v3083_v41 = vpack.c.bf16 %v1076_v39, %v1074_v36  ;;  %v3108_v42 = vpack.c.bf16 %v1430_v40, %v1430_v40 }
 0x1aa   :  { %2796 = vst [vmem:[%s3960_s2 + $0x2cc] sm:$0xf] %v3112_v38 }
 0x1ab   :  { %2767 = vst [vmem:[%s3960_s2 + $0x21c] sm:$0xff] %v3083_v41  ;;  %2792 = vst [vmem:[%s3960_s2 + $0x2b4] sm:$0xf] %v3108_v42 }
 0x1ad   :  { %v1080_v43 = vpop.f32.mrb[92].mxu0  ;;  %v3239_v44 = vpop.f32.mrb[92].mxu1 }
 0x1ae   :  { %v3118_v45 = vpack.c.bf16 %v3239_v44, %v3239_v44  ;;  %v1082_v46 = vpop.f32.mrb[93].mxu0  ;;  %v1443_v47 = vpop.f32.mrb[93].mxu1 }
 0x1af   :  { %v3085_v48 = vpack.c.bf16 %v1082_v46, %v1080_v43  ;;  %v3114_v49 = vpack.c.bf16 %v1443_v47, %v1443_v47  ;;  %v1084_v50 = vpop.f32.mrb[94].mxu0  ;;  %v3240_v51 = vpop.f32.mrb[94].mxu1 }
 0x1b0   :  { %2802 = vst [vmem:[%s3960_s2 + $0x2f0] sm:$0xf] %v3118_v45  ;;  %v3120_v52 = vpack.c.bf16 %v3240_v51, %v3240_v51  ;;  %v1086_v53 = vpop.f32.mrb[95].mxu0  ;;  %v1446_v54 = vpop.f32.mrb[95].mxu1 }
 0x1b1   :  { %2769 = vst [vmem:[%s3960_s2 + $0x228] sm:$0xff] %v3085_v48  ;;  %2798 = vst [vmem:[%s3960_s2 + $0x2d8] sm:$0xf] %v3114_v49  ;;  %v3087_v55 = vpack.c.bf16 %v1086_v53, %v1084_v50  ;;  %v3116_v56 = vpack.c.bf16 %v1446_v54, %v1446_v54 }
 0x1b2   :  { %2804 = vst [vmem:[%s3960_s2 + $0x2fc] sm:$0xf] %v3120_v52 }
 0x1b3   :  { %2771 = vst [vmem:[%s3960_s2 + $0x234] sm:$0xff] %v3087_v55  ;;  %2800 = vst [vmem:[%s3960_s2 + $0x2e4] sm:$0xf] %v3116_v56 }

// kernel: digcn_ib_forward.4
= control target key start
LH: loop header
LB: loop body
LE: loop exit
PB: predicated region body
PF: predicated region fallthrough
CT: control target
= control target key end

     0   :  { %v10473_v2 = vmov 0   ;;  %s10465_s0 = inlined_call_operand.vmem [shape: bf16[512,512], index: 0, kind: input, shape index: {}]   ;;  %s10466_s1 = inlined_call_operand.vmem [shape: bf16[512,512], index: 1, kind: input, shape index: {}]   ;;  %s10467_s2 = inlined_call_operand.vmem [shape: bf16[512,384], index: 2, kind: input, shape index: {}, may-alias: {2,3,4}]   ;;  %s10468_s3 = inlined_call_operand.vmem [shape: bf16[512,384], index: 3, kind: input, shape index: {}, may-alias: {2,3,4}]   ;;  %s10469_s4 = inlined_call_operand.vmem [shape: bf16[512,384], index: 4, kind: input, shape index: {}, may-alias: {2,3,4}]   ;;  %s10470_s5 = inlined_call_operand.vmem [shape: f32[1,128], index: 5, kind: input, shape index: {}]   ;;  %s10471_s6 = inlined_call_operand.vmem [shape: bf16[128,384], index: 6, kind: input, shape index: {}]   ;;  %s10472_s7 = inlined_call_operand.vmem [shape: bf16[512,384], index: 7, kind: output, shape index: {}]  }
   0x1   :  { %v6384_v0 = vld [vmem:[%s10468_s3 + $0x8] sm:$0xf]  ;;  %v6385_v1 = vld [vmem:[%s10468_s3 + $0x14] sm:$0xf]  ;;  %2256 = vmatprep.subr.bf16.mxu0 %v10473_v2  ;;  %7328 = vmatprep.subr.bf16.mxu1 %v10473_v2  ;;  %v6386_v3 = vld [vmem:[%s10468_s3 + $0x20] sm:$0xf] }
   0x2   :  { %329 = vst [vmem:[#allocation4] sm:$0xf] %v6384_v0  ;;  %331 = vst [vmem:[#allocation4 + $0x4] sm:$0xf] %v6385_v1  ;;  %v6387_v4 = vld [vmem:[%s10468_s3 + $0x2c] sm:$0xf] }
   0x3   :  { %v6388_v5 = vld [vmem:[%s10468_s3 + $0x38] sm:$0xf]  ;;  %333 = vst [vmem:[#allocation4 + $0x8] sm:$0xf] %v6386_v3  ;;  %335 = vst [vmem:[#allocation4 + $0xc] sm:$0xf] %v6387_v4 }
   0x4   :  { %337 = vst [vmem:[#allocation4 + $0x10] sm:$0xf] %v6388_v5  ;;  %v6389_v6 = vld [vmem:[%s10468_s3 + $0x44] sm:$0xf]  ;;  %v6390_v7 = vld [vmem:[%s10468_s3 + $0x50] sm:$0xf] }
   0x5   :  { %v6391_v8 = vld [vmem:[%s10468_s3 + $0x5c] sm:$0xf]  ;;  %339 = vst [vmem:[#allocation4 + $0x14] sm:$0xf] %v6389_v6  ;;  %341 = vst [vmem:[#allocation4 + $0x18] sm:$0xf] %v6390_v7 }
   0x6   :  { %343 = vst [vmem:[#allocation4 + $0x1c] sm:$0xf] %v6391_v8  ;;  %v6392_v9 = vld [vmem:[%s10468_s3 + $0x68] sm:$0xf]  ;;  %v6393_v10 = vld [vmem:[%s10468_s3 + $0x74] sm:$0xf] }
   0x7   :  { %v6394_v11 = vld [vmem:[%s10468_s3 + $0x80] sm:$0xf]  ;;  %345 = vst [vmem:[#allocation4 + $0x20] sm:$0xf] %v6392_v9  ;;  %347 = vst [vmem:[#allocation4 + $0x24] sm:$0xf] %v6393_v10 }
   0x8   :  { %349 = vst [vmem:[#allocation4 + $0x28] sm:$0xf] %v6394_v11  ;;  %v6395_v12 = vld [vmem:[%s10468_s3 + $0x8c] sm:$0xf]  ;;  %v6396_v13 = vld [vmem:[%s10468_s3 + $0x98] sm:$0xf] }
   0x9   :  { %v6397_v14 = vld [vmem:[%s10468_s3 + $0xa4] sm:$0xf]  ;;  %351 = vst [vmem:[#allocation4 + $0x2c] sm:$0xf] %v6395_v12  ;;  %353 = vst [vmem:[#allocation4 + $0x30] sm:$0xf] %v6396_v13 }
   0xa   :  { %355 = vst [vmem:[#allocation4 + $0x34] sm:$0xf] %v6397_v14  ;;  %v6398_v15 = vld [vmem:[%s10468_s3 + $0xb0] sm:$0xf]  ;;  %v6399_v16 = vld [vmem:[%s10468_s3 + $0xbc] sm:$0xf] }
   0xb   :  { %v6400_v17 = vld [vmem:[%s10468_s3 + $0xc8] sm:$0xf]  ;;  %357 = vst [vmem:[#allocation4 + $0x38] sm:$0xf] %v6398_v15  ;;  %359 = vst [vmem:[#allocation4 + $0x3c] sm:$0xf] %v6399_v16 }
   0xc   :  { %361 = vst [vmem:[#allocation4 + $0x40] sm:$0xf] %v6400_v17  ;;  %v6401_v18 = vld [vmem:[%s10468_s3 + $0xd4] sm:$0xf]  ;;  %v6402_v19 = vld [vmem:[%s10468_s3 + $0xe0] sm:$0xf] }
   0xd   :  { %v6403_v20 = vld [vmem:[%s10468_s3 + $0xec] sm:$0xf]  ;;  %363 = vst [vmem:[#allocation4 + $0x44] sm:$0xf] %v6401_v18  ;;  %365 = vst [vmem:[#allocation4 + $0x48] sm:$0xf] %v6402_v19 }
   0xe   :  { %367 = vst [vmem:[#allocation4 + $0x4c] sm:$0xf] %v6403_v20  ;;  %v6404_v21 = vld [vmem:[%s10468_s3 + $0xf8] sm:$0xf]  ;;  %v6405_v22 = vld [vmem:[%s10468_s3 + $0x104] sm:$0xf] }
   0xf   :  { %v6406_v23 = vld [vmem:[%s10468_s3 + $0x110] sm:$0xf]  ;;  %v7361_v24 = vld [vmem:[#allocation4] sm:$0xff]   ;;  %369 = vst [vmem:[#allocation4 + $0x50] sm:$0xf] %v6404_v21  ;;  %v7362_v25 = vld [vmem:[#allocation4 + $0x8] sm:$0xff]  }
  0x10   :  { %371 = vst [vmem:[#allocation4 + $0x54] sm:$0xf] %v6405_v22  ;;  %373 = vst [vmem:[#allocation4 + $0x58] sm:$0xf] %v6406_v23  ;;  %2257 = vmatpush1.bf16.msra.mxu0 %v7361_v24  ;;  %7344 = vmatpush1.bf16.msra.mxu1 %v7361_v24  ;;  %v7363_v26 = vld [vmem:[#allocation4 + $0x10] sm:$0xff]   ;;  %v7364_v27 = vld [vmem:[#allocation4 + $0x18] sm:$0xff]  }
  0x11   :  { %2258 = vmatprep.subr.bf16.mxu0 %v10473_v2  ;;  %7329 = vmatprep.subr.bf16.mxu1 %v10473_v2  ;;  %v6407_v28 = vld [vmem:[%s10468_s3 + $0x11c] sm:$0xf]  ;;  %v6408_v29 = vld [vmem:[%s10468_s3 + $0x128] sm:$0xf]  ;;  %v6409_v30 = vld [vmem:[%s10468_s3 + $0x134] sm:$0xf] }
  0x12   :  { %375 = vst [vmem:[#allocation4 + $0x5c] sm:$0xf] %v6407_v28  ;;  %377 = vst [vmem:[#allocation4 + $0x60] sm:$0xf] %v6408_v29  ;;  %v6410_v31 = vld [vmem:[%s10468_s3 + $0x140] sm:$0xf] }
  0x13   :  { %v6411_v32 = vld [vmem:[%s10468_s3 + $0x14c] sm:$0xf]  ;;  %379 = vst [vmem:[#allocation4 + $0x64] sm:$0xf] %v6409_v30  ;;  %381 = vst [vmem:[#allocation4 + $0x68] sm:$0xf] %v6410_v31 }
  0x14   :  { %2259 = vmatpush1.bf16.msra.mxu0 %v7362_v25  ;;  %7345 = vmatpush1.bf16.msra.mxu1 %v7362_v25  ;;  %383 = vst [vmem:[#allocation4 + $0x6c] sm:$0xf] %v6411_v32  ;;  %v6412_v33 = vld [vmem:[%s10468_s3 + $0x158] sm:$0xf]  ;;  %v6413_v34 = vld [vmem:[%s10468_s3 + $0x164] sm:$0xf] }
  0x15   :  { %2260 = vmatprep.subr.bf16.mxu0 %v10473_v2  ;;  %7330 = vmatprep.subr.bf16.mxu1 %v10473_v2  ;;  %v6414_v35 = vld [vmem:[%s10468_s3 + $0x170] sm:$0xf]  ;;  %v7365_v36 = vld [vmem:[#allocation4 + $0x20] sm:$0xff]   ;;  %385 = vst [vmem:[#allocation4 + $0x70] sm:$0xf] %v6412_v33  ;;  %v7366_v44 = vld [vmem:[#allocation4 + $0x28] sm:$0xff]  }
  0x16   :  { %387 = vst [vmem:[#allocation4 + $0x74] sm:$0xf] %v6413_v34  ;;  %389 = vst [vmem:[#allocation4 + $0x78] sm:$0xf] %v6414_v35  ;;  %v6415_v37 = vld [vmem:[%s10468_s3 + $0x17c] sm:$0xf] }
  0x17   :  { %391 = vst [vmem:[#allocation4 + $0x7c] sm:$0xf] %v6415_v37  ;;  %v7379_v38 = vld [vmem:[%s10466_s1 + $0x4] ss:$16 sps:$4 sm:$0xff]   ;;  %v6416_v40 = vld [vmem:[%s10468_s3 + $0x188] sm:$0xf] }
  0x18   :  { %2261 = vmatpush1.bf16.msra.mxu0 %v7363_v26  ;;  %7346 = vmatpush1.bf16.msra.mxu1 %v7363_v26  ;;  %v7382_v39 = vld [vmem:[%s10466_s1 + $0x304] ss:$16 sps:$4 sm:$0xff]   ;;  %393 = vst [vmem:[#allocation4 + $0x80] sm:$0xf] %v6416_v40  ;;  %v6418_v42 = vld [vmem:[%s10468_s3 + $0x1a0] sm:$0xf] }
  0x19   :  { %2262 = vmatprep.subr.bf16.mxu0 %v10473_v2  ;;  %7331 = vmatprep.subr.bf16.mxu1 %v10473_v2  ;;  %v6417_v41 = vld [vmem:[%s10468_s3 + $0x194] sm:$0xf]  ;;  %v6419_v43 = vld [vmem:[%s10468_s3 + $0x1ac] sm:$0xf]  ;;  %397 = vst [vmem:[#allocation4 + $0x88] sm:$0xf] %v6418_v42 }
  0x1a   :  { %2288 = vmatprep.mubr.bf16.mxu0 %v7379_v38  ;;  %395 = vst [vmem:[#allocation4 + $0x84] sm:$0xf] %v6417_v41  ;;  %399 = vst [vmem:[#allocation4 + $0x8c] sm:$0xf] %v6419_v43  ;;  %2480 = vmatprep.mubr.bf16.mxu1 %v7382_v39  ;;  %v7367_v45 = vld [vmem:[#allocation4 + $0x30] sm:$0xff]   ;;  %v7368_v46 = vld [vmem:[#allocation4 + $0x38] sm:$0xff]  }
  0x1b   :  { %v6420_v47 = vld [vmem:[%s10468_s3 + $0x1b8] sm:$0xf]  ;;  %v6421_v48 = vld [vmem:[%s10468_s3 + $0x1c4] sm:$0xf]  ;;  %v6422_v49 = vld [vmem:[%s10468_s3 + $0x1d0] sm:$0xf] }
  0x1c   :  { %2263 = vmatpush1.bf16.msra.mxu0 %v7364_v27  ;;  %7347 = vmatpush1.bf16.msra.mxu1 %v7364_v27  ;;  %401 = vst [vmem:[#allocation4 + $0x90] sm:$0xf] %v6420_v47  ;;  %403 = vst [vmem:[#allocation4 + $0x94] sm:$0xf] %v6421_v48  ;;  %v6423_v50 = vld [vmem:[%s10468_s3 + $0x1dc] sm:$0xf] }
  0x1d   :  { %2264 = vmatprep.subr.bf16.mxu0 %v10473_v2  ;;  %7332 = vmatprep.subr.bf16.mxu1 %v10473_v2  ;;  %405 = vst [vmem:[#allocation4 + $0x98] sm:$0xf] %v6422_v49  ;;  %407 = vst [vmem:[#allocation4 + $0x9c] sm:$0xf] %v6423_v50  ;;  %v7369_v51 = vld [vmem:[#allocation4 + $0x40] sm:$0xff]   ;;  %v7370_v56 = vld [vmem:[#allocation4 + $0x48] sm:$0xff]  }
  0x1e   :  { %v6424_v52 = vld [vmem:[%s10468_s3 + $0x1e8] sm:$0xf]  ;;  %v6425_v53 = vld [vmem:[%s10468_s3 + $0x1f4] sm:$0xf]  ;;  %v6426_v54 = vld [vmem:[%s10468_s3 + $0x200] sm:$0xf] }
  0x1f   :  { %409 = vst [vmem:[#allocation4 + $0xa0] sm:$0xf] %v6424_v52  ;;  %411 = vst [vmem:[#allocation4 + $0xa4] sm:$0xf] %v6425_v53  ;;  %v6427_v55 = vld [vmem:[%s10468_s3 + $0x20c] sm:$0xf] }
  0x20   :  { %2265 = vmatpush1.bf16.msra.mxu0 %v7365_v36  ;;  %7348 = vmatpush1.bf16.msra.mxu1 %v7365_v36  ;;  %413 = vst [vmem:[#allocation4 + $0xa8] sm:$0xf] %v6426_v54  ;;  %415 = vst [vmem:[#allocation4 + $0xac] sm:$0xf] %v6427_v55  ;;  %v7371_v57 = vld [vmem:[#allocation4 + $0x50] sm:$0xff]   ;;  %v7372_v62 = vld [vmem:[#allocation4 + $0x58] sm:$0xff]  }
  0x21   :  { %2266 = vmatprep.subr.bf16.mxu0 %v10473_v2  ;;  %7333 = vmatprep.subr.bf16.mxu1 %v10473_v2  ;;  %v6428_v58 = vld [vmem:[%s10468_s3 + $0x218] sm:$0xf]  ;;  %v6429_v59 = vld [vmem:[%s10468_s3 + $0x224] sm:$0xf]  ;;  %v6430_v60 = vld [vmem:[%s10468_s3 + $0x230] sm:$0xf] }
  0x22   :  { %417 = vst [vmem:[#allocation4 + $0xb0] sm:$0xf] %v6428_v58  ;;  %419 = vst [vmem:[#allocation4 + $0xb4] sm:$0xf] %v6429_v59  ;;  %v6431_v61 = vld [vmem:[%s10468_s3 + $0x23c] sm:$0xf] }
  0x23   :  { %421 = vst [vmem:[#allocation4 + $0xb8] sm:$0xf] %v6430_v60  ;;  %423 = vst [vmem:[#allocation4 + $0xbc] sm:$0xf] %v6431_v61  ;;  %v6432_v63 = vld [vmem:[%s10468_s3 + $0x248] sm:$0xf] }
  0x24   :  { %2267 = vmatpush1.bf16.msra.mxu0 %v7366_v44  ;;  %7349 = vmatpush1.bf16.msra.mxu1 %v7366_v44  ;;  %v6433_v0 = vld [vmem:[%s10468_s3 + $0x254] sm:$0xf]  ;;  %425 = vst [vmem:[#allocation4 + $0xc0] sm:$0xf] %v6432_v63  ;;  %v6434_v1 = vld [vmem:[%s10468_s3 + $0x260] sm:$0xf] }
  0x25   :  { %2268 = vmatprep.subr.bf16.mxu0 %v10473_v2  ;;  %7334 = vmatprep.subr.bf16.mxu1 %v10473_v2  ;;  %427 = vst [vmem:[#allocation4 + $0xc4] sm:$0xf] %v6433_v0  ;;  %v6435_v3 = vld [vmem:[%s10468_s3 + $0x26c] sm:$0xf]  ;;  %429 = vst [vmem:[#allocation4 + $0xc8] sm:$0xf] %v6434_v1 }
  0x26   :  { %431 = vst [vmem:[#allocation4 + $0xcc] sm:$0xf] %v6435_v3  ;;  %v7373_v4 = vld [vmem:[#allocation4 + $0x60] sm:$0xff]   ;;  %v7374_v5 = vld [vmem:[#allocation4 + $0x68] sm:$0xff]   ;;  %v6436_v6 = vld [vmem:[%s10468_s3 + $0x278] sm:$0xf] }
  0x27   :  { %v6437_v7 = vld [vmem:[%s10468_s3 + $0x284] sm:$0xf]  ;;  %433 = vst [vmem:[#allocation4 + $0xd0] sm:$0xf] %v6436_v6  ;;  %v6438_v8 = vld [vmem:[%s10468_s3 + $0x290] sm:$0xf] }
  0x28   :  { %2269 = vmatpush1.bf16.msra.mxu0 %v7367_v45  ;;  %7350 = vmatpush1.bf16.msra.mxu1 %v7367_v45  ;;  %435 = vst [vmem:[#allocation4 + $0xd4] sm:$0xf] %v6437_v7  ;;  %v6439_v9 = vld [vmem:[%s10468_s3 + $0x29c] sm:$0xf]  ;;  %437 = vst [vmem:[#allocation4 + $0xd8] sm:$0xf] %v6438_v8 }
  0x29   :  { %2270 = vmatprep.subr.bf16.mxu0 %v10473_v2  ;;  %7335 = vmatprep.subr.bf16.mxu1 %v10473_v2  ;;  %439 = vst [vmem:[#allocation4 + $0xdc] sm:$0xf] %v6439_v9  ;;  %v7375_v10 = vld [vmem:[#allocation4 + $0x70] sm:$0xff]   ;;  %v6440_v11 = vld [vmem:[%s10468_s3 + $0x2a8] sm:$0xf]  ;;  %v7376_v15 = vld [vmem:[#allocation4 + $0x78] sm:$0xff]  }
  0x2a   :  { %v6441_v12 = vld [vmem:[%s10468_s3 + $0x2b4] sm:$0xf]  ;;  %441 = vst [vmem:[#allocation4 + $0xe0] sm:$0xf] %v6440_v11  ;;  %v6442_v13 = vld [vmem:[%s10468_s3 + $0x2c0] sm:$0xf] }
  0x2b   :  { %443 = vst [vmem:[#allocation4 + $0xe4] sm:$0xf] %v6441_v12  ;;  %v6443_v14 = vld [vmem:[%s10468_s3 + $0x2cc] sm:$0xf]  ;;  %445 = vst [vmem:[#allocation4 + $0xe8] sm:$0xf] %v6442_v13 }
  0x2c   :  { %2271 = vmatpush1.bf16.msra.mxu0 %v7368_v46  ;;  %7351 = vmatpush1.bf16.msra.mxu1 %v7368_v46  ;;  %447 = vst [vmem:[#allocation4 + $0xec] sm:$0xf] %v6443_v14  ;;  %v7377_v16 = vld [vmem:[%s10466_s1] ss:$16 sps:$4 sm:$0xff]   ;;  %v7385_v18 = vld [vmem:[%s10466_s1 + $0x24] ss:$16 sps:$4 sm:$0xff]  }
  0x2d   :  { %2272 = vmatprep.subr.bf16.mxu0 %v10473_v2  ;;  %7336 = vmatprep.subr.bf16.mxu1 %v10473_v2  ;;  %v7380_v17 = vld [vmem:[%s10466_s1 + $0x300] ss:$16 sps:$4 sm:$0xff]   ;;  %v6444_v20 = vld [vmem:[%s10468_s3 + $0x2d8] sm:$0xf]  ;;  %v6445_v21 = vld [vmem:[%s10468_s3 + $0x2e4] sm:$0xf] }
  0x2e   :  { %v7383_v19 = vld [vmem:[#allocation4 + $0x80] sm:$0xff]   ;;  %449 = vst [vmem:[#allocation4 + $0xf0] sm:$0xf] %v6444_v20  ;;  %451 = vst [vmem:[#allocation4 + $0xf4] sm:$0xf] %v6445_v21  ;;  %v7384_v25 = vld [vmem:[#allocation4 + $0x88] sm:$0xff]  }
  0x2f   :  { %v6446_v22 = vld [vmem:[%s10468_s3 + $0x2f0] sm:$0xf]  ;;  %v6447_v23 = vld [vmem:[%s10468_s3 + $0x2fc] sm:$0xf]  ;;  %v7387_v24 = vld [vmem:[%s10466_s1 + $0x324] ss:$16 sps:$4 sm:$0xff]  }
  0x30   :  { %2273 = vmatpush1.bf16.msra.mxu0 %v7369_v51  ;;  %7352 = vmatpush1.bf16.msra.mxu1 %v7369_v51  ;;  %453 = vst [vmem:[#allocation4 + $0xf8] sm:$0xf] %v6446_v22  ;;  %455 = vst [vmem:[#allocation4 + $0xfc] sm:$0xf] %v6447_v23  ;;  %v7389_v26 = vld [vmem:[%s10466_s1 + $0x20] ss:$16 sps:$4 sm:$0xff]  }
  0x31   :  { %2274 = vmatprep.subr.bf16.mxu0 %v10473_v2  ;;  %7337 = vmatprep.subr.bf16.mxu1 %v10473_v2  ;;  %v6352_v27 = vld [vmem:[%s10467_s2 + $0x184] sm:$0xf]  ;;  %v6353_v28 = vld [vmem:[%s10467_s2 + $0x190] sm:$0xf]  ;;  %v7392_v33 = vld [vmem:[#allocation4 + $0x98] sm:$0xff]  }
  0x32   :  { %v7390_v29 = vld [vmem:[%s10466_s1 + $0x320] ss:$16 sps:$4 sm:$0xff]   ;;  %99 = vst [vmem:[#allocation3 + $0x80] sm:$0xf] %v6352_v27  ;;  %101 = vst [vmem:[#allocation3 + $0x84] sm:$0xf] %v6353_v28 }
  0x33   :  { %v7393_v30 = vld [vmem:[%s10466_s1 + $0x44] ss:$16 sps:$4 sm:$0xff]   ;;  %v7397_v34 = vld [vmem:[%s10466_s1 + $0x40] ss:$16 sps:$4 sm:$0xff]   ;;  %v6354_v36 = vld [vmem:[%s10467_s2 + $0x19c] sm:$0xf] }
  0x34   :  { %2275 = vmatpush1.bf16.msra.mxu0 %v7370_v56  ;;  %7353 = vmatpush1.bf16.msra.mxu1 %v7370_v56  ;;  %v7391_v31 = vld [vmem:[#allocation4 + $0x90] sm:$0xff]   ;;  %v6355_v37 = vld [vmem:[%s10467_s2 + $0x1a8] sm:$0xf]  ;;  %103 = vst [vmem:[#allocation3 + $0x88] sm:$0xf] %v6354_v36  ;;  %v7399_v39 = vld [vmem:[#allocation4 + $0xa0] sm:$0xff]  }
  0x35   :  { %2276 = vmatprep.subr.bf16.mxu0 %v10473_v2  ;;  %7338 = vmatprep.subr.bf16.mxu1 %v10473_v2  ;;  %v7395_v32 = vld [vmem:[%s10466_s1 + $0x344] ss:$16 sps:$4 sm:$0xff]   ;;  %v7398_v35 = vld [vmem:[%s10466_s1 + $0x340] ss:$16 sps:$4 sm:$0xff]   ;;  %105 = vst [vmem:[#allocation3 + $0x8c] sm:$0xf] %v6355_v37 }
  0x36   :  { %v7401_v38 = vld [vmem:[%s10466_s1 + $0x64] ss:$16 sps:$4 sm:$0xff]   ;;  %v7400_v42 = vld [vmem:[#allocation4 + $0xa8] sm:$0xff]   ;;  %v6321_v43 = vld [vmem:[%s10467_s2 + $0x10] sm:$0xf] }
  0x37   :  { %v7403_v40 = vld [vmem:[%s10466_s1 + $0x364] ss:$16 sps:$4 sm:$0xff]   ;;  %37 = vst [vmem:[#allocation3 + $0x4] sm:$0xf] %v6321_v43  ;;  %v6357_v45 = vld [vmem:[%s10467_s2 + $0x1c0] sm:$0xf] }
  0x38   :  { %2277 = vmatpush1.bf16.msra.mxu0 %v7371_v57  ;;  %7354 = vmatpush1.bf16.msra.mxu1 %v7371_v57  ;;  %v6320_v41 = vld [vmem:[%s10467_s2 + $0x4] sm:$0xf]  ;;  %v6356_v44 = vld [vmem:[%s10467_s2 + $0x1b4] sm:$0xf]  ;;  %v7405_v46 = vld [vmem:[%s10466_s1 + $0x60] ss:$16 sps:$4 sm:$0xff]  }
  0x39   :  { %2278 = vmatprep.subr.bf16.mxu0 %v10473_v2  ;;  %7339 = vmatprep.subr.bf16.mxu1 %v10473_v2  ;;  %35 = vst [vmem:[#allocation3] sm:$0xf] %v6320_v41  ;;  %107 = vst [vmem:[#allocation3 + $0x90] sm:$0xf] %v6356_v44  ;;  %v7406_v47 = vld [vmem:[%s10466_s1 + $0x360] ss:$16 sps:$4 sm:$0xff]  }
  0x3a   :  { %109 = vst [vmem:[#allocation3 + $0x94] sm:$0xf] %v6357_v45  ;;  %v7407_v48 = vld [vmem:[#allocation4 + $0xb0] sm:$0xff]   ;;  %v6322_v51 = vld [vmem:[%s10467_s2 + $0x1c] sm:$0xf]  ;;  %v7415_v60 = vld [vmem:[#allocation4 + $0xc0] sm:$0xff]  }
  0x3b   :  { %v7409_v49 = vld [vmem:[%s10466_s1 + $0x84] ss:$16 sps:$4 sm:$0xff]   ;;  %v6323_v52 = vld [vmem:[%s10467_s2 + $0x28] sm:$0xf]  ;;  %39 = vst [vmem:[#allocation3 + $0x8] sm:$0xf] %v6322_v51 }
  0x3c   :  { %2279 = vmatpush1.bf16.msra.mxu0 %v7372_v62  ;;  %7355 = vmatpush1.bf16.msra.mxu1 %v7372_v62  ;;  %v7411_v50 = vld [vmem:[%s10466_s1 + $0x384] ss:$16 sps:$4 sm:$0xff]   ;;  %41 = vst [vmem:[#allocation3 + $0xc] sm:$0xf] %v6323_v52  ;;  %v7408_v53 = vld [vmem:[#allocation4 + $0xb8] sm:$0xff]   ;;  %v7416_v1 = vld [vmem:[#allocation4 + $0xc8] sm:$0xff]  }
  0x3d   :  { %2280 = vmatprep.subr.bf16.mxu0 %v10473_v2  ;;  %7340 = vmatprep.subr.bf16.mxu1 %v10473_v2  ;;  %v7413_v55 = vld [vmem:[%s10466_s1 + $0x80] ss:$16 sps:$4 sm:$0xff]   ;;  %v7417_v57 = vld [vmem:[%s10466_s1 + $0xa4] ss:$16 sps:$4 sm:$0xff]   ;;  %v6358_v58 = vld [vmem:[%s10467_s2 + $0x1cc] sm:$0xf] }
  0x3e   :  { %v7414_v56 = vld [vmem:[%s10466_s1 + $0x380] ss:$16 sps:$4 sm:$0xff]   ;;  %111 = vst [vmem:[#allocation3 + $0x98] sm:$0xf] %v6358_v58  ;;  %v6359_v59 = vld [vmem:[%s10467_s2 + $0x1d8] sm:$0xf] }
  0x3f   :  { %113 = vst [vmem:[#allocation3 + $0x9c] sm:$0xf] %v6359_v59  ;;  %v7419_v61 = vld [vmem:[%s10466_s1 + $0x3a4] ss:$16 sps:$4 sm:$0xff]   ;;  %v6325_v0 = vld [vmem:[%s10467_s2 + $0x40] sm:$0xf] }
  0x40   :  { %2281 = vmatpush1.bf16.msra.mxu0 %v7373_v4  ;;  %7356 = vmatpush1.bf16.msra.mxu1 %v7373_v4  ;;  %v7471_v54 = vld [vmem:[#allocation3] sm:$0xff]   ;;  %v6324_v63 = vld [vmem:[%s10467_s2 + $0x34] sm:$0xf]  ;;  %45 = vst [vmem:[#allocation3 + $0x14] sm:$0xf] %v6325_v0  ;;  %v7424_v13 = vld [vmem:[#allocation4 + $0xd8] sm:$0xff]  }
  0x41   :  { %2282 = vmatprep.subr.bf16.mxu0 %v10473_v2  ;;  %7341 = vmatprep.subr.bf16.mxu1 %v10473_v2  ;;  %43 = vst [vmem:[#allocation3 + $0x10] sm:$0xf] %v6324_v63  ;;  %v7421_v3 = vld [vmem:[%s10466_s1 + $0xa0] ss:$16 sps:$4 sm:$0xff]   ;;  %v6360_v6 = vld [vmem:[%s10467_s2 + $0x1e4] sm:$0xf] }
  0x42   :  { %v7422_v4 = vld [vmem:[%s10466_s1 + $0x3a0] ss:$16 sps:$4 sm:$0xff]   ;;  %115 = vst [vmem:[#allocation3 + $0xa0] sm:$0xf] %v6360_v6  ;;  %v6326_v9 = vld [vmem:[%s10467_s2 + $0x4c] sm:$0xf] }
  0x43   :  { %v7481_v62 = vld [vmem:[#allocation3 + $0x8] sm:$0xff]   ;;  %v7423_v7 = vld [vmem:[#allocation4 + $0xd0] sm:$0xff]   ;;  %47 = vst [vmem:[#allocation3 + $0x18] sm:$0xf] %v6326_v9  ;;  %v6362_v22 = vld [vmem:[%s10467_s2 + $0x1fc] sm:$0xf] }
  0x44   :  { %2283 = vmatpush1.bf16.msra.mxu0 %v7374_v5  ;;  %7357 = vmatpush1.bf16.msra.mxu1 %v7374_v5  ;;  %v7425_v5 = vld [vmem:[%s10466_s1 + $0xc4] ss:$16 sps:$4 sm:$0xff]   ;;  %v6361_v8 = vld [vmem:[%s10467_s2 + $0x1f0] sm:$0xf]  ;;  %119 = vst [vmem:[#allocation3 + $0xa8] sm:$0xf] %v6362_v22 }
  0x45   :  { %2284 = vmatprep.subr.bf16.mxu0 %v10473_v2  ;;  %7342 = vmatprep.subr.bf16.mxu1 %v10473_v2  ;;  %117 = vst [vmem:[#allocation3 + $0xa4] sm:$0xf] %v6361_v8  ;;  %v7427_v11 = vld [vmem:[%s10466_s1 + $0x3c4] ss:$16 sps:$4 sm:$0xff]   ;;  %v7429_v14 = vld [vmem:[%s10466_s1 + $0xc0] ss:$16 sps:$4 sm:$0xff]  }
  0x46   :  { %v7435_v21 = vld [vmem:[%s10466_s1 + $0x3e4] ss:$16 sps:$4 sm:$0xff]   ;;  %v6363_v23 = vld [vmem:[%s10467_s2 + $0x208] sm:$0xf]  ;;  %v7437_v27 = vld [vmem:[%s10466_s1 + $0xe0] ss:$16 sps:$4 sm:$0xff]  }
  0x47   :  { %121 = vst [vmem:[#allocation3 + $0xac] sm:$0xf] %v6363_v23  ;;  %v7438_v28 = vld [vmem:[%s10466_s1 + $0x3e0] ss:$16 sps:$4 sm:$0xff]   ;;  %v6364_v43 = vld [vmem:[%s10467_s2 + $0x214] sm:$0xf] }
  0x48   :  { %2285 = vmatpush1.bf16.msra.mxu0 %v7375_v10  ;;  %7358 = vmatpush1.bf16.msra.mxu1 %v7375_v10  ;;  %v6327_v10 = vld [vmem:[%s10467_s2 + $0x58] sm:$0xf]  ;;  %v7493_v12 = vld [vmem:[#allocation3 + $0x10] sm:$0xff]   ;;  %123 = vst [vmem:[#allocation3 + $0xb0] sm:$0xf] %v6364_v43  ;;  %v7460_v51 = vld [vmem:[#allocation3 + $0x88] sm:$0xff]  }
  0x49   :  { %2286 = vmatprep.subr.bf16.mxu0 %v10473_v2  ;;  %7343 = vmatprep.subr.bf16.mxu1 %v10473_v2  ;;  %49 = vst [vmem:[#allocation3 + $0x1c] sm:$0xf] %v6327_v10  ;;  %v7439_v36 = vld [vmem:[#allocation4 + $0xf0] sm:$0xff]   ;;  %v7453_v58 = vld [vmem:[%s10466_s1 + $0x28] ss:$16 sps:$4 sm:$0xff]  }
  0x4a   :  { %v7446_v41 = vld [vmem:[%s10466_s1 + $0x100] ss:$16 sps:$4 sm:$0xff]   ;;  %v7448_v44 = vld [vmem:[%s10466_s1 + $0x124] ss:$16 sps:$4 sm:$0xff]   ;;  %v6366_v6 = vld [vmem:[%s10467_s2 + $0x22c] sm:$0xf] }
  0x4b   :  { %v7454_v59 = vld [vmem:[%s10466_s1 + $0x144] ss:$16 sps:$4 sm:$0xff]   ;;  %v6345_v0 = vld [vmem:[%s10467_s2 + $0x130] sm:$0xf]  ;;  %v6346_v8 = vld [vmem:[%s10467_s2 + $0x13c] sm:$0xf] }
  0x4c   :  { %2287 = vmatpush1.bf16.msra.mxu0 %v7376_v15  ;;  %7359 = vmatpush1.bf16.msra.mxu1 %v7376_v15  ;;  %v7430_v15 = vld [vmem:[%s10466_s1 + $0x3c0] ss:$16 sps:$4 sm:$0xff]   ;;  %v6344_v63 = vld [vmem:[%s10467_s2 + $0x124] sm:$0xf]  ;;  %85 = vst [vmem:[#allocation3 + $0x64] sm:$0xf] %v6345_v0 }
  0x4d   :  { %2545 = vmatprep.subr.bf16.mxu1 %v10473_v2  ;;  %3666 = vmatprep.subr.bf16.mxu0 %v10473_v2  ;;  %83 = vst [vmem:[#allocation3 + $0x60] sm:$0xf] %v6344_v63  ;;  %127 = vst [vmem:[#allocation3 + $0xb8] sm:$0xf] %v6366_v6  ;;  %v6347_v9 = vld [vmem:[%s10467_s2 + $0x148] sm:$0xf] }
  0x4e   :  { %87 = vst [vmem:[#allocation3 + $0x68] sm:$0xf] %v6346_v8  ;;  %v7461_v10 = vld [vmem:[%s10466_s1 + $0x164] ss:$16 sps:$4 sm:$0xff]   ;;  %89 = vst [vmem:[#allocation3 + $0x6c] sm:$0xf] %v6347_v9 }
  0x4f   :  { %2289 = vmatmul.mubr.bf16.vlgmr.msra.gmra.mrb[0].mxu0 %v7377_v16  ;;  %2481 = vmatmul.mubr.bf16.vlgmr.msra.gmra.mrb[0].mxu1 %v7380_v17  ;;  %v7433_v16 = vld [vmem:[%s10466_s1 + $0xe4] ss:$16 sps:$4 sm:$0xff]   ;;  %v7469_v23 = vld [vmem:[%s10466_s1 + $0x8c] ss:$16 sps:$4 sm:$0xff]   ;;  %v6373_v43 = vld [vmem:[%s10467_s2 + $0x280] sm:$0xf] }
  0x50   :  { %2546 = vmatpush1.bf16.msra.mxu1 %v7383_v19  ;;  %2296 = vmatprep.mubr.bf16.mxu0 %v7385_v18  ;;  %v6328_v17 = vld [vmem:[%s10467_s2 + $0x64] sm:$0xf]  ;;  %v6329_v19 = vld [vmem:[%s10467_s2 + $0x70] sm:$0xf]  ;;  %v7503_v20 = vld [vmem:[#allocation3 + $0x18] sm:$0xff]  }
  0x51   :  { %2547 = vmatprep.subr.bf16.mxu1 %v10473_v2  ;;  %2488 = vmatprep.mubr.bf16.mxu1 %v7387_v24  ;;  %v7431_v18 = vld [vmem:[#allocation4 + $0xe0] sm:$0xff]   ;;  %51 = vst [vmem:[#allocation3 + $0x20] sm:$0xf] %v6328_v17  ;;  %53 = vst [vmem:[#allocation3 + $0x24] sm:$0xf] %v6329_v19 }
  0x52   :  { %3667 = vmatpush1.bf16.msra.mxu0 %v7471_v54  ;;  %v6330_v24 = vld [vmem:[%s10467_s2 + $0x7c] sm:$0xf]  ;;  %v6341_v54 = vld [vmem:[%s10467_s2 + $0x100] sm:$0xf]  ;;  %v6351_v17 = vld [vmem:[%s10467_s2 + $0x178] sm:$0xf] }
  0x53   :  { %3668 = vmatprep.subr.bf16.mxu0 %v10473_v2  ;;  %55 = vst [vmem:[#allocation3 + $0x28] sm:$0xf] %v6330_v24  ;;  %77 = vst [vmem:[#allocation3 + $0x54] sm:$0xf] %v6341_v54  ;;  %v7465_v19 = vld [vmem:[%s10466_s1 + $0x160] ss:$16 sps:$4 sm:$0xff]  }
  0x54   :  { %2548 = vmatpush1.bf16.msra.mxu1 %v7384_v25  ;;  %v6331_v25 = vld [vmem:[%s10467_s2 + $0x88] sm:$0xf]  ;;  %97 = vst [vmem:[#allocation3 + $0x7c] sm:$0xf] %v6351_v17  ;;  %v7467_v22 = vld [vmem:[%s10466_s1 + $0x184] ss:$16 sps:$4 sm:$0xff]  }
  0x55   :  { %2549 = vmatprep.subr.bf16.mxu1 %v10473_v2  ;;  %57 = vst [vmem:[#allocation3 + $0x2c] sm:$0xf] %v6331_v25  ;;  %v6368_v25 = vld [vmem:[%s10467_s2 + $0x244] sm:$0xf]  ;;  %141 = vst [vmem:[#allocation3 + $0xd4] sm:$0xf] %v6373_v43 }
  0x56   :  { %3669 = vmatpush1.bf16.msra.mxu0 %v7481_v62  ;;  %131 = vst [vmem:[#allocation3 + $0xc0] sm:$0xf] %v6368_v25  ;;  %v7495_v54 = vld [vmem:[%s10466_s1 + $0xe8] ss:$16 sps:$4 sm:$0xff]   ;;  %v6377_v63 = vld [vmem:[%s10467_s2 + $0x2b0] sm:$0xf] }
  0x57   :  { %2297 = vmatmul.mubr.bf16.gmra.mrb[4].mxu0 %v7389_v26  ;;  %2489 = vmatmul.mubr.bf16.gmra.mrb[4].mxu1 %v7390_v29  ;;  %v7432_v26 = vld [vmem:[#allocation4 + $0xe8] sm:$0xff]   ;;  %v6332_v29 = vld [vmem:[%s10467_s2 + $0x94] sm:$0xf]  ;;  %149 = vst [vmem:[#allocation3 + $0xe4] sm:$0xf] %v6377_v63 }
  0x58   :  { %2550 = vmatpush1.bf16.msra.mxu1 %v7391_v31  ;;  %2304 = vmatprep.mubr.bf16.mxu0 %v7393_v30  ;;  %v7441_v30 = vld [vmem:[%s10466_s1 + $0x104] ss:$16 sps:$4 sm:$0xff]   ;;  %59 = vst [vmem:[#allocation3 + $0x30] sm:$0xf] %v6332_v29  ;;  %v6333_v31 = vld [vmem:[%s10467_s2 + $0xa0] sm:$0xf] }
  0x59   :  { %2551 = vmatprep.subr.bf16.mxu1 %v10473_v2  ;;  %2496 = vmatprep.mubr.bf16.mxu1 %v7395_v32  ;;  %v6334_v32 = vld [vmem:[%s10467_s2 + $0xac] sm:$0xf]  ;;  %61 = vst [vmem:[#allocation3 + $0x34] sm:$0xf] %v6333_v31  ;;  %v7472_v29 = vld [vmem:[%s10466_s1 + $0x180] ss:$16 sps:$4 sm:$0xff]  }
  0x5a   :  { %3670 = vmatprep.subr.bf16.mxu0 %v10473_v2  ;;  %63 = vst [vmem:[#allocation3 + $0x38] sm:$0xf] %v6334_v32  ;;  %v7473_v31 = vld [vmem:[%s10466_s1 + $0x88] ss:$16 sps:$4 sm:$0xff]   ;;  %v7475_v32 = vld [vmem:[%s10466_s1 + $0x1a4] ss:$16 sps:$4 sm:$0xff]  }
  0x5b   :  { %3671 = vmatpush1.bf16.msra.mxu0 %v7493_v12  ;;  %v7502_v12 = vld [vmem:[#allocation3 + $0xa0] sm:$0xff]   ;;  %v7521_v9 = vld [vmem:[%s10466_s1 + $0x16c] ss:$16 sps:$4 sm:$0xff]   ;;  %v7541_v25 = vld [vmem:[%s10466_s1 + $0x1a8] ss:$16 sps:$4 sm:$0xff]  }
  0x5c   :  { %2552 = vmatpush1.bf16.msra.mxu1 %v7392_v33  ;;  %3672 = vmatprep.subr.bf16.mxu0 %v10473_v2  ;;  %v7445_v33 = vld [vmem:[%s10466_s1 + $0xc] ss:$16 sps:$4 sm:$0xff]   ;;  %v7508_v0 = vld [vmem:[%s10466_s1 + $0x220] ss:$16 sps:$4 sm:$0xff]   ;;  %v7519_v8 = vld [vmem:[%s10466_s1 + $0x264] ss:$16 sps:$4 sm:$0xff]  }
  0x5d   :  { %2553 = vmatprep.subr.bf16.mxu1 %v10473_v2  ;;  %v7518_v37 = vld [vmem:[#allocation3 + $0x28] sm:$0xff]   ;;  %v7515_v6 = vld [vmem:[%s10466_s1 + $0x240] ss:$16 sps:$4 sm:$0xff]   ;;  %v7570_v43 = vld [vmem:[%s10465_s0 + $0x24] ss:$16 sps:$4 sm:$0xff]  }
  0x5e   :  { %v7531_v17 = vld [vmem:[%s10466_s1 + $0x280] ss:$16 sps:$4 sm:$0xff]   ;;  %v7589_v63 = vld [vmem:[%s10465_s0 + $0x84] ss:$16 sps:$4 sm:$0xff]  }
  0x5f   :  { %2305 = vmatmul.mubr.bf16.gmra.mrb[8].mxu0 %v7397_v34  ;;  %2497 = vmatmul.mubr.bf16.gmra.mrb[8].mxu1 %v7398_v35  ;;  %v7514_v34 = vld [vmem:[#allocation3 + $0x20] sm:$0xff]   ;;  %v6335_v35 = vld [vmem:[%s10467_s2 + $0xb8] sm:$0xf] }
  0x60   :  { %2554 = vmatpush1.bf16.msra.mxu1 %v7399_v39  ;;  %2312 = vmatprep.mubr.bf16.mxu0 %v7401_v38  ;;  %65 = vst [vmem:[#allocation3 + $0x3c] sm:$0xf] %v6335_v35  ;;  %v7440_v38 = vld [vmem:[#allocation4 + $0xf8] sm:$0xff]   ;;  %v6336_v39 = vld [vmem:[%s10467_s2 + $0xc4] sm:$0xf]  ;;  %v7525_v45 = vld [vmem:[#allocation3 + $0x30] sm:$0xff]  }
  0x61   :  { %2555 = vmatprep.subr.bf16.mxu1 %v10473_v2  ;;  %2504 = vmatprep.mubr.bf16.mxu1 %v7403_v40  ;;  %v7443_v40 = vld [vmem:[%s10466_s1 + $0x8] ss:$16 sps:$4 sm:$0xff]   ;;  %67 = vst [vmem:[#allocation3 + $0x40] sm:$0xf] %v6336_v39  ;;  %v7479_v39 = vld [vmem:[%s10466_s1 + $0x1a0] ss:$16 sps:$4 sm:$0xff]  }
  0x62   :  { %3673 = vmatpush1.bf16.msra.mxu0 %v7503_v20 }
  0x63   :  { %3674 = vmatprep.subr.bf16.mxu0 %v10473_v2 }
  0x64   :  { %2556 = vmatpush1.bf16.msra.mxu1 %v7400_v42  ;;  %v6337_v42 = vld [vmem:[%s10467_s2 + $0xd0] sm:$0xf] }
  0x65   :  { %2557 = vmatprep.subr.bf16.mxu1 %v10473_v2  ;;  %69 = vst [vmem:[#allocation3 + $0x44] sm:$0xf] %v6337_v42  ;;  %v6372_v42 = vld [vmem:[%s10467_s2 + $0x274] sm:$0xf] }
  0x66   :  { %3675 = vmatpush1.bf16.msra.mxu0 %v7514_v34  ;;  %139 = vst [vmem:[#allocation3 + $0xd0] sm:$0xf] %v6372_v42  ;;  %v7568_v42 = vld [vmem:[%s10466_s1 + $0x22c] ss:$16 sps:$4 sm:$0xff]  }
  0x67   :  { %2313 = vmatmul.mubr.bf16.gmra.mrb[12].mxu0 %v7405_v46  ;;  %2505 = vmatmul.mubr.bf16.gmra.mrb[12].mxu1 %v7406_v47  ;;  %v7447_v46 = vld [vmem:[#allocation3 + $0x80] sm:$0xff]   ;;  %v7526_v52 = vld [vmem:[#allocation3 + $0x38] sm:$0xff]  }
  0x68   :  { %2558 = vmatpush1.bf16.msra.mxu1 %v7407_v48  ;;  %2320 = vmatprep.mubr.bf16.mxu0 %v7409_v49  ;;  %v6365_v47 = vld [vmem:[%s10467_s2 + $0x220] sm:$0xf]  ;;  %v6338_v48 = vld [vmem:[%s10467_s2 + $0xdc] sm:$0xf]  ;;  %v6339_v49 = vld [vmem:[%s10467_s2 + $0xe8] sm:$0xf] }
  0x69   :  { %2559 = vmatprep.subr.bf16.mxu1 %v10473_v2  ;;  %2512 = vmatprep.mubr.bf16.mxu1 %v7411_v50  ;;  %125 = vst [vmem:[#allocation3 + $0xb4] sm:$0xf] %v6365_v47  ;;  %v7450_v50 = vld [vmem:[%s10466_s1 + $0x2c] ss:$16 sps:$4 sm:$0xff]   ;;  %71 = vst [vmem:[#allocation3 + $0x48] sm:$0xf] %v6338_v48 }
  0x6a   :  { %3676 = vmatprep.subr.bf16.mxu0 %v10473_v2  ;;  %73 = vst [vmem:[#allocation3 + $0x4c] sm:$0xf] %v6339_v49  ;;  %v7487_v47 = vld [vmem:[%s10466_s1 + $0xc8] ss:$16 sps:$4 sm:$0xff]   ;;  %v7489_v49 = vld [vmem:[%s10466_s1 + $0x1e4] ss:$16 sps:$4 sm:$0xff]  }
  0x6b   :  { %3677 = vmatpush1.bf16.msra.mxu0 %v7518_v37  ;;  %v6371_v37 = vld [vmem:[%s10467_s2 + $0x268] sm:$0xf] }
  0x6c   :  { %2560 = vmatpush1.bf16.msra.mxu1 %v7408_v53  ;;  %3678 = vmatprep.subr.bf16.mxu0 %v10473_v2  ;;  %v6340_v53 = vld [vmem:[%s10467_s2 + $0xf4] sm:$0xf]  ;;  %v7533_v62 = vld [vmem:[#allocation3 + $0x40] sm:$0xff]   ;;  %137 = vst [vmem:[#allocation3 + $0xcc] sm:$0xf] %v6371_v37 }
  0x6d   :  { %2561 = vmatprep.subr.bf16.mxu1 %v10473_v2  ;;  %75 = vst [vmem:[#allocation3 + $0x50] sm:$0xf] %v6340_v53  ;;  %v7593_v48 = vld [vmem:[#allocation3 + $0xd0] sm:$0xff]   ;;  %v7561_v37 = vld [vmem:[%s10466_s1 + $0x20c] ss:$16 sps:$4 sm:$0xff]  }
  0x6e   :  { %v7494_v53 = vld [vmem:[%s10466_s1 + $0x1e0] ss:$16 sps:$4 sm:$0xff]  }
  0x6f   :  { %2321 = vmatmul.mubr.bf16.gmra.mrb[16].mxu0 %v7413_v55  ;;  %2513 = vmatmul.mubr.bf16.gmra.mrb[16].mxu1 %v7414_v56  ;;  %v6342_v55 = vld [vmem:[%s10467_s2 + $0x10c] sm:$0xf]  ;;  %v6343_v56 = vld [vmem:[%s10467_s2 + $0x118] sm:$0xf] }
  0x70   :  { %2562 = vmatpush1.bf16.msra.mxu1 %v7415_v60  ;;  %2328 = vmatprep.mubr.bf16.mxu0 %v7417_v57  ;;  %v7452_v57 = vld [vmem:[%s10466_s1 + $0x120] ss:$16 sps:$4 sm:$0xff]   ;;  %79 = vst [vmem:[#allocation3 + $0x58] sm:$0xf] %v6342_v55  ;;  %81 = vst [vmem:[#allocation3 + $0x5c] sm:$0xf] %v6343_v56 }
  0x71   :  { %2563 = vmatprep.subr.bf16.mxu1 %v10473_v2  ;;  %2520 = vmatprep.mubr.bf16.mxu1 %v7419_v61  ;;  %v7456_v60 = vld [vmem:[%s10466_s1 + $0x4c] ss:$16 sps:$4 sm:$0xff]   ;;  %v7474_v61 = vld [vmem:[#allocation3 + $0x90] sm:$0xff]  }
  0x72   :  { %3679 = vmatpush1.bf16.msra.mxu0 %v7525_v45  ;;  %v7534_v24 = vld [vmem:[#allocation3 + $0xb0] sm:$0xff]   ;;  %v7498_v56 = vld [vmem:[%s10466_s1 + $0x10c] ss:$16 sps:$4 sm:$0xff]  }
  0x73   :  { %3680 = vmatprep.subr.bf16.mxu0 %v10473_v2  ;;  %v7496_v55 = vld [vmem:[%s10466_s1 + $0x204] ss:$16 sps:$4 sm:$0xff]  }
  0x74   :  { %2564 = vmatpush1.bf16.msra.mxu1 %v7416_v1  ;;  %v7488_v1 = vld [vmem:[#allocation3 + $0x98] sm:$0xff]  }
  0x75   :  { %2565 = vmatprep.subr.bf16.mxu1 %v10473_v2 }
  0x76   :  { %3681 = vmatpush1.bf16.msra.mxu0 %v7526_v52  ;;  %v6375_v52 = vld [vmem:[%s10467_s2 + $0x298] sm:$0xf] }
  0x77   :  { %2329 = vmatmul.mubr.bf16.gmra.mrb[20].mxu0 %v7421_v3  ;;  %2521 = vmatmul.mubr.bf16.gmra.mrb[20].mxu1 %v7422_v4  ;;  %v7535_v3 = vld [vmem:[#allocation3 + $0x48] sm:$0xff]   ;;  %v7458_v4 = vld [vmem:[%s10466_s1 + $0x140] ss:$16 sps:$4 sm:$0xff]   ;;  %v7543_v20 = vld [vmem:[#allocation3 + $0x58] sm:$0xff]   ;;  %145 = vst [vmem:[#allocation3 + $0xdc] sm:$0xf] %v6375_v52 }
  0x78   :  { %2566 = vmatpush1.bf16.msra.mxu1 %v7423_v7  ;;  %2336 = vmatprep.mubr.bf16.mxu0 %v7425_v5  ;;  %v7459_v5 = vld [vmem:[%s10466_s1 + $0x48] ss:$16 sps:$4 sm:$0xff]   ;;  %v7579_v52 = vld [vmem:[%s10465_s0 + $0x40] ss:$16 sps:$4 sm:$0xff]  }
  0x79   :  { %2567 = vmatprep.subr.bf16.mxu1 %v10473_v2  ;;  %2528 = vmatprep.mubr.bf16.mxu1 %v7427_v11  ;;  %v6367_v7 = vld [vmem:[%s10467_s2 + $0x238] sm:$0xf]  ;;  %v7463_v11 = vld [vmem:[%s10466_s1 + $0x6c] ss:$16 sps:$4 sm:$0xff]  }
  0x7a   :  { %3682 = vmatprep.subr.bf16.mxu0 %v10473_v2  ;;  %129 = vst [vmem:[#allocation3 + $0xbc] sm:$0xf] %v6367_v7  ;;  %v7516_v7 = vld [vmem:[%s10466_s1 + $0x148] ss:$16 sps:$4 sm:$0xff]  }
  0x7b   :  { %3683 = vmatpush1.bf16.msra.mxu0 %v7533_v62  ;;  %v6376_v62 = vld [vmem:[%s10467_s2 + $0x2a4] sm:$0xf] }
  0x7c   :  { %2568 = vmatpush1.bf16.msra.mxu1 %v7424_v13  ;;  %3684 = vmatprep.subr.bf16.mxu0 %v10473_v2  ;;  %v7542_v13 = vld [vmem:[#allocation3 + $0x50] sm:$0xff]   ;;  %147 = vst [vmem:[#allocation3 + $0xe0] sm:$0xf] %v6376_v62  ;;  %v7587_v62 = vld [vmem:[%s10466_s1 + $0x28c] ss:$16 sps:$4 sm:$0xff]  }
  0x7d   :  { %2569 = vmatprep.subr.bf16.mxu1 %v10473_v2 }
  0x7f   :  { %2337 = vmatmul.mubr.bf16.gmra.mrb[24].mxu0 %v7429_v14  ;;  %2529 = vmatmul.mubr.bf16.gmra.mrb[24].mxu1 %v7430_v15  ;;  %v6348_v14 = vld [vmem:[%s10467_s2 + $0x154] sm:$0xf]  ;;  %v6349_v15 = vld [vmem:[%s10467_s2 + $0x160] sm:$0xf] }
  0x80   :  { %2570 = vmatpush1.bf16.msra.mxu1 %v7431_v18  ;;  %2344 = vmatprep.mubr.bf16.mxu0 %v7433_v16  ;;  %v6350_v16 = vld [vmem:[%s10467_s2 + $0x16c] sm:$0xf]  ;;  %91 = vst [vmem:[#allocation3 + $0x70] sm:$0xf] %v6348_v14  ;;  %93 = vst [vmem:[#allocation3 + $0x74] sm:$0xf] %v6349_v15 }
  0x81   :  { %2571 = vmatprep.subr.bf16.mxu1 %v10473_v2  ;;  %2536 = vmatprep.mubr.bf16.mxu1 %v7435_v21  ;;  %95 = vst [vmem:[#allocation3 + $0x78] sm:$0xf] %v6350_v16  ;;  %v7517_v18 = vld [vmem:[#allocation3 + $0xa8] sm:$0xff]   ;;  %v7527_v14 = vld [vmem:[%s10466_s1 + $0x284] ss:$16 sps:$4 sm:$0xff]  }
  0x82   :  { %3685 = vmatpush1.bf16.msra.mxu0 %v7535_v3  ;;  %v7466_v21 = vld [vmem:[%s10466_s1 + $0x68] ss:$16 sps:$4 sm:$0xff]   ;;  %v7510_v3 = vld [vmem:[%s10466_s1 + $0x244] ss:$16 sps:$4 sm:$0xff]   ;;  %v7529_v15 = vld [vmem:[%s10466_s1 + $0x18c] ss:$16 sps:$4 sm:$0xff]  }
  0x83   :  { %3686 = vmatprep.subr.bf16.mxu0 %v10473_v2 }
  0x84   :  { %2572 = vmatpush1.bf16.msra.mxu1 %v7432_v26  ;;  %v6369_v26 = vld [vmem:[%s10467_s2 + $0x250] sm:$0xf] }
  0x85   :  { %2573 = vmatprep.subr.bf16.mxu1 %v10473_v2  ;;  %133 = vst [vmem:[#allocation3 + $0xc4] sm:$0xf] %v6369_v26  ;;  %v7544_v26 = vld [vmem:[%s10466_s1 + $0x2c4] ss:$16 sps:$4 sm:$0xff]  }
  0x86   :  { %3687 = vmatpush1.bf16.msra.mxu0 %v7542_v13  ;;  %v7524_v13 = vld [vmem:[%s10466_s1 + $0x168] ss:$16 sps:$4 sm:$0xff]  }
  0x87   :  { %2345 = vmatmul.mubr.bf16.gmra.mrb[28].mxu0 %v7437_v27  ;;  %2537 = vmatmul.mubr.bf16.gmra.mrb[28].mxu1 %v7438_v28  ;;  %v7550_v27 = vld [vmem:[#allocation3 + $0x60] sm:$0xff]   ;;  %v7551_v28 = vld [vmem:[#allocation3 + $0xb8] sm:$0xff]   ;;  %v7559_v34 = vld [vmem:[#allocation3 + $0x70] sm:$0xff]  }
  0x88   :  { %2574 = vmatpush1.bf16.msra.mxu1 %v7439_v36  ;;  %2352 = vmatprep.mubr.bf16.mxu0 %v7441_v30  ;;  %v7552_v30 = vld [vmem:[#allocation3 + $0x68] sm:$0xff]   ;;  %v6370_v36 = vld [vmem:[%s10467_s2 + $0x25c] sm:$0xf] }
  0x89   :  { %2575 = vmatprep.subr.bf16.mxu1 %v10473_v2  ;;  %2577 = vmatprep.mubr.bf16.mxu1 %v7445_v33  ;;  %v7477_v33 = vld [vmem:[%s10466_s1 + $0xac] ss:$16 sps:$4 sm:$0xff]   ;;  %135 = vst [vmem:[#allocation3 + $0xc8] sm:$0xf] %v6370_v36  ;;  %v7558_v36 = vld [vmem:[%s10466_s1 + $0x1e8] ss:$16 sps:$4 sm:$0xff]  }
  0x8a   :  { %3688 = vmatprep.subr.bf16.mxu0 %v10473_v2 }
  0x8b   :  { %3689 = vmatpush1.bf16.msra.mxu0 %v7543_v20  ;;  %v7538_v20 = vld [vmem:[%s10466_s1 + $0x1ac] ss:$16 sps:$4 sm:$0xff]  }
  0x8c   :  { %2576 = vmatpush1.bf16.msra.mxu1 %v7440_v38  ;;  %3690 = vmatprep.subr.bf16.mxu0 %v10473_v2  ;;  %v7567_v35 = vld [vmem:[#allocation3 + $0xc0] sm:$0xff]   ;;  %v7560_v38 = vld [vmem:[#allocation3 + $0x78] sm:$0xff]  }
  0x8d   :  { %3955 = vmatprep.subr.bf16.mxu1 %v10473_v2 }
  0x8f   :  { %2353 = vmatmul.mubr.bf16.gmra.mrb[32].mxu0 %v7446_v41  ;;  %2578 = vmatmul.mubr.bf16.vlgmr.msra.gmra.mrb[32].mxu1 %v7443_v40  ;;  %v7480_v40 = vld [vmem:[%s10466_s1 + $0xa8] ss:$16 sps:$4 sm:$0xff]   ;;  %v7482_v41 = vld [vmem:[%s10466_s1 + $0x1c4] ss:$16 sps:$4 sm:$0xff]  }
  0x90   :  { %3956 = vmatpush1.bf16.msra.mxu1 %v7447_v46  ;;  %2360 = vmatprep.mubr.bf16.mxu0 %v7448_v44  ;;  %v7484_v44 = vld [vmem:[%s10466_s1 + $0xcc] ss:$16 sps:$4 sm:$0xff]   ;;  %v7486_v46 = vld [vmem:[%s10466_s1 + $0x1c0] ss:$16 sps:$4 sm:$0xff]  }
  0x91   :  { %2585 = vmatprep.mubr.bf16.mxu1 %v7450_v50  ;;  %3957 = vmatprep.subr.bf16.mxu1 %v10473_v2  ;;  %v7580_v45 = vld [vmem:[#allocation3 + $0xc8] sm:$0xff]  }
  0x92   :  { %3691 = vmatpush1.bf16.msra.mxu0 %v7550_v27  ;;  %v7491_v50 = vld [vmem:[%s10466_s1 + $0xec] ss:$16 sps:$4 sm:$0xff]  }
  0x93   :  { %3692 = vmatprep.subr.bf16.mxu0 %v10473_v2  ;;  %v7546_v27 = vld [vmem:[%s10466_s1 + $0x1cc] ss:$16 sps:$4 sm:$0xff]  }
  0x94   :  { %3958 = vmatpush1.bf16.msra.mxu1 %v7460_v51  ;;  %v6374_v51 = vld [vmem:[%s10467_s2 + $0x28c] sm:$0xf] }
  0x95   :  { %3959 = vmatprep.subr.bf16.mxu1 %v10473_v2  ;;  %143 = vst [vmem:[#allocation3 + $0xd8] sm:$0xf] %v6374_v51  ;;  %v7578_v51 = vld [vmem:[%s10466_s1 + $0x248] ss:$16 sps:$4 sm:$0xff]  }
  0x96   :  { %3693 = vmatpush1.bf16.msra.mxu0 %v7552_v30  ;;  %v7549_v30 = vld [vmem:[%s10466_s1 + $0x1c8] ss:$16 sps:$4 sm:$0xff]  }
  0x97   :  { %2361 = vmatmul.mubr.bf16.gmra.mrb[36].mxu0 %v7452_v57  ;;  %2586 = vmatmul.mubr.bf16.gmra.mrb[36].mxu1 %v7453_v58  ;;  %v7500_v58 = vld [vmem:[%s10466_s1 + $0x200] ss:$16 sps:$4 sm:$0xff]  }
  0x98   :  { %2368 = vmatprep.mubr.bf16.mxu0 %v7454_v59  ;;  %2593 = vmatprep.mubr.bf16.mxu1 %v7456_v60  ;;  %v7501_v59 = vld [vmem:[%s10466_s1 + $0x108] ss:$16 sps:$4 sm:$0xff]   ;;  %v7504_v60 = vld [vmem:[%s10466_s1 + $0x224] ss:$16 sps:$4 sm:$0xff]  }
  0x99   :  { %3960 = vmatpush1.bf16.msra.mxu1 %v7474_v61  ;;  %3694 = vmatprep.subr.bf16.mxu0 %v10473_v2  ;;  %v7506_v61 = vld [vmem:[%s10466_s1 + $0x12c] ss:$16 sps:$4 sm:$0xff]  }
  0x9a   :  { %3961 = vmatprep.subr.bf16.mxu1 %v10473_v2  ;;  %3695 = vmatpush1.bf16.msra.mxu0 %v7559_v34  ;;  %v6383_v34 = vld [vmem:[%s10467_s2 + $0x2f8] sm:$0xf] }
  0x9b   :  { %3696 = vmatprep.subr.bf16.mxu0 %v10473_v2  ;;  %161 = vst [vmem:[#allocation3 + $0xfc] sm:$0xf] %v6383_v34  ;;  %v7605_v34 = vld [vmem:[%s10465_s0 + $0xc0] ss:$16 sps:$4 sm:$0xff]  }
  0x9c   :  { %v7606_v57 = vld [vmem:[#allocation3 + $0xd8] sm:$0xff]  }
  0x9d   :  { %3962 = vmatpush1.bf16.msra.mxu1 %v7488_v1  ;;  %v7509_v1 = vld [vmem:[%s10466_s1 + $0x128] ss:$16 sps:$4 sm:$0xff]  }
  0x9e   :  { %3963 = vmatprep.subr.bf16.mxu1 %v10473_v2  ;;  %3697 = vmatpush1.bf16.msra.mxu0 %v7560_v38  ;;  %v7565_v38 = vld [vmem:[%s10465_s0 + $0x4] ss:$16 sps:$4 sm:$0xff]  }
  0x9f   :  { %2369 = vmatmul.mubr.bf16.gmra.mrb[40].mxu0 %v7458_v4  ;;  %2594 = vmatmul.mubr.bf16.gmra.mrb[40].mxu1 %v7459_v5  ;;  %v7512_v4 = vld [vmem:[%s10466_s1 + $0x14c] ss:$16 sps:$4 sm:$0xff]   ;;  %v7619_v5 = vld [vmem:[#allocation3 + $0xe0] sm:$0xff]  }
  0xa0   :  { %2376 = vmatprep.mubr.bf16.mxu0 %v7461_v10  ;;  %2601 = vmatprep.mubr.bf16.mxu1 %v7463_v11  ;;  %v6378_v10 = vld [vmem:[%s10467_s2 + $0x2bc] sm:$0xf]  ;;  %v6379_v11 = vld [vmem:[%s10467_s2 + $0x2c8] sm:$0xf] }
  0xa1   :  { %3964 = vmatpush1.bf16.msra.mxu1 %v7502_v12  ;;  %151 = vst [vmem:[#allocation3 + $0xe8] sm:$0xf] %v6378_v10  ;;  %153 = vst [vmem:[#allocation3 + $0xec] sm:$0xf] %v6379_v11  ;;  %v7523_v12 = vld [vmem:[%s10466_s1 + $0x260] ss:$16 sps:$4 sm:$0xff]  }
  0xa2   :  { %3965 = vmatprep.subr.bf16.mxu1 %v10473_v2  ;;  %v7594_v11 = vld [vmem:[%s10466_s1 + $0x2ac] ss:$16 sps:$4 sm:$0xff]  }
  0xa5   :  { %3966 = vmatpush1.bf16.msra.mxu1 %v7517_v18  ;;  %v7532_v18 = vld [vmem:[%s10466_s1 + $0x188] ss:$16 sps:$4 sm:$0xff]  }
  0xa6   :  { %3967 = vmatprep.subr.bf16.mxu1 %v10473_v2 }
  0xa7   :  { %2377 = vmatmul.mubr.bf16.gmra.mrb[44].mxu0 %v7465_v19  ;;  %2602 = vmatmul.mubr.bf16.gmra.mrb[44].mxu1 %v7466_v21  ;;  %v7536_v19 = vld [vmem:[%s10466_s1 + $0x2a4] ss:$16 sps:$4 sm:$0xff]  }
  0xa8   :  { %2384 = vmatprep.mubr.bf16.mxu0 %v7467_v22  ;;  %2609 = vmatprep.mubr.bf16.mxu1 %v7469_v23  ;;  %v7632_v16 = vld [vmem:[#allocation3 + $0xe8] sm:$0xff]   ;;  %v7641_v21 = vld [vmem:[%s10471_s6 + $0x4] ss:$12 sps:$4 sm:$0xff]   ;;  %v6380_v22 = vld [vmem:[%s10467_s2 + $0x2d4] sm:$0xf] }
  0xa9   :  { %3968 = vmatpush1.bf16.msra.mxu1 %v7534_v24  ;;  %v6381_v23 = vld [vmem:[%s10467_s2 + $0x2e0] sm:$0xf]  ;;  %155 = vst [vmem:[#allocation3 + $0xf0] sm:$0xf] %v6380_v22  ;;  %4894 = vmatprep.subr.bf16.mxu0 %v7641_v21  ;;  %v7598_v21 = vld [vmem:[%s10466_s1 + $0x2a8] ss:$16 sps:$4 sm:$0xff]  }
  0xaa   :  { %3969 = vmatprep.subr.bf16.mxu1 %v10473_v2  ;;  %157 = vst [vmem:[#allocation3 + $0xf4] sm:$0xf] %v6381_v23  ;;  %v7540_v24 = vld [vmem:[%s10466_s1 + $0x2a0] ss:$16 sps:$4 sm:$0xff]  }
  0xab   :  { %v7599_v22 = vld [vmem:[%s10465_s0 + $0xa0] ss:$16 sps:$4 sm:$0xff]  }
  0xad   :  { %3970 = vmatpush1.bf16.msra.mxu1 %v7551_v28 }
  0xae   :  { %3971 = vmatprep.subr.bf16.mxu1 %v10473_v2 }
  0xaf   :  { %2385 = vmatmul.mubr.bf16.gmra.mrb[48].mxu0 %v7472_v29  ;;  %2610 = vmatmul.mubr.bf16.gmra.mrb[48].mxu1 %v7473_v31  ;;  %v7548_v29 = vld [vmem:[%s10466_s1 + $0x2c0] ss:$16 sps:$4 sm:$0xff]   ;;  %v7553_v31 = vld [vmem:[%s10466_s1 + $0x2e4] ss:$16 sps:$4 sm:$0xff]  }
  0xb0   :  { %2392 = vmatprep.mubr.bf16.mxu0 %v7475_v32  ;;  %2617 = vmatprep.mubr.bf16.mxu1 %v7477_v33  ;;  %v7555_v32 = vld [vmem:[%s10466_s1 + $0x1ec] ss:$16 sps:$4 sm:$0xff]  }
  0xb1   :  { %3972 = vmatpush1.bf16.msra.mxu1 %v7567_v35  ;;  %v7648_v28 = vld [vmem:[#allocation3 + $0xf0] sm:$0xff]   ;;  %v6382_v33 = vld [vmem:[%s10467_s2 + $0x2ec] sm:$0xf] }
  0xb2   :  { %3973 = vmatprep.subr.bf16.mxu1 %v10473_v2  ;;  %159 = vst [vmem:[#allocation3 + $0xf8] sm:$0xf] %v6382_v33  ;;  %v7557_v35 = vld [vmem:[%s10466_s1 + $0x2e0] ss:$16 sps:$4 sm:$0xff]   ;;  %v7604_v33 = vld [vmem:[%s10466_s1 + $0x2c8] ss:$16 sps:$4 sm:$0xff]  }
  0xb5   :  { %3974 = vmatpush1.bf16.msra.mxu1 %v7580_v45  ;;  %v7670_v45 = vld [vmem:[%s10471_s6 + $0x1c] ss:$12 sps:$4 sm:$0xff]  }
  0xb6   :  { %3975 = vmatprep.subr.bf16.mxu1 %v10473_v2 }
  0xb7   :  { %2393 = vmatmul.mubr.bf16.gmra.mrb[52].mxu0 %v7479_v39  ;;  %2618 = vmatmul.mubr.bf16.gmra.mrb[52].mxu1 %v7480_v40  ;;  %v7563_v40 = vld [vmem:[%s10465_s0] ss:$16 sps:$4 sm:$0xff]  }
  0xb8   :  { %2400 = vmatprep.mubr.bf16.mxu0 %v7482_v41  ;;  %2625 = vmatprep.mubr.bf16.mxu1 %v7484_v44  ;;  %v7566_v41 = vld [vmem:[%s10466_s1 + $0x208] ss:$16 sps:$4 sm:$0xff]   ;;  %v7639_v44 = vld [vmem:[%s10471_s6] ss:$12 sps:$4 sm:$0xff]  }
  0xb9   :  { %3976 = vmatpush1.bf16.msra.mxu1 %v7593_v48  ;;  %v7661_v39 = vld [vmem:[#allocation3 + $0xf8] sm:$0xff]   ;;  %v7573_v48 = vld [vmem:[%s10465_s0 + $0x20] ss:$16 sps:$4 sm:$0xff]  }
  0xba   :  { %3977 = vmatprep.subr.bf16.mxu1 %v10473_v2 }
  0xbd   :  { %3978 = vmatpush1.bf16.msra.mxu1 %v7606_v57 }
  0xbe   :  { %3979 = vmatprep.subr.bf16.mxu1 %v10473_v2 }
  0xbf   :  { %2401 = vmatmul.mubr.bf16.gmra.mrb[56].mxu0 %v7486_v46  ;;  %2626 = vmatmul.mubr.bf16.gmra.mrb[56].mxu1 %v7487_v47  ;;  %v7668_v46 = vld [vmem:[%s10471_s6 + $0x18] ss:$12 sps:$4 sm:$0xff]  }
  0xc0   :  { %2408 = vmatprep.mubr.bf16.mxu0 %v7489_v49  ;;  %2633 = vmatprep.mubr.bf16.mxu1 %v7491_v50  ;;  %v7572_v47 = vld [vmem:[%s10466_s1 + $0x228] ss:$16 sps:$4 sm:$0xff]   ;;  %v7574_v49 = vld [vmem:[%s10466_s1 + $0x24c] ss:$16 sps:$4 sm:$0xff]   ;;  %v7576_v50 = vld [vmem:[%s10465_s0 + $0x44] ss:$16 sps:$4 sm:$0xff]  }
  0xc1   :  { %3980 = vmatpush1.bf16.msra.mxu1 %v7619_v5 }
  0xc2   :  { %3981 = vmatprep.subr.bf16.mxu1 %v10473_v2 }
  0xc5   :  { %3982 = vmatpush1.bf16.msra.mxu1 %v7632_v16  ;;  %v7697_v16 = vld [vmem:[%s10471_s6 + $0x34] ss:$12 sps:$4 sm:$0xff]  }
  0xc6   :  { %3983 = vmatprep.subr.bf16.mxu1 %v10473_v2 }
  0xc7   :  { %2409 = vmatmul.mubr.bf16.gmra.mrb[60].mxu0 %v7494_v53  ;;  %2634 = vmatmul.mubr.bf16.gmra.mrb[60].mxu1 %v7495_v54  ;;  %v7581_v53 = vld [vmem:[%s10466_s1 + $0x26c] ss:$16 sps:$4 sm:$0xff]   ;;  %v7583_v54 = vld [vmem:[%s10465_s0 + $0x64] ss:$16 sps:$4 sm:$0xff]  }
  0xc8   :  { %2416 = vmatprep.mubr.bf16.mxu0 %v7496_v55  ;;  %2641 = vmatprep.mubr.bf16.mxu1 %v7498_v56 }
  0xc9   :  { %3984 = vmatpush1.bf16.msra.mxu1 %v7648_v28 }
  0xca   :  { %3985 = vmatprep.subr.bf16.mxu1 %v10473_v2  ;;  %v7709_v2 = vld [vmem:[%s10465_s0 + $0xa8] ss:$16 sps:$4 sm:$0xff]  }
  0xcd   :  { %3986 = vmatpush1.bf16.msra.mxu1 %v7661_v39 }
  0xcf   :  { %2417 = vmatmul.mubr.bf16.gmra.mrb[64].mxu0 %v7500_v58  ;;  %2642 = vmatmul.mubr.bf16.gmra.mrb[64].mxu1 %v7501_v59  ;;  %v7585_v58 = vld [vmem:[%s10466_s1 + $0x268] ss:$16 sps:$4 sm:$0xff]   ;;  %v7586_v59 = vld [vmem:[%s10465_s0 + $0x60] ss:$16 sps:$4 sm:$0xff]  }
  0xd0   :  { %2424 = vmatprep.mubr.bf16.mxu0 %v7504_v60  ;;  %2649 = vmatprep.mubr.bf16.mxu1 %v7506_v61 }
  0xd7   :  { %2425 = vmatmul.mubr.bf16.gmra.mrb[68].mxu0 %v7508_v0  ;;  %2650 = vmatmul.mubr.bf16.gmra.mrb[68].mxu1 %v7509_v1 }
  0xd8   :  { %2432 = vmatprep.mubr.bf16.mxu0 %v7510_v3  ;;  %2657 = vmatprep.mubr.bf16.mxu1 %v7512_v4 }
  0xdf   :  { %2433 = vmatmul.mubr.bf16.gmra.mrb[72].mxu0 %v7515_v6  ;;  %2658 = vmatmul.mubr.bf16.gmra.mrb[72].mxu1 %v7516_v7  ;;  %v7591_v7 = vld [vmem:[%s10466_s1 + $0x288] ss:$16 sps:$4 sm:$0xff]  }
  0xe0   :  { %2440 = vmatprep.mubr.bf16.mxu0 %v7519_v8  ;;  %2665 = vmatprep.mubr.bf16.mxu1 %v7521_v9  ;;  %v7592_v8 = vld [vmem:[%s10465_s0 + $0x80] ss:$16 sps:$4 sm:$0xff]  }
  0xe7   :  { %2441 = vmatmul.mubr.bf16.gmra.mrb[76].mxu0 %v7523_v12  ;;  %2666 = vmatmul.mubr.bf16.gmra.mrb[76].mxu1 %v7524_v13  ;;  %v7596_v12 = vld [vmem:[%s10465_s0 + $0xa4] ss:$16 sps:$4 sm:$0xff]  }
  0xe8   :  { %2448 = vmatprep.mubr.bf16.mxu0 %v7527_v14  ;;  %2673 = vmatprep.mubr.bf16.mxu1 %v7529_v15 }
  0xef   :  { %2449 = vmatmul.mubr.bf16.gmra.mrb[80].mxu0 %v7531_v17  ;;  %2674 = vmatmul.mubr.bf16.gmra.mrb[80].mxu1 %v7532_v18  ;;  %v7695_v17 = vld [vmem:[%s10471_s6 + $0x30] ss:$12 sps:$4 sm:$0xff]  }
  0xf0   :  { %2456 = vmatprep.mubr.bf16.mxu0 %v7536_v19  ;;  %2681 = vmatprep.mubr.bf16.mxu1 %v7538_v20 }
  0xf7   :  { %2457 = vmatmul.mubr.bf16.gmra.mrb[84].mxu0 %v7540_v24  ;;  %2682 = vmatmul.mubr.bf16.gmra.mrb[84].mxu1 %v7541_v25  ;;  %v7600_v25 = vld [vmem:[%s10466_s1 + $0x2cc] ss:$16 sps:$4 sm:$0xff]  }
  0xf8   :  { %2464 = vmatprep.mubr.bf16.mxu0 %v7544_v26  ;;  %2689 = vmatprep.mubr.bf16.mxu1 %v7546_v27  ;;  %v7602_v26 = vld [vmem:[%s10465_s0 + $0xc4] ss:$16 sps:$4 sm:$0xff]  }
  0xff   :  { %2465 = vmatmul.mubr.bf16.gmra.mrb[88].mxu0 %v7548_v29  ;;  %2690 = vmatmul.mubr.bf16.gmra.mrb[88].mxu1 %v7549_v30 }
 0x100   :  { %2472 = vmatprep.mubr.bf16.mxu0 %v7553_v31  ;;  %2697 = vmatprep.mubr.bf16.mxu1 %v7555_v32 }
 0x107   :  { %2473 = vmatmul.mubr.bf16.gmra.mrb[92].mxu0 %v7557_v35  ;;  %2698 = vmatmul.mubr.bf16.gmra.mrb[92].mxu1 %v7558_v36 }
 0x108   :  { %2705 = vmatprep.mubr.bf16.mxu1 %v7561_v37  ;;  %3698 = vmatprep.mubr.bf16.mxu0 %v7565_v38  ;;  %v7607_v37 = vld [vmem:[%s10466_s1 + $0x2ec] ss:$16 sps:$4 sm:$0xff]   ;;  %v7609_v38 = vld [vmem:[%s10465_s0 + $0xe4] ss:$16 sps:$4 sm:$0xff]  }
 0x10f   :  { %2706 = vmatmul.mubr.bf16.gmra.mrb[96].mxu1 %v7566_v41  ;;  %3699 = vmatmul.mubr.bf16.vlgmr.msra.gmra.mrb[96].mxu0 %v7563_v40 }
 0x110   :  { %2713 = vmatprep.mubr.bf16.mxu1 %v7568_v42  ;;  %3706 = vmatprep.mubr.bf16.mxu0 %v7570_v43 }
 0x111   :  { %4895 = vmatpush1.bf16.msra.mxu0 %v7639_v44 }
 0x112   :  { %4896 = vmatprep.subr.bf16.mxu0 %v7670_v45  ;;  %v7611_v45 = vld [vmem:[%s10466_s1 + $0x2e8] ss:$16 sps:$4 sm:$0xff]  }
 0x115   :  { %4897 = vmatpush1.bf16.msra.mxu0 %v7668_v46  ;;  %v7612_v46 = vld [vmem:[%s10465_s0 + $0xe0] ss:$16 sps:$4 sm:$0xff]  }
 0x116   :  { %4898 = vmatprep.subr.bf16.mxu0 %v7697_v16  ;;  %v7624_v16 = vld [vmem:[%s10466_s1 + $0x328] ss:$16 sps:$4 sm:$0xff]  }
 0x117   :  { %2714 = vmatmul.mubr.bf16.gmra.mrb[100].mxu1 %v7572_v47  ;;  %3707 = vmatmul.mubr.bf16.gmra.mrb[100].mxu0 %v7573_v48 }
 0x118   :  { %2721 = vmatprep.mubr.bf16.mxu1 %v7574_v49  ;;  %3714 = vmatprep.mubr.bf16.mxu0 %v7576_v50  ;;  %v7613_v49 = vld [vmem:[%s10466_s1 + $0x30c] ss:$16 sps:$4 sm:$0xff]   ;;  %v7615_v50 = vld [vmem:[%s10465_s0 + $0x104] ss:$16 sps:$4 sm:$0xff]  }
 0x119   :  { %4899 = vmatpush1.bf16.msra.mxu0 %v7695_v17  ;;  %v7625_v17 = vld [vmem:[%s10465_s0 + $0x120] ss:$16 sps:$4 sm:$0xff]  }
 0x11f   :  { %2722 = vmatmul.mubr.bf16.gmra.mrb[104].mxu1 %v7578_v51  ;;  %3715 = vmatmul.mubr.bf16.gmra.mrb[104].mxu0 %v7579_v52 }
 0x120   :  { %2729 = vmatprep.mubr.bf16.mxu1 %v7581_v53  ;;  %3722 = vmatprep.mubr.bf16.mxu0 %v7583_v54 }
 0x122   :  { %v8689_v55 = vpop.f32.mrb[0].mxu1  ;;  %v8691_v56 = vpop.f32.mrb[0].mxu0 }
 0x123   :  { %v2484_v57 = vpop.f32.mrb[1].mxu1  ;;  %v2292_v60 = vpop.f32.mrb[1].mxu0 }
 0x124   :  { %v8699_v61 = vpop.f32.mrb[2].mxu1  ;;  %v8707_v0 = vpop.f32.mrb[2].mxu0  ;;  %v7618_v60 = vld [vmem:[%s10465_s0 + $0x100] ss:$16 sps:$4 sm:$0xff]  }
 0x125   :  { %v2487_v1 = vpop.f32.mrb[3].mxu1  ;;  %v2295_v3 = vpop.f32.mrb[3].mxu0 }
 0x126   :  { %v7620_v1 = vld [vmem:[%s10466_s1 + $0x32c] ss:$16 sps:$4 sm:$0xff]   ;;  %v7622_v3 = vld [vmem:[%s10465_s0 + $0x124] ss:$16 sps:$4 sm:$0xff]  }
 0x127   :  { %2730 = vmatmul.mubr.bf16.gmra.mrb[108].mxu1 %v7585_v58  ;;  %3723 = vmatmul.mubr.bf16.gmra.mrb[108].mxu0 %v7586_v59  ;;  %v7617_v59 = vld [vmem:[%s10466_s1 + $0x308] ss:$16 sps:$4 sm:$0xff]  }
 0x128   :  { %2737 = vmatprep.mubr.bf16.mxu1 %v7587_v62  ;;  %3730 = vmatprep.mubr.bf16.mxu0 %v7589_v63 }
 0x12a   :  { %v8709_v4 = vpop.f32.mrb[4].mxu1  ;;  %v8711_v5 = vpop.f32.mrb[4].mxu0 }
 0x12b   :  { %v2492_v6 = vpop.f32.mrb[5].mxu1  ;;  %v2300_v9 = vpop.f32.mrb[5].mxu0 }
 0x12c   :  { %v8719_v10 = vpop.f32.mrb[6].mxu1  ;;  %v8727_v13 = vpop.f32.mrb[6].mxu0  ;;  %v7724_v9 = vld [vmem:[%s10471_s6 + $0x4c] ss:$12 sps:$4 sm:$0xff]  }
 0x12d   :  { %v2495_v14 = vpop.f32.mrb[7].mxu1  ;;  %v2303_v15 = vpop.f32.mrb[7].mxu0  ;;  %4900 = vmatprep.subr.bf16.mxu0 %v7724_v9 }
 0x12f   :  { %2738 = vmatmul.mubr.bf16.gmra.mrb[112].mxu1 %v7591_v7  ;;  %3731 = vmatmul.mubr.bf16.gmra.mrb[112].mxu0 %v7592_v8 }
 0x130   :  { %2745 = vmatprep.mubr.bf16.mxu1 %v7594_v11  ;;  %3738 = vmatprep.mubr.bf16.mxu0 %v7596_v12  ;;  %v7722_v11 = vld [vmem:[%s10471_s6 + $0x48] ss:$12 sps:$4 sm:$0xff]  }
 0x131   :  { %4901 = vmatpush1.bf16.msra.mxu0 %v7722_v11 }
 0x132   :  { %v8735_v18 = vpop.f32.mrb[8].mxu1  ;;  %v8737_v19 = vpop.f32.mrb[8].mxu0 }
 0x133   :  { %v2500_v20 = vpop.f32.mrb[9].mxu1  ;;  %v2308_v23 = vpop.f32.mrb[9].mxu0 }
 0x134   :  { %v8745_v24 = vpop.f32.mrb[10].mxu1  ;;  %v8753_v27 = vpop.f32.mrb[10].mxu0  ;;  %v7628_v23 = vld [vmem:[%s10465_s0 + $0x144] ss:$16 sps:$4 sm:$0xff]  }
 0x135   :  { %v2503_v28 = vpop.f32.mrb[11].mxu1  ;;  %v2311_v29 = vpop.f32.mrb[11].mxu0 }
 0x137   :  { %2746 = vmatmul.mubr.bf16.gmra.mrb[116].mxu1 %v7598_v21  ;;  %3739 = vmatmul.mubr.bf16.gmra.mrb[116].mxu0 %v7599_v22  ;;  %v7626_v22 = vld [vmem:[%s10466_s1 + $0x34c] ss:$16 sps:$4 sm:$0xff]  }
 0x138   :  { %2753 = vmatprep.mubr.bf16.mxu1 %v7600_v25  ;;  %3746 = vmatprep.mubr.bf16.mxu0 %v7602_v26 }
 0x13a   :  { %v8755_v30 = vpop.f32.mrb[12].mxu1  ;;  %v8757_v31 = vpop.f32.mrb[12].mxu0 }
 0x13b   :  { %v2508_v32 = vpop.f32.mrb[13].mxu1  ;;  %v2316_v35 = vpop.f32.mrb[13].mxu0 }
 0x13c   :  { %v8765_v36 = vpop.f32.mrb[14].mxu1  ;;  %v8773_v39 = vpop.f32.mrb[14].mxu0  ;;  %v7631_v35 = vld [vmem:[%s10465_s0 + $0x140] ss:$16 sps:$4 sm:$0xff]  }
 0x13d   :  { %v2511_v40 = vpop.f32.mrb[15].mxu1  ;;  %v2319_v41 = vpop.f32.mrb[15].mxu0 }
 0x13e   :  { %v7633_v40 = vld [vmem:[%s10466_s1 + $0x36c] ss:$16 sps:$4 sm:$0xff]   ;;  %v7635_v41 = vld [vmem:[%s10465_s0 + $0x164] ss:$16 sps:$4 sm:$0xff]  }
 0x13f   :  { %2754 = vmatmul.mubr.bf16.gmra.mrb[120].mxu1 %v7604_v33  ;;  %3747 = vmatmul.mubr.bf16.gmra.mrb[120].mxu0 %v7605_v34  ;;  %v7630_v34 = vld [vmem:[%s10466_s1 + $0x348] ss:$16 sps:$4 sm:$0xff]  }
 0x140   :  { %2761 = vmatprep.mubr.bf16.mxu1 %v7607_v37  ;;  %3754 = vmatprep.mubr.bf16.mxu0 %v7609_v38 }
 0x142   :  { %v8775_v42 = vpop.f32.mrb[16].mxu1  ;;  %v8777_v43 = vpop.f32.mrb[16].mxu0 }
 0x143   :  { %v2516_v44 = vpop.f32.mrb[17].mxu1  ;;  %v2324_v47 = vpop.f32.mrb[17].mxu0 }
 0x144   :  { %v8785_v48 = vpop.f32.mrb[18].mxu1  ;;  %v8793_v51 = vpop.f32.mrb[18].mxu0 }
 0x145   :  { %10475 = vst [vmem:[#allocation6_spill] sm:$0xff] %v8785_v48  ;;  %v2519_v52 = vpop.f32.mrb[19].mxu1  ;;  %v2327_v53 = vpop.f32.mrb[19].mxu0 }
 0x146   :  { %v7637_v52 = vld [vmem:[%s10466_s1 + $0x368] ss:$16 sps:$4 sm:$0xff]   ;;  %v7638_v53 = vld [vmem:[%s10465_s0 + $0x160] ss:$16 sps:$4 sm:$0xff]  }
 0x147   :  { %2762 = vmatmul.mubr.bf16.gmra.mrb[124].mxu1 %v7611_v45  ;;  %3755 = vmatmul.mubr.bf16.gmra.mrb[124].mxu0 %v7612_v46 }
 0x148   :  { %2769 = vmatprep.mubr.bf16.mxu1 %v7613_v49  ;;  %3762 = vmatprep.mubr.bf16.mxu0 %v7615_v50 }
 0x14a   :  { %v8795_v54 = vpop.f32.mrb[20].mxu1  ;;  %v8797_v57 = vpop.f32.mrb[20].mxu0 }
 0x14b   :  { %10476 = vst [vmem:[#allocation7_spill] sm:$0xff] %v8795_v54  ;;  %v2524_v58 = vpop.f32.mrb[21].mxu1  ;;  %v2332_v62 = vpop.f32.mrb[21].mxu0  ;;  %v7729_v54 = vld [vmem:[%s10465_s0 + $0x300] ss:$16 sps:$4 sm:$0xff]  }
 0x14c   :  { %v8805_v63 = vpop.f32.mrb[22].mxu1  ;;  %v8813_v6 = vpop.f32.mrb[22].mxu0  ;;  %v7642_v62 = vld [vmem:[%s10466_s1 + $0x38c] ss:$16 sps:$4 sm:$0xff]  }
 0x14d   :  { %10477 = vst [vmem:[#allocation8_spill] sm:$0xff] %v8805_v63  ;;  %v2527_v7 = vpop.f32.mrb[23].mxu1  ;;  %v2335_v8 = vpop.f32.mrb[23].mxu0 }
 0x14f   :  { %2770 = vmatmul.mubr.bf16.gmra.mrb[128].mxu1 %v7617_v59  ;;  %3763 = vmatmul.mubr.bf16.gmra.mrb[128].mxu0 %v7618_v60 }
 0x150   :  { %2777 = vmatprep.mubr.bf16.mxu1 %v7620_v1  ;;  %3770 = vmatprep.mubr.bf16.mxu0 %v7622_v3  ;;  %v7644_v1 = vld [vmem:[%s10465_s0 + $0x184] ss:$16 sps:$4 sm:$0xff]  }
 0x152   :  { %v8821_v12 = vpop.f32.mrb[24].mxu1  ;;  %v8823_v14 = vpop.f32.mrb[24].mxu0 }
 0x153   :  { %10478 = vst [vmem:[#allocation9_spill] sm:$0xff] %v8821_v12  ;;  %v2532_v15 = vpop.f32.mrb[25].mxu1  ;;  %v2340_v20 = vpop.f32.mrb[25].mxu0  ;;  %v7720_v12 = vld [vmem:[%s10465_s0 + $0x2e0] ss:$16 sps:$4 sm:$0xff]  }
 0x154   :  { %v8831_v21 = vpop.f32.mrb[26].mxu1  ;;  %v8839_v25 = vpop.f32.mrb[26].mxu0 }
 0x155   :  { %10479 = vst [vmem:[#allocation10_spill] sm:$0xff] %v8831_v21  ;;  %v2535_v26 = vpop.f32.mrb[27].mxu1  ;;  %v2343_v28 = vpop.f32.mrb[27].mxu0 }
 0x156   :  { %v7651_v26 = vld [vmem:[%s10465_s0 + $0x1a4] ss:$16 sps:$4 sm:$0xff]  }
 0x157   :  { %2778 = vmatmul.mubr.bf16.gmra.mrb[132].mxu1 %v7624_v16  ;;  %3771 = vmatmul.mubr.bf16.gmra.mrb[132].mxu0 %v7625_v17  ;;  %v7646_v16 = vld [vmem:[%s10466_s1 + $0x388] ss:$16 sps:$4 sm:$0xff]   ;;  %v7647_v17 = vld [vmem:[%s10465_s0 + $0x180] ss:$16 sps:$4 sm:$0xff]  }
 0x158   :  { %2785 = vmatprep.mubr.bf16.mxu1 %v7626_v22  ;;  %3778 = vmatprep.mubr.bf16.mxu0 %v7628_v23  ;;  %v7649_v23 = vld [vmem:[%s10466_s1 + $0x3ac] ss:$16 sps:$4 sm:$0xff]  }
 0x15a   :  { %v8841_v29 = vpop.f32.mrb[28].mxu1  ;;  %v8843_v32 = vpop.f32.mrb[28].mxu0 }
 0x15b   :  { %10480 = vst [vmem:[#allocation11_spill] sm:$0xff] %v8841_v29  ;;  %v2540_v33 = vpop.f32.mrb[29].mxu1  ;;  %v2348_v37 = vpop.f32.mrb[29].mxu0  ;;  %v7714_v29 = vld [vmem:[%s10465_s0 + $0x2c0] ss:$16 sps:$4 sm:$0xff]  }
 0x15c   :  { %v8851_v38 = vpop.f32.mrb[30].mxu1  ;;  %v8859_v44 = vpop.f32.mrb[30].mxu0  ;;  %v7749_v37 = vld [vmem:[%s10471_s6 + $0x60] ss:$12 sps:$4 sm:$0xff]  }
 0x15d   :  { %10481 = vst [vmem:[#allocation12_spill] sm:$0xff] %v8851_v38  ;;  %v2543_v45 = vpop.f32.mrb[31].mxu1  ;;  %v2351_v46 = vpop.f32.mrb[31].mxu0 }
 0x15e   :  { %v7653_v46 = vld [vmem:[%s10466_s1 + $0x3a8] ss:$16 sps:$4 sm:$0xff]  }
 0x15f   :  { %2786 = vmatmul.mubr.bf16.gmra.mrb[136].mxu1 %v7630_v34  ;;  %3779 = vmatmul.mubr.bf16.gmra.mrb[136].mxu0 %v7631_v35 }
 0x160   :  { %2793 = vmatprep.mubr.bf16.mxu1 %v7633_v40  ;;  %3786 = vmatprep.mubr.bf16.mxu0 %v7635_v41  ;;  %v8914_v40 = vld [vmem:[%s10471_s6 + $0x8] ss:$12 sps:$4 sm:$0xff]  }
 0x161   :  { %7248 = vmatprep.subr.bf16.mxu1 %v8914_v40 }
 0x162   :  { %v2579_v47 = vpop.f32.mrb[32].mxu1  ;;  %v8861_v49 = vpop.f32.mrb[32].mxu0 }
 0x163   :  { %v2581_v50 = vpop.f32.mrb[33].mxu1  ;;  %v2356_v58 = vpop.f32.mrb[33].mxu0  ;;  %v8870_v59 = vadd.f32 %v2579_v47, %v8691_v56  ;;  %v7654_v47 = vld [vmem:[%s10465_s0 + $0x1a0] ss:$16 sps:$4 sm:$0xff]  }
 0x164   :  { %v2582_v60 = vpop.f32.mrb[34].mxu1  ;;  %v8878_v3 = vpop.f32.mrb[34].mxu0  ;;  %v7655_v58 = vld [vmem:[%s10466_s1 + $0x3cc] ss:$16 sps:$4 sm:$0xff]  }
 0x165   :  { %v2584_v7 = vpop.f32.mrb[35].mxu1  ;;  %v2359_v8 = vpop.f32.mrb[35].mxu0  ;;  %v8881_v9 = vadd.f32 %v2582_v60, %v8707_v0  ;;  %v7657_v60 = vld [vmem:[%s10465_s0 + $0x1c4] ss:$16 sps:$4 sm:$0xff]  }
 0x167   :  { %2794 = vmatmul.mubr.bf16.gmra.mrb[140].mxu1 %v7637_v52  ;;  %3787 = vmatmul.mubr.bf16.gmra.mrb[140].mxu0 %v7638_v53 }
 0x168   :  { %2801 = vmatprep.mubr.bf16.mxu1 %v7642_v62  ;;  %3794 = vmatprep.mubr.bf16.mxu0 %v7644_v1 }
 0x16a   :  { %v2587_v56 = vpop.f32.mrb[36].mxu1  ;;  %v8883_v11 = vpop.f32.mrb[36].mxu0 }
 0x16b   :  { %v2589_v15 = vpop.f32.mrb[37].mxu1  ;;  %v2364_v20 = vpop.f32.mrb[37].mxu0  ;;  %v8892_v0 = vadd.f32 %v2587_v56, %v8711_v5  ;;  %v7751_v5 = vld [vmem:[%s10471_s6 + $0x64] ss:$12 sps:$4 sm:$0xff]  }
 0x16c   :  { %v2590_v22 = vpop.f32.mrb[38].mxu1  ;;  %v8900_v28 = vpop.f32.mrb[38].mxu0  ;;  %4902 = vmatprep.subr.bf16.mxu0 %v7751_v5 }
 0x16d   :  { %v2592_v33 = vpop.f32.mrb[39].mxu1  ;;  %v2367_v34 = vpop.f32.mrb[39].mxu0  ;;  %v8903_v35 = vadd.f32 %v2590_v22, %v8727_v13  ;;  %4903 = vmatpush1.bf16.msra.mxu0 %v7749_v37 }
 0x16f   :  { %2802 = vmatmul.mubr.bf16.gmra.mrb[144].mxu1 %v7646_v16  ;;  %3795 = vmatmul.mubr.bf16.gmra.mrb[144].mxu0 %v7647_v17  ;;  %v7659_v16 = vld [vmem:[%s10466_s1 + $0x3c8] ss:$16 sps:$4 sm:$0xff]   ;;  %v7660_v17 = vld [vmem:[%s10465_s0 + $0x1c0] ss:$16 sps:$4 sm:$0xff]  }
 0x170   :  { %2809 = vmatprep.mubr.bf16.mxu1 %v7649_v23  ;;  %3802 = vmatprep.mubr.bf16.mxu0 %v7651_v26  ;;  %v7662_v23 = vld [vmem:[%s10466_s1 + $0x3ec] ss:$16 sps:$4 sm:$0xff]   ;;  %v7664_v26 = vld [vmem:[%s10465_s0 + $0x1e4] ss:$16 sps:$4 sm:$0xff]  }
 0x172   :  { %v2595_v13 = vpop.f32.mrb[40].mxu1  ;;  %v8917_v41 = vpop.f32.mrb[40].mxu0 }
 0x173   :  { %v2597_v45 = vpop.f32.mrb[41].mxu1  ;;  %v2372_v50 = vpop.f32.mrb[41].mxu0  ;;  %v8926_v52 = vadd.f32 %v2595_v13, %v8737_v19 }
 0x174   :  { %v2598_v53 = vpop.f32.mrb[42].mxu1  ;;  %v8934_v62 = vpop.f32.mrb[42].mxu0 }
 0x175   :  { %v2600_v1 = vpop.f32.mrb[43].mxu1  ;;  %v2375_v7 = vpop.f32.mrb[43].mxu0  ;;  %v8937_v8 = vadd.f32 %v2598_v53, %v8753_v27 }
 0x177   :  { %2810 = vmatmul.mubr.bf16.gmra.mrb[148].mxu1 %v7653_v46  ;;  %3803 = vmatmul.mubr.bf16.gmra.mrb[148].mxu0 %v7654_v47  ;;  %v7666_v46 = vld [vmem:[%s10466_s1 + $0x3e8] ss:$16 sps:$4 sm:$0xff]   ;;  %v7667_v47 = vld [vmem:[%s10465_s0 + $0x1e0] ss:$16 sps:$4 sm:$0xff]  }
 0x178   :  { %2817 = vmatprep.mubr.bf16.mxu1 %v7655_v58  ;;  %3810 = vmatprep.mubr.bf16.mxu0 %v7657_v60  ;;  %v7671_v58 = vld [vmem:[%s10465_s0 + $0x204] ss:$16 sps:$4 sm:$0xff]   ;;  %v7675_v60 = vld [vmem:[%s10465_s0 + $0xc] ss:$16 sps:$4 sm:$0xff]  }
 0x17a   :  { %v2603_v19 = vpop.f32.mrb[44].mxu1  ;;  %v8939_v56 = vpop.f32.mrb[44].mxu0 }
 0x17b   :  { %v2605_v15 = vpop.f32.mrb[45].mxu1  ;;  %v2380_v20 = vpop.f32.mrb[45].mxu0  ;;  %v8948_v27 = vadd.f32 %v2603_v19, %v8757_v31 }
 0x17c   :  { %v2606_v22 = vpop.f32.mrb[46].mxu1  ;;  %v8956_v33 = vpop.f32.mrb[46].mxu0  ;;  %v7673_v20 = vld [vmem:[%s10465_s0 + $0x8] ss:$16 sps:$4 sm:$0xff]  }
 0x17d   :  { %v2608_v34 = vpop.f32.mrb[47].mxu1  ;;  %v2383_v5 = vpop.f32.mrb[47].mxu0  ;;  %v8959_v37 = vadd.f32 %v2606_v22, %v8773_v39  ;;  %v7676_v22 = vld [vmem:[%s10465_s0 + $0x200] ss:$16 sps:$4 sm:$0xff]  }
 0x17e   :  { %v7677_v34 = vld [vmem:[%s10465_s0 + $0x224] ss:$16 sps:$4 sm:$0xff]   ;;  %v7679_v5 = vld [vmem:[%s10465_s0 + $0x2c] ss:$16 sps:$4 sm:$0xff]  }
 0x17f   :  { %2818 = vmatmul.mubr.bf16.gmra.mrb[152].mxu1 %v7659_v16  ;;  %3811 = vmatmul.mubr.bf16.gmra.mrb[152].mxu0 %v7660_v17 }
 0x180   :  { %2825 = vmatprep.mubr.bf16.mxu1 %v7662_v23  ;;  %3818 = vmatprep.mubr.bf16.mxu0 %v7664_v26 }
 0x182   :  { %v2611_v31 = vpop.f32.mrb[48].mxu1  ;;  %v8961_v13 = vpop.f32.mrb[48].mxu0 }
 0x183   :  { %v2613_v45 = vpop.f32.mrb[49].mxu1  ;;  %v2388_v50 = vpop.f32.mrb[49].mxu0  ;;  %v8970_v39 = vadd.f32 %v2611_v31, %v8777_v43 }
 0x184   :  { %v2614_v53 = vpop.f32.mrb[50].mxu1  ;;  %v8978_v1 = vpop.f32.mrb[50].mxu0  ;;  %v7777_v50 = vld [vmem:[%s10471_s6 + $0x78] ss:$12 sps:$4 sm:$0xff]  }
 0x185   :  { %v2616_v7 = vpop.f32.mrb[51].mxu1  ;;  %v2391_v19 = vpop.f32.mrb[51].mxu0  ;;  %v8981_v15 = vadd.f32 %v2614_v53, %v8793_v51  ;;  %v7780_v53 = vld [vmem:[%s10471_s6 + $0x20] ss:$12 sps:$4 sm:$0xff]  }
 0x186   :  { %v7681_v7 = vld [vmem:[%s10465_s0 + $0x220] ss:$16 sps:$4 sm:$0xff]   ;;  %v7682_v19 = vld [vmem:[%s10465_s0 + $0x28] ss:$16 sps:$4 sm:$0xff]  }
 0x187   :  { %2826 = vmatmul.mubr.bf16.gmra.mrb[156].mxu1 %v7666_v46  ;;  %3819 = vmatmul.mubr.bf16.gmra.mrb[156].mxu0 %v7667_v47 }
 0x188   :  { %3826 = vmatprep.mubr.bf16.mxu0 %v7671_v58  ;;  %3987 = vmatprep.mubr.bf16.mxu1 %v7675_v60 }
 0x18a   :  { %v2619_v43 = vpop.f32.mrb[52].mxu1  ;;  %v8983_v16 = vpop.f32.mrb[52].mxu0 }
 0x18b   :  { %v2621_v17 = vpop.f32.mrb[53].mxu1  ;;  %v2396_v23 = vpop.f32.mrb[53].mxu0  ;;  %v8992_v51 = vadd.f32 %v2619_v43, %v8797_v57  ;;  %v7779_v57 = vld [vmem:[%s10471_s6 + $0x7c] ss:$12 sps:$4 sm:$0xff]  }
 0x18c   :  { %v2622_v26 = vpop.f32.mrb[54].mxu1  ;;  %v9000_v31 = vpop.f32.mrb[54].mxu0  ;;  %4904 = vmatprep.subr.bf16.mxu0 %v7779_v57  ;;  %v7687_v57 = vld [vmem:[%s10465_s0 + $0x240] ss:$16 sps:$4 sm:$0xff]  }
 0x18d   :  { %v2624_v45 = vpop.f32.mrb[55].mxu1  ;;  %v2399_v46 = vpop.f32.mrb[55].mxu0  ;;  %v9003_v47 = vadd.f32 %v2622_v26, %v8813_v6  ;;  %4905 = vmatpush1.bf16.msra.mxu0 %v7777_v50  ;;  %v7688_v50 = vld [vmem:[%s10465_s0 + $0x48] ss:$16 sps:$4 sm:$0xff]  }
 0x18f   :  { %3827 = vmatmul.mubr.bf16.gmra.mrb[160].mxu0 %v7676_v22  ;;  %3988 = vmatmul.mubr.bf16.vlgmr.msra.gmra.mrb[160].mxu1 %v7673_v20  ;;  %v7683_v20 = vld [vmem:[%s10465_s0 + $0x244] ss:$16 sps:$4 sm:$0xff]   ;;  %v7685_v22 = vld [vmem:[%s10465_s0 + $0x4c] ss:$16 sps:$4 sm:$0xff]  }
 0x190   :  { %3834 = vmatprep.mubr.bf16.mxu0 %v7677_v34  ;;  %3995 = vmatprep.mubr.bf16.mxu1 %v7679_v5 }
 0x191   :  { %7249 = vmatpush3.bf16.msra.mxu1 %v8914_v40 }
 0x192   :  { %v2627_v6 = vpop.f32.mrb[56].mxu1  ;;  %v9015_v58 = vpop.f32.mrb[56].mxu0  ;;  %7250 = vmatprep.subr.bf16.mxu1 %v7780_v53 }
 0x193   :  { %v2629_v60 = vpop.f32.mrb[57].mxu1  ;;  %v2404_v43 = vpop.f32.mrb[57].mxu0  ;;  %v9024_v17 = vadd.f32 %v2627_v6, %v8823_v14 }
 0x194   :  { %v2630_v40 = vpop.f32.mrb[58].mxu1  ;;  %v9032_v23 = vpop.f32.mrb[58].mxu0  ;;  %v7689_v60 = vld [vmem:[%s10465_s0 + $0x264] ss:$16 sps:$4 sm:$0xff]  }
 0x195   :  { %v2632_v26 = vpop.f32.mrb[59].mxu1  ;;  %v2407_v34 = vpop.f32.mrb[59].mxu0  ;;  %7251 = vmatpush3.bf16.msra.mxu1 %v7780_v53  ;;  %v9035_v5 = vadd.f32 %v2630_v40, %v8839_v25 }
 0x196   :  { %v7693_v34 = vld [vmem:[%s10465_s0 + $0x260] ss:$16 sps:$4 sm:$0xff]  }
 0x197   :  { %3835 = vmatmul.mubr.bf16.gmra.mrb[164].mxu0 %v7681_v7  ;;  %3996 = vmatmul.mubr.bf16.gmra.mrb[164].mxu1 %v7682_v19  ;;  %v7691_v7 = vld [vmem:[%s10465_s0 + $0x6c] ss:$16 sps:$4 sm:$0xff]  }
 0x198   :  { %3842 = vmatprep.mubr.bf16.mxu0 %v7683_v20  ;;  %4003 = vmatprep.mubr.bf16.mxu1 %v7685_v22 }
 0x19a   :  { %v2635_v14 = vpop.f32.mrb[60].mxu1  ;;  %v9037_v45 = vpop.f32.mrb[60].mxu0 }
 0x19b   :  { %v2637_v46 = vpop.f32.mrb[61].mxu1  ;;  %v2412_v53 = vpop.f32.mrb[61].mxu0  ;;  %v9046_v25 = vadd.f32 %v2635_v14, %v8843_v32  ;;  %v7694_v14 = vld [vmem:[%s10465_s0 + $0x68] ss:$16 sps:$4 sm:$0xff]  }
 0x19c   :  { %v2638_v6 = vpop.f32.mrb[62].mxu1  ;;  %v9054_v19 = vpop.f32.mrb[62].mxu0  ;;  %v7700_v53 = vld [vmem:[%s10465_s0 + $0x8c] ss:$16 sps:$4 sm:$0xff]  }
 0x19d   :  { %v2640_v43 = vpop.f32.mrb[63].mxu1  ;;  %v2415_v40 = vpop.f32.mrb[63].mxu0  ;;  %v9057_v20 = vadd.f32 %v2638_v6, %v8859_v44 }
 0x19f   :  { %3843 = vmatmul.mubr.bf16.gmra.mrb[168].mxu0 %v7687_v57  ;;  %4004 = vmatmul.mubr.bf16.gmra.mrb[168].mxu1 %v7688_v50  ;;  %v7698_v50 = vld [vmem:[%s10465_s0 + $0x284] ss:$16 sps:$4 sm:$0xff]  }
 0x1a0   :  { %3850 = vmatprep.mubr.bf16.mxu0 %v7689_v60  ;;  %4011 = vmatprep.mubr.bf16.mxu1 %v7691_v7 }
 0x1a2   :  { %v2643_v32 = vpop.f32.mrb[64].mxu1  ;;  %v9059_v22 = vpop.f32.mrb[64].mxu0 }
 0x1a3   :  { %v2645_v26 = vpop.f32.mrb[65].mxu1  ;;  %v2420_v46 = vpop.f32.mrb[65].mxu0  ;;  %v9068_v44 = vadd.f32 %v2643_v32, %v8861_v49 }
 0x1a4   :  { %v2646_v57 = vpop.f32.mrb[66].mxu1  ;;  %v9076_v6 = vpop.f32.mrb[66].mxu0  ;;  %v7702_v26 = vld [vmem:[%s10465_s0 + $0x280] ss:$16 sps:$4 sm:$0xff]   ;;  %v7703_v46 = vld [vmem:[%s10465_s0 + $0x88] ss:$16 sps:$4 sm:$0xff]  }
 0x1a5   :  { %v2648_v60 = vpop.f32.mrb[67].mxu1  ;;  %v2423_v7 = vpop.f32.mrb[67].mxu0  ;;  %v9079_v43 = vadd.f32 %v2646_v57, %v8878_v3  ;;  %v7706_v57 = vld [vmem:[%s10465_s0 + $0xac] ss:$16 sps:$4 sm:$0xff]  }
 0x1a7   :  { %3851 = vmatmul.mubr.bf16.gmra.mrb[172].mxu0 %v7693_v34  ;;  %4012 = vmatmul.mubr.bf16.gmra.mrb[172].mxu1 %v7694_v14  ;;  %v7704_v14 = vld [vmem:[%s10465_s0 + $0x2a4] ss:$16 sps:$4 sm:$0xff]  }
 0x1a8   :  { %3858 = vmatprep.mubr.bf16.mxu0 %v7698_v50  ;;  %4019 = vmatprep.mubr.bf16.mxu1 %v7700_v53 }
 0x1aa   :  { %v2651_v49 = vpop.f32.mrb[68].mxu1  ;;  %v9081_v40 = vpop.f32.mrb[68].mxu0 }
 0x1ab   :  { %v2653_v32 = vpop.f32.mrb[69].mxu1  ;;  %v2428_v60 = vpop.f32.mrb[69].mxu0  ;;  %v9090_v3 = vadd.f32 %v2651_v49, %v8883_v11  ;;  %v7795_v11 = vld [vmem:[%s10471_s6 + $0x94] ss:$12 sps:$4 sm:$0xff]   ;;  %v7793_v49 = vld [vmem:[%s10471_s6 + $0x90] ss:$12 sps:$4 sm:$0xff]  }
 0x1ac   :  { %v2654_v34 = vpop.f32.mrb[70].mxu1  ;;  %v9098_v50 = vpop.f32.mrb[70].mxu0  ;;  %v7796_v60 = vld [vmem:[%s10471_s6 + $0x38] ss:$12 sps:$4 sm:$0xff]   ;;  %4906 = vmatprep.subr.bf16.mxu0 %v7795_v11  ;;  %v7712_v11 = vld [vmem:[%s10465_s0 + $0xcc] ss:$16 sps:$4 sm:$0xff]  }
 0x1ad   :  { %v2656_v53 = vpop.f32.mrb[71].mxu1  ;;  %v2431_v7 = vpop.f32.mrb[71].mxu0  ;;  %v9101_v32 = vadd.f32 %v2654_v34, %v8900_v28  ;;  %7252 = vmatprep.subr.bf16.mxu1 %v7796_v60  ;;  %4907 = vmatpush1.bf16.msra.mxu0 %v7793_v49 }
 0x1ae   :  { %7253 = vmatpush3.bf16.msra.mxu1 %v7796_v60  ;;  %v7708_v7 = vld [vmem:[%s10465_s0 + $0x2a0] ss:$16 sps:$4 sm:$0xff]  }
 0x1af   :  { %3859 = vmatmul.mubr.bf16.gmra.mrb[176].mxu0 %v7702_v26  ;;  %4020 = vmatmul.mubr.bf16.gmra.mrb[176].mxu1 %v7703_v46 }
 0x1b0   :  { %3866 = vmatprep.mubr.bf16.mxu0 %v7704_v14  ;;  %4027 = vmatprep.mubr.bf16.mxu1 %v7706_v57  ;;  %v7710_v57 = vld [vmem:[%s10465_s0 + $0x2c4] ss:$16 sps:$4 sm:$0xff]  }
 0x1b2   :  { %v2659_v28 = vpop.f32.mrb[72].mxu1  ;;  %v9112_v34 = vpop.f32.mrb[72].mxu0 }
 0x1b3   :  { %v2661_v53 = vpop.f32.mrb[73].mxu1  ;;  %v2436_v26 = vpop.f32.mrb[73].mxu0  ;;  %v9121_v46 = vadd.f32 %v2659_v28, %v8917_v41 }
 0x1b4   :  { %v2662_v14 = vpop.f32.mrb[74].mxu1  ;;  %v9129_v49 = vpop.f32.mrb[74].mxu0 }
 0x1b5   :  { %v2664_v60 = vpop.f32.mrb[75].mxu1  ;;  %v2439_v53 = vpop.f32.mrb[75].mxu0  ;;  %v9132_v38 = vadd.f32 %v2662_v14, %v8934_v62  ;;  %v7718_v14 = vld [vmem:[%s10465_s0 + $0xec] ss:$16 sps:$4 sm:$0xff]  }
 0x1b6   :  { %v7715_v60 = vld [vmem:[%s10465_s0 + $0xc8] ss:$16 sps:$4 sm:$0xff]  }
 0x1b7   :  { %3867 = vmatmul.mubr.bf16.gmra.mrb[180].mxu0 %v7708_v7  ;;  %4028 = vmatmul.mubr.bf16.gmra.mrb[180].mxu1 %v7709_v2  ;;  %v7716_v2 = vld [vmem:[%s10465_s0 + $0x2e4] ss:$16 sps:$4 sm:$0xff]  }
 0x1b8   :  { %3874 = vmatprep.mubr.bf16.mxu0 %v7710_v57  ;;  %4035 = vmatprep.mubr.bf16.mxu1 %v7712_v11 }
 0x1ba   :  { %v2667_v41 = vpop.f32.mrb[76].mxu1  ;;  %v9134_v28 = vpop.f32.mrb[76].mxu0 }
 0x1bb   :  { %v2669_v26 = vpop.f32.mrb[77].mxu1  ;;  %v2444_v53 = vpop.f32.mrb[77].mxu0  ;;  %v9143_v62 = vadd.f32 %v2667_v41, %v8939_v56 }
 0x1bc   :  { %v2670_v7 = vpop.f32.mrb[78].mxu1  ;;  %v9151_v57 = vpop.f32.mrb[78].mxu0 }
 0x1bd   :  { %v2672_v11 = vpop.f32.mrb[79].mxu1  ;;  %v2447_v26 = vpop.f32.mrb[79].mxu0  ;;  %v9154_v21 = vadd.f32 %v2670_v7, %v8956_v33  ;;  %v7727_v7 = vld [vmem:[%s10465_s0 + $0x10c] ss:$16 sps:$4 sm:$0xff]  }
 0x1be   :  { %v7721_v11 = vld [vmem:[%s10465_s0 + $0xe8] ss:$16 sps:$4 sm:$0xff]  }
 0x1bf   :  { %3875 = vmatmul.mubr.bf16.gmra.mrb[184].mxu0 %v7714_v29  ;;  %4036 = vmatmul.mubr.bf16.gmra.mrb[184].mxu1 %v7715_v60  ;;  %v7725_v60 = vld [vmem:[%s10465_s0 + $0x304] ss:$16 sps:$4 sm:$0xff]  }
 0x1c0   :  { %3882 = vmatprep.mubr.bf16.mxu0 %v7716_v2  ;;  %4043 = vmatprep.mubr.bf16.mxu1 %v7718_v14 }
 0x1c2   :  { %v2675_v56 = vpop.f32.mrb[80].mxu1  ;;  %v9156_v41 = vpop.f32.mrb[80].mxu0 }
 0x1c3   :  { %v2677_v53 = vpop.f32.mrb[81].mxu1  ;;  %v2452_v26 = vpop.f32.mrb[81].mxu0  ;;  %v9165_v33 = vadd.f32 %v2675_v56, %v8961_v13 }
 0x1c4   :  { %v2678_v29 = vpop.f32.mrb[82].mxu1  ;;  %v9173_v2 = vpop.f32.mrb[82].mxu0 }
 0x1c5   :  { %v2680_v14 = vpop.f32.mrb[83].mxu1  ;;  %v2455_v53 = vpop.f32.mrb[83].mxu0  ;;  %v9176_v63 = vadd.f32 %v2678_v29, %v8978_v1  ;;  %v7733_v29 = vld [vmem:[%s10465_s0 + $0x12c] ss:$16 sps:$4 sm:$0xff]  }
 0x1c6   :  { %v7730_v14 = vld [vmem:[%s10465_s0 + $0x108] ss:$16 sps:$4 sm:$0xff]  }
 0x1c7   :  { %10482 = vst [vmem:[#allocation13_spill] sm:$0xff] %v9176_v63  ;;  %3883 = vmatmul.mubr.bf16.gmra.mrb[188].mxu0 %v7720_v12  ;;  %4044 = vmatmul.mubr.bf16.gmra.mrb[188].mxu1 %v7721_v11  ;;  %v7731_v11 = vld [vmem:[%s10465_s0 + $0x324] ss:$16 sps:$4 sm:$0xff]  }
 0x1c8   :  { %3890 = vmatprep.mubr.bf16.mxu0 %v7725_v60  ;;  %4051 = vmatprep.mubr.bf16.mxu1 %v7727_v7 }
 0x1ca   :  { %v2683_v13 = vpop.f32.mrb[84].mxu1  ;;  %v9178_v56 = vpop.f32.mrb[84].mxu0 }
 0x1cb   :  { %v2685_v26 = vpop.f32.mrb[85].mxu1  ;;  %v2460_v53 = vpop.f32.mrb[85].mxu0  ;;  %v9187_v1 = vadd.f32 %v2683_v13, %v8983_v16  ;;  %v7811_v16 = vld [vmem:[%s10471_s6 + $0xac] ss:$12 sps:$4 sm:$0xff]   ;;  %v7809_v13 = vld [vmem:[%s10471_s6 + $0xa8] ss:$12 sps:$4 sm:$0xff]  }
 0x1cc   :  { %v2686_v12 = vpop.f32.mrb[86].mxu1  ;;  %v9195_v60 = vpop.f32.mrb[86].mxu0  ;;  %v7812_v53 = vld [vmem:[%s10471_s6 + $0x50] ss:$12 sps:$4 sm:$0xff]   ;;  %4908 = vmatprep.subr.bf16.mxu0 %v7811_v16  ;;  %v7737_v16 = vld [vmem:[%s10465_s0 + $0x344] ss:$16 sps:$4 sm:$0xff]  }
 0x1cd   :  { %10483 = vst [vmem:[#allocation14_spill] sm:$0xff] %v9187_v1  ;;  %v2688_v7 = vpop.f32.mrb[87].mxu1  ;;  %v2463_v26 = vpop.f32.mrb[87].mxu0  ;;  %v9198_v63 = vadd.f32 %v2686_v12, %v9000_v31  ;;  %7254 = vmatprep.subr.bf16.mxu1 %v7812_v53  ;;  %4909 = vmatpush1.bf16.msra.mxu0 %v7809_v13  ;;  %v7739_v13 = vld [vmem:[%s10465_s0 + $0x14c] ss:$16 sps:$4 sm:$0xff]  }
 0x1ce   :  { %7255 = vmatpush3.bf16.msra.mxu1 %v7812_v53  ;;  %v7735_v26 = vld [vmem:[%s10465_s0 + $0x320] ss:$16 sps:$4 sm:$0xff]  }
 0x1cf   :  { %10484 = vst [vmem:[#allocation15_spill] sm:$0xff] %v9198_v63  ;;  %3891 = vmatmul.mubr.bf16.gmra.mrb[192].mxu0 %v7729_v54  ;;  %4052 = vmatmul.mubr.bf16.gmra.mrb[192].mxu1 %v7730_v14  ;;  %v7736_v63 = vld [vmem:[%s10465_s0 + $0x128] ss:$16 sps:$4 sm:$0xff]  }
 0x1d0   :  { %3898 = vmatprep.mubr.bf16.mxu0 %v7731_v11  ;;  %4059 = vmatprep.mubr.bf16.mxu1 %v7733_v29 }
 0x1d2   :  { %v2691_v31 = vpop.f32.mrb[88].mxu1  ;;  %v9209_v12 = vpop.f32.mrb[88].mxu0 }
 0x1d3   :  { %v2693_v7 = vpop.f32.mrb[89].mxu1  ;;  %v2468_v54 = vpop.f32.mrb[89].mxu0  ;;  %v9218_v14 = vadd.f32 %v2691_v31, %v9015_v58 }
 0x1d4   :  { %v2694_v11 = vpop.f32.mrb[90].mxu1  ;;  %v9220_v29 = vpop.f32.mrb[90].mxu0  ;;  %v621_v54 = vld [vmem:[%s10469_s4] sm:$0xf] }
 0x1d5   :  { %10485 = vst [vmem:[#allocation16_spill] sm:$0xff] %v9218_v14  ;;  %v2696_v53 = vpop.f32.mrb[91].mxu1  ;;  %v2471_v7 = vpop.f32.mrb[91].mxu0  ;;  %v9229_v1 = vadd.f32 %v2694_v11, %v9032_v23  ;;  %v623_v14 = vld [vmem:[%s10469_s4 + $0xc] sm:$0xf] }
 0x1d6   :  { %v7741_v23 = vld [vmem:[%s10465_s0 + $0x340] ss:$16 sps:$4 sm:$0xff]   ;;  %622 = vst [vmem:[#allocation5] sm:$0xf] %v621_v54  ;;  %624 = vst [vmem:[#allocation5 + $0x4] sm:$0xf] %v623_v14 }
 0x1d7   :  { %10486 = vst [vmem:[#allocation17_spill] sm:$0xff] %v9229_v1  ;;  %3899 = vmatmul.mubr.bf16.gmra.mrb[196].mxu0 %v7735_v26  ;;  %4060 = vmatmul.mubr.bf16.gmra.mrb[196].mxu1 %v7736_v63  ;;  %v7742_v63 = vld [vmem:[%s10465_s0 + $0x148] ss:$16 sps:$4 sm:$0xff]  }
 0x1d8   :  { %3906 = vmatprep.mubr.bf16.mxu0 %v7737_v16  ;;  %4067 = vmatprep.mubr.bf16.mxu1 %v7739_v13  ;;  %v7743_v13 = vld [vmem:[%s10465_s0 + $0x364] ss:$16 sps:$4 sm:$0xff]   ;;  %v625_v54 = vld [vmem:[%s10469_s4 + $0x18] sm:$0xf] }
 0x1d9   :  { %626 = vst [vmem:[#allocation5 + $0x8] sm:$0xf] %v625_v54 }
 0x1da   :  { %v2699_v58 = vpop.f32.mrb[92].mxu1  ;;  %v9231_v31 = vpop.f32.mrb[92].mxu0 }
 0x1db   :  { %v2701_v53 = vpop.f32.mrb[93].mxu1  ;;  %v2476_v7 = vpop.f32.mrb[93].mxu0  ;;  %v9246_v26 = vadd.f32 %v2699_v58, %v9037_v45  ;;  %v7747_v58 = vld [vmem:[%s10465_s0 + $0x360] ss:$16 sps:$4 sm:$0xff]  }
 0x1dc   :  { %v2702_v11 = vpop.f32.mrb[94].mxu1  ;;  %v9248_v16 = vpop.f32.mrb[94].mxu0  ;;  %v7745_v53 = vld [vmem:[%s10465_s0 + $0x16c] ss:$16 sps:$4 sm:$0xff]  }
 0x1dd   :  { %v2704_v7 = vpop.f32.mrb[95].mxu1  ;;  %v2479_v1 = vpop.f32.mrb[95].mxu0  ;;  %v9257_v48 = vadd.f32 %v2702_v11, %v9054_v19  ;;  %v627_v11 = vld [vmem:[%s10469_s4 + $0x24] sm:$0xf] }
 0x1de   :  { %628 = vst [vmem:[#allocation5 + $0xc] sm:$0xf] %v627_v11 }
 0x1df   :  { %3907 = vmatmul.mubr.bf16.gmra.mrb[200].mxu0 %v7741_v23  ;;  %4068 = vmatmul.mubr.bf16.gmra.mrb[200].mxu1 %v7742_v63  ;;  %v7748_v63 = vld [vmem:[%s10465_s0 + $0x168] ss:$16 sps:$4 sm:$0xff]  }
 0x1e0   :  { %3914 = vmatprep.mubr.bf16.mxu0 %v7743_v13  ;;  %4075 = vmatprep.mubr.bf16.mxu1 %v7745_v53 }
 0x1e2   :  { %v2707_v45 = vpop.f32.mrb[96].mxu1  ;;  %v3700_v14 = vpop.f32.mrb[96].mxu0 }
 0x1e3   :  { %v9266_v7 = vadd.f32 %v2707_v45, %v9059_v22  ;;  %v9269_v19 = vadd.f32 %v3700_v14, %v8870_v59  ;;  %v2709_v1 = vpop.f32.mrb[97].mxu1  ;;  %v3702_v23 = vpop.f32.mrb[97].mxu0  ;;  %v7753_v22 = vld [vmem:[%s10465_s0 + $0x384] ss:$16 sps:$4 sm:$0xff]   ;;  %v7755_v59 = vld [vmem:[%s10465_s0 + $0x18c] ss:$16 sps:$4 sm:$0xff]  }
 0x1e4   :  { %v2710_v13 = vpop.f32.mrb[98].mxu1  ;;  %v3703_v53 = vpop.f32.mrb[98].mxu0 }
 0x1e5   :  { %10487 = vst [vmem:[#allocation18_spill] sm:$0xff] %v9266_v7  ;;  %10488 = vst [vmem:[#allocation19_spill] sm:$0xff] %v9269_v19  ;;  %v9284_v45 = vadd.f32 %v2710_v13, %v9076_v6  ;;  %v9287_v14 = vadd.f32 %v3703_v53, %v8881_v9  ;;  %v2712_v54 = vpop.f32.mrb[99].mxu1  ;;  %v3705_v1 = vpop.f32.mrb[99].mxu0  ;;  %v629_v7 = vld [vmem:[%s10469_s4 + $0x30] sm:$0xf] }
 0x1e6   :  { %v631_v6 = vld [vmem:[%s10469_s4 + $0x3c] sm:$0xf]  ;;  %v7757_v13 = vld [vmem:[%s10465_s0 + $0x380] ss:$16 sps:$4 sm:$0xff]   ;;  %v7758_v53 = vld [vmem:[%s10465_s0 + $0x188] ss:$16 sps:$4 sm:$0xff]  }
 0x1e7   :  { %3915 = vmatmul.mubr.bf16.gmra.mrb[204].mxu0 %v7747_v58  ;;  %4076 = vmatmul.mubr.bf16.gmra.mrb[204].mxu1 %v7748_v63  ;;  %630 = vst [vmem:[#allocation5 + $0x10] sm:$0xf] %v629_v7  ;;  %632 = vst [vmem:[#allocation5 + $0x14] sm:$0xf] %v631_v6  ;;  %v7825_v7 = vld [vmem:[%s10471_s6 + $0x68] ss:$12 sps:$4 sm:$0xff]  }
 0x1e8   :  { %3922 = vmatprep.mubr.bf16.mxu0 %v7753_v22  ;;  %4083 = vmatprep.mubr.bf16.mxu1 %v7755_v59 }
 0x1e9   :  { %7256 = vmatprep.subr.bf16.mxu1 %v7825_v7 }
 0x1ea   :  { %v2715_v23 = vpop.f32.mrb[100].mxu1  ;;  %v3708_v19 = vpop.f32.mrb[100].mxu0  ;;  %7257 = vmatpush3.bf16.msra.mxu1 %v7825_v7 }
 0x1eb   :  { %v9296_v11 = vadd.f32 %v2715_v23, %v9081_v40  ;;  %v9299_v9 = vadd.f32 %v3708_v19, %v8892_v0  ;;  %v2717_v58 = vpop.f32.mrb[101].mxu1  ;;  %v3710_v63 = vpop.f32.mrb[101].mxu0  ;;  %v7759_v40 = vld [vmem:[%s10465_s0 + $0x3a4] ss:$16 sps:$4 sm:$0xff]   ;;  %v7761_v0 = vld [vmem:[%s10465_s0 + $0x1ac] ss:$16 sps:$4 sm:$0xff]  }
 0x1ec   :  { %v2718_v22 = vpop.f32.mrb[102].mxu1  ;;  %v3711_v59 = vpop.f32.mrb[102].mxu0 }
 0x1ed   :  { %v9314_v19 = vadd.f32 %v2718_v22, %v9098_v50  ;;  %v9317_v54 = vadd.f32 %v3711_v59, %v8903_v35  ;;  %v2720_v1 = vpop.f32.mrb[103].mxu1  ;;  %v3713_v23 = vpop.f32.mrb[103].mxu0  ;;  %v7763_v50 = vld [vmem:[%s10465_s0 + $0x3a0] ss:$16 sps:$4 sm:$0xff]   ;;  %v633_v35 = vld [vmem:[%s10469_s4 + $0x48] sm:$0xf] }
 0x1ee   :  { %v7764_v59 = vld [vmem:[%s10465_s0 + $0x1a8] ss:$16 sps:$4 sm:$0xff]   ;;  %634 = vst [vmem:[#allocation5 + $0x18] sm:$0xf] %v633_v35 }
 0x1ef   :  { %3923 = vmatmul.mubr.bf16.gmra.mrb[208].mxu0 %v7757_v13  ;;  %4084 = vmatmul.mubr.bf16.gmra.mrb[208].mxu1 %v7758_v53 }
 0x1f0   :  { %3930 = vmatprep.mubr.bf16.mxu0 %v7759_v40  ;;  %4091 = vmatprep.mubr.bf16.mxu1 %v7761_v0  ;;  %v635_v40 = vld [vmem:[%s10469_s4 + $0x54] sm:$0xf] }
 0x1f1   :  { %636 = vst [vmem:[#allocation5 + $0x1c] sm:$0xf] %v635_v40  ;;  %v7769_v40 = vld [vmem:[%s10465_s0 + $0x3c0] ss:$16 sps:$4 sm:$0xff]  }
 0x1f2   :  { %v2723_v6 = vpop.f32.mrb[104].mxu1  ;;  %v3716_v58 = vpop.f32.mrb[104].mxu0 }
 0x1f3   :  { %v9329_v63 = vadd.f32 %v2723_v6, %v9112_v34  ;;  %v9332_v13 = vadd.f32 %v3716_v58, %v8926_v52  ;;  %v2725_v53 = vpop.f32.mrb[105].mxu1  ;;  %v3718_v22 = vpop.f32.mrb[105].mxu0  ;;  %v7765_v34 = vld [vmem:[%s10465_s0 + $0x3c4] ss:$16 sps:$4 sm:$0xff]   ;;  %v7767_v52 = vld [vmem:[%s10465_s0 + $0x1cc] ss:$16 sps:$4 sm:$0xff]  }
 0x1f4   :  { %v2726_v0 = vpop.f32.mrb[106].mxu1  ;;  %v3719_v1 = vpop.f32.mrb[106].mxu0 }
 0x1f5   :  { %10489 = vst [vmem:[#allocation20_spill] sm:$0xff] %v9332_v13  ;;  %v9347_v23 = vadd.f32 %v2726_v0, %v9129_v49  ;;  %v9350_v6 = vadd.f32 %v3719_v1, %v8937_v8  ;;  %v2728_v58 = vpop.f32.mrb[107].mxu1  ;;  %v3721_v35 = vpop.f32.mrb[107].mxu0  ;;  %v637_v13 = vld [vmem:[%s10469_s4 + $0x60] sm:$0xf] }
 0x1f6   :  { %v639_v49 = vld [vmem:[%s10469_s4 + $0x6c] sm:$0xf]  ;;  %v7770_v0 = vld [vmem:[%s10465_s0 + $0x1c8] ss:$16 sps:$4 sm:$0xff]   ;;  %638 = vst [vmem:[#allocation5 + $0x20] sm:$0xf] %v637_v13 }
 0x1f7   :  { %3931 = vmatmul.mubr.bf16.gmra.mrb[212].mxu0 %v7763_v50  ;;  %4092 = vmatmul.mubr.bf16.gmra.mrb[212].mxu1 %v7764_v59  ;;  %640 = vst [vmem:[#allocation5 + $0x24] sm:$0xf] %v639_v49  ;;  %v7835_v13 = vld [vmem:[%s10471_s6 + $0x80] ss:$12 sps:$4 sm:$0xff]  }
 0x1f8   :  { %3938 = vmatprep.mubr.bf16.mxu0 %v7765_v34  ;;  %4099 = vmatprep.mubr.bf16.mxu1 %v7767_v52 }
 0x1f9   :  { %7258 = vmatprep.subr.bf16.mxu1 %v7835_v13 }
 0x1fa   :  { %v2731_v53 = vpop.f32.mrb[108].mxu1  ;;  %v3724_v22 = vpop.f32.mrb[108].mxu0  ;;  %7259 = vmatpush3.bf16.msra.mxu1 %v7835_v13 }
 0x1fb   :  { %v9359_v7 = vadd.f32 %v2731_v53, %v9134_v28  ;;  %v9362_v8 = vadd.f32 %v3724_v22, %v8948_v27  ;;  %v2733_v50 = vpop.f32.mrb[109].mxu1  ;;  %v3726_v59 = vpop.f32.mrb[109].mxu0  ;;  %v7771_v28 = vld [vmem:[%s10465_s0 + $0x3e4] ss:$16 sps:$4 sm:$0xff]   ;;  %v7773_v27 = vld [vmem:[%s10465_s0 + $0x1ec] ss:$16 sps:$4 sm:$0xff]  }
 0x1fc   :  { %v2734_v1 = vpop.f32.mrb[110].mxu1  ;;  %v3727_v34 = vpop.f32.mrb[110].mxu0 }
 0x1fd   :  { %v9377_v52 = vadd.f32 %v2734_v1, %v9151_v57  ;;  %v9380_v58 = vadd.f32 %v3727_v34, %v8959_v37  ;;  %v2736_v35 = vpop.f32.mrb[111].mxu1  ;;  %v3729_v53 = vpop.f32.mrb[111].mxu0  ;;  %v7775_v57 = vld [vmem:[%s10465_s0 + $0x3e0] ss:$16 sps:$4 sm:$0xff]   ;;  %v641_v37 = vld [vmem:[%s10469_s4 + $0x78] sm:$0xf] }
 0x1fe   :  { %v7776_v1 = vld [vmem:[%s10465_s0 + $0x1e8] ss:$16 sps:$4 sm:$0xff]   ;;  %642 = vst [vmem:[#allocation5 + $0x28] sm:$0xf] %v641_v37  ;;  %v643_v34 = vld [vmem:[%s10469_s4 + $0x84] sm:$0xf] }
 0x1ff   :  { %3939 = vmatmul.mubr.bf16.gmra.mrb[216].mxu0 %v7769_v40  ;;  %4100 = vmatmul.mubr.bf16.gmra.mrb[216].mxu1 %v7770_v0  ;;  %644 = vst [vmem:[#allocation5 + $0x2c] sm:$0xf] %v643_v34  ;;  %v10490_v37 = vmov 0  }
 0x200   :  { %3946 = vmatprep.mubr.bf16.mxu0 %v7771_v28  ;;  %4107 = vmatprep.mubr.bf16.mxu1 %v7773_v27 }
 0x202   :  { %v2739_v22 = vpop.f32.mrb[112].mxu1  ;;  %v3732_v49 = vpop.f32.mrb[112].mxu0 }
 0x203   :  { %v9392_v50 = vadd.f32 %v2739_v22, %v9156_v41  ;;  %v9395_v59 = vadd.f32 %v3732_v49, %v8970_v39  ;;  %v2741_v40 = vpop.f32.mrb[113].mxu1  ;;  %v3734_v0 = vpop.f32.mrb[113].mxu0  ;;  %v7781_v41 = vld [vmem:[%s10465_s0 + $0x20c] ss:$16 sps:$4 sm:$0xff]   ;;  %v7839_v49 = vld [vmem:[%s10471_s6 + $0x98] ss:$12 sps:$4 sm:$0xff]  }
 0x204   :  { %v2742_v28 = vpop.f32.mrb[114].mxu1  ;;  %v3735_v27 = vpop.f32.mrb[114].mxu0  ;;  %7260 = vmatprep.subr.bf16.mxu1 %v7839_v49 }
 0x205   :  { %v9407_v39 = vadd.f32 %v2742_v28, %v9173_v2  ;;  %v9410_v35 = vadd.f32 %v3735_v27, %v8981_v15  ;;  %v2744_v53 = vpop.f32.mrb[115].mxu1  ;;  %v3737_v22 = vpop.f32.mrb[115].mxu0  ;;  %v7840_v2 = vld [vmem:[%s10471_s6 + $0xb0] ss:$12 sps:$4 sm:$0xff]   ;;  %7261 = vmatpush3.bf16.msra.mxu1 %v7839_v49  ;;  %v7783_v27 = vld [vmem:[%s10465_s0 + $0x208] ss:$16 sps:$4 sm:$0xff]  }
 0x206   :  { %v645_v15 = vld [vmem:[%s10469_s4 + $0x90] sm:$0xf]  ;;  %7262 = vmatprep.subr.bf16.mxu1 %v7840_v2  ;;  %v7784_v22 = vld [vmem:[%s10465_s0 + $0x22c] ss:$16 sps:$4 sm:$0xff]  }
 0x207   :  { %3947 = vmatmul.mubr.bf16.gmra.mrb[220].mxu0 %v7775_v57  ;;  %4108 = vmatmul.mubr.bf16.gmra.mrb[220].mxu1 %v7776_v1  ;;  %v647_v57 = vld [vmem:[%s10469_s4 + $0x9c] sm:$0xf]  ;;  %646 = vst [vmem:[#allocation5 + $0x30] sm:$0xf] %v645_v15 }
 0x208   :  { %4115 = vmatprep.mubr.bf16.mxu1 %v7781_v41  ;;  %4926 = vmatprep.mubr.bf16.mxu0 %v10490_v37  ;;  %648 = vst [vmem:[#allocation5 + $0x34] sm:$0xf] %v647_v57  ;;  %v649_v57 = vld [vmem:[%s10469_s4 + $0xa8] sm:$0xf] }
 0x209   :  { %7263 = vmatpush3.bf16.msra.mxu1 %v7840_v2  ;;  %v7786_v2 = vld [vmem:[%s10465_s0 + $0x228] ss:$16 sps:$4 sm:$0xff]   ;;  %650 = vst [vmem:[#allocation5 + $0x38] sm:$0xf] %v649_v57  ;;  %v653_v57 = vld [vmem:[%s10469_s4 + $0xc0] sm:$0xf] }
 0x20a   :  { %v2747_v13 = vpop.f32.mrb[116].mxu1  ;;  %v3740_v40 = vpop.f32.mrb[116].mxu0  ;;  %654 = vst [vmem:[#allocation5 + $0x40] sm:$0xf] %v653_v57  ;;  %v657_v57 = vld [vmem:[%s10469_s4 + $0xd8] sm:$0xf] }
 0x20b   :  { %v9426_v0 = vadd.f32 %v2747_v13, %v9178_v56  ;;  %v9429_v1 = vadd.f32 %v3740_v40, %v8992_v51  ;;  %v2749_v34 = vpop.f32.mrb[117].mxu1  ;;  %v3742_v28 = vpop.f32.mrb[117].mxu0  ;;  %658 = vst [vmem:[#allocation5 + $0x48] sm:$0xf] %v657_v57  ;;  %v661_v57 = vld [vmem:[%s10469_s4 + $0xf0] sm:$0xf] }
 0x20c   :  { %v2750_v41 = vpop.f32.mrb[118].mxu1  ;;  %v3743_v53 = vpop.f32.mrb[118].mxu0  ;;  %662 = vst [vmem:[#allocation5 + $0x50] sm:$0xf] %v661_v57  ;;  %v665_v57 = vld [vmem:[%s10469_s4 + $0x108] sm:$0xf] }
 0x20d   :  { %v9438_v56 = vadd.f32 %v2750_v41, %v9195_v60  ;;  %v9441_v51 = vadd.f32 %v3743_v53, %v9003_v47  ;;  %v2752_v49 = vpop.f32.mrb[119].mxu1  ;;  %v3745_v13 = vpop.f32.mrb[119].mxu0  ;;  %666 = vst [vmem:[#allocation5 + $0x58] sm:$0xf] %v665_v57  ;;  %v669_v57 = vld [vmem:[%s10469_s4 + $0x120] sm:$0xf] }
 0x20e   :  { %670 = vst [vmem:[#allocation5 + $0x60] sm:$0xf] %v669_v57  ;;  %v673_v57 = vld [vmem:[%s10469_s4 + $0x138] sm:$0xf] }
 0x20f   :  { %4116 = vmatmul.mubr.bf16.gmra.mrb[224].mxu1 %v7783_v27  ;;  %v651_v27 = vld [vmem:[%s10469_s4 + $0xb4] sm:$0xf]  ;;  %674 = vst [vmem:[#allocation5 + $0x68] sm:$0xf] %v673_v57 }
 0x210   :  { %4123 = vmatprep.mubr.bf16.mxu1 %v7784_v22  ;;  %652 = vst [vmem:[#allocation5 + $0x3c] sm:$0xf] %v651_v27 }
 0x212   :  { %v2755_v40 = vpop.f32.mrb[120].mxu1  ;;  %v3748_v15 = vpop.f32.mrb[120].mxu0 }
 0x213   :  { %v9447_v34 = vadd.f32 %v2755_v40, %v9209_v12  ;;  %v9450_v60 = vadd.f32 %v3748_v15, %v9024_v17  ;;  %v2757_v28 = vpop.f32.mrb[121].mxu1  ;;  %v3750_v47 = vpop.f32.mrb[121].mxu0  ;;  %v7787_v12 = vld [vmem:[%s10465_s0 + $0x24c] ss:$16 sps:$4 sm:$0xff]  }
 0x214   :  { %v2758_v41 = vpop.f32.mrb[122].mxu1  ;;  %v3751_v53 = vpop.f32.mrb[122].mxu0  ;;  %v655_v28 = vld [vmem:[%s10469_s4 + $0xcc] sm:$0xf] }
 0x215   :  { %v9462_v17 = vadd.f32 %v2758_v41, %v9220_v29  ;;  %v9465_v22 = vadd.f32 %v3751_v53, %v9035_v5  ;;  %v2760_v49 = vpop.f32.mrb[123].mxu1  ;;  %v3753_v13 = vpop.f32.mrb[123].mxu0  ;;  %656 = vst [vmem:[#allocation5 + $0x44] sm:$0xf] %v655_v28 }
 0x217   :  { %4124 = vmatmul.mubr.bf16.gmra.mrb[228].mxu1 %v7786_v2  ;;  %v7789_v2 = vld [vmem:[%s10465_s0 + $0x248] ss:$16 sps:$4 sm:$0xff]  }
 0x218   :  { %4131 = vmatprep.mubr.bf16.mxu1 %v7787_v12  ;;  %v7790_v12 = vld [vmem:[%s10465_s0 + $0x26c] ss:$16 sps:$4 sm:$0xff]  }
 0x21a   :  { %v2763_v40 = vpop.f32.mrb[124].mxu1  ;;  %v3756_v15 = vpop.f32.mrb[124].mxu0 }
 0x21b   :  { %v9474_v29 = vadd.f32 %v2763_v40, %v9231_v31  ;;  %v9477_v5 = vadd.f32 %v3756_v15, %v9046_v25  ;;  %v2765_v47 = vpop.f32.mrb[125].mxu1  ;;  %v3758_v27 = vpop.f32.mrb[125].mxu0 }
 0x21c   :  { %v2766_v41 = vpop.f32.mrb[126].mxu1  ;;  %v3759_v53 = vpop.f32.mrb[126].mxu0 }
 0x21d   :  { %v9486_v31 = vadd.f32 %v2766_v41, %v9248_v16  ;;  %v9489_v25 = vadd.f32 %v3759_v53, %v9057_v20  ;;  %v2768_v49 = vpop.f32.mrb[127].mxu1  ;;  %v3761_v13 = vpop.f32.mrb[127].mxu0  ;;  %v7792_v20 = vld [vmem:[%s10465_s0 + $0x268] ss:$16 sps:$4 sm:$0xff]  }
 0x21f   :  { %4132 = vmatmul.mubr.bf16.gmra.mrb[232].mxu1 %v7789_v2  ;;  %v659_v2 = vld [vmem:[%s10469_s4 + $0xe4] sm:$0xf] }
 0x220   :  { %4139 = vmatprep.mubr.bf16.mxu1 %v7790_v12  ;;  %660 = vst [vmem:[#allocation5 + $0x4c] sm:$0xf] %v659_v2 }
 0x222   :  { %v2771_v40 = vpop.f32.mrb[128].mxu1  ;;  %v3764_v15 = vpop.f32.mrb[128].mxu0 }
 0x223   :  { %v9495_v28 = vadd.f32 %v2771_v40, %v8689_v55  ;;  %v9498_v47 = vadd.f32 %v3764_v15, %v9068_v44  ;;  %v2773_v16 = vpop.f32.mrb[129].mxu1  ;;  %v3766_v27 = vpop.f32.mrb[129].mxu0  ;;  %v7797_v55 = vld [vmem:[%s10465_s0 + $0x28c] ss:$16 sps:$4 sm:$0xff]  }
 0x224   :  { %v2774_v41 = vpop.f32.mrb[130].mxu1  ;;  %v3767_v53 = vpop.f32.mrb[130].mxu0  ;;  %v663_v16 = vld [vmem:[%s10469_s4 + $0xfc] sm:$0xf] }
 0x225   :  { %v9510_v44 = vadd.f32 %v2774_v41, %v8699_v61  ;;  %v9513_v12 = vadd.f32 %v3767_v53, %v9079_v43  ;;  %v2776_v49 = vpop.f32.mrb[131].mxu1  ;;  %v3769_v13 = vpop.f32.mrb[131].mxu0  ;;  %664 = vst [vmem:[#allocation5 + $0x54] sm:$0xf] %v663_v16 }
 0x227   :  { %4140 = vmatmul.mubr.bf16.gmra.mrb[236].mxu1 %v7792_v20  ;;  %v7799_v20 = vld [vmem:[%s10465_s0 + $0x288] ss:$16 sps:$4 sm:$0xff]  }
 0x228   :  { %4147 = vmatprep.mubr.bf16.mxu1 %v7797_v55  ;;  %v7800_v55 = vld [vmem:[%s10465_s0 + $0x2ac] ss:$16 sps:$4 sm:$0xff]  }
 0x22a   :  { %v2779_v40 = vpop.f32.mrb[132].mxu1  ;;  %v3772_v15 = vpop.f32.mrb[132].mxu0 }
 0x22b   :  { %v9522_v61 = vadd.f32 %v2779_v40, %v8709_v4  ;;  %v9525_v43 = vadd.f32 %v3772_v15, %v9090_v3  ;;  %v2781_v27 = vpop.f32.mrb[133].mxu1  ;;  %v3774_v2 = vpop.f32.mrb[133].mxu0 }
 0x22c   :  { %v2782_v41 = vpop.f32.mrb[134].mxu1  ;;  %v3775_v53 = vpop.f32.mrb[134].mxu0 }
 0x22d   :  { %v9534_v4 = vadd.f32 %v2782_v41, %v8719_v10  ;;  %v9537_v3 = vadd.f32 %v3775_v53, %v9101_v32  ;;  %v2784_v49 = vpop.f32.mrb[135].mxu1  ;;  %v3777_v13 = vpop.f32.mrb[135].mxu0  ;;  %v7802_v32 = vld [vmem:[%s10465_s0 + $0x2a8] ss:$16 sps:$4 sm:$0xff]  }
 0x22f   :  { %4148 = vmatmul.mubr.bf16.gmra.mrb[240].mxu1 %v7799_v20  ;;  %v667_v20 = vld [vmem:[%s10469_s4 + $0x114] sm:$0xf] }
 0x230   :  { %4155 = vmatprep.mubr.bf16.mxu1 %v7800_v55  ;;  %668 = vst [vmem:[#allocation5 + $0x5c] sm:$0xf] %v667_v20 }
 0x232   :  { %v2787_v40 = vpop.f32.mrb[136].mxu1  ;;  %v3780_v15 = vpop.f32.mrb[136].mxu0 }
 0x233   :  { %v9543_v16 = vadd.f32 %v2787_v40, %v8735_v18  ;;  %v9546_v27 = vadd.f32 %v3780_v15, %v9121_v46  ;;  %v2789_v10 = vpop.f32.mrb[137].mxu1  ;;  %v3782_v2 = vpop.f32.mrb[137].mxu0  ;;  %v7803_v18 = vld [vmem:[%s10465_s0 + $0x2cc] ss:$16 sps:$4 sm:$0xff]  }
 0x234   :  { %v2790_v41 = vpop.f32.mrb[138].mxu1  ;;  %v3783_v53 = vpop.f32.mrb[138].mxu0  ;;  %v671_v10 = vld [vmem:[%s10469_s4 + $0x12c] sm:$0xf] }
 0x235   :  { %v9558_v46 = vadd.f32 %v2790_v41, %v8745_v24  ;;  %v9561_v55 = vadd.f32 %v3783_v53, %v9132_v38  ;;  %v2792_v49 = vpop.f32.mrb[139].mxu1  ;;  %v3785_v13 = vpop.f32.mrb[139].mxu0  ;;  %672 = vst [vmem:[#allocation5 + $0x64] sm:$0xf] %v671_v10 }
 0x237   :  { %4156 = vmatmul.mubr.bf16.gmra.mrb[244].mxu1 %v7802_v32  ;;  %v7805_v32 = vld [vmem:[%s10465_s0 + $0x2c8] ss:$16 sps:$4 sm:$0xff]  }
 0x238   :  { %4163 = vmatprep.mubr.bf16.mxu1 %v7803_v18  ;;  %v7806_v18 = vld [vmem:[%s10465_s0 + $0x2ec] ss:$16 sps:$4 sm:$0xff]  }
 0x23a   :  { %v2795_v40 = vpop.f32.mrb[140].mxu1  ;;  %v3788_v15 = vpop.f32.mrb[140].mxu0 }
 0x23b   :  { %v9570_v24 = vadd.f32 %v2795_v40, %v8755_v30  ;;  %v9573_v38 = vadd.f32 %v3788_v15, %v9143_v62  ;;  %v2797_v2 = vpop.f32.mrb[141].mxu1  ;;  %v3790_v20 = vpop.f32.mrb[141].mxu0 }
 0x23c   :  { %v2798_v41 = vpop.f32.mrb[142].mxu1  ;;  %v3791_v53 = vpop.f32.mrb[142].mxu0 }
 0x23d   :  { %v9582_v30 = vadd.f32 %v2798_v41, %v8765_v36  ;;  %v9585_v62 = vadd.f32 %v3791_v53, %v9154_v21  ;;  %v2800_v49 = vpop.f32.mrb[143].mxu1  ;;  %v3793_v13 = vpop.f32.mrb[143].mxu0  ;;  %v7808_v21 = vld [vmem:[%s10465_s0 + $0x2e8] ss:$16 sps:$4 sm:$0xff]  }
 0x23e   :  { %v10496_v49 = vld [vmem:[#allocation13_spill] sm:$0xff] }
 0x23f   :  { %10491 = vst [vmem:[#allocation21_spill] sm:$0xff] %v9585_v62  ;;  %4164 = vmatmul.mubr.bf16.gmra.mrb[248].mxu1 %v7805_v32  ;;  %v675_v32 = vld [vmem:[%s10469_s4 + $0x144] sm:$0xf] }
 0x240   :  { %4171 = vmatprep.mubr.bf16.mxu1 %v7806_v18  ;;  %676 = vst [vmem:[#allocation5 + $0x6c] sm:$0xf] %v675_v32  ;;  %v679_v32 = vld [vmem:[%s10469_s4 + $0x15c] sm:$0xf] }
 0x241   :  { %680 = vst [vmem:[#allocation5 + $0x74] sm:$0xf] %v679_v32  ;;  %v10504_v32 = vld [vmem:[#allocation9_spill] sm:$0xff] }
 0x242   :  { %v2803_v40 = vpop.f32.mrb[144].mxu1  ;;  %v3796_v15 = vpop.f32.mrb[144].mxu0 }
 0x243   :  { %v9591_v10 = vadd.f32 %v2803_v40, %v8775_v42  ;;  %v9594_v2 = vadd.f32 %v3796_v15, %v9165_v33  ;;  %v2805_v36 = vpop.f32.mrb[145].mxu1  ;;  %v3798_v20 = vpop.f32.mrb[145].mxu0  ;;  %v7815_v42 = vld [vmem:[%s10465_s0 + $0x30c] ss:$16 sps:$4 sm:$0xff]   ;;  %v10494_v33 = vld [vmem:[#allocation6_spill] sm:$0xff] }
 0x244   :  { %v2806_v41 = vpop.f32.mrb[146].mxu1  ;;  %v3799_v53 = vpop.f32.mrb[146].mxu0  ;;  %v677_v20 = vld [vmem:[%s10469_s4 + $0x150] sm:$0xf] }
 0x245   :  { %10492 = vst [vmem:[#allocation22_spill] sm:$0xff] %v9591_v10  ;;  %10493 = vst [vmem:[#allocation23_spill] sm:$0xff] %v9594_v2  ;;  %v9606_v18 = vadd.f32 %v2806_v41, %v10494_v33  ;;  %v9609_v13 = vadd.f32 %v3799_v53, %v10496_v49  ;;  %v2808_v40 = vpop.f32.mrb[147].mxu1  ;;  %v3801_v15 = vpop.f32.mrb[147].mxu0  ;;  %v10498_v2 = vld [vmem:[#allocation7_spill] sm:$0xff]  ;;  %v10500_v33 = vld [vmem:[#allocation14_spill] sm:$0xff] }
 0x246   :  { %678 = vst [vmem:[#allocation5 + $0x70] sm:$0xf] %v677_v20  ;;  %v681_v20 = vld [vmem:[%s10469_s4 + $0x168] sm:$0xf]  ;;  %v10506_v10 = vld [vmem:[#allocation16_spill] sm:$0xff] }
 0x247   :  { %10495 = vst [vmem:[#allocation6_spill] sm:$0xff] %v9606_v18  ;;  %10497 = vst [vmem:[#allocation13_spill] sm:$0xff] %v9609_v13  ;;  %4172 = vmatmul.mubr.bf16.gmra.mrb[252].mxu1 %v7808_v21  ;;  %v7813_v21 = vld [vmem:[%s10465_s0 + $0x308] ss:$16 sps:$4 sm:$0xff]   ;;  %v7818_v13 = vld [vmem:[%s10465_s0 + $0x32c] ss:$16 sps:$4 sm:$0xff]  }
 0x248   :  { %4179 = vmatprep.mubr.bf16.mxu1 %v7815_v42  ;;  %v10502_v18 = vld [vmem:[#allocation8_spill] sm:$0xff]  ;;  %682 = vst [vmem:[#allocation5 + $0x78] sm:$0xf] %v681_v20 }
 0x24a   :  { %v2811_v57 = vpop.f32.mrb[148].mxu1  ;;  %v3804_v36 = vpop.f32.mrb[148].mxu0 }
 0x24b   :  { %v9618_v41 = vadd.f32 %v2811_v57, %v10498_v2  ;;  %v9621_v53 = vadd.f32 %v3804_v36, %v10500_v33  ;;  %v2813_v49 = vpop.f32.mrb[149].mxu1  ;;  %v3806_v40 = vpop.f32.mrb[149].mxu0  ;;  %v10503_v57 = vld [vmem:[#allocation15_spill] sm:$0xff] }
 0x24c   :  { %v2814_v42 = vpop.f32.mrb[150].mxu1  ;;  %v3807_v15 = vpop.f32.mrb[150].mxu0 }
 0x24d   :  { %10499 = vst [vmem:[#allocation7_spill] sm:$0xff] %v9618_v41  ;;  %10501 = vst [vmem:[#allocation14_spill] sm:$0xff] %v9621_v53  ;;  %v9630_v2 = vadd.f32 %v2814_v42, %v10502_v18  ;;  %v9633_v36 = vadd.f32 %v3807_v15, %v10503_v57  ;;  %v2816_v33 = vpop.f32.mrb[151].mxu1  ;;  %v3809_v49 = vpop.f32.mrb[151].mxu0  ;;  %v7816_v15 = vld [vmem:[%s10465_s0 + $0x328] ss:$16 sps:$4 sm:$0xff]  }
 0x24e   :  { %v7821_v33 = vld [vmem:[%s10465_s0 + $0x34c] ss:$16 sps:$4 sm:$0xff]  }
 0x24f   :  { %4180 = vmatmul.mubr.bf16.gmra.mrb[0].mxu1 %v7813_v21  ;;  %v10510_v49 = vld [vmem:[#allocation17_spill] sm:$0xff] }
 0x250   :  { %4187 = vmatprep.mubr.bf16.mxu1 %v7818_v13  ;;  %v683_v13 = vld [vmem:[%s10469_s4 + $0x174] sm:$0xf] }
 0x251   :  { %684 = vst [vmem:[#allocation5 + $0x7c] sm:$0xf] %v683_v13  ;;  %v687_v13 = vld [vmem:[%s10469_s4 + $0x18c] sm:$0xf] }
 0x252   :  { %v2819_v40 = vpop.f32.mrb[152].mxu1  ;;  %v3812_v53 = vpop.f32.mrb[152].mxu0  ;;  %688 = vst [vmem:[#allocation5 + $0x84] sm:$0xf] %v687_v13 }
 0x253   :  { %v9639_v41 = vadd.f32 %v2819_v40, %v10504_v32  ;;  %v9642_v62 = vadd.f32 %v3812_v53, %v10506_v10  ;;  %v2821_v18 = vpop.f32.mrb[153].mxu1  ;;  %v3814_v42 = vpop.f32.mrb[153].mxu0  ;;  %v10508_v10 = vld [vmem:[#allocation10_spill] sm:$0xff] }
 0x254   :  { %v2822_v21 = vpop.f32.mrb[154].mxu1  ;;  %v3815_v57 = vpop.f32.mrb[154].mxu0 }
 0x255   :  { %10505 = vst [vmem:[#allocation8_spill] sm:$0xff] %v9639_v41  ;;  %10507 = vst [vmem:[#allocation15_spill] sm:$0xff] %v9642_v62  ;;  %v9654_v53 = vadd.f32 %v2822_v21, %v10508_v10  ;;  %v9657_v40 = vadd.f32 %v3815_v57, %v10510_v49  ;;  %v2824_v32 = vpop.f32.mrb[155].mxu1  ;;  %v3817_v18 = vpop.f32.mrb[155].mxu0  ;;  %v685_v62 = vld [vmem:[%s10469_s4 + $0x180] sm:$0xf] }
 0x256   :  { %v10512_v41 = vld [vmem:[#allocation11_spill] sm:$0xff]  ;;  %686 = vst [vmem:[#allocation5 + $0x80] sm:$0xf] %v685_v62 }
 0x257   :  { %10509 = vst [vmem:[#allocation9_spill] sm:$0xff] %v9654_v53  ;;  %10511 = vst [vmem:[#allocation16_spill] sm:$0xff] %v9657_v40  ;;  %4188 = vmatmul.mubr.bf16.gmra.mrb[4].mxu1 %v7816_v15  ;;  %v7819_v15 = vld [vmem:[%s10465_s0 + $0x348] ss:$16 sps:$4 sm:$0xff]   ;;  %v7824_v18 = vld [vmem:[%s10465_s0 + $0x36c] ss:$16 sps:$4 sm:$0xff]  }
 0x258   :  { %4195 = vmatprep.mubr.bf16.mxu1 %v7821_v33  ;;  %v10515_v40 = vld [vmem:[#allocation12_spill] sm:$0xff] }
 0x25a   :  { %v2827_v20 = vpop.f32.mrb[156].mxu1  ;;  %v3820_v42 = vpop.f32.mrb[156].mxu0 }
 0x25b   :  { %v9666_v21 = vadd.f32 %v2827_v20, %v10512_v41  ;;  %v9669_v57 = vadd.f32 %v3820_v42, %v9246_v26  ;;  %v2829_v10 = vpop.f32.mrb[157].mxu1  ;;  %v3822_v49 = vpop.f32.mrb[157].mxu0 }
 0x25c   :  { %v2830_v33 = vpop.f32.mrb[158].mxu1  ;;  %v3823_v32 = vpop.f32.mrb[158].mxu0  ;;  %v7050_v10 = vld [vmem:[#allocation5] sm:$0xff]  }
 0x25d   :  { %10513 = vst [vmem:[#allocation10_spill] sm:$0xff] %v9666_v21  ;;  %10514 = vst [vmem:[#allocation17_spill] sm:$0xff] %v9669_v57  ;;  %v9678_v41 = vadd.f32 %v2830_v33, %v10515_v40  ;;  %v9681_v26 = vadd.f32 %v3823_v32, %v9257_v48  ;;  %v2832_v20 = vpop.f32.mrb[159].mxu1  ;;  %v3825_v42 = vpop.f32.mrb[159].mxu0  ;;  %v7051_v49 = vunpack.c.l.bf16 %v7050_v10  ;;  %v689_v57 = vld [vmem:[%s10469_s4 + $0x198] sm:$0xf]  ;;  %v7052_v32 = vunpack.c.h.bf16 %v7050_v10 }
 0x25e   :  { %v10518_v21 = vld [vmem:[#allocation18_spill] sm:$0xff]  ;;  %v10520_v40 = vld [vmem:[#allocation19_spill] sm:$0xff]  ;;  %690 = vst [vmem:[#allocation5 + $0x88] sm:$0xf] %v689_v57 }
 0x25f   :  { %10516 = vst [vmem:[#allocation11_spill] sm:$0xff] %v9678_v41  ;;  %10517 = vst [vmem:[#allocation12_spill] sm:$0xff] %v9681_v26  ;;  %4196 = vmatmul.mubr.bf16.gmra.mrb[8].mxu1 %v7819_v15  ;;  %v7822_v15 = vld [vmem:[%s10465_s0 + $0x368] ss:$16 sps:$4 sm:$0xff]   ;;  %v9706_v57 = vld [vmem:[%s10470_s5] ss:$0 sm:$0xff] }
 0x260   :  { %4203 = vmatprep.mubr.bf16.mxu1 %v7824_v18  ;;  %v691_v18 = vld [vmem:[%s10469_s4 + $0x1a4] sm:$0xf] }
 0x261   :  { %692 = vst [vmem:[#allocation5 + $0x8c] sm:$0xf] %v691_v18 }
 0x262   :  { %v3828_v62 = vpop.f32.mrb[160].mxu0  ;;  %v3989_v13 = vpop.f32.mrb[160].mxu1 }
 0x263   :  { %v9687_v53 = vadd.f32 %v3828_v62, %v10518_v21  ;;  %v3990_v33 = vadd.f32 %v3989_v13, %v10520_v40  ;;  %v3830_v41 = vpop.f32.mrb[161].mxu0  ;;  %v3991_v48 = vpop.f32.mrb[161].mxu1  ;;  %v7828_v21 = vld [vmem:[%s10465_s0 + $0x38c] ss:$16 sps:$4 sm:$0xff]  }
 0x264   :  { %v3831_v20 = vpop.f32.mrb[162].mxu0  ;;  %v3992_v42 = vpop.f32.mrb[162].mxu1  ;;  %v7177_v48 = vld [vmem:[#allocation5 + $0x8] sm:$0xff]  }
 0x265   :  { %10519 = vst [vmem:[#allocation18_spill] sm:$0xff] %v9687_v53  ;;  %v4567_v62 = vadd.f32 %v7051_v49, %v3990_v33  ;;  %v9700_v41 = vadd.f32 %v3831_v20, %v9284_v45  ;;  %v3993_v10 = vadd.f32 %v3992_v42, %v9287_v14  ;;  %v3994_v13 = vpop.f32.mrb[163].mxu1  ;;  %v3833_v40 = vpop.f32.mrb[163].mxu0  ;;  %v7055_v33 = vunpack.c.l.bf16 %v7177_v48  ;;  %v693_v14 = vld [vmem:[%s10469_s4 + $0x1b0] sm:$0xf] }
 0x266   :  { %v695_v20 = vld [vmem:[%s10469_s4 + $0x1bc] sm:$0xf]  ;;  %694 = vst [vmem:[#allocation5 + $0x90] sm:$0xf] %v693_v14 }
 0x267   :  { %v4568_v53 = vadd.f32 %v7052_v32, %v3993_v10  ;;  %4204 = vmatmul.mubr.bf16.gmra.mrb[12].mxu1 %v7822_v15  ;;  %v4638_v26 = vadd.f32 %v9706_v57, %v4567_v62  ;;  %v7056_v62 = vunpack.c.h.bf16 %v7177_v48  ;;  %v7826_v10 = vld [vmem:[%s10465_s0 + $0x388] ss:$16 sps:$4 sm:$0xff]   ;;  %696 = vst [vmem:[#allocation5 + $0x94] sm:$0xf] %v695_v20 }
 0x268   :  { %4211 = vmatprep.mubr.bf16.mxu1 %v7828_v21 }
 0x269   :  { %v4639_v49 = vadd.f32 %v9706_v57, %v4568_v53 }
 0x26a   :  { %v3836_v45 = vpop.f32.mrb[164].mxu0  ;;  %v3997_v18 = vpop.f32.mrb[164].mxu1 }
 0x26b   :  { %v9716_v42 = vpack.c.bf16 %v4639_v49, %v4638_v26  ;;  %v9719_v32 = vadd.f32 %v3836_v45, %v9296_v11  ;;  %v3998_v15 = vadd.f32 %v3997_v18, %v9299_v9  ;;  %v3838_v21 = vpop.f32.mrb[165].mxu0  ;;  %v3999_v53 = vpop.f32.mrb[165].mxu1  ;;  %v7831_v26 = vld [vmem:[%s10465_s0 + $0x3ac] ss:$16 sps:$4 sm:$0xff]   ;;  %v7178_v18 = vld [vmem:[#allocation5 + $0x10] sm:$0xff]  }
 0x26c   :  { %v3839_v13 = vpop.f32.mrb[166].mxu0  ;;  %v4000_v40 = vpop.f32.mrb[166].mxu1 }
 0x26d   :  { %v4569_v49 = vadd.f32 %v7055_v33, %v3998_v15  ;;  %v9729_v11 = vadd.f32 %v3839_v13, %v9314_v19  ;;  %v4001_v9 = vadd.f32 %v4000_v40, %v9317_v54  ;;  %v4002_v45 = vpop.f32.mrb[167].mxu1  ;;  %4927 = vmatmul.mubr.bf16.vlgmr.msra.gmra.mrb[224].mxu0 %v9716_v42  ;;  %v3841_v48 = vpop.f32.mrb[167].mxu0  ;;  %v7059_v33 = vunpack.c.l.bf16 %v7178_v18  ;;  %v697_v54 = vld [vmem:[%s10469_s4 + $0x1c8] sm:$0xf]  ;;  %v10521_v13 = vld [vmem:[#allocation20_spill] sm:$0xff] }
 0x26e   :  { %4936 = vmatprep.mubr.bf16.mxu0 %v10490_v37  ;;  %698 = vst [vmem:[#allocation5 + $0x98] sm:$0xf] %v697_v54  ;;  %v7179_v54 = vld [vmem:[#allocation5 + $0x18] sm:$0xff]  }
 0x26f   :  { %v4570_v14 = vadd.f32 %v7056_v62, %v4001_v9  ;;  %4212 = vmatmul.mubr.bf16.gmra.mrb[16].mxu1 %v7826_v10  ;;  %v4640_v20 = vadd.f32 %v9706_v57, %v4569_v49  ;;  %v7060_v10 = vunpack.c.h.bf16 %v7178_v18  ;;  %v7829_v49 = vld [vmem:[%s10465_s0 + $0x3a8] ss:$16 sps:$4 sm:$0xff]   ;;  %v699_v9 = vld [vmem:[%s10469_s4 + $0x1d4] sm:$0xf] }
 0x270   :  { %4219 = vmatprep.mubr.bf16.mxu1 %v7831_v26  ;;  %700 = vst [vmem:[#allocation5 + $0x9c] sm:$0xf] %v699_v9  ;;  %v703_v9 = vld [vmem:[%s10469_s4 + $0x1ec] sm:$0xf] }
 0x271   :  { %v4641_v21 = vadd.f32 %v9706_v57, %v4570_v14  ;;  %704 = vst [vmem:[#allocation5 + $0xa4] sm:$0xf] %v703_v9 }
 0x272   :  { %v3844_v15 = vpop.f32.mrb[168].mxu0  ;;  %v4005_v19 = vpop.f32.mrb[168].mxu1 }
 0x273   :  { %v9740_v53 = vadd.f32 %v3844_v15, %v9329_v63  ;;  %v4006_v40 = vadd.f32 %v4005_v19, %v10521_v13  ;;  %v3846_v45 = vpop.f32.mrb[169].mxu0  ;;  %v4007_v62 = vpop.f32.mrb[169].mxu1  ;;  %v9743_v26 = vpack.c.bf16 %v4641_v21, %v4640_v20  ;;  %v7834_v63 = vld [vmem:[%s10465_s0 + $0x3cc] ss:$16 sps:$4 sm:$0xff]  }
 0x274   :  { %v3847_v48 = vpop.f32.mrb[170].mxu0  ;;  %v4008_v14 = vpop.f32.mrb[170].mxu1 }
 0x275   :  { %v4571_v15 = vadd.f32 %v7059_v33, %v4006_v40  ;;  %v9755_v18 = vadd.f32 %v3847_v48, %v9347_v23  ;;  %v4009_v20 = vadd.f32 %v4008_v14, %v9350_v6  ;;  %v4010_v21 = vpop.f32.mrb[171].mxu1  ;;  %4937 = vmatmul.mubr.bf16.gmra.mrb[228].mxu0 %v9743_v26  ;;  %v3849_v19 = vpop.f32.mrb[171].mxu0  ;;  %v7063_v33 = vunpack.c.l.bf16 %v7179_v54  ;;  %v701_v6 = vld [vmem:[%s10469_s4 + $0x1e0] sm:$0xf] }
 0x276   :  { %4946 = vmatprep.mubr.bf16.mxu0 %v10490_v37  ;;  %702 = vst [vmem:[#allocation5 + $0xa0] sm:$0xf] %v701_v6 }
 0x277   :  { %v4572_v13 = vadd.f32 %v7060_v10, %v4009_v20  ;;  %4220 = vmatmul.mubr.bf16.gmra.mrb[20].mxu1 %v7829_v49  ;;  %v4642_v45 = vadd.f32 %v9706_v57, %v4571_v15  ;;  %v7832_v20 = vld [vmem:[%s10465_s0 + $0x3c8] ss:$16 sps:$4 sm:$0xff]  }
 0x278   :  { %4227 = vmatprep.mubr.bf16.mxu1 %v7834_v63  ;;  %v7064_v63 = vunpack.c.h.bf16 %v7179_v54 }
 0x279   :  { %v4643_v62 = vadd.f32 %v9706_v57, %v4572_v13 }
 0x27a   :  { %v3852_v40 = vpop.f32.mrb[172].mxu0  ;;  %v4013_v23 = vpop.f32.mrb[172].mxu1 }
 0x27b   :  { %v9769_v48 = vadd.f32 %v3852_v40, %v9359_v7  ;;  %v4014_v10 = vadd.f32 %v4013_v23, %v9362_v8  ;;  %v3854_v49 = vpop.f32.mrb[173].mxu0  ;;  %v4015_v14 = vpop.f32.mrb[173].mxu1  ;;  %v9772_v15 = vpack.c.bf16 %v4643_v62, %v4642_v45  ;;  %v7838_v7 = vld [vmem:[%s10465_s0 + $0x3ec] ss:$16 sps:$4 sm:$0xff]   ;;  %v7180_v40 = vld [vmem:[#allocation5 + $0x20] sm:$0xff]  }
 0x27c   :  { %v3855_v21 = vpop.f32.mrb[174].mxu0  ;;  %v4016_v19 = vpop.f32.mrb[174].mxu1 }
 0x27d   :  { %v4573_v13 = vadd.f32 %v7063_v33, %v4014_v10  ;;  %v9781_v8 = vadd.f32 %v3855_v21, %v9377_v52  ;;  %v4017_v54 = vadd.f32 %v4016_v19, %v9380_v58  ;;  %v4018_v45 = vpop.f32.mrb[175].mxu1  ;;  %4947 = vmatmul.mubr.bf16.gmra.mrb[232].mxu0 %v9772_v15  ;;  %v3857_v62 = vpop.f32.mrb[175].mxu0  ;;  %v7067_v33 = vunpack.c.l.bf16 %v7180_v40  ;;  %v705_v58 = vld [vmem:[%s10469_s4 + $0x1f8] sm:$0xf] }
 0x27e   :  { %4956 = vmatprep.mubr.bf16.mxu0 %v10490_v37  ;;  %706 = vst [vmem:[#allocation5 + $0xa8] sm:$0xf] %v705_v58 }
 0x27f   :  { %v4574_v23 = vadd.f32 %v7064_v63, %v4017_v54  ;;  %4228 = vmatmul.mubr.bf16.gmra.mrb[24].mxu1 %v7832_v20  ;;  %v4644_v6 = vadd.f32 %v9706_v57, %v4573_v13  ;;  %v7068_v20 = vunpack.c.h.bf16 %v7180_v40  ;;  %v707_v13 = vld [vmem:[%s10469_s4 + $0x204] sm:$0xf] }
 0x280   :  { %4235 = vmatprep.mubr.bf16.mxu1 %v7838_v7  ;;  %v7836_v7 = vld [vmem:[%s10465_s0 + $0x3e8] ss:$16 sps:$4 sm:$0xff]   ;;  %708 = vst [vmem:[#allocation5 + $0xac] sm:$0xf] %v707_v13 }
 0x281   :  { %v4645_v9 = vadd.f32 %v9706_v57, %v4574_v23 }
 0x282   :  { %v3860_v10 = vpop.f32.mrb[176].mxu0  ;;  %v4021_v52 = vpop.f32.mrb[176].mxu1 }
 0x283   :  { %v9792_v49 = vadd.f32 %v3860_v10, %v9392_v50  ;;  %v4022_v14 = vadd.f32 %v4021_v52, %v9395_v59  ;;  %v3862_v21 = vpop.f32.mrb[177].mxu0  ;;  %v4023_v63 = vpop.f32.mrb[177].mxu1  ;;  %v9795_v19 = vpack.c.bf16 %v4645_v9, %v4644_v6  ;;  %v7181_v6 = vld [vmem:[#allocation5 + $0x28] sm:$0xff]  }
 0x284   :  { %v3863_v54 = vpop.f32.mrb[178].mxu0  ;;  %v4024_v45 = vpop.f32.mrb[178].mxu1  ;;  %v7071_v52 = vunpack.c.l.bf16 %v7181_v6 }
 0x285   :  { %v4575_v50 = vadd.f32 %v7067_v33, %v4022_v14  ;;  %v9804_v59 = vadd.f32 %v3863_v54, %v9407_v39  ;;  %v4025_v62 = vadd.f32 %v4024_v45, %v9410_v35  ;;  %v4026_v40 = vpop.f32.mrb[179].mxu1  ;;  %4957 = vmatmul.mubr.bf16.gmra.mrb[236].mxu0 %v9795_v19  ;;  %v3865_v23 = vpop.f32.mrb[179].mxu0  ;;  %v709_v35 = vld [vmem:[%s10469_s4 + $0x210] sm:$0xf]  ;;  %v711_v14 = vld [vmem:[%s10469_s4 + $0x21c] sm:$0xf] }
 0x286   :  { %4966 = vmatprep.mubr.bf16.mxu0 %v10490_v37  ;;  %710 = vst [vmem:[#allocation5 + $0xb0] sm:$0xf] %v709_v35  ;;  %712 = vst [vmem:[#allocation5 + $0xb4] sm:$0xf] %v711_v14 }
 0x287   :  { %v4576_v9 = vadd.f32 %v7068_v20, %v4025_v62  ;;  %4236 = vmatmul.mubr.bf16.gmra.mrb[28].mxu1 %v7836_v7  ;;  %v4646_v10 = vadd.f32 %v9706_v57, %v4575_v50  ;;  %v7072_v7 = vunpack.c.h.bf16 %v7181_v6 }
 0x288   :  { %7264 = vmatprep.mubr.bf16.mxu1 %v9716_v42 }
 0x289   :  { %v4647_v33 = vadd.f32 %v9706_v57, %v4576_v9  ;;  %v7182_v9 = vld [vmem:[#allocation5 + $0x30] sm:$0xff]  }
 0x28a   :  { %v3868_v39 = vpop.f32.mrb[180].mxu0  ;;  %v4029_v58 = vpop.f32.mrb[180].mxu1  ;;  %v7076_v14 = vunpack.c.h.bf16 %v7182_v9 }
 0x28b   :  { %v9819_v21 = vadd.f32 %v3868_v39, %v9426_v0  ;;  %v4030_v42 = vadd.f32 %v4029_v58, %v9429_v1  ;;  %v3870_v63 = vpop.f32.mrb[181].mxu0  ;;  %v4031_v20 = vpop.f32.mrb[181].mxu1  ;;  %v4706_v13 = vpack.c.bf16 %v4647_v33, %v4646_v10  ;;  %v7075_v33 = vunpack.c.l.bf16 %v7182_v9 }
 0x28c   :  { %v3871_v54 = vpop.f32.mrb[182].mxu0  ;;  %v4032_v45 = vpop.f32.mrb[182].mxu1 }
 0x28d   :  { %v4577_v50 = vadd.f32 %v7071_v52, %v4030_v42  ;;  %v9823_v62 = vadd.f32 %v3871_v54, %v9438_v56  ;;  %v4033_v40 = vadd.f32 %v4032_v45, %v9441_v51  ;;  %v4034_v23 = vpop.f32.mrb[183].mxu1  ;;  %4967 = vmatmul.mubr.bf16.gmra.mrb[240].mxu0 %v4706_v13  ;;  %v3873_v0 = vpop.f32.mrb[183].mxu0  ;;  %v713_v51 = vld [vmem:[%s10469_s4 + $0x228] sm:$0xf]  ;;  %v715_v42 = vld [vmem:[%s10469_s4 + $0x234] sm:$0xf] }
 0x28e   :  { %4976 = vmatprep.mubr.bf16.mxu0 %v10490_v37  ;;  %714 = vst [vmem:[#allocation5 + $0xb8] sm:$0xf] %v713_v51  ;;  %716 = vst [vmem:[#allocation5 + $0xbc] sm:$0xf] %v715_v42 }
 0x28f   :  { %v4578_v1 = vadd.f32 %v7072_v7, %v4033_v40  ;;  %7265 = vmatmul.mubr.bf16.vlgmr.msra.gmra.mrb[32].mxu1 %v9743_v26  ;;  %v4648_v6 = vadd.f32 %v9706_v57, %v4577_v50  ;;  %v7183_v50 = vld [vmem:[#allocation5 + $0x38] sm:$0xff]  }
 0x290   :  { %7268 = vmatprep.mubr.bf16.mxu1 %v9772_v15  ;;  %v7079_v9 = vunpack.c.l.bf16 %v7183_v50 }
 0x291   :  { %v4649_v10 = vadd.f32 %v9706_v57, %v4578_v1 }
 0x292   :  { %v3876_v56 = vpop.f32.mrb[184].mxu0  ;;  %v4037_v52 = vpop.f32.mrb[184].mxu1 }
 0x293   :  { %v9835_v39 = vadd.f32 %v3876_v56, %v9447_v34  ;;  %v4038_v58 = vadd.f32 %v4037_v52, %v9450_v60  ;;  %v3878_v35 = vpop.f32.mrb[185].mxu0  ;;  %v4039_v26 = vpop.f32.mrb[185].mxu1  ;;  %v4707_v15 = vpack.c.bf16 %v4649_v10, %v4648_v6  ;;  %v719_v6 = vld [vmem:[%s10469_s4 + $0x24c] sm:$0xf]  ;;  %v7080_v56 = vunpack.c.h.bf16 %v7183_v50 }
 0x294   :  { %v3879_v63 = vpop.f32.mrb[186].mxu0  ;;  %v4040_v20 = vpop.f32.mrb[186].mxu1  ;;  %720 = vst [vmem:[#allocation5 + $0xc4] sm:$0xf] %v719_v6 }
 0x295   :  { %v4579_v7 = vadd.f32 %v7075_v33, %v4038_v58  ;;  %v9842_v54 = vadd.f32 %v3879_v63, %v9462_v17  ;;  %v4041_v34 = vadd.f32 %v4040_v20, %v9465_v22  ;;  %v4042_v45 = vpop.f32.mrb[187].mxu1  ;;  %4977 = vmatmul.mubr.bf16.gmra.mrb[244].mxu0 %v4707_v15  ;;  %v3881_v60 = vpop.f32.mrb[187].mxu0  ;;  %v717_v22 = vld [vmem:[%s10469_s4 + $0x240] sm:$0xf] }
 0x296   :  { %4986 = vmatprep.mubr.bf16.mxu0 %v10490_v37  ;;  %718 = vst [vmem:[#allocation5 + $0xc0] sm:$0xf] %v717_v22  ;;  %v7184_v63 = vld [vmem:[#allocation5 + $0x40] sm:$0xff]  }
 0x297   :  { %v4580_v40 = vadd.f32 %v7076_v14, %v4041_v34  ;;  %7269 = vmatmul.mubr.bf16.gmra.mrb[36].mxu1 %v9795_v19  ;;  %v4650_v23 = vadd.f32 %v9706_v57, %v4579_v7  ;;  %v7083_v34 = vunpack.c.l.bf16 %v7184_v63 }
 0x298   :  { %7272 = vmatprep.mubr.bf16.mxu1 %v4706_v13 }
 0x299   :  { %v4651_v0 = vadd.f32 %v9706_v57, %v4580_v40 }
 0x29a   :  { %v3884_v1 = vpop.f32.mrb[188].mxu0  ;;  %v4045_v17 = vpop.f32.mrb[188].mxu1 }
 0x29b   :  { %v9856_v10 = vadd.f32 %v3884_v1, %v9474_v29  ;;  %v4046_v19 = vadd.f32 %v4045_v17, %v9477_v5  ;;  %v3886_v13 = vpop.f32.mrb[189].mxu0  ;;  %v4047_v33 = vpop.f32.mrb[189].mxu1  ;;  %v4708_v52 = vpack.c.bf16 %v4651_v0, %v4650_v23 }
 0x29c   :  { %v3887_v51 = vpop.f32.mrb[190].mxu0  ;;  %v4048_v58 = vpop.f32.mrb[190].mxu1  ;;  %v7185_v13 = vld [vmem:[#allocation5 + $0x48] sm:$0xff]  }
 0x29d   :  { %v4581_v35 = vadd.f32 %v7079_v9, %v4046_v19  ;;  %v9860_v26 = vadd.f32 %v3887_v51, %v9486_v31  ;;  %v4049_v14 = vadd.f32 %v4048_v58, %v9489_v25  ;;  %v4050_v42 = vpop.f32.mrb[191].mxu1  ;;  %4987 = vmatmul.mubr.bf16.gmra.mrb[248].mxu0 %v4708_v52  ;;  %v3889_v29 = vpop.f32.mrb[191].mxu0  ;;  %v721_v31 = vld [vmem:[%s10469_s4 + $0x258] sm:$0xf]  ;;  %v723_v9 = vld [vmem:[%s10469_s4 + $0x264] sm:$0xf]  ;;  %v7087_v51 = vunpack.c.l.bf16 %v7185_v13 }
 0x29e   :  { %4996 = vmatprep.mubr.bf16.mxu0 %v10490_v37  ;;  %722 = vst [vmem:[#allocation5 + $0xc8] sm:$0xf] %v721_v31  ;;  %724 = vst [vmem:[#allocation5 + $0xcc] sm:$0xf] %v723_v9 }
 0x29f   :  { %v4582_v5 = vadd.f32 %v7080_v56, %v4049_v14  ;;  %7273 = vmatmul.mubr.bf16.gmra.mrb[40].mxu1 %v4707_v15  ;;  %v4652_v20 = vadd.f32 %v9706_v57, %v4581_v35  ;;  %v7084_v15 = vunpack.c.h.bf16 %v7184_v63 }
 0x2a0   :  { %7276 = vmatprep.mubr.bf16.mxu1 %v4708_v52 }
 0x2a1   :  { %v4653_v7 = vadd.f32 %v9706_v57, %v4582_v5 }
 0x2a2   :  { %v3892_v45 = vpop.f32.mrb[192].mxu0  ;;  %v4053_v60 = vpop.f32.mrb[192].mxu1 }
 0x2a3   :  { %v9870_v25 = vadd.f32 %v3892_v45, %v9495_v28  ;;  %v4054_v50 = vadd.f32 %v4053_v60, %v9498_v47  ;;  %v3894_v40 = vpop.f32.mrb[193].mxu0  ;;  %v4055_v23 = vpop.f32.mrb[193].mxu1  ;;  %v4709_v0 = vpack.c.bf16 %v4653_v7, %v4652_v20  ;;  %v7088_v20 = vunpack.c.h.bf16 %v7185_v13  ;;  %v731_v13 = vld [vmem:[%s10469_s4 + $0x294] sm:$0xf] }
 0x2a4   :  { %v3895_v1 = vpop.f32.mrb[194].mxu0  ;;  %v4056_v17 = vpop.f32.mrb[194].mxu1  ;;  %v7186_v40 = vld [vmem:[#allocation5 + $0x50] sm:$0xff]   ;;  %732 = vst [vmem:[#allocation5 + $0xdc] sm:$0xf] %v731_v13  ;;  %v10523_v13 = vld [vmem:[#allocation22_spill] sm:$0xff] }
 0x2a5   :  { %v4583_v22 = vadd.f32 %v7083_v34, %v4054_v50  ;;  %v9877_v6 = vadd.f32 %v3895_v1, %v9510_v44  ;;  %v4057_v28 = vadd.f32 %v4056_v17, %v9513_v12  ;;  %v4058_v19 = vpop.f32.mrb[195].mxu1  ;;  %4997 = vmatmul.mubr.bf16.gmra.mrb[252].mxu0 %v4709_v0  ;;  %v3897_v47 = vpop.f32.mrb[195].mxu0  ;;  %v725_v44 = vld [vmem:[%s10469_s4 + $0x270] sm:$0xf]  ;;  %v727_v12 = vld [vmem:[%s10469_s4 + $0x27c] sm:$0xf] }
 0x2a6   :  { %5006 = vmatprep.mubr.bf16.mxu0 %v10490_v37  ;;  %726 = vst [vmem:[#allocation5 + $0xd0] sm:$0xf] %v725_v44  ;;  %728 = vst [vmem:[#allocation5 + $0xd4] sm:$0xf] %v727_v12  ;;  %v7092_v47 = vunpack.c.h.bf16 %v7186_v40 }
 0x2a7   :  { %v4584_v33 = vadd.f32 %v7084_v15, %v4057_v28  ;;  %7277 = vmatmul.mubr.bf16.gmra.mrb[44].mxu1 %v4709_v0  ;;  %v4654_v56 = vadd.f32 %v9706_v57, %v4583_v22  ;;  %v7091_v0 = vunpack.c.l.bf16 %v7186_v40 }
 0x2a9   :  { %v4655_v52 = vadd.f32 %v9706_v57, %v4584_v33 }
 0x2aa   :  { %v3900_v58 = vpop.f32.mrb[196].mxu0  ;;  %v4061_v35 = vpop.f32.mrb[196].mxu1 }
 0x2ab   :  { %v4710_v14 = vpack.c.bf16 %v4655_v52, %v4654_v56  ;;  %v9890_v42 = vadd.f32 %v3900_v58, %v9522_v61  ;;  %v4062_v29 = vadd.f32 %v4061_v35, %v9525_v43  ;;  %v3902_v63 = vpop.f32.mrb[197].mxu0  ;;  %v4063_v5 = vpop.f32.mrb[197].mxu1  ;;  %v7187_v35 = vld [vmem:[#allocation5 + $0x58] sm:$0xff]  }
 0x2ac   :  { %v3903_v7 = vpop.f32.mrb[198].mxu0  ;;  %v4064_v34 = vpop.f32.mrb[198].mxu1 }
 0x2ad   :  { %v4585_v45 = vadd.f32 %v7087_v51, %v4062_v29  ;;  %v9894_v60 = vadd.f32 %v3903_v7, %v9534_v4  ;;  %v4065_v31 = vadd.f32 %v4064_v34, %v9537_v3  ;;  %v4066_v50 = vpop.f32.mrb[199].mxu1  ;;  %5007 = vmatmul.mubr.bf16.gmra.mrb[0].mxu0 %v4710_v14  ;;  %7280 = vmatprep.mubr.bf16.mxu1 %v4710_v14  ;;  %v3905_v61 = vpop.f32.mrb[199].mxu0  ;;  %v729_v4 = vld [vmem:[%s10469_s4 + $0x288] sm:$0xf]  ;;  %v7095_v29 = vunpack.c.l.bf16 %v7187_v35 }
 0x2ae   :  { %5016 = vmatprep.mubr.bf16.mxu0 %v10490_v37  ;;  %730 = vst [vmem:[#allocation5 + $0xd8] sm:$0xf] %v729_v4  ;;  %v7096_v50 = vunpack.c.h.bf16 %v7187_v35  ;;  %v739_v35 = vld [vmem:[%s10469_s4 + $0x2c4] sm:$0xf] }
 0x2af   :  { %v4586_v43 = vadd.f32 %v7088_v20, %v4065_v31  ;;  %v4656_v23 = vadd.f32 %v9706_v57, %v4585_v45  ;;  %740 = vst [vmem:[#allocation5 + $0xec] sm:$0xf] %v739_v35 }
 0x2b1   :  { %v4657_v15 = vadd.f32 %v9706_v57, %v4586_v43 }
 0x2b2   :  { %v3908_v9 = vpop.f32.mrb[200].mxu0  ;;  %v4069_v1 = vpop.f32.mrb[200].mxu1 }
 0x2b3   :  { %v4711_v3 = vpack.c.bf16 %v4657_v15, %v4656_v23  ;;  %v9904_v17 = vadd.f32 %v3908_v9, %v9543_v16  ;;  %v4070_v22 = vadd.f32 %v4069_v1, %v9546_v27  ;;  %v3910_v28 = vpop.f32.mrb[201].mxu0  ;;  %v4071_v19 = vpop.f32.mrb[201].mxu1  ;;  %v10522_v15 = vld [vmem:[#allocation21_spill] sm:$0xff]  ;;  %v7188_v1 = vld [vmem:[#allocation5 + $0x60] sm:$0xff]  }
 0x2b4   :  { %v3911_v33 = vpop.f32.mrb[202].mxu0  ;;  %v4072_v56 = vpop.f32.mrb[202].mxu1 }
 0x2b5   :  { %v4587_v52 = vadd.f32 %v7091_v0, %v4070_v22  ;;  %v9911_v51 = vadd.f32 %v3911_v33, %v9558_v46  ;;  %v4073_v16 = vadd.f32 %v4072_v56, %v9561_v55  ;;  %v4074_v58 = vpop.f32.mrb[203].mxu1  ;;  %5017 = vmatmul.mubr.bf16.gmra.mrb[4].mxu0 %v4711_v3  ;;  %7281 = vmatmul.mubr.bf16.gmra.mrb[48].mxu1 %v4711_v3  ;;  %v3913_v27 = vpop.f32.mrb[203].mxu0  ;;  %v733_v46 = vld [vmem:[%s10469_s4 + $0x2a0] sm:$0xf]  ;;  %v735_v55 = vld [vmem:[%s10469_s4 + $0x2ac] sm:$0xf]  ;;  %v7099_v22 = vunpack.c.l.bf16 %v7188_v1 }
 0x2b6   :  { %5026 = vmatprep.mubr.bf16.mxu0 %v10490_v37  ;;  %734 = vst [vmem:[#allocation5 + $0xe0] sm:$0xf] %v733_v46  ;;  %736 = vst [vmem:[#allocation5 + $0xe4] sm:$0xf] %v735_v55  ;;  %v10524_v56 = vld [vmem:[#allocation23_spill] sm:$0xff]  ;;  %v7100_v27 = vunpack.c.h.bf16 %v7188_v1 }
 0x2b7   :  { %v4588_v44 = vadd.f32 %v7092_v47, %v4073_v16  ;;  %v4658_v12 = vadd.f32 %v9706_v57, %v4587_v52 }
 0x2b9   :  { %v4659_v14 = vadd.f32 %v9706_v57, %v4588_v44 }
 0x2ba   :  { %v3916_v63 = vpop.f32.mrb[204].mxu0  ;;  %v4077_v5 = vpop.f32.mrb[204].mxu1 }
 0x2bb   :  { %v4712_v20 = vpack.c.bf16 %v4659_v14, %v4658_v12  ;;  %v9924_v7 = vadd.f32 %v3916_v63, %v9570_v24  ;;  %v4078_v34 = vadd.f32 %v4077_v5, %v9573_v38  ;;  %v3918_v45 = vpop.f32.mrb[205].mxu0  ;;  %v4079_v31 = vpop.f32.mrb[205].mxu1  ;;  %v10526_v5 = vld [vmem:[#allocation13_spill] sm:$0xff] }
 0x2bc   :  { %v3919_v61 = vpop.f32.mrb[206].mxu0  ;;  %v4080_v40 = vpop.f32.mrb[206].mxu1 }
 0x2bd   :  { %v4589_v43 = vadd.f32 %v7095_v29, %v4078_v34  ;;  %v9928_v23 = vadd.f32 %v3919_v61, %v9582_v30  ;;  %v4081_v0 = vadd.f32 %v4080_v40, %v10522_v15  ;;  %v4082_v9 = vpop.f32.mrb[207].mxu1  ;;  %5027 = vmatmul.mubr.bf16.gmra.mrb[8].mxu0 %v4712_v20  ;;  %7284 = vmatprep.mubr.bf16.mxu1 %v4712_v20  ;;  %v3921_v24 = vpop.f32.mrb[207].mxu0  ;;  %v737_v30 = vld [vmem:[%s10469_s4 + $0x2b8] sm:$0xf]  ;;  %v10525_v29 = vld [vmem:[#allocation6_spill] sm:$0xff]  ;;  %v7189_v34 = vld [vmem:[#allocation5 + $0x68] sm:$0xff]  }
 0x2be   :  { %5036 = vmatprep.mubr.bf16.mxu0 %v10490_v37  ;;  %738 = vst [vmem:[#allocation5 + $0xe8] sm:$0xf] %v737_v30  ;;  %v7103_v61 = vunpack.c.l.bf16 %v7189_v34  ;;  %v741_v15 = vld [vmem:[%s10469_s4 + $0x2d0] sm:$0xf]  ;;  %v10527_v24 = vld [vmem:[#allocation7_spill] sm:$0xff] }
 0x2bf   :  { %v4590_v38 = vadd.f32 %v7096_v50, %v4081_v0  ;;  %v4660_v4 = vadd.f32 %v9706_v57, %v4589_v43  ;;  %v743_v0 = vld [vmem:[%s10469_s4 + $0x2dc] sm:$0xf]  ;;  %742 = vst [vmem:[#allocation5 + $0xf0] sm:$0xf] %v741_v15 }
 0x2c0   :  { %744 = vst [vmem:[#allocation5 + $0xf4] sm:$0xf] %v743_v0  ;;  %v10531_v15 = vld [vmem:[#allocation9_spill] sm:$0xff] }
 0x2c1   :  { %v4661_v3 = vadd.f32 %v9706_v57, %v4590_v38  ;;  %v10528_v38 = vld [vmem:[#allocation14_spill] sm:$0xff] }
 0x2c2   :  { %v3924_v28 = vpop.f32.mrb[208].mxu0  ;;  %v4085_v19 = vpop.f32.mrb[208].mxu1 }
 0x2c3   :  { %v4713_v47 = vpack.c.bf16 %v4661_v3, %v4660_v4  ;;  %v9938_v33 = vadd.f32 %v3924_v28, %v10523_v13  ;;  %v4086_v52 = vadd.f32 %v4085_v19, %v10524_v56  ;;  %v3926_v16 = vpop.f32.mrb[209].mxu0  ;;  %v4087_v58 = vpop.f32.mrb[209].mxu1  ;;  %v7104_v28 = vunpack.c.h.bf16 %v7189_v34 }
 0x2c4   :  { %v3927_v44 = vpop.f32.mrb[210].mxu0  ;;  %v4088_v12 = vpop.f32.mrb[210].mxu1  ;;  %v7190_v58 = vld [vmem:[#allocation5 + $0x70] sm:$0xff]  }
 0x2c5   :  { %v4591_v14 = vadd.f32 %v7099_v22, %v4086_v52  ;;  %v9945_v63 = vadd.f32 %v3927_v44, %v10525_v29  ;;  %v4089_v46 = vadd.f32 %v4088_v12, %v10526_v5  ;;  %v4090_v55 = vpop.f32.mrb[211].mxu1  ;;  %5037 = vmatmul.mubr.bf16.gmra.mrb[12].mxu0 %v4713_v47  ;;  %7285 = vmatmul.mubr.bf16.gmra.mrb[52].mxu1 %v4713_v47  ;;  %v3929_v20 = vpop.f32.mrb[211].mxu0  ;;  %v7107_v12 = vunpack.c.l.bf16 %v7190_v58  ;;  %v10529_v5 = vld [vmem:[#allocation8_spill] sm:$0xff] }
 0x2c6   :  { %5046 = vmatprep.mubr.bf16.mxu0 %v10490_v37  ;;  %v10530_v55 = vld [vmem:[#allocation15_spill] sm:$0xff] }
 0x2c7   :  { %v4592_v45 = vadd.f32 %v7100_v27, %v4089_v46  ;;  %v4662_v31 = vadd.f32 %v9706_v57, %v4591_v14 }
 0x2c9   :  { %v4663_v50 = vadd.f32 %v9706_v57, %v4592_v45 }
 0x2ca   :  { %v3932_v40 = vpop.f32.mrb[212].mxu0  ;;  %v4093_v43 = vpop.f32.mrb[212].mxu1 }
 0x2cb   :  { %v4714_v9 = vpack.c.bf16 %v4663_v50, %v4662_v31  ;;  %v9958_v1 = vadd.f32 %v3932_v40, %v10527_v24  ;;  %v4094_v4 = vadd.f32 %v4093_v43, %v10528_v38  ;;  %v3934_v3 = vpop.f32.mrb[213].mxu0  ;;  %v4095_v22 = vpop.f32.mrb[213].mxu1  ;;  %v7108_v31 = vunpack.c.h.bf16 %v7190_v58  ;;  %v747_v50 = vld [vmem:[%s10469_s4 + $0x2f4] sm:$0xf] }
 0x2cc   :  { %v3935_v19 = vpop.f32.mrb[214].mxu0  ;;  %v4096_v30 = vpop.f32.mrb[214].mxu1  ;;  %748 = vst [vmem:[#allocation5 + $0xfc] sm:$0xf] %v747_v50  ;;  %v7191_v3 = vld [vmem:[#allocation5 + $0x78] sm:$0xff]   ;;  %v7192_v50 = vld [vmem:[#allocation5 + $0x80] sm:$0xff]  }
 0x2cd   :  { %v4593_v47 = vadd.f32 %v7103_v61, %v4094_v4  ;;  %v9962_v13 = vadd.f32 %v3935_v19, %v9630_v2  ;;  %v4097_v56 = vadd.f32 %v4096_v30, %v9633_v36  ;;  %v4098_v52 = vpop.f32.mrb[215].mxu1  ;;  %5047 = vmatmul.mubr.bf16.gmra.mrb[16].mxu0 %v4714_v9  ;;  %7288 = vmatprep.mubr.bf16.mxu1 %v4714_v9  ;;  %v3937_v16 = vpop.f32.mrb[215].mxu0  ;;  %v745_v2 = vld [vmem:[%s10469_s4 + $0x2e8] sm:$0xf]  ;;  %v10532_v9 = vld [vmem:[#allocation16_spill] sm:$0xff]  ;;  %v7111_v30 = vunpack.c.l.bf16 %v7191_v3 }
 0x2ce   :  { %5056 = vmatprep.mubr.bf16.mxu0 %v10490_v37  ;;  %746 = vst [vmem:[#allocation5 + $0xf8] sm:$0xf] %v745_v2  ;;  %v10533_v16 = vld [vmem:[#allocation10_spill] sm:$0xff] }
 0x2cf   :  { %v4594_v27 = vadd.f32 %v7104_v28, %v4097_v56  ;;  %v4664_v35 = vadd.f32 %v9706_v57, %v4593_v47 }
 0x2d1   :  { %v4665_v44 = vadd.f32 %v9706_v57, %v4594_v27  ;;  %v10534_v27 = vld [vmem:[#allocation17_spill] sm:$0xff] }
 0x2d2   :  { %v3940_v14 = vpop.f32.mrb[216].mxu0  ;;  %v4101_v29 = vpop.f32.mrb[216].mxu1 }
 0x2d3   :  { %v4715_v36 = vpack.c.bf16 %v4665_v44, %v4664_v35  ;;  %v9972_v46 = vadd.f32 %v3940_v14, %v10529_v5  ;;  %v4102_v20 = vadd.f32 %v4101_v29, %v10530_v55  ;;  %v3942_v34 = vpop.f32.mrb[217].mxu0  ;;  %v4103_v45 = vpop.f32.mrb[217].mxu1  ;;  %v7112_v14 = vunpack.c.h.bf16 %v7191_v3  ;;  %v10535_v5 = vld [vmem:[#allocation11_spill] sm:$0xff] }
 0x2d4   :  { %v3943_v61 = vpop.f32.mrb[218].mxu0  ;;  %v4104_v40 = vpop.f32.mrb[218].mxu1 }
 0x2d5   :  { %v4595_v43 = vadd.f32 %v7107_v12, %v4102_v20  ;;  %v9979_v0 = vadd.f32 %v3943_v61, %v10531_v15  ;;  %v4105_v24 = vadd.f32 %v4104_v40, %v10532_v9  ;;  %v4106_v38 = vpop.f32.mrb[219].mxu1  ;;  %5057 = vmatmul.mubr.bf16.gmra.mrb[20].mxu0 %v4715_v36  ;;  %7289 = vmatmul.mubr.bf16.gmra.mrb[56].mxu1 %v4715_v36  ;;  %v3945_v4 = vpop.f32.mrb[219].mxu0  ;;  %v10536_v20 = vld [vmem:[#allocation12_spill] sm:$0xff]  ;;  %v7115_v15 = vunpack.c.l.bf16 %v7192_v50 }
 0x2d6   :  { %5066 = vmatprep.mubr.bf16.mxu0 %v10490_v37  ;;  %v10537_v38 = vld [vmem:[#allocation18_spill] sm:$0xff] }
 0x2d7   :  { %v4596_v22 = vadd.f32 %v7108_v31, %v4105_v24  ;;  %v4666_v28 = vadd.f32 %v9706_v57, %v4595_v43 }
 0x2d9   :  { %v4667_v19 = vadd.f32 %v9706_v57, %v4596_v22  ;;  %v7116_v22 = vunpack.c.h.bf16 %v7192_v50 }
 0x2da   :  { %v3948_v47 = vpop.f32.mrb[220].mxu0  ;;  %v4109_v56 = vpop.f32.mrb[220].mxu1 }
 0x2db   :  { %v4716_v52 = vpack.c.bf16 %v4667_v19, %v4666_v28  ;;  %v9986_v58 = vadd.f32 %v3948_v47, %v10533_v16  ;;  %v4110_v35 = vadd.f32 %v4109_v56, %v10534_v27  ;;  %v3950_v44 = vpop.f32.mrb[221].mxu0  ;;  %v4111_v12 = vpop.f32.mrb[221].mxu1  ;;  %v7193_v56 = vld [vmem:[#allocation5 + $0x88] sm:$0xff]  }
 0x2dc   :  { %v3951_v29 = vpop.f32.mrb[222].mxu0  ;;  %v4112_v2 = vpop.f32.mrb[222].mxu1 }
 0x2dd   :  { %v4597_v36 = vadd.f32 %v7111_v30, %v4110_v35  ;;  %v9990_v55 = vadd.f32 %v3951_v29, %v10535_v5  ;;  %v4113_v34 = vadd.f32 %v4112_v2, %v10536_v20  ;;  %v4114_v45 = vpop.f32.mrb[223].mxu1  ;;  %5067 = vmatmul.mubr.bf16.gmra.mrb[24].mxu0 %v4716_v52  ;;  %7292 = vmatprep.mubr.bf16.mxu1 %v4716_v52  ;;  %v3953_v31 = vpop.f32.mrb[223].mxu0  ;;  %v7119_v35 = vunpack.c.l.bf16 %v7193_v56 }
 0x2de   :  { %5076 = vmatprep.mubr.bf16.mxu0 %v10490_v37  ;;  %v7120_v2 = vunpack.c.h.bf16 %v7193_v56 }
 0x2df   :  { %v4598_v61 = vadd.f32 %v7112_v14, %v4113_v34  ;;  %v4668_v40 = vadd.f32 %v9706_v57, %v4597_v36  ;;  %v7194_v34 = vld [vmem:[#allocation5 + $0x90] sm:$0xff]  }
 0x2e1   :  { %v4669_v43 = vadd.f32 %v9706_v57, %v4598_v61  ;;  %v7123_v61 = vunpack.c.l.bf16 %v7194_v34 }
 0x2e2   :  { %v4117_v9 = vpop.f32.mrb[224].mxu1 }
 0x2e3   :  { %v4717_v24 = vpack.c.bf16 %v4669_v43, %v4668_v40  ;;  %v4118_v4 = vadd.f32 %v4117_v9, %v10537_v38  ;;  %v4119_v3 = vpop.f32.mrb[225].mxu1  ;;  %v7124_v9 = vunpack.c.h.bf16 %v7194_v34 }
 0x2e4   :  { %v4120_v28 = vpop.f32.mrb[226].mxu1  ;;  %v7195_v3 = vld [vmem:[#allocation5 + $0x98] sm:$0xff]  }
 0x2e5   :  { %v4599_v19 = vadd.f32 %v7115_v15, %v4118_v4  ;;  %v4121_v30 = vadd.f32 %v4120_v28, %v9700_v41  ;;  %v4122_v47 = vpop.f32.mrb[227].mxu1  ;;  %5077 = vmatmul.mubr.bf16.gmra.mrb[28].mxu0 %v4717_v24  ;;  %7293 = vmatmul.mubr.bf16.gmra.mrb[60].mxu1 %v4717_v24 }
 0x2e6   :  { %5086 = vmatprep.mubr.bf16.mxu0 %v10490_v37 }
 0x2e7   :  { %v4600_v52 = vadd.f32 %v7116_v22, %v4121_v30  ;;  %v4670_v16 = vadd.f32 %v9706_v57, %v4599_v19  ;;  %v7127_v30 = vunpack.c.l.bf16 %v7195_v3 }
 0x2e9   :  { %v4671_v27 = vadd.f32 %v9706_v57, %v4600_v52 }
 0x2ea   :  { %v4125_v44 = vpop.f32.mrb[228].mxu1 }
 0x2eb   :  { %v4718_v12 = vpack.c.bf16 %v4671_v27, %v4670_v16  ;;  %v4126_v14 = vadd.f32 %v4125_v44, %v9719_v32  ;;  %v4127_v29 = vpop.f32.mrb[229].mxu1  ;;  %v7128_v16 = vunpack.c.h.bf16 %v7195_v3 }
 0x2ec   :  { %v4128_v36 = vpop.f32.mrb[230].mxu1 }
 0x2ed   :  { %v4601_v41 = vadd.f32 %v7119_v35, %v4126_v14  ;;  %v4129_v5 = vadd.f32 %v4128_v36, %v9729_v11  ;;  %v4130_v20 = vpop.f32.mrb[231].mxu1  ;;  %5087 = vmatmul.mubr.bf16.gmra.mrb[32].mxu0 %v4718_v12  ;;  %7296 = vmatprep.mubr.bf16.mxu1 %v4718_v12  ;;  %v7196_v12 = vld [vmem:[#allocation5 + $0xa0] sm:$0xff]  }
 0x2ee   :  { %5096 = vmatprep.mubr.bf16.mxu0 %v10490_v37  ;;  %v7131_v36 = vunpack.c.l.bf16 %v7196_v12  ;;  %v7132_v34 = vunpack.c.h.bf16 %v7196_v12  ;;  %v7199_v12 = vld [vmem:[#allocation5 + $0xb8] sm:$0xff]  }
 0x2ef   :  { %v4602_v45 = vadd.f32 %v7120_v2, %v4129_v5  ;;  %v4672_v31 = vadd.f32 %v9706_v57, %v4601_v41 }
 0x2f1   :  { %v4673_v50 = vadd.f32 %v9706_v57, %v4602_v45 }
 0x2f2   :  { %v4133_v40 = vpop.f32.mrb[232].mxu1 }
 0x2f3   :  { %v4719_v32 = vpack.c.bf16 %v4673_v50, %v4672_v31  ;;  %v4134_v43 = vadd.f32 %v4133_v40, %v9740_v53  ;;  %v4135_v15 = vpop.f32.mrb[233].mxu1 }
 0x2f4   :  { %v4136_v24 = vpop.f32.mrb[234].mxu1 }
 0x2f5   :  { %v4603_v11 = vadd.f32 %v7123_v61, %v4134_v43  ;;  %v4137_v38 = vadd.f32 %v4136_v24, %v9755_v18  ;;  %v4138_v4 = vpop.f32.mrb[235].mxu1  ;;  %5097 = vmatmul.mubr.bf16.gmra.mrb[36].mxu0 %v4719_v32  ;;  %7297 = vmatmul.mubr.bf16.gmra.mrb[64].mxu1 %v4719_v32  ;;  %v7197_v61 = vld [vmem:[#allocation5 + $0xa8] sm:$0xff]  }
 0x2f6   :  { %5106 = vmatprep.mubr.bf16.mxu0 %v10490_v37  ;;  %v7135_v15 = vunpack.c.l.bf16 %v7197_v61 }
 0x2f7   :  { %v4604_v22 = vadd.f32 %v7124_v9, %v4137_v38  ;;  %v4674_v28 = vadd.f32 %v9706_v57, %v4603_v11  ;;  %v7136_v38 = vunpack.c.h.bf16 %v7197_v61 }
 0x2f9   :  { %v4675_v19 = vadd.f32 %v9706_v57, %v4604_v22 }
 0x2fa   :  { %v4141_v47 = vpop.f32.mrb[236].mxu1 }
 0x2fb   :  { %v4720_v53 = vpack.c.bf16 %v4675_v19, %v4674_v28  ;;  %v4142_v56 = vadd.f32 %v4141_v47, %v9769_v48  ;;  %v4143_v52 = vpop.f32.mrb[237].mxu1  ;;  %v7198_v28 = vld [vmem:[#allocation5 + $0xb0] sm:$0xff]  }
 0x2fc   :  { %v4144_v27 = vpop.f32.mrb[238].mxu1  ;;  %v7139_v47 = vunpack.c.l.bf16 %v7198_v28 }
 0x2fd   :  { %v4605_v18 = vadd.f32 %v7127_v30, %v4142_v56  ;;  %v4145_v35 = vadd.f32 %v4144_v27, %v9781_v8  ;;  %v4146_v44 = vpop.f32.mrb[239].mxu1  ;;  %5107 = vmatmul.mubr.bf16.gmra.mrb[40].mxu0 %v4720_v53  ;;  %7300 = vmatprep.mubr.bf16.mxu1 %v4720_v53 }
 0x2fe   :  { %5116 = vmatprep.mubr.bf16.mxu0 %v10490_v37 }
 0x2ff   :  { %v4606_v14 = vadd.f32 %v7128_v16, %v4145_v35  ;;  %v4676_v29 = vadd.f32 %v9706_v57, %v4605_v18  ;;  %v7140_v16 = vunpack.c.h.bf16 %v7198_v28 }
 0x301   :  { %v4677_v2 = vadd.f32 %v9706_v57, %v4606_v14 }
 0x302   :  { %v4149_v41 = vpop.f32.mrb[240].mxu1 }
 0x303   :  { %v4721_v48 = vpack.c.bf16 %v4677_v2, %v4676_v29  ;;  %v4150_v5 = vadd.f32 %v4149_v41, %v9792_v49  ;;  %v4151_v20 = vpop.f32.mrb[241].mxu1 }
 0x304   :  { %v4152_v45 = vpop.f32.mrb[242].mxu1  ;;  %v7144_v20 = vunpack.c.h.bf16 %v7199_v12 }
 0x305   :  { %v4607_v8 = vadd.f32 %v7131_v36, %v4150_v5  ;;  %v4153_v31 = vadd.f32 %v4152_v45, %v9804_v59  ;;  %v4154_v50 = vpop.f32.mrb[243].mxu1  ;;  %5117 = vmatmul.mubr.bf16.gmra.mrb[44].mxu0 %v4721_v48  ;;  %7301 = vmatmul.mubr.bf16.gmra.mrb[68].mxu1 %v4721_v48  ;;  %v7143_v36 = vunpack.c.l.bf16 %v7199_v12 }
 0x306   :  { %5126 = vmatprep.mubr.bf16.mxu0 %v10490_v37 }
 0x307   :  { %v4608_v40 = vadd.f32 %v7132_v34, %v4153_v31  ;;  %v4678_v32 = vadd.f32 %v9706_v57, %v4607_v8  ;;  %v7200_v31 = vld [vmem:[#allocation5 + $0xc0] sm:$0xff]  }
 0x309   :  { %v4679_v43 = vadd.f32 %v9706_v57, %v4608_v40  ;;  %v10027_v57 = vld [vmem:[%s10470_s5] ss:$0 sm:$0xff] }
 0x30a   :  { %v4157_v9 = vpop.f32.mrb[244].mxu1 }
 0x30b   :  { %v4722_v49 = vpack.c.bf16 %v4679_v43, %v4678_v32  ;;  %v4158_v24 = vadd.f32 %v4157_v9, %v9819_v21  ;;  %v4159_v11 = vpop.f32.mrb[245].mxu1  ;;  %v7147_v32 = vunpack.c.l.bf16 %v7200_v31 }
 0x30c   :  { %v4160_v4 = vpop.f32.mrb[246].mxu1 }
 0x30d   :  { %v4609_v59 = vadd.f32 %v7135_v15, %v4158_v24  ;;  %v4161_v3 = vadd.f32 %v4160_v4, %v9823_v62  ;;  %v4162_v22 = vpop.f32.mrb[247].mxu1  ;;  %5127 = vmatmul.mubr.bf16.gmra.mrb[48].mxu0 %v4722_v49  ;;  %7304 = vmatprep.mubr.bf16.mxu1 %v4722_v49  ;;  %v7148_v49 = vunpack.c.h.bf16 %v7200_v31  ;;  %v7201_v4 = vld [vmem:[#allocation5 + $0xc8] sm:$0xff]  }
 0x30e   :  { %5136 = vmatprep.mubr.bf16.mxu0 %v10490_v37  ;;  %v7151_v28 = vunpack.c.l.bf16 %v7201_v4 }
 0x30f   :  { %v4610_v19 = vadd.f32 %v7136_v38, %v4161_v3  ;;  %v4680_v21 = vadd.f32 %v10027_v57, %v4609_v59 }
 0x311   :  { %v4681_v30 = vadd.f32 %v10027_v57, %v4610_v19 }
 0x312   :  { %v4165_v53 = vpop.f32.mrb[248].mxu1 }
 0x313   :  { %v4723_v56 = vpack.c.bf16 %v4681_v30, %v4680_v21  ;;  %v4166_v62 = vadd.f32 %v4165_v53, %v9835_v39  ;;  %v4167_v52 = vpop.f32.mrb[249].mxu1 }
 0x314   :  { %v4168_v27 = vpop.f32.mrb[250].mxu1  ;;  %v7202_v52 = vld [vmem:[#allocation5 + $0xd0] sm:$0xff]  }
 0x315   :  { %v4611_v18 = vadd.f32 %v7139_v47, %v4166_v62  ;;  %v4169_v35 = vadd.f32 %v4168_v27, %v9842_v54  ;;  %v4170_v44 = vpop.f32.mrb[251].mxu1  ;;  %5137 = vmatmul.mubr.bf16.gmra.mrb[52].mxu0 %v4723_v56  ;;  %7305 = vmatmul.mubr.bf16.gmra.mrb[72].mxu1 %v4723_v56  ;;  %v7152_v47 = vunpack.c.h.bf16 %v7201_v4 }
 0x316   :  { %5146 = vmatprep.mubr.bf16.mxu0 %v10490_v37 }
 0x317   :  { %v4612_v14 = vadd.f32 %v7140_v16, %v4169_v35  ;;  %v4682_v29 = vadd.f32 %v10027_v57, %v4611_v18  ;;  %v7155_v35 = vunpack.c.l.bf16 %v7202_v52 }
 0x319   :  { %v4683_v2 = vadd.f32 %v10027_v57, %v4612_v14 }
 0x31a   :  { %v4173_v41 = vpop.f32.mrb[252].mxu1 }
 0x31b   :  { %v4724_v39 = vpack.c.bf16 %v4683_v2, %v4682_v29  ;;  %v4174_v48 = vadd.f32 %v4173_v41, %v9856_v10  ;;  %v4175_v5 = vpop.f32.mrb[253].mxu1  ;;  %v7156_v29 = vunpack.c.h.bf16 %v7202_v52 }
 0x31c   :  { %v4176_v34 = vpop.f32.mrb[254].mxu1 }
 0x31d   :  { %v4613_v54 = vadd.f32 %v7143_v36, %v4174_v48  ;;  %v4177_v45 = vadd.f32 %v4176_v34, %v9860_v26  ;;  %v4178_v8 = vpop.f32.mrb[255].mxu1  ;;  %5147 = vmatmul.mubr.bf16.gmra.mrb[56].mxu0 %v4724_v39  ;;  %7308 = vmatprep.mubr.bf16.mxu1 %v4724_v39  ;;  %v7203_v39 = vld [vmem:[#allocation5 + $0xd8] sm:$0xff]  }
 0x31e   :  { %5156 = vmatprep.mubr.bf16.mxu0 %v10490_v37  ;;  %v7159_v34 = vunpack.c.l.bf16 %v7203_v39  ;;  %v7160_v31 = vunpack.c.h.bf16 %v7203_v39 }
 0x31f   :  { %v4614_v50 = vadd.f32 %v7144_v20, %v4177_v45  ;;  %v4684_v61 = vadd.f32 %v10027_v57, %v4613_v54 }
 0x321   :  { %v4685_v40 = vadd.f32 %v10027_v57, %v4614_v50 }
 0x322   :  { %v4181_v43 = vpop.f32.mrb[0].mxu1 }
 0x323   :  { %v4725_v10 = vpack.c.bf16 %v4685_v40, %v4684_v61  ;;  %v4182_v15 = vadd.f32 %v4181_v43, %v9870_v25  ;;  %v4183_v9 = vpop.f32.mrb[1].mxu1 }
 0x324   :  { %v4184_v24 = vpop.f32.mrb[2].mxu1 }
 0x325   :  { %v4615_v26 = vadd.f32 %v7147_v32, %v4182_v15  ;;  %v4185_v11 = vadd.f32 %v4184_v24, %v9877_v6  ;;  %v4186_v38 = vpop.f32.mrb[3].mxu1  ;;  %5157 = vmatmul.mubr.bf16.gmra.mrb[60].mxu0 %v4725_v10  ;;  %7309 = vmatmul.mubr.bf16.gmra.mrb[76].mxu1 %v4725_v10  ;;  %v7204_v32 = vld [vmem:[#allocation5 + $0xe0] sm:$0xff]  }
 0x326   :  { %5166 = vmatprep.mubr.bf16.mxu0 %v10490_v37 }
 0x327   :  { %v4616_v59 = vadd.f32 %v7148_v49, %v4185_v11  ;;  %v4686_v3 = vadd.f32 %v10027_v57, %v4615_v26 }
 0x329   :  { %v4687_v22 = vadd.f32 %v10027_v57, %v4616_v59 }
 0x32a   :  { %v4189_v19 = vpop.f32.mrb[4].mxu1 }
 0x32b   :  { %v4726_v25 = vpack.c.bf16 %v4687_v22, %v4686_v3  ;;  %v4190_v21 = vadd.f32 %v4189_v19, %v9890_v42  ;;  %v4191_v30 = vpop.f32.mrb[5].mxu1  ;;  %v7164_v3 = vunpack.c.h.bf16 %v7204_v32 }
 0x32c   :  { %v4192_v53 = vpop.f32.mrb[6].mxu1 }
 0x32d   :  { %v4617_v6 = vadd.f32 %v7151_v28, %v4190_v21  ;;  %v4193_v56 = vadd.f32 %v4192_v53, %v9894_v60  ;;  %v4194_v62 = vpop.f32.mrb[7].mxu1  ;;  %5167 = vmatmul.mubr.bf16.gmra.mrb[64].mxu0 %v4726_v25  ;;  %7312 = vmatprep.mubr.bf16.mxu1 %v4726_v25 }
 0x32e   :  { %5176 = vmatprep.mubr.bf16.mxu0 %v10490_v37 }
 0x32f   :  { %v4618_v16 = vadd.f32 %v7152_v47, %v4193_v56  ;;  %v4688_v27 = vadd.f32 %v10027_v57, %v4617_v6 }
 0x331   :  { %v4689_v18 = vadd.f32 %v10027_v57, %v4618_v16 }
 0x332   :  { %v4197_v44 = vpop.f32.mrb[8].mxu1 }
 0x333   :  { %v4727_v42 = vpack.c.bf16 %v4689_v18, %v4688_v27  ;;  %v4198_v12 = vadd.f32 %v4197_v44, %v9904_v17  ;;  %v4199_v14 = vpop.f32.mrb[9].mxu1 }
 0x334   :  { %v4200_v2 = vpop.f32.mrb[10].mxu1 }
 0x335   :  { %v4619_v60 = vadd.f32 %v7155_v35, %v4198_v12  ;;  %v4201_v36 = vadd.f32 %v4200_v2, %v9911_v51  ;;  %v4202_v41 = vpop.f32.mrb[11].mxu1  ;;  %5177 = vmatmul.mubr.bf16.gmra.mrb[68].mxu0 %v4727_v42  ;;  %7313 = vmatmul.mubr.bf16.gmra.mrb[80].mxu1 %v4727_v42 }
 0x336   :  { %5186 = vmatprep.mubr.bf16.mxu0 %v10490_v37 }
 0x337   :  { %v4620_v48 = vadd.f32 %v7156_v29, %v4201_v36  ;;  %v4690_v5 = vadd.f32 %v10027_v57, %v4619_v60 }
 0x339   :  { %v4691_v20 = vadd.f32 %v10027_v57, %v4620_v48 }
 0x33a   :  { %v4205_v54 = vpop.f32.mrb[12].mxu1 }
 0x33b   :  { %v4728_v17 = vpack.c.bf16 %v4691_v20, %v4690_v5  ;;  %v4206_v45 = vadd.f32 %v4205_v54, %v9924_v7  ;;  %v4207_v8 = vpop.f32.mrb[13].mxu1  ;;  %v7163_v7 = vunpack.c.l.bf16 %v7204_v32 }
 0x33c   :  { %v4208_v50 = vpop.f32.mrb[14].mxu1 }
 0x33d   :  { %v4621_v51 = vadd.f32 %v7159_v34, %v4206_v45  ;;  %v4209_v61 = vadd.f32 %v4208_v50, %v9928_v23  ;;  %v4210_v40 = vpop.f32.mrb[15].mxu1  ;;  %5187 = vmatmul.mubr.bf16.gmra.mrb[72].mxu0 %v4728_v17  ;;  %7316 = vmatprep.mubr.bf16.mxu1 %v4728_v17 }
 0x33e   :  { %5196 = vmatprep.mubr.bf16.mxu0 %v10490_v37 }
 0x33f   :  { %v4622_v43 = vadd.f32 %v7160_v31, %v4209_v61  ;;  %v4692_v15 = vadd.f32 %v10027_v57, %v4621_v51 }
 0x340   :  { %v4928_v10 = vpop.f32.mrb[224].mxu0 }
 0x341   :  { %v4693_v9 = vadd.f32 %v10027_v57, %v4622_v43  ;;  %v4930_v49 = vpop.f32.mrb[225].mxu0 }
 0x342   :  { %v6921_v24 = vpack.c.bf16 %v4930_v49, %v4928_v10  ;;  %v4213_v26 = vpop.f32.mrb[16].mxu1  ;;  %v4932_v11 = vpop.f32.mrb[226].mxu0 }
 0x343   :  { %v4729_v38 = vpack.c.bf16 %v4693_v9, %v4692_v15  ;;  %v4214_v23 = vadd.f32 %v4213_v26, %v9938_v33  ;;  %v4215_v4 = vpop.f32.mrb[17].mxu1  ;;  %v4934_v59 = vpop.f32.mrb[227].mxu0  ;;  %v7205_v33 = vld [vmem:[#allocation5 + $0xe8] sm:$0xff]  }
 0x344   :  { %6176 = vst [vmem:[%s10472_s7] sm:$0xff] %v6921_v24  ;;  %v6923_v22 = vpack.c.bf16 %v4934_v59, %v4932_v11  ;;  %v4216_v28 = vpop.f32.mrb[18].mxu1  ;;  %v7167_v62 = vunpack.c.l.bf16 %v7205_v33  ;;  %v7168_v42 = vunpack.c.h.bf16 %v7205_v33 }
 0x345   :  { %v4623_v19 = vadd.f32 %v7163_v7, %v4214_v23  ;;  %v4217_v25 = vadd.f32 %v4216_v28, %v9945_v63  ;;  %v4218_v21 = vpop.f32.mrb[19].mxu1  ;;  %5197 = vmatmul.mubr.bf16.gmra.mrb[76].mxu0 %v4729_v38  ;;  %7317 = vmatmul.mubr.bf16.gmra.mrb[84].mxu1 %v4729_v38 }
 0x346   :  { %6178 = vst [vmem:[%s10472_s7 + $0xc] sm:$0xff] %v6923_v22  ;;  %5206 = vmatprep.mubr.bf16.mxu0 %v10490_v37 }
 0x347   :  { %v4624_v30 = vadd.f32 %v7164_v3, %v4217_v25  ;;  %v4694_v53 = vadd.f32 %v10027_v57, %v4623_v19 }
 0x348   :  { %v4938_v47 = vpop.f32.mrb[228].mxu0 }
 0x349   :  { %v4695_v6 = vadd.f32 %v10027_v57, %v4624_v30  ;;  %v4940_v56 = vpop.f32.mrb[229].mxu0 }
 0x34a   :  { %v6925_v52 = vpack.c.bf16 %v4940_v56, %v4938_v47  ;;  %v4221_v63 = vpop.f32.mrb[20].mxu1  ;;  %v4942_v16 = vpop.f32.mrb[230].mxu0 }
 0x34b   :  { %v4730_v27 = vpack.c.bf16 %v4695_v6, %v4694_v53  ;;  %v4222_v18 = vadd.f32 %v4221_v63, %v9958_v1  ;;  %v4223_v35 = vpop.f32.mrb[21].mxu1  ;;  %v4944_v44 = vpop.f32.mrb[231].mxu0  ;;  %v7206_v1 = vld [vmem:[#allocation5 + $0xf0] sm:$0xff]  }
 0x34c   :  { %6180 = vst [vmem:[%s10472_s7 + $0x18] sm:$0xff] %v6925_v52  ;;  %v6927_v12 = vpack.c.bf16 %v4944_v44, %v4942_v16  ;;  %v4224_v14 = vpop.f32.mrb[22].mxu1  ;;  %v7171_v20 = vunpack.c.l.bf16 %v7206_v1  ;;  %v7172_v50 = vunpack.c.h.bf16 %v7206_v1 }
 0x34d   :  { %v4625_v29 = vadd.f32 %v7167_v62, %v4222_v18  ;;  %v4225_v2 = vadd.f32 %v4224_v14, %v9962_v13  ;;  %v4226_v60 = vpop.f32.mrb[23].mxu1  ;;  %5207 = vmatmul.mubr.bf16.gmra.mrb[80].mxu0 %v4730_v27  ;;  %7320 = vmatprep.mubr.bf16.mxu1 %v4730_v27 }
 0x34e   :  { %6182 = vst [vmem:[%s10472_s7 + $0x24] sm:$0xff] %v6927_v12  ;;  %5216 = vmatprep.mubr.bf16.mxu0 %v10490_v37 }
 0x34f   :  { %v4626_v36 = vadd.f32 %v7168_v42, %v4225_v2  ;;  %v4696_v39 = vadd.f32 %v10027_v57, %v4625_v29 }
 0x350   :  { %v4948_v41 = vpop.f32.mrb[232].mxu0 }
 0x351   :  { %v4697_v48 = vadd.f32 %v10027_v57, %v4626_v36  ;;  %v4950_v5 = vpop.f32.mrb[233].mxu0 }
 0x352   :  { %v6929_v34 = vpack.c.bf16 %v4950_v5, %v4948_v41  ;;  %v4229_v13 = vpop.f32.mrb[24].mxu1  ;;  %v4952_v54 = vpop.f32.mrb[234].mxu0 }
 0x353   :  { %v4731_v17 = vpack.c.bf16 %v4697_v48, %v4696_v39  ;;  %v4230_v45 = vadd.f32 %v4229_v13, %v9972_v46  ;;  %v4231_v8 = vpop.f32.mrb[25].mxu1  ;;  %v4954_v31 = vpop.f32.mrb[235].mxu0  ;;  %v7207_v46 = vld [vmem:[#allocation5 + $0xf8] sm:$0xff]  }
 0x354   :  { %6184 = vst [vmem:[%s10472_s7 + $0x30] sm:$0xff] %v6929_v34  ;;  %v6931_v51 = vpack.c.bf16 %v4954_v31, %v4952_v54  ;;  %v4232_v61 = vpop.f32.mrb[26].mxu1  ;;  %v7175_v24 = vunpack.c.l.bf16 %v7207_v46  ;;  %v7176_v3 = vunpack.c.h.bf16 %v7207_v46 }
 0x355   :  { %v4627_v40 = vadd.f32 %v7171_v20, %v4230_v45  ;;  %v4233_v32 = vadd.f32 %v4232_v61, %v9979_v0  ;;  %v4234_v43 = vpop.f32.mrb[27].mxu1  ;;  %5217 = vmatmul.mubr.bf16.gmra.mrb[84].mxu0 %v4731_v17  ;;  %7321 = vmatmul.mubr.bf16.gmra.mrb[88].mxu1 %v4731_v17 }
 0x356   :  { %6186 = vst [vmem:[%s10472_s7 + $0x3c] sm:$0xff] %v6931_v51  ;;  %5226 = vmatprep.mubr.bf16.mxu0 %v10490_v37 }
 0x357   :  { %v4628_v10 = vadd.f32 %v7172_v50, %v4233_v32  ;;  %v4698_v9 = vadd.f32 %v10027_v57, %v4627_v40 }
 0x358   :  { %v4958_v15 = vpop.f32.mrb[236].mxu0 }
 0x359   :  { %v4699_v49 = vadd.f32 %v10027_v57, %v4628_v10  ;;  %v4960_v7 = vpop.f32.mrb[237].mxu0 }
 0x35a   :  { %v6933_v26 = vpack.c.bf16 %v4960_v7, %v4958_v15  ;;  %v4237_v0 = vpop.f32.mrb[28].mxu1  ;;  %v4962_v11 = vpop.f32.mrb[238].mxu0 }
 0x35b   :  { %v4732_v38 = vpack.c.bf16 %v4699_v49, %v4698_v9  ;;  %v4238_v23 = vadd.f32 %v4237_v0, %v9986_v58  ;;  %v4239_v4 = vpop.f32.mrb[29].mxu1  ;;  %v4964_v59 = vpop.f32.mrb[239].mxu0 }
 0x35c   :  { %6188 = vst [vmem:[%s10472_s7 + $0x48] sm:$0xff] %v6933_v26  ;;  %v6935_v22 = vpack.c.bf16 %v4964_v59, %v4962_v11  ;;  %v4240_v28 = vpop.f32.mrb[30].mxu1 }
 0x35d   :  { %v4629_v19 = vadd.f32 %v7175_v24, %v4238_v23  ;;  %v4241_v25 = vadd.f32 %v4240_v28, %v9990_v55  ;;  %v4242_v21 = vpop.f32.mrb[31].mxu1  ;;  %5227 = vmatmul.mubr.bf16.gmra.mrb[88].mxu0 %v4732_v38  ;;  %7324 = vmatprep.mubr.bf16.mxu1 %v4732_v38 }
 0x35e   :  { %6190 = vst [vmem:[%s10472_s7 + $0x54] sm:$0xff] %v6935_v22  ;;  %5236 = vmatprep.mubr.bf16.mxu0 %v10490_v37 }
 0x35f   :  { %v4630_v58 = vadd.f32 %v7176_v3, %v4241_v25  ;;  %v4700_v30 = vadd.f32 %v10027_v57, %v4629_v19 }
 0x360   :  { %v4968_v33 = vpop.f32.mrb[240].mxu0 }
 0x361   :  { %v4701_v47 = vadd.f32 %v10027_v57, %v4630_v58  ;;  %v4970_v53 = vpop.f32.mrb[241].mxu0 }
 0x362   :  { %v6937_v6 = vpack.c.bf16 %v4970_v53, %v4968_v33  ;;  %v4972_v56 = vpop.f32.mrb[242].mxu0  ;;  %v7266_v62 = vpop.f32.mrb[32].mxu1 }
 0x363   :  { %v4733_v55 = vpack.c.bf16 %v4701_v47, %v4700_v30  ;;  %v6926_v52 = vpack.c.bf16 %v7266_v62, %v7266_v62  ;;  %v4974_v63 = vpop.f32.mrb[243].mxu0  ;;  %v5281_v16 = vpop.f32.mrb[33].mxu1 }
 0x364   :  { %6192 = vst [vmem:[%s10472_s7 + $0x60] sm:$0xff] %v6937_v6  ;;  %v6939_v27 = vpack.c.bf16 %v4974_v63, %v4972_v56  ;;  %v6922_v37 = vpack.c.bf16 %v5281_v16, %v5281_v16  ;;  %v7267_v18 = vpop.f32.mrb[34].mxu1 }
 0x365   :  { %6181 = vst [vmem:[%s10472_s7 + $0x20] sm:$0xf] %v6926_v52  ;;  %v6928_v57 = vpack.c.bf16 %v7267_v18, %v7267_v18  ;;  %5237 = vmatmul.mubr.bf16.gmra.mrb[92].mxu0 %v4733_v55  ;;  %v5284_v35 = vpop.f32.mrb[35].mxu1  ;;  %7325 = vmatmul.mubr.bf16.gmra.mrb[92].mxu1 %v4733_v55 }
 0x366   :  { %6194 = vst [vmem:[%s10472_s7 + $0x6c] sm:$0xff] %v6939_v27  ;;  %6177 = vst [vmem:[%s10472_s7 + $0x8] sm:$0xf] %v6922_v37  ;;  %v6924_v44 = vpack.c.bf16 %v5284_v35, %v5284_v35 }
 0x367   :  { %6183 = vst [vmem:[%s10472_s7 + $0x2c] sm:$0xf] %v6928_v57 }
 0x368   :  { %6179 = vst [vmem:[%s10472_s7 + $0x14] sm:$0xf] %v6924_v44  ;;  %v4978_v42 = vpop.f32.mrb[244].mxu0 }
 0x369   :  { %v4980_v12 = vpop.f32.mrb[245].mxu0 }
 0x36a   :  { %v6941_v14 = vpack.c.bf16 %v4980_v12, %v4978_v42  ;;  %v4982_v29 = vpop.f32.mrb[246].mxu0  ;;  %v7270_v2 = vpop.f32.mrb[36].mxu1 }
 0x36b   :  { %v6934_v60 = vpack.c.bf16 %v7270_v2, %v7270_v2  ;;  %v4984_v1 = vpop.f32.mrb[247].mxu0  ;;  %v5297_v36 = vpop.f32.mrb[37].mxu1 }
 0x36c   :  { %6196 = vst [vmem:[%s10472_s7 + $0x78] sm:$0xff] %v6941_v14  ;;  %v6943_v41 = vpack.c.bf16 %v4984_v1, %v4982_v29  ;;  %v6930_v39 = vpack.c.bf16 %v5297_v36, %v5297_v36  ;;  %v7271_v48 = vpop.f32.mrb[38].mxu1 }
 0x36d   :  { %6189 = vst [vmem:[%s10472_s7 + $0x50] sm:$0xf] %v6934_v60  ;;  %v6936_v5 = vpack.c.bf16 %v7271_v48, %v7271_v48  ;;  %v5300_v20 = vpop.f32.mrb[39].mxu1 }
 0x36e   :  { %6198 = vst [vmem:[%s10472_s7 + $0x84] sm:$0xff] %v6943_v41  ;;  %6185 = vst [vmem:[%s10472_s7 + $0x38] sm:$0xf] %v6930_v39  ;;  %v6932_v34 = vpack.c.bf16 %v5300_v20, %v5300_v20 }
 0x36f   :  { %6191 = vst [vmem:[%s10472_s7 + $0x5c] sm:$0xf] %v6936_v5 }
 0x370   :  { %6187 = vst [vmem:[%s10472_s7 + $0x44] sm:$0xf] %v6932_v34  ;;  %v4988_v13 = vpop.f32.mrb[248].mxu0 }
 0x371   :  { %v4990_v54 = vpop.f32.mrb[249].mxu0 }
 0x372   :  { %v6945_v17 = vpack.c.bf16 %v4990_v54, %v4988_v13  ;;  %v4992_v45 = vpop.f32.mrb[250].mxu0  ;;  %v7274_v8 = vpop.f32.mrb[40].mxu1 }
 0x373   :  { %v6942_v31 = vpack.c.bf16 %v7274_v8, %v7274_v8  ;;  %v4994_v50 = vpop.f32.mrb[251].mxu0  ;;  %v5313_v51 = vpop.f32.mrb[41].mxu1 }
 0x374   :  { %6200 = vst [vmem:[%s10472_s7 + $0x90] sm:$0xff] %v6945_v17  ;;  %v6947_v61 = vpack.c.bf16 %v4994_v50, %v4992_v45  ;;  %v6938_v40 = vpack.c.bf16 %v5313_v51, %v5313_v51  ;;  %v7275_v32 = vpop.f32.mrb[42].mxu1 }
 0x375   :  { %6197 = vst [vmem:[%s10472_s7 + $0x80] sm:$0xf] %v6942_v31  ;;  %v6944_v43 = vpack.c.bf16 %v7275_v32, %v7275_v32  ;;  %v5316_v46 = vpop.f32.mrb[43].mxu1 }
 0x376   :  { %6202 = vst [vmem:[%s10472_s7 + $0x9c] sm:$0xff] %v6947_v61  ;;  %6193 = vst [vmem:[%s10472_s7 + $0x68] sm:$0xf] %v6938_v40  ;;  %v6940_v10 = vpack.c.bf16 %v5316_v46, %v5316_v46 }
 0x377   :  { %6199 = vst [vmem:[%s10472_s7 + $0x8c] sm:$0xf] %v6944_v43 }
 0x378   :  { %6195 = vst [vmem:[%s10472_s7 + $0x74] sm:$0xf] %v6940_v10  ;;  %v4998_v15 = vpop.f32.mrb[252].mxu0 }
 0x379   :  { %v5000_v9 = vpop.f32.mrb[253].mxu0 }
 0x37a   :  { %v6949_v49 = vpack.c.bf16 %v5000_v9, %v4998_v15  ;;  %v5002_v7 = vpop.f32.mrb[254].mxu0  ;;  %v7278_v24 = vpop.f32.mrb[44].mxu1 }
 0x37b   :  { %v6950_v26 = vpack.c.bf16 %v7278_v24, %v7278_v24  ;;  %v5004_v0 = vpop.f32.mrb[255].mxu0  ;;  %v5329_v11 = vpop.f32.mrb[45].mxu1 }
 0x37c   :  { %6204 = vst [vmem:[%s10472_s7 + $0xa8] sm:$0xff] %v6949_v49  ;;  %v6951_v38 = vpack.c.bf16 %v5004_v0, %v5002_v7  ;;  %v6946_v23 = vpack.c.bf16 %v5329_v11, %v5329_v11  ;;  %v7279_v4 = vpop.f32.mrb[46].mxu1 }
 0x37d   :  { %6205 = vst [vmem:[%s10472_s7 + $0xb0] sm:$0xf] %v6950_v26  ;;  %v6952_v59 = vpack.c.bf16 %v7279_v4, %v7279_v4  ;;  %v5332_v3 = vpop.f32.mrb[47].mxu1 }
 0x37e   :  { %6206 = vst [vmem:[%s10472_s7 + $0xb4] sm:$0xff] %v6951_v38  ;;  %6201 = vst [vmem:[%s10472_s7 + $0x98] sm:$0xf] %v6946_v23  ;;  %v6948_v22 = vpack.c.bf16 %v5332_v3, %v5332_v3 }
 0x37f   :  { %6207 = vst [vmem:[%s10472_s7 + $0xbc] sm:$0xf] %v6952_v59 }
 0x380   :  { %6203 = vst [vmem:[%s10472_s7 + $0xa4] sm:$0xf] %v6948_v22  ;;  %v5008_v28 = vpop.f32.mrb[0].mxu0 }
 0x381   :  { %v5010_v19 = vpop.f32.mrb[1].mxu0 }
 0x382   :  { %v6953_v25 = vpack.c.bf16 %v5010_v19, %v5008_v28  ;;  %v5012_v21 = vpop.f32.mrb[2].mxu0 }
 0x383   :  { %v5014_v58 = vpop.f32.mrb[3].mxu0 }
 0x384   :  { %6208 = vst [vmem:[%s10472_s7 + $0xc0] sm:$0xff] %v6953_v25  ;;  %v6955_v33 = vpack.c.bf16 %v5014_v58, %v5012_v21 }
 0x386   :  { %6210 = vst [vmem:[%s10472_s7 + $0xcc] sm:$0xff] %v6955_v33 }
 0x388   :  { %v5018_v30 = vpop.f32.mrb[4].mxu0  ;;  %v7282_v47 = vpop.f32.mrb[48].mxu1 }
 0x389   :  { %v6958_v53 = vpack.c.bf16 %v7282_v47, %v7282_v47  ;;  %v5020_v6 = vpop.f32.mrb[5].mxu0  ;;  %v5345_v56 = vpop.f32.mrb[49].mxu1 }
 0x38a   :  { %v6957_v62 = vpack.c.bf16 %v5020_v6, %v5018_v30  ;;  %v6954_v55 = vpack.c.bf16 %v5345_v56, %v5345_v56  ;;  %v5022_v52 = vpop.f32.mrb[6].mxu0  ;;  %v7283_v63 = vpop.f32.mrb[50].mxu1 }
 0x38b   :  { %6213 = vst [vmem:[%s10472_s7 + $0xe0] sm:$0xf] %v6958_v53  ;;  %v6960_v16 = vpack.c.bf16 %v7283_v63, %v7283_v63  ;;  %v5024_v27 = vpop.f32.mrb[7].mxu0  ;;  %v5348_v37 = vpop.f32.mrb[51].mxu1 }
 0x38c   :  { %6212 = vst [vmem:[%s10472_s7 + $0xd8] sm:$0xff] %v6957_v62  ;;  %6209 = vst [vmem:[%s10472_s7 + $0xc8] sm:$0xf] %v6954_v55  ;;  %v6959_v18 = vpack.c.bf16 %v5024_v27, %v5022_v52  ;;  %v6956_v57 = vpack.c.bf16 %v5348_v37, %v5348_v37 }
 0x38d   :  { %6215 = vst [vmem:[%s10472_s7 + $0xec] sm:$0xf] %v6960_v16 }
 0x38e   :  { %6214 = vst [vmem:[%s10472_s7 + $0xe4] sm:$0xff] %v6959_v18  ;;  %6211 = vst [vmem:[%s10472_s7 + $0xd4] sm:$0xf] %v6956_v57 }
 0x390   :  { %v5028_v35 = vpop.f32.mrb[8].mxu0 }
 0x391   :  { %v5030_v44 = vpop.f32.mrb[9].mxu0 }
 0x392   :  { %v6961_v42 = vpack.c.bf16 %v5030_v44, %v5028_v35  ;;  %v5032_v12 = vpop.f32.mrb[10].mxu0 }
 0x393   :  { %v5034_v14 = vpop.f32.mrb[11].mxu0 }
 0x394   :  { %6216 = vst [vmem:[%s10472_s7 + $0xf0] sm:$0xff] %v6961_v42  ;;  %v6963_v29 = vpack.c.bf16 %v5034_v14, %v5032_v12 }
 0x396   :  { %6218 = vst [vmem:[%s10472_s7 + $0xfc] sm:$0xff] %v6963_v29 }
 0x398   :  { %v5038_v2 = vpop.f32.mrb[12].mxu0  ;;  %v7286_v60 = vpop.f32.mrb[52].mxu1 }
 0x399   :  { %v6966_v1 = vpack.c.bf16 %v7286_v60, %v7286_v60  ;;  %v5040_v36 = vpop.f32.mrb[13].mxu0  ;;  %v5361_v41 = vpop.f32.mrb[53].mxu1 }
 0x39a   :  { %v6965_v39 = vpack.c.bf16 %v5040_v36, %v5038_v2  ;;  %v6962_v48 = vpack.c.bf16 %v5361_v41, %v5361_v41  ;;  %v5042_v5 = vpop.f32.mrb[14].mxu0  ;;  %v7287_v20 = vpop.f32.mrb[54].mxu1 }
 0x39b   :  { %6221 = vst [vmem:[%s10472_s7 + $0x110] sm:$0xf] %v6966_v1  ;;  %v6968_v34 = vpack.c.bf16 %v7287_v20, %v7287_v20  ;;  %v5044_v13 = vpop.f32.mrb[15].mxu0  ;;  %v5364_v54 = vpop.f32.mrb[55].mxu1 }
 0x39c   :  { %6220 = vst [vmem:[%s10472_s7 + $0x108] sm:$0xff] %v6965_v39  ;;  %6217 = vst [vmem:[%s10472_s7 + $0xf8] sm:$0xf] %v6962_v48  ;;  %v6967_v17 = vpack.c.bf16 %v5044_v13, %v5042_v5  ;;  %v6964_v45 = vpack.c.bf16 %v5364_v54, %v5364_v54 }
 0x39d   :  { %6223 = vst [vmem:[%s10472_s7 + $0x11c] sm:$0xf] %v6968_v34 }
 0x39e   :  { %6222 = vst [vmem:[%s10472_s7 + $0x114] sm:$0xff] %v6967_v17  ;;  %6219 = vst [vmem:[%s10472_s7 + $0x104] sm:$0xf] %v6964_v45 }
 0x3a0   :  { %v5048_v8 = vpop.f32.mrb[16].mxu0 }
 0x3a1   :  { %v5050_v31 = vpop.f32.mrb[17].mxu0 }
 0x3a2   :  { %v6969_v50 = vpack.c.bf16 %v5050_v31, %v5048_v8  ;;  %v5052_v51 = vpop.f32.mrb[18].mxu0 }
 0x3a3   :  { %v5054_v61 = vpop.f32.mrb[19].mxu0 }
 0x3a4   :  { %6224 = vst [vmem:[%s10472_s7 + $0x120] sm:$0xff] %v6969_v50  ;;  %v6971_v40 = vpack.c.bf16 %v5054_v61, %v5052_v51 }
 0x3a6   :  { %6226 = vst [vmem:[%s10472_s7 + $0x12c] sm:$0xff] %v6971_v40 }
 0x3a8   :  { %v5058_v32 = vpop.f32.mrb[20].mxu0  ;;  %v7290_v43 = vpop.f32.mrb[56].mxu1 }
 0x3a9   :  { %v6974_v46 = vpack.c.bf16 %v7290_v43, %v7290_v43  ;;  %v5060_v10 = vpop.f32.mrb[21].mxu0  ;;  %v5377_v15 = vpop.f32.mrb[57].mxu1 }
 0x3aa   :  { %v6973_v9 = vpack.c.bf16 %v5060_v10, %v5058_v32  ;;  %v6970_v49 = vpack.c.bf16 %v5377_v15, %v5377_v15  ;;  %v5062_v7 = vpop.f32.mrb[22].mxu0  ;;  %v7291_v24 = vpop.f32.mrb[58].mxu1 }
 0x3ab   :  { %6229 = vst [vmem:[%s10472_s7 + $0x140] sm:$0xf] %v6974_v46  ;;  %v6976_v26 = vpack.c.bf16 %v7291_v24, %v7291_v24  ;;  %v5064_v0 = vpop.f32.mrb[23].mxu0  ;;  %v5380_v11 = vpop.f32.mrb[59].mxu1 }
 0x3ac   :  { %6228 = vst [vmem:[%s10472_s7 + $0x138] sm:$0xff] %v6973_v9  ;;  %6225 = vst [vmem:[%s10472_s7 + $0x128] sm:$0xf] %v6970_v49  ;;  %v6975_v38 = vpack.c.bf16 %v5064_v0, %v5062_v7  ;;  %v6972_v23 = vpack.c.bf16 %v5380_v11, %v5380_v11 }
 0x3ad   :  { %6231 = vst [vmem:[%s10472_s7 + $0x14c] sm:$0xf] %v6976_v26 }
 0x3ae   :  { %6230 = vst [vmem:[%s10472_s7 + $0x144] sm:$0xff] %v6975_v38  ;;  %6227 = vst [vmem:[%s10472_s7 + $0x134] sm:$0xf] %v6972_v23 }
 0x3b0   :  { %v5068_v4 = vpop.f32.mrb[24].mxu0 }
 0x3b1   :  { %v5070_v59 = vpop.f32.mrb[25].mxu0 }
 0x3b2   :  { %v6977_v3 = vpack.c.bf16 %v5070_v59, %v5068_v4  ;;  %v5072_v22 = vpop.f32.mrb[26].mxu0 }
 0x3b3   :  { %v5074_v28 = vpop.f32.mrb[27].mxu0 }
 0x3b4   :  { %6232 = vst [vmem:[%s10472_s7 + $0x150] sm:$0xff] %v6977_v3  ;;  %v6979_v19 = vpack.c.bf16 %v5074_v28, %v5072_v22 }
 0x3b6   :  { %6234 = vst [vmem:[%s10472_s7 + $0x15c] sm:$0xff] %v6979_v19 }
 0x3b8   :  { %v5078_v25 = vpop.f32.mrb[28].mxu0  ;;  %v7294_v21 = vpop.f32.mrb[60].mxu1 }
 0x3b9   :  { %v6982_v58 = vpack.c.bf16 %v7294_v21, %v7294_v21  ;;  %v5080_v33 = vpop.f32.mrb[29].mxu0  ;;  %v5393_v30 = vpop.f32.mrb[61].mxu1 }
 0x3ba   :  { %v6981_v47 = vpack.c.bf16 %v5080_v33, %v5078_v25  ;;  %v6978_v53 = vpack.c.bf16 %v5393_v30, %v5393_v30  ;;  %v5082_v6 = vpop.f32.mrb[30].mxu0  ;;  %v7295_v56 = vpop.f32.mrb[62].mxu1 }
 0x3bb   :  { %6237 = vst [vmem:[%s10472_s7 + $0x170] sm:$0xf] %v6982_v58  ;;  %v6984_v62 = vpack.c.bf16 %v7295_v56, %v7295_v56  ;;  %v5084_v55 = vpop.f32.mrb[31].mxu0  ;;  %v5396_v52 = vpop.f32.mrb[63].mxu1 }
 0x3bc   :  { %6236 = vst [vmem:[%s10472_s7 + $0x168] sm:$0xff] %v6981_v47  ;;  %6233 = vst [vmem:[%s10472_s7 + $0x158] sm:$0xf] %v6978_v53  ;;  %v6983_v63 = vpack.c.bf16 %v5084_v55, %v5082_v6  ;;  %v6980_v16 = vpack.c.bf16 %v5396_v52, %v5396_v52 }
 0x3bd   :  { %6239 = vst [vmem:[%s10472_s7 + $0x17c] sm:$0xf] %v6984_v62 }
 0x3be   :  { %6238 = vst [vmem:[%s10472_s7 + $0x174] sm:$0xff] %v6983_v63  ;;  %6235 = vst [vmem:[%s10472_s7 + $0x164] sm:$0xf] %v6980_v16 }
 0x3c0   :  { %v5088_v27 = vpop.f32.mrb[32].mxu0 }
 0x3c1   :  { %v5090_v37 = vpop.f32.mrb[33].mxu0 }
 0x3c2   :  { %v6985_v18 = vpack.c.bf16 %v5090_v37, %v5088_v27  ;;  %v5092_v57 = vpop.f32.mrb[34].mxu0 }
 0x3c3   :  { %v5094_v35 = vpop.f32.mrb[35].mxu0 }
 0x3c4   :  { %6240 = vst [vmem:[%s10472_s7 + $0x180] sm:$0xff] %v6985_v18  ;;  %v6987_v44 = vpack.c.bf16 %v5094_v35, %v5092_v57 }
 0x3c6   :  { %6242 = vst [vmem:[%s10472_s7 + $0x18c] sm:$0xff] %v6987_v44 }
 0x3c8   :  { %v5098_v42 = vpop.f32.mrb[36].mxu0  ;;  %v7298_v12 = vpop.f32.mrb[64].mxu1 }
 0x3c9   :  { %v6990_v14 = vpack.c.bf16 %v7298_v12, %v7298_v12  ;;  %v5100_v29 = vpop.f32.mrb[37].mxu0  ;;  %v5409_v2 = vpop.f32.mrb[65].mxu1 }
 0x3ca   :  { %v6989_v60 = vpack.c.bf16 %v5100_v29, %v5098_v42  ;;  %v6986_v1 = vpack.c.bf16 %v5409_v2, %v5409_v2  ;;  %v5102_v36 = vpop.f32.mrb[38].mxu0  ;;  %v7299_v41 = vpop.f32.mrb[66].mxu1 }
 0x3cb   :  { %6245 = vst [vmem:[%s10472_s7 + $0x1a0] sm:$0xf] %v6990_v14  ;;  %v6992_v39 = vpack.c.bf16 %v7299_v41, %v7299_v41  ;;  %v5104_v48 = vpop.f32.mrb[39].mxu0  ;;  %v5412_v5 = vpop.f32.mrb[67].mxu1 }
 0x3cc   :  { %6244 = vst [vmem:[%s10472_s7 + $0x198] sm:$0xff] %v6989_v60  ;;  %6241 = vst [vmem:[%s10472_s7 + $0x188] sm:$0xf] %v6986_v1  ;;  %v6991_v20 = vpack.c.bf16 %v5104_v48, %v5102_v36  ;;  %v6988_v34 = vpack.c.bf16 %v5412_v5, %v5412_v5 }
 0x3cd   :  { %6247 = vst [vmem:[%s10472_s7 + $0x1ac] sm:$0xf] %v6992_v39 }
 0x3ce   :  { %6246 = vst [vmem:[%s10472_s7 + $0x1a4] sm:$0xff] %v6991_v20  ;;  %6243 = vst [vmem:[%s10472_s7 + $0x194] sm:$0xf] %v6988_v34 }
 0x3d0   :  { %v5108_v13 = vpop.f32.mrb[40].mxu0 }
 0x3d1   :  { %v5110_v54 = vpop.f32.mrb[41].mxu0 }
 0x3d2   :  { %v6993_v17 = vpack.c.bf16 %v5110_v54, %v5108_v13  ;;  %v5112_v45 = vpop.f32.mrb[42].mxu0 }
 0x3d3   :  { %v5114_v8 = vpop.f32.mrb[43].mxu0 }
 0x3d4   :  { %6248 = vst [vmem:[%s10472_s7 + $0x1b0] sm:$0xff] %v6993_v17  ;;  %v6995_v31 = vpack.c.bf16 %v5114_v8, %v5112_v45 }
 0x3d6   :  { %6250 = vst [vmem:[%s10472_s7 + $0x1bc] sm:$0xff] %v6995_v31 }
 0x3d8   :  { %v5118_v50 = vpop.f32.mrb[44].mxu0  ;;  %v7302_v51 = vpop.f32.mrb[68].mxu1 }
 0x3d9   :  { %v6998_v61 = vpack.c.bf16 %v7302_v51, %v7302_v51  ;;  %v5120_v40 = vpop.f32.mrb[45].mxu0  ;;  %v5425_v32 = vpop.f32.mrb[69].mxu1 }
 0x3da   :  { %v6997_v43 = vpack.c.bf16 %v5120_v40, %v5118_v50  ;;  %v6994_v46 = vpack.c.bf16 %v5425_v32, %v5425_v32  ;;  %v5122_v10 = vpop.f32.mrb[46].mxu0  ;;  %v7303_v15 = vpop.f32.mrb[70].mxu1 }
 0x3db   :  { %6253 = vst [vmem:[%s10472_s7 + $0x1d0] sm:$0xf] %v6998_v61  ;;  %v7000_v9 = vpack.c.bf16 %v7303_v15, %v7303_v15  ;;  %v5124_v49 = vpop.f32.mrb[47].mxu0  ;;  %v5428_v7 = vpop.f32.mrb[71].mxu1 }
 0x3dc   :  { %6252 = vst [vmem:[%s10472_s7 + $0x1c8] sm:$0xff] %v6997_v43  ;;  %6249 = vst [vmem:[%s10472_s7 + $0x1b8] sm:$0xf] %v6994_v46  ;;  %v6999_v24 = vpack.c.bf16 %v5124_v49, %v5122_v10  ;;  %v6996_v26 = vpack.c.bf16 %v5428_v7, %v5428_v7 }
 0x3dd   :  { %6255 = vst [vmem:[%s10472_s7 + $0x1dc] sm:$0xf] %v7000_v9 }
 0x3de   :  { %6254 = vst [vmem:[%s10472_s7 + $0x1d4] sm:$0xff] %v6999_v24  ;;  %6251 = vst [vmem:[%s10472_s7 + $0x1c4] sm:$0xf] %v6996_v26 }
 0x3e0   :  { %v5128_v0 = vpop.f32.mrb[48].mxu0 }
 0x3e1   :  { %v5130_v11 = vpop.f32.mrb[49].mxu0 }
 0x3e2   :  { %v7001_v38 = vpack.c.bf16 %v5130_v11, %v5128_v0  ;;  %v5132_v23 = vpop.f32.mrb[50].mxu0 }
 0x3e3   :  { %v5134_v4 = vpop.f32.mrb[51].mxu0 }
 0x3e4   :  { %6256 = vst [vmem:[%s10472_s7 + $0x1e0] sm:$0xff] %v7001_v38  ;;  %v7003_v59 = vpack.c.bf16 %v5134_v4, %v5132_v23 }
 0x3e6   :  { %6258 = vst [vmem:[%s10472_s7 + $0x1ec] sm:$0xff] %v7003_v59 }
 0x3e8   :  { %v5138_v3 = vpop.f32.mrb[52].mxu0  ;;  %v7306_v22 = vpop.f32.mrb[72].mxu1 }
 0x3e9   :  { %v7006_v28 = vpack.c.bf16 %v7306_v22, %v7306_v22  ;;  %v5140_v19 = vpop.f32.mrb[53].mxu0  ;;  %v5441_v25 = vpop.f32.mrb[73].mxu1 }
 0x3ea   :  { %v7005_v21 = vpack.c.bf16 %v5140_v19, %v5138_v3  ;;  %v7002_v58 = vpack.c.bf16 %v5441_v25, %v5441_v25  ;;  %v5142_v33 = vpop.f32.mrb[54].mxu0  ;;  %v7307_v30 = vpop.f32.mrb[74].mxu1 }
 0x3eb   :  { %6261 = vst [vmem:[%s10472_s7 + $0x200] sm:$0xf] %v7006_v28  ;;  %v7008_v47 = vpack.c.bf16 %v7307_v30, %v7307_v30  ;;  %v5144_v53 = vpop.f32.mrb[55].mxu0  ;;  %v5444_v6 = vpop.f32.mrb[75].mxu1 }
 0x3ec   :  { %6260 = vst [vmem:[%s10472_s7 + $0x1f8] sm:$0xff] %v7005_v21  ;;  %6257 = vst [vmem:[%s10472_s7 + $0x1e8] sm:$0xf] %v7002_v58  ;;  %v7007_v56 = vpack.c.bf16 %v5144_v53, %v5142_v33  ;;  %v7004_v62 = vpack.c.bf16 %v5444_v6, %v5444_v6 }
 0x3ed   :  { %6263 = vst [vmem:[%s10472_s7 + $0x20c] sm:$0xf] %v7008_v47 }
 0x3ee   :  { %6262 = vst [vmem:[%s10472_s7 + $0x204] sm:$0xff] %v7007_v56  ;;  %6259 = vst [vmem:[%s10472_s7 + $0x1f4] sm:$0xf] %v7004_v62 }
 0x3f0   :  { %v5148_v55 = vpop.f32.mrb[56].mxu0 }
 0x3f1   :  { %v5150_v52 = vpop.f32.mrb[57].mxu0 }
 0x3f2   :  { %v7009_v63 = vpack.c.bf16 %v5150_v52, %v5148_v55  ;;  %v5152_v16 = vpop.f32.mrb[58].mxu0 }
 0x3f3   :  { %v5154_v27 = vpop.f32.mrb[59].mxu0 }
 0x3f4   :  { %6264 = vst [vmem:[%s10472_s7 + $0x210] sm:$0xff] %v7009_v63  ;;  %v7011_v37 = vpack.c.bf16 %v5154_v27, %v5152_v16 }
 0x3f6   :  { %6266 = vst [vmem:[%s10472_s7 + $0x21c] sm:$0xff] %v7011_v37 }
 0x3f8   :  { %v5158_v18 = vpop.f32.mrb[60].mxu0  ;;  %v7310_v57 = vpop.f32.mrb[76].mxu1 }
 0x3f9   :  { %v7014_v35 = vpack.c.bf16 %v7310_v57, %v7310_v57  ;;  %v5160_v44 = vpop.f32.mrb[61].mxu0  ;;  %v5457_v42 = vpop.f32.mrb[77].mxu1 }
 0x3fa   :  { %v7013_v12 = vpack.c.bf16 %v5160_v44, %v5158_v18  ;;  %v7010_v14 = vpack.c.bf16 %v5457_v42, %v5457_v42  ;;  %v5162_v29 = vpop.f32.mrb[62].mxu0  ;;  %v7311_v2 = vpop.f32.mrb[78].mxu1 }
 0x3fb   :  { %6269 = vst [vmem:[%s10472_s7 + $0x230] sm:$0xf] %v7014_v35  ;;  %v7016_v60 = vpack.c.bf16 %v7311_v2, %v7311_v2  ;;  %v5164_v1 = vpop.f32.mrb[63].mxu0  ;;  %v5460_v36 = vpop.f32.mrb[79].mxu1 }
 0x3fc   :  { %6268 = vst [vmem:[%s10472_s7 + $0x228] sm:$0xff] %v7013_v12  ;;  %6265 = vst [vmem:[%s10472_s7 + $0x218] sm:$0xf] %v7010_v14  ;;  %v7015_v41 = vpack.c.bf16 %v5164_v1, %v5162_v29  ;;  %v7012_v39 = vpack.c.bf16 %v5460_v36, %v5460_v36 }
 0x3fd   :  { %6271 = vst [vmem:[%s10472_s7 + $0x23c] sm:$0xf] %v7016_v60 }
 0x3fe   :  { %6270 = vst [vmem:[%s10472_s7 + $0x234] sm:$0xff] %v7015_v41  ;;  %6267 = vst [vmem:[%s10472_s7 + $0x224] sm:$0xf] %v7012_v39 }
 0x400   :  { %v5168_v48 = vpop.f32.mrb[64].mxu0 }
 0x401   :  { %v5170_v5 = vpop.f32.mrb[65].mxu0 }
 0x402   :  { %v7017_v20 = vpack.c.bf16 %v5170_v5, %v5168_v48  ;;  %v5172_v34 = vpop.f32.mrb[66].mxu0 }
 0x403   :  { %v5174_v13 = vpop.f32.mrb[67].mxu0 }
 0x404   :  { %6272 = vst [vmem:[%s10472_s7 + $0x240] sm:$0xff] %v7017_v20  ;;  %v7019_v54 = vpack.c.bf16 %v5174_v13, %v5172_v34 }
 0x406   :  { %6274 = vst [vmem:[%s10472_s7 + $0x24c] sm:$0xff] %v7019_v54 }
 0x408   :  { %v5178_v17 = vpop.f32.mrb[68].mxu0  ;;  %v7314_v45 = vpop.f32.mrb[80].mxu1 }
 0x409   :  { %v7022_v8 = vpack.c.bf16 %v7314_v45, %v7314_v45  ;;  %v5180_v31 = vpop.f32.mrb[69].mxu0  ;;  %v5473_v50 = vpop.f32.mrb[81].mxu1 }
 0x40a   :  { %v7021_v51 = vpack.c.bf16 %v5180_v31, %v5178_v17  ;;  %v7018_v61 = vpack.c.bf16 %v5473_v50, %v5473_v50  ;;  %v5182_v40 = vpop.f32.mrb[70].mxu0  ;;  %v7315_v32 = vpop.f32.mrb[82].mxu1 }
 0x40b   :  { %6277 = vst [vmem:[%s10472_s7 + $0x260] sm:$0xf] %v7022_v8  ;;  %v7024_v43 = vpack.c.bf16 %v7315_v32, %v7315_v32  ;;  %v5184_v46 = vpop.f32.mrb[71].mxu0  ;;  %v5476_v10 = vpop.f32.mrb[83].mxu1 }
 0x40c   :  { %6276 = vst [vmem:[%s10472_s7 + $0x258] sm:$0xff] %v7021_v51  ;;  %6273 = vst [vmem:[%s10472_s7 + $0x248] sm:$0xf] %v7018_v61  ;;  %v7023_v15 = vpack.c.bf16 %v5184_v46, %v5182_v40  ;;  %v7020_v9 = vpack.c.bf16 %v5476_v10, %v5476_v10 }
 0x40d   :  { %6279 = vst [vmem:[%s10472_s7 + $0x26c] sm:$0xf] %v7024_v43 }
 0x40e   :  { %6278 = vst [vmem:[%s10472_s7 + $0x264] sm:$0xff] %v7023_v15  ;;  %6275 = vst [vmem:[%s10472_s7 + $0x254] sm:$0xf] %v7020_v9 }
 0x410   :  { %v5188_v49 = vpop.f32.mrb[72].mxu0 }
 0x411   :  { %v5190_v7 = vpop.f32.mrb[73].mxu0 }
 0x412   :  { %v7025_v24 = vpack.c.bf16 %v5190_v7, %v5188_v49  ;;  %v5192_v26 = vpop.f32.mrb[74].mxu0 }
 0x413   :  { %v5194_v0 = vpop.f32.mrb[75].mxu0 }
 0x414   :  { %6280 = vst [vmem:[%s10472_s7 + $0x270] sm:$0xff] %v7025_v24  ;;  %v7027_v11 = vpack.c.bf16 %v5194_v0, %v5192_v26 }
 0x416   :  { %6282 = vst [vmem:[%s10472_s7 + $0x27c] sm:$0xff] %v7027_v11 }
 0x418   :  { %v5198_v38 = vpop.f32.mrb[76].mxu0  ;;  %v7318_v23 = vpop.f32.mrb[84].mxu1 }
 0x419   :  { %v7030_v4 = vpack.c.bf16 %v7318_v23, %v7318_v23  ;;  %v5200_v59 = vpop.f32.mrb[77].mxu0  ;;  %v5489_v3 = vpop.f32.mrb[85].mxu1 }
 0x41a   :  { %v7029_v22 = vpack.c.bf16 %v5200_v59, %v5198_v38  ;;  %v7026_v28 = vpack.c.bf16 %v5489_v3, %v5489_v3  ;;  %v5202_v19 = vpop.f32.mrb[78].mxu0  ;;  %v7319_v25 = vpop.f32.mrb[86].mxu1 }
 0x41b   :  { %6285 = vst [vmem:[%s10472_s7 + $0x290] sm:$0xf] %v7030_v4  ;;  %v7032_v21 = vpack.c.bf16 %v7319_v25, %v7319_v25  ;;  %v5204_v58 = vpop.f32.mrb[79].mxu0  ;;  %v5492_v33 = vpop.f32.mrb[87].mxu1 }
 0x41c   :  { %6284 = vst [vmem:[%s10472_s7 + $0x288] sm:$0xff] %v7029_v22  ;;  %6281 = vst [vmem:[%s10472_s7 + $0x278] sm:$0xf] %v7026_v28  ;;  %v7031_v30 = vpack.c.bf16 %v5204_v58, %v5202_v19  ;;  %v7028_v47 = vpack.c.bf16 %v5492_v33, %v5492_v33 }
 0x41d   :  { %6287 = vst [vmem:[%s10472_s7 + $0x29c] sm:$0xf] %v7032_v21 }
 0x41e   :  { %6286 = vst [vmem:[%s10472_s7 + $0x294] sm:$0xff] %v7031_v30  ;;  %6283 = vst [vmem:[%s10472_s7 + $0x284] sm:$0xf] %v7028_v47 }
 0x420   :  { %v5208_v53 = vpop.f32.mrb[80].mxu0 }
 0x421   :  { %v5210_v6 = vpop.f32.mrb[81].mxu0 }
 0x422   :  { %v7033_v56 = vpack.c.bf16 %v5210_v6, %v5208_v53  ;;  %v5212_v62 = vpop.f32.mrb[82].mxu0 }
 0x423   :  { %v5214_v55 = vpop.f32.mrb[83].mxu0 }
 0x424   :  { %6288 = vst [vmem:[%s10472_s7 + $0x2a0] sm:$0xff] %v7033_v56  ;;  %v7035_v52 = vpack.c.bf16 %v5214_v55, %v5212_v62 }
 0x426   :  { %6290 = vst [vmem:[%s10472_s7 + $0x2ac] sm:$0xff] %v7035_v52 }
 0x428   :  { %v5218_v63 = vpop.f32.mrb[84].mxu0  ;;  %v7322_v16 = vpop.f32.mrb[88].mxu1 }
 0x429   :  { %v7038_v27 = vpack.c.bf16 %v7322_v16, %v7322_v16  ;;  %v5220_v37 = vpop.f32.mrb[85].mxu0  ;;  %v5505_v18 = vpop.f32.mrb[89].mxu1 }
 0x42a   :  { %v7037_v57 = vpack.c.bf16 %v5220_v37, %v5218_v63  ;;  %v7034_v35 = vpack.c.bf16 %v5505_v18, %v5505_v18  ;;  %v5222_v44 = vpop.f32.mrb[86].mxu0  ;;  %v7323_v42 = vpop.f32.mrb[90].mxu1 }
 0x42b   :  { %6293 = vst [vmem:[%s10472_s7 + $0x2c0] sm:$0xf] %v7038_v27  ;;  %v7040_v12 = vpack.c.bf16 %v7323_v42, %v7323_v42  ;;  %v5224_v14 = vpop.f32.mrb[87].mxu0  ;;  %v5508_v29 = vpop.f32.mrb[91].mxu1 }
 0x42c   :  { %6292 = vst [vmem:[%s10472_s7 + $0x2b8] sm:$0xff] %v7037_v57  ;;  %6289 = vst [vmem:[%s10472_s7 + $0x2a8] sm:$0xf] %v7034_v35  ;;  %v7039_v2 = vpack.c.bf16 %v5224_v14, %v5222_v44  ;;  %v7036_v60 = vpack.c.bf16 %v5508_v29, %v5508_v29 }
 0x42d   :  { %6295 = vst [vmem:[%s10472_s7 + $0x2cc] sm:$0xf] %v7040_v12 }
 0x42e   :  { %6294 = vst [vmem:[%s10472_s7 + $0x2c4] sm:$0xff] %v7039_v2  ;;  %6291 = vst [vmem:[%s10472_s7 + $0x2b4] sm:$0xf] %v7036_v60 }
 0x430   :  { %v5228_v1 = vpop.f32.mrb[88].mxu0 }
 0x431   :  { %v5230_v36 = vpop.f32.mrb[89].mxu0 }
 0x432   :  { %v7041_v41 = vpack.c.bf16 %v5230_v36, %v5228_v1  ;;  %v5232_v39 = vpop.f32.mrb[90].mxu0 }
 0x433   :  { %v5234_v48 = vpop.f32.mrb[91].mxu0 }
 0x434   :  { %6296 = vst [vmem:[%s10472_s7 + $0x2d0] sm:$0xff] %v7041_v41  ;;  %v7043_v5 = vpack.c.bf16 %v5234_v48, %v5232_v39 }
 0x436   :  { %6298 = vst [vmem:[%s10472_s7 + $0x2dc] sm:$0xff] %v7043_v5 }
 0x438   :  { %v5238_v20 = vpop.f32.mrb[92].mxu0  ;;  %v7326_v34 = vpop.f32.mrb[92].mxu1 }
 0x439   :  { %v7046_v13 = vpack.c.bf16 %v7326_v34, %v7326_v34  ;;  %v5240_v54 = vpop.f32.mrb[93].mxu0  ;;  %v5521_v17 = vpop.f32.mrb[93].mxu1 }
 0x43a   :  { %v7045_v45 = vpack.c.bf16 %v5240_v54, %v5238_v20  ;;  %v7042_v8 = vpack.c.bf16 %v5521_v17, %v5521_v17  ;;  %v5242_v31 = vpop.f32.mrb[94].mxu0  ;;  %v7327_v50 = vpop.f32.mrb[94].mxu1 }
 0x43b   :  { %6301 = vst [vmem:[%s10472_s7 + $0x2f0] sm:$0xf] %v7046_v13  ;;  %v7048_v51 = vpack.c.bf16 %v7327_v50, %v7327_v50  ;;  %v5244_v61 = vpop.f32.mrb[95].mxu0  ;;  %v5524_v40 = vpop.f32.mrb[95].mxu1 }
 0x43c   :  { %6300 = vst [vmem:[%s10472_s7 + $0x2e8] sm:$0xff] %v7045_v45  ;;  %6297 = vst [vmem:[%s10472_s7 + $0x2d8] sm:$0xf] %v7042_v8  ;;  %v7047_v32 = vpack.c.bf16 %v5244_v61, %v5242_v31  ;;  %v7044_v43 = vpack.c.bf16 %v5524_v40, %v5524_v40 }
 0x43d   :  { %6303 = vst [vmem:[%s10472_s7 + $0x2fc] sm:$0xf] %v7048_v51 }
 0x43e   :  { %6302 = vst [vmem:[%s10472_s7 + $0x2f4] sm:$0xff] %v7047_v32  ;;  %6299 = vst [vmem:[%s10472_s7 + $0x2e4] sm:$0xf] %v7044_v43 }

</bundles_post_ra>
